<compile_context>
chip_gen: v7x
topology: tpu7x:2x2x1
jax: 0.10.0
libtpu: 0.0.40
codegen_flags: <defaults>
</compile_context>

<pallas_src>
import jax
import jax.numpy as jnp
from jax.experimental import pallas as pl
from jax.experimental.pallas import tpu as pltpu

# ------------------------- synthetic cfg -------------------------
NODE_FEATURE_DIM = 64
EDGE_FEATURE_DIM = 64
GNN_HIDDEN_DIM = 64
GNN_NUM_LAYERS = 2
NODE_FROM_GNN = True
MULTI_REL = False
NUM_OBJ_CLS = 20
NUM_REL_CLS = 8

NUM_POINTS = 128   # points per object / relation point cloud
OBJ_PT_DIM = 3     # xyz
REL_PT_DIM = 4     # xyz + mask channel


# ------------------------- helpers -------------------------
def _round_up(x, m):
    return ((x + m - 1) // m) * m


def _full_spec(shape):
    """BlockSpec covering the full array (grid=(1,))."""
    nd = len(shape)
    return pl.BlockSpec(shape, lambda i, nd=nd: (0,) * nd)


def _init_linear(key, cin, cout):
    kw, kb = jax.random.split(key)
    w = jax.random.normal(kw, (cin, cout), dtype=jnp.float32) * (1.0 / jnp.sqrt(float(cin)))
    b = jax.random.normal(kb, (1, cout), dtype=jnp.float32) * 0.02
    return w, b


# ------------------------- in-kernel math helpers -------------------------
def _bf16_dot(a, w):
    """MXU matmul with bf16 operands, f32 accumulation."""
    return jnp.dot(a.astype(jnp.bfloat16), w.astype(jnp.bfloat16),
                   preferred_element_type=jnp.float32)


def _pointnet_mlp_pool(x, w1, b1, w2, b2, w3, b3, n_items):
    """Per-point MLP applied to all items at once (x: (n_items*P, C_in)),
    then max-pool over the P points of each item -> (n_items, D_out)."""
    h = jnp.maximum(_bf16_dot(x, w1) + b1, 0.0)
    h = jnp.maximum(_bf16_dot(h, w2) + b2, 0.0)
    h = _bf16_dot(h, w3) + b3
    p = x.shape[0] // n_items
    d = h.shape[-1]
    return jnp.max(h.reshape(n_items, p, d), axis=1)


def _cls_head(x, w1, b1, w2, b2, w3, b3):
    """fc -> relu -> fc -> relu -> fc (PointNetCls / PointNetRelCls, eval mode)."""
    h = jnp.maximum(_bf16_dot(x, w1) + b1, 0.0)
    h = jnp.maximum(_bf16_dot(h, w2) + b2, 0.0)
    return _bf16_dot(h, w3) + b3


# ------------------------- Pallas kernels -------------------------
def _sgpn_fused_kernel(
    # data
    obj_x_ref, rel_x_ref, gt_ref, gs_ref, agg_ref,
    # obj encoder
    ow1, ob1, ow2, ob2, ow3, ob3,
    # rel encoder
    rw1, rb1, rw2, rb2, rw3, rb3,
    # GNN layers, stacked along a leading layer axis, weight-split for lane alignment
    g11i, g11e, g11j, gb11,
    g12i, g12e, g12j, gb12i, gb12e, gb12j,
    g21, gb21, g22, gb22,
    # obj classifier head (output columns pre-padded to a lane multiple)
    ohw1, ohb1, ohw2, ohb2, ohw3, ohb3,
    # rel classifier head (output columns pre-padded to a lane multiple)
    rhw1, rhb1, rhw2, rhb2, rhw3, rhb3,
    # outputs (sublane/lane padded)
    obj_cls_ref, rel_cls_ref,
):
    n_obj = obj_cls_ref.shape[0]
    n_edge = rel_cls_ref.shape[0]

    # ---- PointNet encoders (batched over all points) ----
    obj_feat = _pointnet_mlp_pool(obj_x_ref[...], ow1[...], ob1[...], ow2[...],
                                  ob2[...], ow3[...], ob3[...], n_obj)      # (N, Dn)
    rel_feat = _pointnet_mlp_pool(rel_x_ref[...], rw1[...], rb1[...], rw2[...],
                                  rb2[...], rw3[...], rb3[...], n_edge)     # (E, De)

    # ---- TripletGCN layers ----
    gt = gt_ref[...]    # (E, N) one-hot of target nodes  (PyG x_i); zero rows for pad edges
    gs = gs_ref[...]    # (E, N) one-hot of source nodes  (PyG x_j)
    agg = agg_ref[...]  # (N, E) mean-scatter matrix to target nodes; zero cols for pad edges

    x, e = obj_feat, rel_feat
    num_layers = g11i.shape[0]
    for l in range(num_layers):  # static unroll (small, fixed layer count)
        x_i = jnp.dot(gt, x, preferred_element_type=jnp.float32)   # (E, Dn) exact gather
        x_j = jnp.dot(gs, x, preferred_element_type=jnp.float32)   # (E, Dn) exact gather
        # nn1 layer 1: weight-split matmuls == concat([x_i, e, x_j]) @ w11
        h = jnp.maximum(
            _bf16_dot(x_i, g11i[l]) + _bf16_dot(e, g11e[l]) + _bf16_dot(x_j, g11j[l])
            + gb11[l], 0.0)                                         # (E, H)
        # nn1 layer 2: output-column-split matmuls == relu(h @ w12 + b12) then split
        new_xi = jnp.maximum(_bf16_dot(h, g12i[l]) + gb12i[l], 0.0)
        new_e = jnp.maximum(_bf16_dot(h, g12e[l]) + gb12e[l], 0.0)
        new_xj = jnp.maximum(_bf16_dot(h, g12j[l]) + gb12j[l], 0.0)
        msg = new_xi + new_xj                                       # (E, H)
        aggr = jnp.dot(agg, msg, preferred_element_type=jnp.float32)  # (N, H) mean scatter
        h2 = jnp.maximum(_bf16_dot(aggr, g21[l]) + gb21[l], 0.0)
        dx = _bf16_dot(h2, g22[l]) + gb22[l]
        x = x + dx          # residual node update
        e = new_e           # edge feature replaced
        if l < num_layers - 1:
            x = jnp.maximum(x, 0.0)
            e = jnp.maximum(e, 0.0)

    # ---- classifier heads (full-tile, lane-dense output stores) ----
    obj_in = x if NODE_FROM_GNN else obj_feat
    obj_cls_ref[...] = _cls_head(obj_in, ohw1[...], ohb1[...], ohw2[...],
                                 ohb2[...], ohw3[...], ohb3[...])
    rel_cls_ref[...] = _cls_head(e, rhw1[...], rhb1[...], rhw2[...],
                                 rhb2[...], rhw3[...], rhb3[...])


def _encode_classify_kernel(x_ref, w1, b1, w2, b2, w3, b3,
                            hw1, hb1, hw2, hb2, hw3, hb3, o_ref):
    """Fallback path (no edges / no GNN): PointNet encoder + classifier head, fused."""
    n_items = o_ref.shape[0]
    feat = _pointnet_mlp_pool(x_ref[...], w1[...], b1[...], w2[...], b2[...],
                              w3[...], b3[...], n_items)
    o_ref[...] = _cls_head(feat, hw1[...], hb1[...], hw2[...], hb2[...],
                           hw3[...], hb3[...])


# ------------------------- wrappers -------------------------
_COMPILER_PARAMS = pltpu.CompilerParams(dimension_semantics=("arbitrary",))


def _bf(w):
    return w.astype(jnp.bfloat16)


def _enc_args(p):
    (w1, b1), (w2, b2), (w3, b3) = p
    return (_bf(w1), b1, _bf(w2), b2, _bf(w3), b3)


def _pad_head(p, out_pad):
    """Zero-pad the last fc layer's output columns to a lane multiple (exact: padded
    logits are never read after the wrapper-side slice)."""
    (w1, b1), (w2, b2), (w3, b3) = p
    k = w3.shape[1]
    if k < out_pad:
        w3 = jnp.pad(w3, ((0, 0), (0, out_pad - k)))
        b3 = jnp.pad(b3, ((0, 0), (0, out_pad - k)))
    return ((w1, b1), (w2, b2), (w3, b3))


def _fused_forward(params, obj_points, rel_points, edges):
    """Full forward (edges present, GNN enabled) as a single pallas_call."""
    n_obj = obj_points.shape[0]
    n_edge = rel_points.shape[0]
    # Sublane-pad counts so all row dims inside the kernel are multiples of 8 and the
    # output stores are full tiles.  Padded rows are sliced off afterwards.
    n_obj_p = _round_up(n_obj, 8)
    n_edge_p = _round_up(n_edge, 8)
    k_obj_p = _round_up(NUM_OBJ_CLS, 128)
    k_rel_p = _round_up(NUM_REL_CLS, 128)

    if n_obj_p > n_obj:
        obj_points = jnp.pad(obj_points, ((0, n_obj_p - n_obj), (0, 0), (0, 0)))
    if n_edge_p > n_edge:
        rel_points = jnp.pad(rel_points, ((0, n_edge_p - n_edge), (0, 0), (0, 0)))

    # Flatten point clouds so the per-point MLP is one batched matmul per layer.
    obj_x = obj_points.reshape(n_obj_p * NUM_POINTS, obj_points.shape[-1])
    rel_x = rel_points.reshape(n_edge_p * NUM_POINTS, rel_points.shape[-1])

    # Edge gather / mean-scatter matrices, built ONCE (edges don't change across layers).
    # Padded edge slots get index -1 -> all-zero one-hot rows / scatter columns.
    src, tgt = edges[0], edges[1]
    pad_idx = -jnp.ones((n_edge_p - n_edge,), dtype=src.dtype)
    src_p = jnp.concatenate([src, pad_idx])
    tgt_p = jnp.concatenate([tgt, pad_idx])
    oh_t = jax.nn.one_hot(tgt_p, n_obj_p, dtype=jnp.float32)   # (E, N) target gather (x_i)
    oh_s = jax.nn.one_hot(src_p, n_obj_p, dtype=jnp.float32)   # (E, N) source gather (x_j)
    deg = jnp.maximum(jnp.sum(oh_t, axis=0), 1.0)              # (N,)
    agg = (oh_t / deg[None, :]).T                              # (N, E) mean-scatter matrix

    obj_enc = _enc_args(params['obj_encoder'])
    rel_enc = _enc_args(params['rel_encoder'])
    obj_head = _enc_args(_pad_head(params['obj_predictor'], k_obj_p))
    rel_head = _enc_args(_pad_head(params['rel_predictor'], k_rel_p))

    # Split GNN weights (lane-aligned sub-blocks) and stack over layers.
    Dn, De, H = NODE_FEATURE_DIM, EDGE_FEATURE_DIM, GNN_HIDDEN_DIM
    cols = {k: [] for k in ('g11i', 'g11e', 'g11j', 'gb11',
                            'g12i', 'g12e', 'g12j', 'gb12i', 'gb12e', 'gb12j',
                            'g21', 'gb21', 'g22', 'gb22')}
    for (w11, b11), (w12, b12), (w21, b21), (w22, b22) in params['gnn']:
        cols['g11i'].append(_bf(w11[:Dn]))
        cols['g11e'].append(_bf(w11[Dn:Dn + De]))
        cols['g11j'].append(_bf(w11[Dn + De:]))
        cols['gb11'].append(b11)
        cols['g12i'].append(_bf(w12[:, :H]))
        cols['g12e'].append(_bf(w12[:, H:H + De]))
        cols['g12j'].append(_bf(w12[:, H + De:]))
        cols['gb12i'].append(b12[:, :H])
        cols['gb12e'].append(b12[:, H:H + De])
        cols['gb12j'].append(b12[:, H + De:])
        cols['g21'].append(_bf(w21))
        cols['gb21'].append(b21)
        cols['g22'].append(_bf(w22))
        cols['gb22'].append(b22)
    gnn_args = tuple(jnp.stack(cols[k], axis=0) for k in
                     ('g11i', 'g11e', 'g11j', 'gb11',
                      'g12i', 'g12e', 'g12j', 'gb12i', 'gb12e', 'gb12j',
                      'g21', 'gb21', 'g22', 'gb22'))

    args = (obj_x, rel_x, oh_t, oh_s, agg) + obj_enc + rel_enc + gnn_args + obj_head + rel_head
    out_shape = (jax.ShapeDtypeStruct((n_obj_p, k_obj_p), jnp.float32),
                 jax.ShapeDtypeStruct((n_edge_p, k_rel_p), jnp.float32))
    obj_cls_p, rel_cls_p = pl.pallas_call(
        _sgpn_fused_kernel,
        grid=(1,),
        in_specs=[_full_spec(a.shape) for a in args],
        out_specs=(_full_spec((n_obj_p, k_obj_p)), _full_spec((n_edge_p, k_rel_p))),
        out_shape=out_shape,
        compiler_params=_COMPILER_PARAMS,
    )(*args)
    return obj_cls_p[:n_obj, :NUM_OBJ_CLS], rel_cls_p[:n_edge, :NUM_REL_CLS]


def _encode_classify(points, enc_params, head_params):
    """Fallback (no edges / no GNN): encoder + head fused in one pallas_call."""
    n = points.shape[0]
    k = head_params[2][0].shape[1]
    n_p = _round_up(n, 8)
    k_p = _round_up(k, 128)
    if n_p > n:
        points = jnp.pad(points, ((0, n_p - n), (0, 0), (0, 0)))
    x = points.reshape(n_p * NUM_POINTS, points.shape[-1])
    args = (x,) + _enc_args(enc_params) + _enc_args(_pad_head(head_params, k_p))
    out_p = pl.pallas_call(
        _encode_classify_kernel,
        grid=(1,),
        in_specs=[_full_spec(a.shape) for a in args],
        out_specs=_full_spec((n_p, k_p)),
        out_shape=jax.ShapeDtypeStruct((n_p, k_p), jnp.float32),
        compiler_params=_COMPILER_PARAMS,
    )(*args)
    return out_p[:n, :k]


_fused_forward_jit = jax.jit(_fused_forward)
_encode_classify_jit = jax.jit(_encode_classify)


# ------------------------- SGPN params + forward -------------------------
def init_params(key):
    keys = iter(jax.random.split(key, 32))
    lin = lambda cin, cout: _init_linear(next(keys), cin, cout)
    params = {}
    params['obj_encoder'] = (lin(OBJ_PT_DIM, 64), lin(64, 128), lin(128, NODE_FEATURE_DIM))
    params['rel_encoder'] = (lin(REL_PT_DIM, 64), lin(64, 128), lin(128, EDGE_FEATURE_DIM))
    tri_in = 2 * NODE_FEATURE_DIM + EDGE_FEATURE_DIM
    tri_out = 2 * GNN_HIDDEN_DIM + EDGE_FEATURE_DIM
    params['gnn'] = [
        (lin(tri_in, GNN_HIDDEN_DIM),             # nn1 layer 1
         lin(GNN_HIDDEN_DIM, tri_out),            # nn1 layer 2 (relu on last)
         lin(GNN_HIDDEN_DIM, GNN_HIDDEN_DIM),     # nn2 layer 1
         lin(GNN_HIDDEN_DIM, NODE_FEATURE_DIM))   # nn2 layer 2
        for _ in range(GNN_NUM_LAYERS)
    ]
    params['obj_predictor'] = (lin(NODE_FEATURE_DIM, 512), lin(512, 256), lin(256, NUM_OBJ_CLS))
    params['rel_predictor'] = (lin(EDGE_FEATURE_DIM, 512), lin(512, 256), lin(256, NUM_REL_CLS))
    return params


def sgpn_forward(params, obj_points, rel_points, node_edges):
    has_edge = node_edges.size > 0
    if has_edge and node_edges.shape[0] != 2:
        node_edges = node_edges.T
    if has_edge and len(params['gnn']) > 0:
        return _fused_forward_jit(params, obj_points, rel_points, node_edges)
    # Fallback paths: no edges, or edges but GNN disabled.
    obj_cls = _encode_classify_jit(obj_points, params['obj_encoder'], params['obj_predictor'])
    rel_cls = (_encode_classify_jit(rel_points, params['rel_encoder'], params['rel_predictor'])
               if has_edge else None)
    return obj_cls, rel_cls


# ------------------------- main -------------------------
if __name__ == "__main__":
    key = jax.random.PRNGKey(0)
    kp, kobj, krel = jax.random.split(key, 3)
    params = init_params(kp)

    n_obj, n_edge = 4, 6
    obj_points = jax.random.normal(kobj, (n_obj, NUM_POINTS, OBJ_PT_DIM), dtype=jnp.float32)
    rel_points = jax.random.normal(krel, (n_edge, NUM_POINTS, REL_PT_DIM), dtype=jnp.float32)
    node_edges = jnp.array([[0, 1, 2, 3, 0, 2],
                            [1, 2, 3, 0, 2, 1]], dtype=jnp.int32)  # (2, E)

    obj_cls, rel_cls = sgpn_forward(params, obj_points, rel_points, node_edges)
    jax.block_until_ready((obj_cls, rel_cls))
    assert obj_cls.shape == (n_obj, NUM_OBJ_CLS)
    assert rel_cls.shape == (n_edge, NUM_REL_CLS)
    assert bool(jnp.all(jnp.isfinite(obj_cls))) and bool(jnp.all(jnp.isfinite(rel_cls)))
    print("KERNEL_OK")
</pallas_src>

<mosaic_0001>
module attributes {stable_mosaic.version = 11 : i64} {
  func.func @_sgpn_fused_kernel(%arg0: i32, %arg1: memref<1024x3xf32, #tpu.memory_space<vmem>>, %arg2: memref<1024x4xf32, #tpu.memory_space<vmem>>, %arg3: memref<8x8xf32, #tpu.memory_space<vmem>>, %arg4: memref<8x8xf32, #tpu.memory_space<vmem>>, %arg5: memref<8x8xf32, #tpu.memory_space<vmem>>, %arg6: memref<3x64xbf16, #tpu.memory_space<vmem>>, %arg7: memref<1x64xf32, #tpu.memory_space<vmem>>, %arg8: memref<64x128xbf16, #tpu.memory_space<vmem>>, %arg9: memref<1x128xf32, #tpu.memory_space<vmem>>, %arg10: memref<128x64xbf16, #tpu.memory_space<vmem>>, %arg11: memref<1x64xf32, #tpu.memory_space<vmem>>, %arg12: memref<4x64xbf16, #tpu.memory_space<vmem>>, %arg13: memref<1x64xf32, #tpu.memory_space<vmem>>, %arg14: memref<64x128xbf16, #tpu.memory_space<vmem>>, %arg15: memref<1x128xf32, #tpu.memory_space<vmem>>, %arg16: memref<128x64xbf16, #tpu.memory_space<vmem>>, %arg17: memref<1x64xf32, #tpu.memory_space<vmem>>, %arg18: memref<2x64x64xbf16, #tpu.memory_space<vmem>>, %arg19: memref<2x64x64xbf16, #tpu.memory_space<vmem>>, %arg20: memref<2x64x64xbf16, #tpu.memory_space<vmem>>, %arg21: memref<2x1x64xf32, #tpu.memory_space<vmem>>, %arg22: memref<2x64x64xbf16, #tpu.memory_space<vmem>>, %arg23: memref<2x64x64xbf16, #tpu.memory_space<vmem>>, %arg24: memref<2x64x64xbf16, #tpu.memory_space<vmem>>, %arg25: memref<2x1x64xf32, #tpu.memory_space<vmem>>, %arg26: memref<2x1x64xf32, #tpu.memory_space<vmem>>, %arg27: memref<2x1x64xf32, #tpu.memory_space<vmem>>, %arg28: memref<2x64x64xbf16, #tpu.memory_space<vmem>>, %arg29: memref<2x1x64xf32, #tpu.memory_space<vmem>>, %arg30: memref<2x64x64xbf16, #tpu.memory_space<vmem>>, %arg31: memref<2x1x64xf32, #tpu.memory_space<vmem>>, %arg32: memref<64x512xbf16, #tpu.memory_space<vmem>>, %arg33: memref<1x512xf32, #tpu.memory_space<vmem>>, %arg34: memref<512x256xbf16, #tpu.memory_space<vmem>>, %arg35: memref<1x256xf32, #tpu.memory_space<vmem>>, %arg36: memref<256x128xbf16, #tpu.memory_space<vmem>>, %arg37: memref<1x128xf32, #tpu.memory_space<vmem>>, %arg38: memref<64x512xbf16, #tpu.memory_space<vmem>>, %arg39: memref<1x512xf32, #tpu.memory_space<vmem>>, %arg40: memref<512x256xbf16, #tpu.memory_space<vmem>>, %arg41: memref<1x256xf32, #tpu.memory_space<vmem>>, %arg42: memref<256x128xbf16, #tpu.memory_space<vmem>>, %arg43: memref<1x128xf32, #tpu.memory_space<vmem>>, %arg44: memref<8x128xf32, #tpu.memory_space<vmem>>, %arg45: memref<8x128xf32, #tpu.memory_space<vmem>>) attributes {dimension_semantics = [#tpu.dimension_semantics<arbitrary>], iteration_bounds = array<i64: 1>, scalar_prefetch = 0 : i64, scratch_operands = 0 : i64, tpu.core_type = #tpu.core_type<tc>, window_params = [{pipeline_mode = #tpu.pipeline_mode<synchronous>, transform_indices = @transform_0, window_bounds = array<i64: 1024, 3>}, {pipeline_mode = #tpu.pipeline_mode<synchronous>, transform_indices = @transform_1, window_bounds = array<i64: 1024, 4>}, {pipeline_mode = #tpu.pipeline_mode<synchronous>, transform_indices = @transform_2, window_bounds = array<i64: 8, 8>}, {pipeline_mode = #tpu.pipeline_mode<synchronous>, transform_indices = @transform_3, window_bounds = array<i64: 8, 8>}, {pipeline_mode = #tpu.pipeline_mode<synchronous>, transform_indices = @transform_4, window_bounds = array<i64: 8, 8>}, {pipeline_mode = #tpu.pipeline_mode<synchronous>, transform_indices = @transform_5, window_bounds = array<i64: 3, 64>}, {pipeline_mode = #tpu.pipeline_mode<synchronous>, transform_indices = @transform_6, window_bounds = array<i64: 1, 64>}, {pipeline_mode = #tpu.pipeline_mode<synchronous>, transform_indices = @transform_7, window_bounds = array<i64: 64, 128>}, {pipeline_mode = #tpu.pipeline_mode<synchronous>, transform_indices = @transform_8, window_bounds = array<i64: 1, 128>}, {pipeline_mode = #tpu.pipeline_mode<synchronous>, transform_indices = @transform_9, window_bounds = array<i64: 128, 64>}, {pipeline_mode = #tpu.pipeline_mode<synchronous>, transform_indices = @transform_10, window_bounds = array<i64: 1, 64>}, {pipeline_mode = #tpu.pipeline_mode<synchronous>, transform_indices = @transform_11, window_bounds = array<i64: 4, 64>}, {pipeline_mode = #tpu.pipeline_mode<synchronous>, transform_indices = @transform_12, window_bounds = array<i64: 1, 64>}, {pipeline_mode = #tpu.pipeline_mode<synchronous>, transform_indices = @transform_13, window_bounds = array<i64: 64, 128>}, {pipeline_mode = #tpu.pipeline_mode<synchronous>, transform_indices = @transform_14, window_bounds = array<i64: 1, 128>}, {pipeline_mode = #tpu.pipeline_mode<synchronous>, transform_indices = @transform_15, window_bounds = array<i64: 128, 64>}, {pipeline_mode = #tpu.pipeline_mode<synchronous>, transform_indices = @transform_16, window_bounds = array<i64: 1, 64>}, {pipeline_mode = #tpu.pipeline_mode<synchronous>, transform_indices = @transform_17, window_bounds = array<i64: 2, 64, 64>}, {pipeline_mode = #tpu.pipeline_mode<synchronous>, transform_indices = @transform_18, window_bounds = array<i64: 2, 64, 64>}, {pipeline_mode = #tpu.pipeline_mode<synchronous>, transform_indices = @transform_19, window_bounds = array<i64: 2, 64, 64>}, {pipeline_mode = #tpu.pipeline_mode<synchronous>, transform_indices = @transform_20, window_bounds = array<i64: 2, 1, 64>}, {pipeline_mode = #tpu.pipeline_mode<synchronous>, transform_indices = @transform_21, window_bounds = array<i64: 2, 64, 64>}, {pipeline_mode = #tpu.pipeline_mode<synchronous>, transform_indices = @transform_22, window_bounds = array<i64: 2, 64, 64>}, {pipeline_mode = #tpu.pipeline_mode<synchronous>, transform_indices = @transform_23, window_bounds = array<i64: 2, 64, 64>}, {pipeline_mode = #tpu.pipeline_mode<synchronous>, transform_indices = @transform_24, window_bounds = array<i64: 2, 1, 64>}, {pipeline_mode = #tpu.pipeline_mode<synchronous>, transform_indices = @transform_25, window_bounds = array<i64: 2, 1, 64>}, {pipeline_mode = #tpu.pipeline_mode<synchronous>, transform_indices = @transform_26, window_bounds = array<i64: 2, 1, 64>}, {pipeline_mode = #tpu.pipeline_mode<synchronous>, transform_indices = @transform_27, window_bounds = array<i64: 2, 64, 64>}, {pipeline_mode = #tpu.pipeline_mode<synchronous>, transform_indices = @transform_28, window_bounds = array<i64: 2, 1, 64>}, {pipeline_mode = #tpu.pipeline_mode<synchronous>, transform_indices = @transform_29, window_bounds = array<i64: 2, 64, 64>}, {pipeline_mode = #tpu.pipeline_mode<synchronous>, transform_indices = @transform_30, window_bounds = array<i64: 2, 1, 64>}, {pipeline_mode = #tpu.pipeline_mode<synchronous>, transform_indices = @transform_31, window_bounds = array<i64: 64, 512>}, {pipeline_mode = #tpu.pipeline_mode<synchronous>, transform_indices = @transform_32, window_bounds = array<i64: 1, 512>}, {pipeline_mode = #tpu.pipeline_mode<synchronous>, transform_indices = @transform_33, window_bounds = array<i64: 512, 256>}, {pipeline_mode = #tpu.pipeline_mode<synchronous>, transform_indices = @transform_34, window_bounds = array<i64: 1, 256>}, {pipeline_mode = #tpu.pipeline_mode<synchronous>, transform_indices = @transform_35, window_bounds = array<i64: 256, 128>}, {pipeline_mode = #tpu.pipeline_mode<synchronous>, transform_indices = @transform_36, window_bounds = array<i64: 1, 128>}, {pipeline_mode = #tpu.pipeline_mode<synchronous>, transform_indices = @transform_37, window_bounds = array<i64: 64, 512>}, {pipeline_mode = #tpu.pipeline_mode<synchronous>, transform_indices = @transform_38, window_bounds = array<i64: 1, 512>}, {pipeline_mode = #tpu.pipeline_mode<synchronous>, transform_indices = @transform_39, window_bounds = array<i64: 512, 256>}, {pipeline_mode = #tpu.pipeline_mode<synchronous>, transform_indices = @transform_40, window_bounds = array<i64: 1, 256>}, {pipeline_mode = #tpu.pipeline_mode<synchronous>, transform_indices = @transform_41, window_bounds = array<i64: 256, 128>}, {pipeline_mode = #tpu.pipeline_mode<synchronous>, transform_indices = @transform_42, window_bounds = array<i64: 1, 128>}, {pipeline_mode = #tpu.pipeline_mode<synchronous>, transform_indices = @transform_43, window_bounds = array<i64: 8, 128>}, {pipeline_mode = #tpu.pipeline_mode<synchronous>, transform_indices = @transform_44, window_bounds = array<i64: 8, 128>}]} {
    %c0 = arith.constant 0 : index
    %c0_0 = arith.constant 0 : index
    %0 = vector.load %arg1[%c0, %c0_0] : memref<1024x3xf32, #tpu.memory_space<vmem>>, vector<1024x3xf32>
    %c0_1 = arith.constant 0 : index
    %c0_2 = arith.constant 0 : index
    %1 = vector.load %arg6[%c0_1, %c0_2] : memref<3x64xbf16, #tpu.memory_space<vmem>>, vector<3x64xbf16>
    %c0_3 = arith.constant 0 : index
    %c0_4 = arith.constant 0 : index
    %2 = vector.load %arg7[%c0_3, %c0_4] : memref<1x64xf32, #tpu.memory_space<vmem>>, vector<1x64xf32>
    %c0_5 = arith.constant 0 : index
    %c0_6 = arith.constant 0 : index
    %3 = vector.load %arg8[%c0_5, %c0_6] : memref<64x128xbf16, #tpu.memory_space<vmem>>, vector<64x128xbf16>
    %c0_7 = arith.constant 0 : index
    %c0_8 = arith.constant 0 : index
    %4 = vector.load %arg9[%c0_7, %c0_8] : memref<1x128xf32, #tpu.memory_space<vmem>>, vector<1x128xf32>
    %c0_9 = arith.constant 0 : index
    %c0_10 = arith.constant 0 : index
    %5 = vector.load %arg10[%c0_9, %c0_10] : memref<128x64xbf16, #tpu.memory_space<vmem>>, vector<128x64xbf16>
    %c0_11 = arith.constant 0 : index
    %c0_12 = arith.constant 0 : index
    %6 = vector.load %arg11[%c0_11, %c0_12] : memref<1x64xf32, #tpu.memory_space<vmem>>, vector<1x64xf32>
    %7 = arith.truncf %0 : vector<1024x3xf32> to vector<1024x3xbf16>
    %cst = arith.constant dense<0.000000e+00> : vector<1024x64xf32>
    %8 = tpu.matmul %7, %1, %cst {dimension_numbers = #tpu.dot_dimension_numbers<[1], [0], [0], [1], [0, 0, 1, 1], [], []>} : vector<1024x3xbf16>, vector<3x64xbf16>, vector<1024x64xf32> -> vector<1024x64xf32>
    %9 = vector.broadcast %2 : vector<1x64xf32> to vector<1024x64xf32>
    %10 = arith.addf %8, %9 : vector<1024x64xf32>
    %cst_13 = arith.constant 0.000000e+00 : f32
    %11 = vector.broadcast %cst_13 : f32 to vector<1024x64xf32>
    %12 = arith.maximumf %10, %11 : vector<1024x64xf32>
    %13 = arith.truncf %12 : vector<1024x64xf32> to vector<1024x64xbf16>
    %cst_14 = arith.constant dense<0.000000e+00> : vector<1024x128xf32>
    %14 = tpu.matmul %13, %3, %cst_14 {dimension_numbers = #tpu.dot_dimension_numbers<[1], [0], [0], [1], [0, 0, 1, 1], [], []>} : vector<1024x64xbf16>, vector<64x128xbf16>, vector<1024x128xf32> -> vector<1024x128xf32>
    %15 = vector.broadcast %4 : vector<1x128xf32> to vector<1024x128xf32>
    %16 = arith.addf %14, %15 : vector<1024x128xf32>
    %cst_15 = arith.constant 0.000000e+00 : f32
    %17 = vector.broadcast %cst_15 : f32 to vector<1024x128xf32>
    %18 = arith.maximumf %16, %17 : vector<1024x128xf32>
    %19 = arith.truncf %18 : vector<1024x128xf32> to vector<1024x128xbf16>
    %cst_16 = arith.constant dense<0.000000e+00> : vector<1024x64xf32>
    %20 = tpu.matmul %19, %5, %cst_16 {dimension_numbers = #tpu.dot_dimension_numbers<[1], [0], [0], [1], [0, 0, 1, 1], [], []>} : vector<1024x128xbf16>, vector<128x64xbf16>, vector<1024x64xf32> -> vector<1024x64xf32>
    %21 = vector.broadcast %6 : vector<1x64xf32> to vector<1024x64xf32>
    %22 = arith.addf %20, %21 : vector<1024x64xf32>
    %23 = vector.shape_cast %22 : vector<1024x64xf32> to vector<8x128x64xf32>
    %cst_17 = arith.constant dense<0xFF800000> : vector<8x64xf32>
    %24 = vector.multi_reduction <maximumf>, %23, %cst_17 [1] : vector<8x128x64xf32> to vector<8x64xf32>
    %c0_18 = arith.constant 0 : index
    %c0_19 = arith.constant 0 : index
    %25 = vector.load %arg2[%c0_18, %c0_19] : memref<1024x4xf32, #tpu.memory_space<vmem>>, vector<1024x4xf32>
    %c0_20 = arith.constant 0 : index
    %c0_21 = arith.constant 0 : index
    %26 = vector.load %arg12[%c0_20, %c0_21] : memref<4x64xbf16, #tpu.memory_space<vmem>>, vector<4x64xbf16>
    %c0_22 = arith.constant 0 : index
    %c0_23 = arith.constant 0 : index
    %27 = vector.load %arg13[%c0_22, %c0_23] : memref<1x64xf32, #tpu.memory_space<vmem>>, vector<1x64xf32>
    %c0_24 = arith.constant 0 : index
    %c0_25 = arith.constant 0 : index
    %28 = vector.load %arg14[%c0_24, %c0_25] : memref<64x128xbf16, #tpu.memory_space<vmem>>, vector<64x128xbf16>
    %c0_26 = arith.constant 0 : index
    %c0_27 = arith.constant 0 : index
    %29 = vector.load %arg15[%c0_26, %c0_27] : memref<1x128xf32, #tpu.memory_space<vmem>>, vector<1x128xf32>
    %c0_28 = arith.constant 0 : index
    %c0_29 = arith.constant 0 : index
    %30 = vector.load %arg16[%c0_28, %c0_29] : memref<128x64xbf16, #tpu.memory_space<vmem>>, vector<128x64xbf16>
    %c0_30 = arith.constant 0 : index
    %c0_31 = arith.constant 0 : index
    %31 = vector.load %arg17[%c0_30, %c0_31] : memref<1x64xf32, #tpu.memory_space<vmem>>, vector<1x64xf32>
    %32 = arith.truncf %25 : vector<1024x4xf32> to vector<1024x4xbf16>
    %cst_32 = arith.constant dense<0.000000e+00> : vector<1024x64xf32>
    %33 = tpu.matmul %32, %26, %cst_32 {dimension_numbers = #tpu.dot_dimension_numbers<[1], [0], [0], [1], [0, 0, 1, 1], [], []>} : vector<1024x4xbf16>, vector<4x64xbf16>, vector<1024x64xf32> -> vector<1024x64xf32>
    %34 = vector.broadcast %27 : vector<1x64xf32> to vector<1024x64xf32>
    %35 = arith.addf %33, %34 : vector<1024x64xf32>
    %cst_33 = arith.constant 0.000000e+00 : f32
    %36 = vector.broadcast %cst_33 : f32 to vector<1024x64xf32>
    %37 = arith.maximumf %35, %36 : vector<1024x64xf32>
    %38 = arith.truncf %37 : vector<1024x64xf32> to vector<1024x64xbf16>
    %cst_34 = arith.constant dense<0.000000e+00> : vector<1024x128xf32>
    %39 = tpu.matmul %38, %28, %cst_34 {dimension_numbers = #tpu.dot_dimension_numbers<[1], [0], [0], [1], [0, 0, 1, 1], [], []>} : vector<1024x64xbf16>, vector<64x128xbf16>, vector<1024x128xf32> -> vector<1024x128xf32>
    %40 = vector.broadcast %29 : vector<1x128xf32> to vector<1024x128xf32>
    %41 = arith.addf %39, %40 : vector<1024x128xf32>
    %cst_35 = arith.constant 0.000000e+00 : f32
    %42 = vector.broadcast %cst_35 : f32 to vector<1024x128xf32>
    %43 = arith.maximumf %41, %42 : vector<1024x128xf32>
    %44 = arith.truncf %43 : vector<1024x128xf32> to vector<1024x128xbf16>
    %cst_36 = arith.constant dense<0.000000e+00> : vector<1024x64xf32>
    %45 = tpu.matmul %44, %30, %cst_36 {dimension_numbers = #tpu.dot_dimension_numbers<[1], [0], [0], [1], [0, 0, 1, 1], [], []>} : vector<1024x128xbf16>, vector<128x64xbf16>, vector<1024x64xf32> -> vector<1024x64xf32>
    %46 = vector.broadcast %31 : vector<1x64xf32> to vector<1024x64xf32>
    %47 = arith.addf %45, %46 : vector<1024x64xf32>
    %48 = vector.shape_cast %47 : vector<1024x64xf32> to vector<8x128x64xf32>
    %cst_37 = arith.constant dense<0xFF800000> : vector<8x64xf32>
    %49 = vector.multi_reduction <maximumf>, %48, %cst_37 [1] : vector<8x128x64xf32> to vector<8x64xf32>
    %c0_38 = arith.constant 0 : index
    %c0_39 = arith.constant 0 : index
    %50 = vector.load %arg3[%c0_38, %c0_39] : memref<8x8xf32, #tpu.memory_space<vmem>>, vector<8x8xf32>
    %c0_40 = arith.constant 0 : index
    %c0_41 = arith.constant 0 : index
    %51 = vector.load %arg4[%c0_40, %c0_41] : memref<8x8xf32, #tpu.memory_space<vmem>>, vector<8x8xf32>
    %c0_42 = arith.constant 0 : index
    %c0_43 = arith.constant 0 : index
    %52 = vector.load %arg5[%c0_42, %c0_43] : memref<8x8xf32, #tpu.memory_space<vmem>>, vector<8x8xf32>
    %cst_44 = arith.constant dense<0.000000e+00> : vector<8x64xf32>
    %53 = tpu.matmul %50, %24, %cst_44 {dimension_numbers = #tpu.dot_dimension_numbers<[1], [0], [0], [1], [0, 0, 1, 1], [], []>} : vector<8x8xf32>, vector<8x64xf32>, vector<8x64xf32> -> vector<8x64xf32>
    %cst_45 = arith.constant dense<0.000000e+00> : vector<8x64xf32>
    %54 = tpu.matmul %51, %24, %cst_45 {dimension_numbers = #tpu.dot_dimension_numbers<[1], [0], [0], [1], [0, 0, 1, 1], [], []>} : vector<8x8xf32>, vector<8x64xf32>, vector<8x64xf32> -> vector<8x64xf32>
    %c0_46 = arith.constant 0 : index
    %c0_47 = arith.constant 0 : index
    %c0_48 = arith.constant 0 : index
    %55 = vector.load %arg18[%c0_46, %c0_47, %c0_48] : memref<2x64x64xbf16, #tpu.memory_space<vmem>>, vector<1x64x64xbf16>
    %56 = vector.shape_cast %55 : vector<1x64x64xbf16> to vector<64x64xbf16>
    %57 = arith.truncf %53 : vector<8x64xf32> to vector<8x64xbf16>
    %cst_49 = arith.constant dense<0.000000e+00> : vector<8x64xf32>
    %58 = tpu.matmul %57, %56, %cst_49 {dimension_numbers = #tpu.dot_dimension_numbers<[1], [0], [0], [1], [0, 0, 1, 1], [], []>} : vector<8x64xbf16>, vector<64x64xbf16>, vector<8x64xf32> -> vector<8x64xf32>
    %c0_50 = arith.constant 0 : index
    %c0_51 = arith.constant 0 : index
    %c0_52 = arith.constant 0 : index
    %59 = vector.load %arg19[%c0_50, %c0_51, %c0_52] : memref<2x64x64xbf16, #tpu.memory_space<vmem>>, vector<1x64x64xbf16>
    %60 = vector.shape_cast %59 : vector<1x64x64xbf16> to vector<64x64xbf16>
    %61 = arith.truncf %49 : vector<8x64xf32> to vector<8x64xbf16>
    %cst_53 = arith.constant dense<0.000000e+00> : vector<8x64xf32>
    %62 = tpu.matmul %61, %60, %cst_53 {dimension_numbers = #tpu.dot_dimension_numbers<[1], [0], [0], [1], [0, 0, 1, 1], [], []>} : vector<8x64xbf16>, vector<64x64xbf16>, vector<8x64xf32> -> vector<8x64xf32>
    %63 = arith.addf %58, %62 : vector<8x64xf32>
    %c0_54 = arith.constant 0 : index
    %c0_55 = arith.constant 0 : index
    %c0_56 = arith.constant 0 : index
    %64 = vector.load %arg20[%c0_54, %c0_55, %c0_56] : memref<2x64x64xbf16, #tpu.memory_space<vmem>>, vector<1x64x64xbf16>
    %65 = vector.shape_cast %64 : vector<1x64x64xbf16> to vector<64x64xbf16>
    %66 = arith.truncf %54 : vector<8x64xf32> to vector<8x64xbf16>
    %cst_57 = arith.constant dense<0.000000e+00> : vector<8x64xf32>
    %67 = tpu.matmul %66, %65, %cst_57 {dimension_numbers = #tpu.dot_dimension_numbers<[1], [0], [0], [1], [0, 0, 1, 1], [], []>} : vector<8x64xbf16>, vector<64x64xbf16>, vector<8x64xf32> -> vector<8x64xf32>
    %68 = arith.addf %63, %67 : vector<8x64xf32>
    %c0_58 = arith.constant 0 : index
    %c0_59 = arith.constant 0 : index
    %c0_60 = arith.constant 0 : index
    %69 = vector.load %arg21[%c0_58, %c0_59, %c0_60] : memref<2x1x64xf32, #tpu.memory_space<vmem>>, vector<1x1x64xf32>
    %70 = vector.shape_cast %69 : vector<1x1x64xf32> to vector<1x64xf32>
    %71 = vector.broadcast %70 : vector<1x64xf32> to vector<8x64xf32>
    %72 = arith.addf %68, %71 : vector<8x64xf32>
    %cst_61 = arith.constant 0.000000e+00 : f32
    %73 = vector.broadcast %cst_61 : f32 to vector<8x64xf32>
    %74 = arith.maximumf %72, %73 : vector<8x64xf32>
    %c0_62 = arith.constant 0 : index
    %c0_63 = arith.constant 0 : index
    %c0_64 = arith.constant 0 : index
    %75 = vector.load %arg22[%c0_62, %c0_63, %c0_64] : memref<2x64x64xbf16, #tpu.memory_space<vmem>>, vector<1x64x64xbf16>
    %76 = vector.shape_cast %75 : vector<1x64x64xbf16> to vector<64x64xbf16>
    %77 = arith.truncf %74 : vector<8x64xf32> to vector<8x64xbf16>
    %cst_65 = arith.constant dense<0.000000e+00> : vector<8x64xf32>
    %78 = tpu.matmul %77, %76, %cst_65 {dimension_numbers = #tpu.dot_dimension_numbers<[1], [0], [0], [1], [0, 0, 1, 1], [], []>} : vector<8x64xbf16>, vector<64x64xbf16>, vector<8x64xf32> -> vector<8x64xf32>
    %c0_66 = arith.constant 0 : index
    %c0_67 = arith.constant 0 : index
    %c0_68 = arith.constant 0 : index
    %79 = vector.load %arg25[%c0_66, %c0_67, %c0_68] : memref<2x1x64xf32, #tpu.memory_space<vmem>>, vector<1x1x64xf32>
    %80 = vector.shape_cast %79 : vector<1x1x64xf32> to vector<1x64xf32>
    %81 = vector.broadcast %80 : vector<1x64xf32> to vector<8x64xf32>
    %82 = arith.addf %78, %81 : vector<8x64xf32>
    %cst_69 = arith.constant 0.000000e+00 : f32
    %83 = vector.broadcast %cst_69 : f32 to vector<8x64xf32>
    %84 = arith.maximumf %82, %83 : vector<8x64xf32>
    %c0_70 = arith.constant 0 : index
    %c0_71 = arith.constant 0 : index
    %c0_72 = arith.constant 0 : index
    %85 = vector.load %arg23[%c0_70, %c0_71, %c0_72] : memref<2x64x64xbf16, #tpu.memory_space<vmem>>, vector<1x64x64xbf16>
    %86 = vector.shape_cast %85 : vector<1x64x64xbf16> to vector<64x64xbf16>
    %87 = arith.truncf %74 : vector<8x64xf32> to vector<8x64xbf16>
    %cst_73 = arith.constant dense<0.000000e+00> : vector<8x64xf32>
    %88 = tpu.matmul %87, %86, %cst_73 {dimension_numbers = #tpu.dot_dimension_numbers<[1], [0], [0], [1], [0, 0, 1, 1], [], []>} : vector<8x64xbf16>, vector<64x64xbf16>, vector<8x64xf32> -> vector<8x64xf32>
    %c0_74 = arith.constant 0 : index
    %c0_75 = arith.constant 0 : index
    %c0_76 = arith.constant 0 : index
    %89 = vector.load %arg26[%c0_74, %c0_75, %c0_76] : memref<2x1x64xf32, #tpu.memory_space<vmem>>, vector<1x1x64xf32>
    %90 = vector.shape_cast %89 : vector<1x1x64xf32> to vector<1x64xf32>
    %91 = vector.broadcast %90 : vector<1x64xf32> to vector<8x64xf32>
    %92 = arith.addf %88, %91 : vector<8x64xf32>
    %cst_77 = arith.constant 0.000000e+00 : f32
    %93 = vector.broadcast %cst_77 : f32 to vector<8x64xf32>
    %94 = arith.maximumf %92, %93 : vector<8x64xf32>
    %c0_78 = arith.constant 0 : index
    %c0_79 = arith.constant 0 : index
    %c0_80 = arith.constant 0 : index
    %95 = vector.load %arg24[%c0_78, %c0_79, %c0_80] : memref<2x64x64xbf16, #tpu.memory_space<vmem>>, vector<1x64x64xbf16>
    %96 = vector.shape_cast %95 : vector<1x64x64xbf16> to vector<64x64xbf16>
    %97 = arith.truncf %74 : vector<8x64xf32> to vector<8x64xbf16>
    %cst_81 = arith.constant dense<0.000000e+00> : vector<8x64xf32>
    %98 = tpu.matmul %97, %96, %cst_81 {dimension_numbers = #tpu.dot_dimension_numbers<[1], [0], [0], [1], [0, 0, 1, 1], [], []>} : vector<8x64xbf16>, vector<64x64xbf16>, vector<8x64xf32> -> vector<8x64xf32>
    %c0_82 = arith.constant 0 : index
    %c0_83 = arith.constant 0 : index
    %c0_84 = arith.constant 0 : index
    %99 = vector.load %arg27[%c0_82, %c0_83, %c0_84] : memref<2x1x64xf32, #tpu.memory_space<vmem>>, vector<1x1x64xf32>
    %100 = vector.shape_cast %99 : vector<1x1x64xf32> to vector<1x64xf32>
    %101 = vector.broadcast %100 : vector<1x64xf32> to vector<8x64xf32>
    %102 = arith.addf %98, %101 : vector<8x64xf32>
    %cst_85 = arith.constant 0.000000e+00 : f32
    %103 = vector.broadcast %cst_85 : f32 to vector<8x64xf32>
    %104 = arith.maximumf %102, %103 : vector<8x64xf32>
    %105 = arith.addf %84, %104 : vector<8x64xf32>
    %cst_86 = arith.constant dense<0.000000e+00> : vector<8x64xf32>
    %106 = tpu.matmul %52, %105, %cst_86 {dimension_numbers = #tpu.dot_dimension_numbers<[1], [0], [0], [1], [0, 0, 1, 1], [], []>} : vector<8x8xf32>, vector<8x64xf32>, vector<8x64xf32> -> vector<8x64xf32>
    %c0_87 = arith.constant 0 : index
    %c0_88 = arith.constant 0 : index
    %c0_89 = arith.constant 0 : index
    %107 = vector.load %arg28[%c0_87, %c0_88, %c0_89] : memref<2x64x64xbf16, #tpu.memory_space<vmem>>, vector<1x64x64xbf16>
    %108 = vector.shape_cast %107 : vector<1x64x64xbf16> to vector<64x64xbf16>
    %109 = arith.truncf %106 : vector<8x64xf32> to vector<8x64xbf16>
    %cst_90 = arith.constant dense<0.000000e+00> : vector<8x64xf32>
    %110 = tpu.matmul %109, %108, %cst_90 {dimension_numbers = #tpu.dot_dimension_numbers<[1], [0], [0], [1], [0, 0, 1, 1], [], []>} : vector<8x64xbf16>, vector<64x64xbf16>, vector<8x64xf32> -> vector<8x64xf32>
    %c0_91 = arith.constant 0 : index
    %c0_92 = arith.constant 0 : index
    %c0_93 = arith.constant 0 : index
    %111 = vector.load %arg29[%c0_91, %c0_92, %c0_93] : memref<2x1x64xf32, #tpu.memory_space<vmem>>, vector<1x1x64xf32>
    %112 = vector.shape_cast %111 : vector<1x1x64xf32> to vector<1x64xf32>
    %113 = vector.broadcast %112 : vector<1x64xf32> to vector<8x64xf32>
    %114 = arith.addf %110, %113 : vector<8x64xf32>
    %cst_94 = arith.constant 0.000000e+00 : f32
    %115 = vector.broadcast %cst_94 : f32 to vector<8x64xf32>
    %116 = arith.maximumf %114, %115 : vector<8x64xf32>
    %c0_95 = arith.constant 0 : index
    %c0_96 = arith.constant 0 : index
    %c0_97 = arith.constant 0 : index
    %117 = vector.load %arg30[%c0_95, %c0_96, %c0_97] : memref<2x64x64xbf16, #tpu.memory_space<vmem>>, vector<1x64x64xbf16>
    %118 = vector.shape_cast %117 : vector<1x64x64xbf16> to vector<64x64xbf16>
    %119 = arith.truncf %116 : vector<8x64xf32> to vector<8x64xbf16>
    %cst_98 = arith.constant dense<0.000000e+00> : vector<8x64xf32>
    %120 = tpu.matmul %119, %118, %cst_98 {dimension_numbers = #tpu.dot_dimension_numbers<[1], [0], [0], [1], [0, 0, 1, 1], [], []>} : vector<8x64xbf16>, vector<64x64xbf16>, vector<8x64xf32> -> vector<8x64xf32>
    %c0_99 = arith.constant 0 : index
    %c0_100 = arith.constant 0 : index
    %c0_101 = arith.constant 0 : index
    %121 = vector.load %arg31[%c0_99, %c0_100, %c0_101] : memref<2x1x64xf32, #tpu.memory_space<vmem>>, vector<1x1x64xf32>
    %122 = vector.shape_cast %121 : vector<1x1x64xf32> to vector<1x64xf32>
    %123 = vector.broadcast %122 : vector<1x64xf32> to vector<8x64xf32>
    %124 = arith.addf %120, %123 : vector<8x64xf32>
    %125 = arith.addf %24, %124 : vector<8x64xf32>
    %cst_102 = arith.constant 0.000000e+00 : f32
    %126 = vector.broadcast %cst_102 : f32 to vector<8x64xf32>
    %127 = arith.maximumf %125, %126 : vector<8x64xf32>
    %cst_103 = arith.constant 0.000000e+00 : f32
    %128 = vector.broadcast %cst_103 : f32 to vector<8x64xf32>
    %129 = arith.maximumf %94, %128 : vector<8x64xf32>
    %cst_104 = arith.constant dense<0.000000e+00> : vector<8x64xf32>
    %130 = tpu.matmul %50, %127, %cst_104 {dimension_numbers = #tpu.dot_dimension_numbers<[1], [0], [0], [1], [0, 0, 1, 1], [], []>} : vector<8x8xf32>, vector<8x64xf32>, vector<8x64xf32> -> vector<8x64xf32>
    %cst_105 = arith.constant dense<0.000000e+00> : vector<8x64xf32>
    %131 = tpu.matmul %51, %127, %cst_105 {dimension_numbers = #tpu.dot_dimension_numbers<[1], [0], [0], [1], [0, 0, 1, 1], [], []>} : vector<8x8xf32>, vector<8x64xf32>, vector<8x64xf32> -> vector<8x64xf32>
    %c1 = arith.constant 1 : index
    %c0_106 = arith.constant 0 : index
    %c0_107 = arith.constant 0 : index
    %132 = vector.load %arg18[%c1, %c0_106, %c0_107] : memref<2x64x64xbf16, #tpu.memory_space<vmem>>, vector<1x64x64xbf16>
    %133 = vector.shape_cast %132 : vector<1x64x64xbf16> to vector<64x64xbf16>
    %134 = arith.truncf %130 : vector<8x64xf32> to vector<8x64xbf16>
    %cst_108 = arith.constant dense<0.000000e+00> : vector<8x64xf32>
    %135 = tpu.matmul %134, %133, %cst_108 {dimension_numbers = #tpu.dot_dimension_numbers<[1], [0], [0], [1], [0, 0, 1, 1], [], []>} : vector<8x64xbf16>, vector<64x64xbf16>, vector<8x64xf32> -> vector<8x64xf32>
    %c1_109 = arith.constant 1 : index
    %c0_110 = arith.constant 0 : index
    %c0_111 = arith.constant 0 : index
    %136 = vector.load %arg19[%c1_109, %c0_110, %c0_111] : memref<2x64x64xbf16, #tpu.memory_space<vmem>>, vector<1x64x64xbf16>
    %137 = vector.shape_cast %136 : vector<1x64x64xbf16> to vector<64x64xbf16>
    %138 = arith.truncf %129 : vector<8x64xf32> to vector<8x64xbf16>
    %cst_112 = arith.constant dense<0.000000e+00> : vector<8x64xf32>
    %139 = tpu.matmul %138, %137, %cst_112 {dimension_numbers = #tpu.dot_dimension_numbers<[1], [0], [0], [1], [0, 0, 1, 1], [], []>} : vector<8x64xbf16>, vector<64x64xbf16>, vector<8x64xf32> -> vector<8x64xf32>
    %140 = arith.addf %135, %139 : vector<8x64xf32>
    %c1_113 = arith.constant 1 : index
    %c0_114 = arith.constant 0 : index
    %c0_115 = arith.constant 0 : index
    %141 = vector.load %arg20[%c1_113, %c0_114, %c0_115] : memref<2x64x64xbf16, #tpu.memory_space<vmem>>, vector<1x64x64xbf16>
    %142 = vector.shape_cast %141 : vector<1x64x64xbf16> to vector<64x64xbf16>
    %143 = arith.truncf %131 : vector<8x64xf32> to vector<8x64xbf16>
    %cst_116 = arith.constant dense<0.000000e+00> : vector<8x64xf32>
    %144 = tpu.matmul %143, %142, %cst_116 {dimension_numbers = #tpu.dot_dimension_numbers<[1], [0], [0], [1], [0, 0, 1, 1], [], []>} : vector<8x64xbf16>, vector<64x64xbf16>, vector<8x64xf32> -> vector<8x64xf32>
    %145 = arith.addf %140, %144 : vector<8x64xf32>
    %c1_117 = arith.constant 1 : index
    %c0_118 = arith.constant 0 : index
    %c0_119 = arith.constant 0 : index
    %146 = vector.load %arg21[%c1_117, %c0_118, %c0_119] : memref<2x1x64xf32, #tpu.memory_space<vmem>>, vector<1x1x64xf32>
    %147 = vector.shape_cast %146 : vector<1x1x64xf32> to vector<1x64xf32>
    %148 = vector.broadcast %147 : vector<1x64xf32> to vector<8x64xf32>
    %149 = arith.addf %145, %148 : vector<8x64xf32>
    %cst_120 = arith.constant 0.000000e+00 : f32
    %150 = vector.broadcast %cst_120 : f32 to vector<8x64xf32>
    %151 = arith.maximumf %149, %150 : vector<8x64xf32>
    %c1_121 = arith.constant 1 : index
    %c0_122 = arith.constant 0 : index
    %c0_123 = arith.constant 0 : index
    %152 = vector.load %arg22[%c1_121, %c0_122, %c0_123] : memref<2x64x64xbf16, #tpu.memory_space<vmem>>, vector<1x64x64xbf16>
    %153 = vector.shape_cast %152 : vector<1x64x64xbf16> to vector<64x64xbf16>
    %154 = arith.truncf %151 : vector<8x64xf32> to vector<8x64xbf16>
    %cst_124 = arith.constant dense<0.000000e+00> : vector<8x64xf32>
    %155 = tpu.matmul %154, %153, %cst_124 {dimension_numbers = #tpu.dot_dimension_numbers<[1], [0], [0], [1], [0, 0, 1, 1], [], []>} : vector<8x64xbf16>, vector<64x64xbf16>, vector<8x64xf32> -> vector<8x64xf32>
    %c1_125 = arith.constant 1 : index
    %c0_126 = arith.constant 0 : index
    %c0_127 = arith.constant 0 : index
    %156 = vector.load %arg25[%c1_125, %c0_126, %c0_127] : memref<2x1x64xf32, #tpu.memory_space<vmem>>, vector<1x1x64xf32>
    %157 = vector.shape_cast %156 : vector<1x1x64xf32> to vector<1x64xf32>
    %158 = vector.broadcast %157 : vector<1x64xf32> to vector<8x64xf32>
    %159 = arith.addf %155, %158 : vector<8x64xf32>
    %cst_128 = arith.constant 0.000000e+00 : f32
    %160 = vector.broadcast %cst_128 : f32 to vector<8x64xf32>
    %161 = arith.maximumf %159, %160 : vector<8x64xf32>
    %c1_129 = arith.constant 1 : index
    %c0_130 = arith.constant 0 : index
    %c0_131 = arith.constant 0 : index
    %162 = vector.load %arg23[%c1_129, %c0_130, %c0_131] : memref<2x64x64xbf16, #tpu.memory_space<vmem>>, vector<1x64x64xbf16>
    %163 = vector.shape_cast %162 : vector<1x64x64xbf16> to vector<64x64xbf16>
    %164 = arith.truncf %151 : vector<8x64xf32> to vector<8x64xbf16>
    %cst_132 = arith.constant dense<0.000000e+00> : vector<8x64xf32>
    %165 = tpu.matmul %164, %163, %cst_132 {dimension_numbers = #tpu.dot_dimension_numbers<[1], [0], [0], [1], [0, 0, 1, 1], [], []>} : vector<8x64xbf16>, vector<64x64xbf16>, vector<8x64xf32> -> vector<8x64xf32>
    %c1_133 = arith.constant 1 : index
    %c0_134 = arith.constant 0 : index
    %c0_135 = arith.constant 0 : index
    %166 = vector.load %arg26[%c1_133, %c0_134, %c0_135] : memref<2x1x64xf32, #tpu.memory_space<vmem>>, vector<1x1x64xf32>
    %167 = vector.shape_cast %166 : vector<1x1x64xf32> to vector<1x64xf32>
    %168 = vector.broadcast %167 : vector<1x64xf32> to vector<8x64xf32>
    %169 = arith.addf %165, %168 : vector<8x64xf32>
    %cst_136 = arith.constant 0.000000e+00 : f32
    %170 = vector.broadcast %cst_136 : f32 to vector<8x64xf32>
    %171 = arith.maximumf %169, %170 : vector<8x64xf32>
    %c1_137 = arith.constant 1 : index
    %c0_138 = arith.constant 0 : index
    %c0_139 = arith.constant 0 : index
    %172 = vector.load %arg24[%c1_137, %c0_138, %c0_139] : memref<2x64x64xbf16, #tpu.memory_space<vmem>>, vector<1x64x64xbf16>
    %173 = vector.shape_cast %172 : vector<1x64x64xbf16> to vector<64x64xbf16>
    %174 = arith.truncf %151 : vector<8x64xf32> to vector<8x64xbf16>
    %cst_140 = arith.constant dense<0.000000e+00> : vector<8x64xf32>
    %175 = tpu.matmul %174, %173, %cst_140 {dimension_numbers = #tpu.dot_dimension_numbers<[1], [0], [0], [1], [0, 0, 1, 1], [], []>} : vector<8x64xbf16>, vector<64x64xbf16>, vector<8x64xf32> -> vector<8x64xf32>
    %c1_141 = arith.constant 1 : index
    %c0_142 = arith.constant 0 : index
    %c0_143 = arith.constant 0 : index
    %176 = vector.load %arg27[%c1_141, %c0_142, %c0_143] : memref<2x1x64xf32, #tpu.memory_space<vmem>>, vector<1x1x64xf32>
    %177 = vector.shape_cast %176 : vector<1x1x64xf32> to vector<1x64xf32>
    %178 = vector.broadcast %177 : vector<1x64xf32> to vector<8x64xf32>
    %179 = arith.addf %175, %178 : vector<8x64xf32>
    %cst_144 = arith.constant 0.000000e+00 : f32
    %180 = vector.broadcast %cst_144 : f32 to vector<8x64xf32>
    %181 = arith.maximumf %179, %180 : vector<8x64xf32>
    %182 = arith.addf %161, %181 : vector<8x64xf32>
    %cst_145 = arith.constant dense<0.000000e+00> : vector<8x64xf32>
    %183 = tpu.matmul %52, %182, %cst_145 {dimension_numbers = #tpu.dot_dimension_numbers<[1], [0], [0], [1], [0, 0, 1, 1], [], []>} : vector<8x8xf32>, vector<8x64xf32>, vector<8x64xf32> -> vector<8x64xf32>
    %c1_146 = arith.constant 1 : index
    %c0_147 = arith.constant 0 : index
    %c0_148 = arith.constant 0 : index
    %184 = vector.load %arg28[%c1_146, %c0_147, %c0_148] : memref<2x64x64xbf16, #tpu.memory_space<vmem>>, vector<1x64x64xbf16>
    %185 = vector.shape_cast %184 : vector<1x64x64xbf16> to vector<64x64xbf16>
    %186 = arith.truncf %183 : vector<8x64xf32> to vector<8x64xbf16>
    %cst_149 = arith.constant dense<0.000000e+00> : vector<8x64xf32>
    %187 = tpu.matmul %186, %185, %cst_149 {dimension_numbers = #tpu.dot_dimension_numbers<[1], [0], [0], [1], [0, 0, 1, 1], [], []>} : vector<8x64xbf16>, vector<64x64xbf16>, vector<8x64xf32> -> vector<8x64xf32>
    %c1_150 = arith.constant 1 : index
    %c0_151 = arith.constant 0 : index
    %c0_152 = arith.constant 0 : index
    %188 = vector.load %arg29[%c1_150, %c0_151, %c0_152] : memref<2x1x64xf32, #tpu.memory_space<vmem>>, vector<1x1x64xf32>
    %189 = vector.shape_cast %188 : vector<1x1x64xf32> to vector<1x64xf32>
    %190 = vector.broadcast %189 : vector<1x64xf32> to vector<8x64xf32>
    %191 = arith.addf %187, %190 : vector<8x64xf32>
    %cst_153 = arith.constant 0.000000e+00 : f32
    %192 = vector.broadcast %cst_153 : f32 to vector<8x64xf32>
    %193 = arith.maximumf %191, %192 : vector<8x64xf32>
    %c1_154 = arith.constant 1 : index
    %c0_155 = arith.constant 0 : index
    %c0_156 = arith.constant 0 : index
    %194 = vector.load %arg30[%c1_154, %c0_155, %c0_156] : memref<2x64x64xbf16, #tpu.memory_space<vmem>>, vector<1x64x64xbf16>
    %195 = vector.shape_cast %194 : vector<1x64x64xbf16> to vector<64x64xbf16>
    %196 = arith.truncf %193 : vector<8x64xf32> to vector<8x64xbf16>
    %cst_157 = arith.constant dense<0.000000e+00> : vector<8x64xf32>
    %197 = tpu.matmul %196, %195, %cst_157 {dimension_numbers = #tpu.dot_dimension_numbers<[1], [0], [0], [1], [0, 0, 1, 1], [], []>} : vector<8x64xbf16>, vector<64x64xbf16>, vector<8x64xf32> -> vector<8x64xf32>
    %c1_158 = arith.constant 1 : index
    %c0_159 = arith.constant 0 : index
    %c0_160 = arith.constant 0 : index
    %198 = vector.load %arg31[%c1_158, %c0_159, %c0_160] : memref<2x1x64xf32, #tpu.memory_space<vmem>>, vector<1x1x64xf32>
    %199 = vector.shape_cast %198 : vector<1x1x64xf32> to vector<1x64xf32>
    %200 = vector.broadcast %199 : vector<1x64xf32> to vector<8x64xf32>
    %201 = arith.addf %197, %200 : vector<8x64xf32>
    %202 = arith.addf %127, %201 : vector<8x64xf32>
    %c0_161 = arith.constant 0 : index
    %c0_162 = arith.constant 0 : index
    %203 = vector.load %arg32[%c0_161, %c0_162] : memref<64x512xbf16, #tpu.memory_space<vmem>>, vector<64x512xbf16>
    %c0_163 = arith.constant 0 : index
    %c0_164 = arith.constant 0 : index
    %204 = vector.load %arg33[%c0_163, %c0_164] : memref<1x512xf32, #tpu.memory_space<vmem>>, vector<1x512xf32>
    %c0_165 = arith.constant 0 : index
    %c0_166 = arith.constant 0 : index
    %205 = vector.load %arg34[%c0_165, %c0_166] : memref<512x256xbf16, #tpu.memory_space<vmem>>, vector<512x256xbf16>
    %c0_167 = arith.constant 0 : index
    %c0_168 = arith.constant 0 : index
    %206 = vector.load %arg35[%c0_167, %c0_168] : memref<1x256xf32, #tpu.memory_space<vmem>>, vector<1x256xf32>
    %c0_169 = arith.constant 0 : index
    %c0_170 = arith.constant 0 : index
    %207 = vector.load %arg36[%c0_169, %c0_170] : memref<256x128xbf16, #tpu.memory_space<vmem>>, vector<256x128xbf16>
    %c0_171 = arith.constant 0 : index
    %c0_172 = arith.constant 0 : index
    %208 = vector.load %arg37[%c0_171, %c0_172] : memref<1x128xf32, #tpu.memory_space<vmem>>, vector<1x128xf32>
    %209 = arith.truncf %202 : vector<8x64xf32> to vector<8x64xbf16>
    %cst_173 = arith.constant dense<0.000000e+00> : vector<8x512xf32>
    %210 = tpu.matmul %209, %203, %cst_173 {dimension_numbers = #tpu.dot_dimension_numbers<[1], [0], [0], [1], [0, 0, 1, 1], [], []>} : vector<8x64xbf16>, vector<64x512xbf16>, vector<8x512xf32> -> vector<8x512xf32>
    %211 = vector.broadcast %204 : vector<1x512xf32> to vector<8x512xf32>
    %212 = arith.addf %210, %211 : vector<8x512xf32>
    %cst_174 = arith.constant 0.000000e+00 : f32
    %213 = vector.broadcast %cst_174 : f32 to vector<8x512xf32>
    %214 = arith.maximumf %212, %213 : vector<8x512xf32>
    %215 = arith.truncf %214 : vector<8x512xf32> to vector<8x512xbf16>
    %cst_175 = arith.constant dense<0.000000e+00> : vector<8x256xf32>
    %216 = tpu.matmul %215, %205, %cst_175 {dimension_numbers = #tpu.dot_dimension_numbers<[1], [0], [0], [1], [0, 0, 1, 1], [], []>} : vector<8x512xbf16>, vector<512x256xbf16>, vector<8x256xf32> -> vector<8x256xf32>
    %217 = vector.broadcast %206 : vector<1x256xf32> to vector<8x256xf32>
    %218 = arith.addf %216, %217 : vector<8x256xf32>
    %cst_176 = arith.constant 0.000000e+00 : f32
    %219 = vector.broadcast %cst_176 : f32 to vector<8x256xf32>
    %220 = arith.maximumf %218, %219 : vector<8x256xf32>
    %221 = arith.truncf %220 : vector<8x256xf32> to vector<8x256xbf16>
    %cst_177 = arith.constant dense<0.000000e+00> : vector<8x128xf32>
    %222 = tpu.matmul %221, %207, %cst_177 {dimension_numbers = #tpu.dot_dimension_numbers<[1], [0], [0], [1], [0, 0, 1, 1], [], []>} : vector<8x256xbf16>, vector<256x128xbf16>, vector<8x128xf32> -> vector<8x128xf32>
    %223 = vector.broadcast %208 : vector<1x128xf32> to vector<8x128xf32>
    %224 = arith.addf %222, %223 : vector<8x128xf32>
    %c0_178 = arith.constant 0 : index
    %c0_179 = arith.constant 0 : index
    %225 = vector.load %arg44[%c0_178, %c0_179] : memref<8x128xf32, #tpu.memory_space<vmem>>, vector<8x128xf32>
    tpu.vector_store %arg44[%c0_178, %c0_179], %224 {strides = array<i32>} : memref<8x128xf32, #tpu.memory_space<vmem>>, vector<8x128xf32>,
    %c0_180 = arith.constant 0 : index
    %c0_181 = arith.constant 0 : index
    %226 = vector.load %arg38[%c0_180, %c0_181] : memref<64x512xbf16, #tpu.memory_space<vmem>>, vector<64x512xbf16>
    %c0_182 = arith.constant 0 : index
    %c0_183 = arith.constant 0 : index
    %227 = vector.load %arg39[%c0_182, %c0_183] : memref<1x512xf32, #tpu.memory_space<vmem>>, vector<1x512xf32>
    %c0_184 = arith.constant 0 : index
    %c0_185 = arith.constant 0 : index
    %228 = vector.load %arg40[%c0_184, %c0_185] : memref<512x256xbf16, #tpu.memory_space<vmem>>, vector<512x256xbf16>
    %c0_186 = arith.constant 0 : index
    %c0_187 = arith.constant 0 : index
    %229 = vector.load %arg41[%c0_186, %c0_187] : memref<1x256xf32, #tpu.memory_space<vmem>>, vector<1x256xf32>
    %c0_188 = arith.constant 0 : index
    %c0_189 = arith.constant 0 : index
    %230 = vector.load %arg42[%c0_188, %c0_189] : memref<256x128xbf16, #tpu.memory_space<vmem>>, vector<256x128xbf16>
    %c0_190 = arith.constant 0 : index
    %c0_191 = arith.constant 0 : index
    %231 = vector.load %arg43[%c0_190, %c0_191] : memref<1x128xf32, #tpu.memory_space<vmem>>, vector<1x128xf32>
    %232 = arith.truncf %171 : vector<8x64xf32> to vector<8x64xbf16>
    %cst_192 = arith.constant dense<0.000000e+00> : vector<8x512xf32>
    %233 = tpu.matmul %232, %226, %cst_192 {dimension_numbers = #tpu.dot_dimension_numbers<[1], [0], [0], [1], [0, 0, 1, 1], [], []>} : vector<8x64xbf16>, vector<64x512xbf16>, vector<8x512xf32> -> vector<8x512xf32>
    %234 = vector.broadcast %227 : vector<1x512xf32> to vector<8x512xf32>
    %235 = arith.addf %233, %234 : vector<8x512xf32>
    %cst_193 = arith.constant 0.000000e+00 : f32
    %236 = vector.broadcast %cst_193 : f32 to vector<8x512xf32>
    %237 = arith.maximumf %235, %236 : vector<8x512xf32>
    %238 = arith.truncf %237 : vector<8x512xf32> to vector<8x512xbf16>
    %cst_194 = arith.constant dense<0.000000e+00> : vector<8x256xf32>
    %239 = tpu.matmul %238, %228, %cst_194 {dimension_numbers = #tpu.dot_dimension_numbers<[1], [0], [0], [1], [0, 0, 1, 1], [], []>} : vector<8x512xbf16>, vector<512x256xbf16>, vector<8x256xf32> -> vector<8x256xf32>
    %240 = vector.broadcast %229 : vector<1x256xf32> to vector<8x256xf32>
    %241 = arith.addf %239, %240 : vector<8x256xf32>
    %cst_195 = arith.constant 0.000000e+00 : f32
    %242 = vector.broadcast %cst_195 : f32 to vector<8x256xf32>
    %243 = arith.maximumf %241, %242 : vector<8x256xf32>
    %244 = arith.truncf %243 : vector<8x256xf32> to vector<8x256xbf16>
    %cst_196 = arith.constant dense<0.000000e+00> : vector<8x128xf32>
    %245 = tpu.matmul %244, %230, %cst_196 {dimension_numbers = #tpu.dot_dimension_numbers<[1], [0], [0], [1], [0, 0, 1, 1], [], []>} : vector<8x256xbf16>, vector<256x128xbf16>, vector<8x128xf32> -> vector<8x128xf32>
    %246 = vector.broadcast %231 : vector<1x128xf32> to vector<8x128xf32>
    %247 = arith.addf %245, %246 : vector<8x128xf32>
    %c0_197 = arith.constant 0 : index
    %c0_198 = arith.constant 0 : index
    %248 = vector.load %arg45[%c0_197, %c0_198] : memref<8x128xf32, #tpu.memory_space<vmem>>, vector<8x128xf32>
    tpu.vector_store %arg45[%c0_197, %c0_198], %247 {strides = array<i32>} : memref<8x128xf32, #tpu.memory_space<vmem>>, vector<8x128xf32>,
    return
  }
  func.func @transform_0(%arg0: i32) -> (i32, i32) {
    %c0_i32 = arith.constant 0 : i32
    %c0_i32_0 = arith.constant 0 : i32
    %c0_i32_1 = arith.constant 0 : i32
    return %c0_i32, %c0_i32_0 : i32, i32
  }
  func.func @transform_1(%arg0: i32) -> (i32, i32) {
    %c0_i32 = arith.constant 0 : i32
    %c0_i32_0 = arith.constant 0 : i32
    %c0_i32_1 = arith.constant 0 : i32
    return %c0_i32, %c0_i32_0 : i32, i32
  }
  func.func @transform_2(%arg0: i32) -> (i32, i32) {
    %c0_i32 = arith.constant 0 : i32
    %c0_i32_0 = arith.constant 0 : i32
    %c0_i32_1 = arith.constant 0 : i32
    return %c0_i32, %c0_i32_0 : i32, i32
  }
  func.func @transform_3(%arg0: i32) -> (i32, i32) {
    %c0_i32 = arith.constant 0 : i32
    %c0_i32_0 = arith.constant 0 : i32
    %c0_i32_1 = arith.constant 0 : i32
    return %c0_i32, %c0_i32_0 : i32, i32
  }
  func.func @transform_4(%arg0: i32) -> (i32, i32) {
    %c0_i32 = arith.constant 0 : i32
    %c0_i32_0 = arith.constant 0 : i32
    %c0_i32_1 = arith.constant 0 : i32
    return %c0_i32, %c0_i32_0 : i32, i32
  }
  func.func @transform_5(%arg0: i32) -> (i32, i32) {
    %c0_i32 = arith.constant 0 : i32
    %c0_i32_0 = arith.constant 0 : i32
    %c0_i32_1 = arith.constant 0 : i32
    return %c0_i32, %c0_i32_0 : i32, i32
  }
  func.func @transform_6(%arg0: i32) -> (i32, i32) {
    %c0_i32 = arith.constant 0 : i32
    %c0_i32_0 = arith.constant 0 : i32
    %c0_i32_1 = arith.constant 0 : i32
    return %c0_i32, %c0_i32_0 : i32, i32
  }
  func.func @transform_7(%arg0: i32) -> (i32, i32) {
    %c0_i32 = arith.constant 0 : i32
    %c0_i32_0 = arith.constant 0 : i32
    %c0_i32_1 = arith.constant 0 : i32
    return %c0_i32, %c0_i32_0 : i32, i32
  }
  func.func @transform_8(%arg0: i32) -> (i32, i32) {
    %c0_i32 = arith.constant 0 : i32
    %c0_i32_0 = arith.constant 0 : i32
    %c0_i32_1 = arith.constant 0 : i32
    return %c0_i32, %c0_i32_0 : i32, i32
  }
  func.func @transform_9(%arg0: i32) -> (i32, i32) {
    %c0_i32 = arith.constant 0 : i32
    %c0_i32_0 = arith.constant 0 : i32
    %c0_i32_1 = arith.constant 0 : i32
    return %c0_i32, %c0_i32_0 : i32, i32
  }
  func.func @transform_10(%arg0: i32) -> (i32, i32) {
    %c0_i32 = arith.constant 0 : i32
    %c0_i32_0 = arith.constant 0 : i32
    %c0_i32_1 = arith.constant 0 : i32
    return %c0_i32, %c0_i32_0 : i32, i32
  }
  func.func @transform_11(%arg0: i32) -> (i32, i32) {
    %c0_i32 = arith.constant 0 : i32
    %c0_i32_0 = arith.constant 0 : i32
    %c0_i32_1 = arith.constant 0 : i32
    return %c0_i32, %c0_i32_0 : i32, i32
  }
  func.func @transform_12(%arg0: i32) -> (i32, i32) {
    %c0_i32 = arith.constant 0 : i32
    %c0_i32_0 = arith.constant 0 : i32
    %c0_i32_1 = arith.constant 0 : i32
    return %c0_i32, %c0_i32_0 : i32, i32
  }
  func.func @transform_13(%arg0: i32) -> (i32, i32) {
    %c0_i32 = arith.constant 0 : i32
    %c0_i32_0 = arith.constant 0 : i32
    %c0_i32_1 = arith.constant 0 : i32
    return %c0_i32, %c0_i32_0 : i32, i32
  }
  func.func @transform_14(%arg0: i32) -> (i32, i32) {
    %c0_i32 = arith.constant 0 : i32
    %c0_i32_0 = arith.constant 0 : i32
    %c0_i32_1 = arith.constant 0 : i32
    return %c0_i32, %c0_i32_0 : i32, i32
  }
  func.func @transform_15(%arg0: i32) -> (i32, i32) {
    %c0_i32 = arith.constant 0 : i32
    %c0_i32_0 = arith.constant 0 : i32
    %c0_i32_1 = arith.constant 0 : i32
    return %c0_i32, %c0_i32_0 : i32, i32
  }
  func.func @transform_16(%arg0: i32) -> (i32, i32) {
    %c0_i32 = arith.constant 0 : i32
    %c0_i32_0 = arith.constant 0 : i32
    %c0_i32_1 = arith.constant 0 : i32
    return %c0_i32, %c0_i32_0 : i32, i32
  }
  func.func @transform_17(%arg0: i32) -> (i32, i32, i32) {
    %c0_i32 = arith.constant 0 : i32
    %c0_i32_0 = arith.constant 0 : i32
    %c0_i32_1 = arith.constant 0 : i32
    %c0_i32_2 = arith.constant 0 : i32
    return %c0_i32, %c0_i32_0, %c0_i32_1 : i32, i32, i32
  }
  func.func @transform_18(%arg0: i32) -> (i32, i32, i32) {
    %c0_i32 = arith.constant 0 : i32
    %c0_i32_0 = arith.constant 0 : i32
    %c0_i32_1 = arith.constant 0 : i32
    %c0_i32_2 = arith.constant 0 : i32
    return %c0_i32, %c0_i32_0, %c0_i32_1 : i32, i32, i32
  }
  func.func @transform_19(%arg0: i32) -> (i32, i32, i32) {
    %c0_i32 = arith.constant 0 : i32
    %c0_i32_0 = arith.constant 0 : i32
    %c0_i32_1 = arith.constant 0 : i32
    %c0_i32_2 = arith.constant 0 : i32
    return %c0_i32, %c0_i32_0, %c0_i32_1 : i32, i32, i32
  }
  func.func @transform_20(%arg0: i32) -> (i32, i32, i32) {
    %c0_i32 = arith.constant 0 : i32
    %c0_i32_0 = arith.constant 0 : i32
    %c0_i32_1 = arith.constant 0 : i32
    %c0_i32_2 = arith.constant 0 : i32
    return %c0_i32, %c0_i32_0, %c0_i32_1 : i32, i32, i32
  }
  func.func @transform_21(%arg0: i32) -> (i32, i32, i32) {
    %c0_i32 = arith.constant 0 : i32
    %c0_i32_0 = arith.constant 0 : i32
    %c0_i32_1 = arith.constant 0 : i32
    %c0_i32_2 = arith.constant 0 : i32
    return %c0_i32, %c0_i32_0, %c0_i32_1 : i32, i32, i32
  }
  func.func @transform_22(%arg0: i32) -> (i32, i32, i32) {
    %c0_i32 = arith.constant 0 : i32
    %c0_i32_0 = arith.constant 0 : i32
    %c0_i32_1 = arith.constant 0 : i32
    %c0_i32_2 = arith.constant 0 : i32
    return %c0_i32, %c0_i32_0, %c0_i32_1 : i32, i32, i32
  }
  func.func @transform_23(%arg0: i32) -> (i32, i32, i32) {
    %c0_i32 = arith.constant 0 : i32
    %c0_i32_0 = arith.constant 0 : i32
    %c0_i32_1 = arith.constant 0 : i32
    %c0_i32_2 = arith.constant 0 : i32
    return %c0_i32, %c0_i32_0, %c0_i32_1 : i32, i32, i32
  }
  func.func @transform_24(%arg0: i32) -> (i32, i32, i32) {
    %c0_i32 = arith.constant 0 : i32
    %c0_i32_0 = arith.constant 0 : i32
    %c0_i32_1 = arith.constant 0 : i32
    %c0_i32_2 = arith.constant 0 : i32
    return %c0_i32, %c0_i32_0, %c0_i32_1 : i32, i32, i32
  }
  func.func @transform_25(%arg0: i32) -> (i32, i32, i32) {
    %c0_i32 = arith.constant 0 : i32
    %c0_i32_0 = arith.constant 0 : i32
    %c0_i32_1 = arith.constant 0 : i32
    %c0_i32_2 = arith.constant 0 : i32
    return %c0_i32, %c0_i32_0, %c0_i32_1 : i32, i32, i32
  }
  func.func @transform_26(%arg0: i32) -> (i32, i32, i32) {
    %c0_i32 = arith.constant 0 : i32
    %c0_i32_0 = arith.constant 0 : i32
    %c0_i32_1 = arith.constant 0 : i32
    %c0_i32_2 = arith.constant 0 : i32
    return %c0_i32, %c0_i32_0, %c0_i32_1 : i32, i32, i32
  }
  func.func @transform_27(%arg0: i32) -> (i32, i32, i32) {
    %c0_i32 = arith.constant 0 : i32
    %c0_i32_0 = arith.constant 0 : i32
    %c0_i32_1 = arith.constant 0 : i32
    %c0_i32_2 = arith.constant 0 : i32
    return %c0_i32, %c0_i32_0, %c0_i32_1 : i32, i32, i32
  }
  func.func @transform_28(%arg0: i32) -> (i32, i32, i32) {
    %c0_i32 = arith.constant 0 : i32
    %c0_i32_0 = arith.constant 0 : i32
    %c0_i32_1 = arith.constant 0 : i32
    %c0_i32_2 = arith.constant 0 : i32
    return %c0_i32, %c0_i32_0, %c0_i32_1 : i32, i32, i32
  }
  func.func @transform_29(%arg0: i32) -> (i32, i32, i32) {
    %c0_i32 = arith.constant 0 : i32
    %c0_i32_0 = arith.constant 0 : i32
    %c0_i32_1 = arith.constant 0 : i32
    %c0_i32_2 = arith.constant 0 : i32
    return %c0_i32, %c0_i32_0, %c0_i32_1 : i32, i32, i32
  }
  func.func @transform_30(%arg0: i32) -> (i32, i32, i32) {
    %c0_i32 = arith.constant 0 : i32
    %c0_i32_0 = arith.constant 0 : i32
    %c0_i32_1 = arith.constant 0 : i32
    %c0_i32_2 = arith.constant 0 : i32
    return %c0_i32, %c0_i32_0, %c0_i32_1 : i32, i32, i32
  }
  func.func @transform_31(%arg0: i32) -> (i32, i32) {
    %c0_i32 = arith.constant 0 : i32
    %c0_i32_0 = arith.constant 0 : i32
    %c0_i32_1 = arith.constant 0 : i32
    return %c0_i32, %c0_i32_0 : i32, i32
  }
  func.func @transform_32(%arg0: i32) -> (i32, i32) {
    %c0_i32 = arith.constant 0 : i32
    %c0_i32_0 = arith.constant 0 : i32
    %c0_i32_1 = arith.constant 0 : i32
    return %c0_i32, %c0_i32_0 : i32, i32
  }
  func.func @transform_33(%arg0: i32) -> (i32, i32) {
    %c0_i32 = arith.constant 0 : i32
    %c0_i32_0 = arith.constant 0 : i32
    %c0_i32_1 = arith.constant 0 : i32
    return %c0_i32, %c0_i32_0 : i32, i32
  }
  func.func @transform_34(%arg0: i32) -> (i32, i32) {
    %c0_i32 = arith.constant 0 : i32
    %c0_i32_0 = arith.constant 0 : i32
    %c0_i32_1 = arith.constant 0 : i32
    return %c0_i32, %c0_i32_0 : i32, i32
  }
  func.func @transform_35(%arg0: i32) -> (i32, i32) {
    %c0_i32 = arith.constant 0 : i32
    %c0_i32_0 = arith.constant 0 : i32
    %c0_i32_1 = arith.constant 0 : i32
    return %c0_i32, %c0_i32_0 : i32, i32
  }
  func.func @transform_36(%arg0: i32) -> (i32, i32) {
    %c0_i32 = arith.constant 0 : i32
    %c0_i32_0 = arith.constant 0 : i32
    %c0_i32_1 = arith.constant 0 : i32
    return %c0_i32, %c0_i32_0 : i32, i32
  }
  func.func @transform_37(%arg0: i32) -> (i32, i32) {
    %c0_i32 = arith.constant 0 : i32
    %c0_i32_0 = arith.constant 0 : i32
    %c0_i32_1 = arith.constant 0 : i32
    return %c0_i32, %c0_i32_0 : i32, i32
  }
  func.func @transform_38(%arg0: i32) -> (i32, i32) {
    %c0_i32 = arith.constant 0 : i32
    %c0_i32_0 = arith.constant 0 : i32
    %c0_i32_1 = arith.constant 0 : i32
    return %c0_i32, %c0_i32_0 : i32, i32
  }
  func.func @transform_39(%arg0: i32) -> (i32, i32) {
    %c0_i32 = arith.constant 0 : i32
    %c0_i32_0 = arith.constant 0 : i32
    %c0_i32_1 = arith.constant 0 : i32
    return %c0_i32, %c0_i32_0 : i32, i32
  }
  func.func @transform_40(%arg0: i32) -> (i32, i32) {
    %c0_i32 = arith.constant 0 : i32
    %c0_i32_0 = arith.constant 0 : i32
    %c0_i32_1 = arith.constant 0 : i32
    return %c0_i32, %c0_i32_0 : i32, i32
  }
  func.func @transform_41(%arg0: i32) -> (i32, i32) {
    %c0_i32 = arith.constant 0 : i32
    %c0_i32_0 = arith.constant 0 : i32
    %c0_i32_1 = arith.constant 0 : i32
    return %c0_i32, %c0_i32_0 : i32, i32
  }
  func.func @transform_42(%arg0: i32) -> (i32, i32) {
    %c0_i32 = arith.constant 0 : i32
    %c0_i32_0 = arith.constant 0 : i32
    %c0_i32_1 = arith.constant 0 : i32
    return %c0_i32, %c0_i32_0 : i32, i32
  }
  func.func @transform_43(%arg0: i32) -> (i32, i32) {
    %c0_i32 = arith.constant 0 : i32
    %c0_i32_0 = arith.constant 0 : i32
    %c0_i32_1 = arith.constant 0 : i32
    return %c0_i32, %c0_i32_0 : i32, i32
  }
  func.func @transform_44(%arg0: i32) -> (i32, i32) {
    %c0_i32 = arith.constant 0 : i32
    %c0_i32_0 = arith.constant 0 : i32
    %c0_i32_1 = arith.constant 0 : i32
    return %c0_i32, %c0_i32_0 : i32, i32
  }
}

</mosaic_0001>

<bundles_post_ra>
// kernel: _fused_forward.1
= control target key start
LH: loop header
LB: loop body
LE: loop exit
PB: predicated region body
PF: predicated region fallthrough
CT: control target
= control target key end

     0   :  { %s12633_s6 = smov 1   ;;  %s12634_s10 = smov 2   ;;  %s15182_s0 = inlined_call_operand.smem [shape: u32[45], index: -1, kind: input, shape index: {}] }
   0x1   :  { %s12690_s5 = sld [smem:[%s15182_s0]]   ;;  %s12635_s14 = smov 3  }
   0x2   :  { %s12695_s9 = sld [smem:[%s15182_s0 + %s12633_s6]]   ;;  %s12636_s18 = smov 4  }
   0x3   :  { %s12700_s13 = sld [smem:[%s15182_s0 + %s12634_s10]]   ;;  %s12637_s22 = smov 5  }
   0x4   :  { %s12705_s17 = sld [smem:[%s15182_s0 + %s12635_s14]]   ;;  %s12638_s26 = smov 6  }
   0x5   :  { %s12710_s21 = sld [smem:[%s15182_s0 + %s12636_s18]]   ;;  %s12639_s30 = smov 7  }
   0x6   :  { %s12715_s25 = sld [smem:[%s15182_s0 + %s12637_s22]]   ;;  %s12640_s4 = smov 8  }
   0x7   :  { %s12720_s29 = sld [smem:[%s15182_s0 + %s12638_s26]]   ;;  %s12641_s10 = smov 9  }
   0x8   :  { %s12725_s3 = sld [smem:[%s15182_s0 + %s12639_s30]]   ;;  %s12642_s15 = smov 10  }
   0x9   :  { %s12730_s8 = sld [smem:[%s15182_s0 + %s12640_s4]]   ;;  %s12643_s20 = smov 11  }
   0xa   :  { %15204 = sst [smem:[#allocation5_spill]] %s12705_s17  ;;  %s12644_s26 = smov 12  }
   0xb   :  { %15205 = sst [smem:[#allocation6_spill]] %s12710_s21  ;;  %s12645_s1 = smov 13  }
   0xc   :  { %s12735_s14 = sld [smem:[%s15182_s0 + %s12641_s10]]   ;;  %s12646_s7 = smov 14  }
   0xd   :  { %s12740_s19 = sld [smem:[%s15182_s0 + %s12642_s15]]   ;;  %s12647_s15 = smov 15  }
   0xe   :  { %s12745_s24 = sld [smem:[%s15182_s0 + %s12643_s20]]   ;;  %s12648_s22 = smov 16  }
   0xf   :  { %s12750_s30 = sld [smem:[%s15182_s0 + %s12644_s26]]   ;;  %s12649_s28 = smov 17  }
  0x10   :  { %s12755_s6 = sld [smem:[%s15182_s0 + %s12645_s1]]  }
  0x11   :  { %s12760_s12 = sld [smem:[%s15182_s0 + %s12646_s7]]   ;;  %s12650_s7 = smov 18  }
  0x12   :  { %s12765_s20 = sld [smem:[%s15182_s0 + %s12647_s15]]   ;;  %s12651_s15 = smov 19  }
  0x13   :  { %s12770_s27 = sld [smem:[%s15182_s0 + %s12648_s22]]   ;;  %s12652_s22 = smov 20  }
  0x14   :  { %s12775_s4 = sld [smem:[%s15182_s0 + %s12649_s28]]   ;;  %s12653_s28 = smov 21  }
  0x15   :  { %s12780_s21 = sld [smem:[%s15182_s0 + %s12650_s7]]   ;;  %s12654_s7 = smov 22  }
  0x16   :  { %s12785_s17 = sld [smem:[%s15182_s0 + %s12651_s15]]   ;;  %s12655_s15 = smov 23  }
  0x19   :  { %15206 = sst [smem:[#allocation7_spill]] %s12770_s27 }
  0x1a   :  { %15207 = sst [smem:[#allocation8_spill]] %s12775_s4 }
  0x1b   :  { %15208 = sst [smem:[#allocation9_spill]] %s12780_s21 }
  0x1c   :  { %15209 = sst [smem:[#allocation10_spill]] %s12785_s17 }
  0x1d   :  { %s12790_s27 = sld [smem:[%s15182_s0 + %s12652_s22]]   ;;  %s12656_s22 = smov 24  }
  0x1e   :  { %s12795_s4 = sld [smem:[%s15182_s0 + %s12653_s28]]   ;;  %s12657_s28 = smov 25  }
  0x1f   :  { %s12800_s21 = sld [smem:[%s15182_s0 + %s12654_s7]]   ;;  %s12658_s7 = smov 26  }
  0x20   :  { %s12805_s17 = sld [smem:[%s15182_s0 + %s12655_s15]]   ;;  %s12659_s15 = smov 27  }
  0x23   :  { %15210 = sst [smem:[#allocation11_spill]] %s12790_s27 }
  0x24   :  { %15211 = sst [smem:[#allocation12_spill]] %s12795_s4 }
  0x25   :  { %15212 = sst [smem:[#allocation13_spill]] %s12800_s21 }
  0x26   :  { %15213 = sst [smem:[#allocation14_spill]] %s12805_s17 }
  0x27   :  { %s12810_s27 = sld [smem:[%s15182_s0 + %s12656_s22]]   ;;  %s12660_s22 = smov 28  }
  0x28   :  { %s12815_s4 = sld [smem:[%s15182_s0 + %s12657_s28]]   ;;  %s12661_s28 = smov 29  }
  0x29   :  { %s12820_s21 = sld [smem:[%s15182_s0 + %s12658_s7]]   ;;  %s12662_s7 = smov 30  }
  0x2a   :  { %s12825_s17 = sld [smem:[%s15182_s0 + %s12659_s15]]   ;;  %s12663_s15 = smov 31  }
  0x2d   :  { %15214 = sst [smem:[#allocation15_spill]] %s12810_s27 }
  0x2e   :  { %15215 = sst [smem:[#allocation16_spill]] %s12815_s4 }
  0x2f   :  { %15216 = sst [smem:[#allocation17_spill]] %s12820_s21 }
  0x30   :  { %15217 = sst [smem:[#allocation18_spill]] %s12825_s17 }
  0x31   :  { %s12830_s27 = sld [smem:[%s15182_s0 + %s12660_s22]]   ;;  %s12664_s22 = smov 32  }
  0x32   :  { %s12835_s4 = sld [smem:[%s15182_s0 + %s12661_s28]]   ;;  %s12665_s28 = smov 33  }
  0x33   :  { %s12840_s21 = sld [smem:[%s15182_s0 + %s12662_s7]]   ;;  %s12666_s7 = smov 34  }
  0x34   :  { %s12845_s17 = sld [smem:[%s15182_s0 + %s12663_s15]]   ;;  %s12667_s15 = smov 35  }
  0x37   :  { %15218 = sst [smem:[#allocation19_spill]] %s12830_s27 }
  0x38   :  { %15219 = sst [smem:[#allocation20_spill]] %s12835_s4 }
  0x39   :  { %15220 = sst [smem:[#allocation21_spill]] %s12840_s21 }
  0x3a   :  { %15221 = sst [smem:[#allocation22_spill]] %s12845_s17 }
  0x3b   :  { %s12850_s27 = sld [smem:[%s15182_s0 + %s12664_s22]]   ;;  %s12668_s22 = smov 36  }
  0x3c   :  { %s12855_s4 = sld [smem:[%s15182_s0 + %s12665_s28]]   ;;  %s12669_s28 = smov 37  }
  0x3d   :  { %s12860_s21 = sld [smem:[%s15182_s0 + %s12666_s7]]   ;;  %s12670_s7 = smov 38  }
  0x3e   :  { %s12865_s17 = sld [smem:[%s15182_s0 + %s12667_s15]]   ;;  %s12671_s15 = smov 39  }
  0x41   :  { %15222 = sst [smem:[#allocation23_spill]] %s12850_s27 }
  0x42   :  { %15223 = sst [smem:[#allocation24_spill]] %s12855_s4 }
  0x43   :  { %15224 = sst [smem:[#allocation25_spill]] %s12860_s21 }
  0x44   :  { %15225 = sst [smem:[#allocation26_spill]] %s12865_s17 }
  0x45   :  { %s12870_s27 = sld [smem:[%s15182_s0 + %s12668_s22]]   ;;  %s12672_s22 = smov 40  }
  0x46   :  { %s12875_s4 = sld [smem:[%s15182_s0 + %s12669_s28]]   ;;  %s12673_s28 = smov 41  }
  0x47   :  { %s12880_s21 = sld [smem:[%s15182_s0 + %s12670_s7]]   ;;  %s12674_s7 = smov 42  }
  0x48   :  { %s12885_s17 = sld [smem:[%s15182_s0 + %s12671_s15]]   ;;  %s12675_s15 = smov 43  }
  0x4b   :  { %15226 = sst [smem:[#allocation27_spill]] %s12870_s27 }
  0x4c   :  { %15227 = sst [smem:[#allocation28_spill]] %s12875_s4 }
  0x4d   :  { %15228 = sst [smem:[#allocation29_spill]] %s12880_s21 }
  0x4e   :  { %15229 = sst [smem:[#allocation30_spill]] %s12885_s17 }
  0x4f   :  { %s12890_s27 = sld [smem:[%s15182_s0 + %s12672_s22]]   ;;  %s12676_s22 = smov 44  }
  0x50   :  { %s12895_s4 = sld [smem:[%s15182_s0 + %s12673_s28]]  }
  0x51   :  { %s12900_s21 = sld [smem:[%s15182_s0 + %s12674_s7]]  }
  0x52   :  { %s12905_s17 = sld [smem:[%s15182_s0 + %s12675_s15]]  }
  0x55   :  { %15230 = sst [smem:[#allocation31_spill]] %s12890_s27 }
  0x56   :  { %s12910_s27 = sld [smem:[%s15182_s0 + %s12676_s22]]  }
  0x57   :  { %v311_v0 = vld [vmem:[%s12715_s25] sm:$0x3]  ;;  %vm602_vm0 = vcmask 1040384   ;;  %vm603_vm1 = vcmask 1041408   ;;  %v12677_v2 = vmov 65535   ;;  %v184_v4 = vld [vmem:[%s12690_s5 + $0x8] sm:$0xff] }
  0x58   :  { %v183_v1 = vld [vmem:[%s12690_s5] sm:$0xff]  ;;  %v604_v3 = vsel %vm602_vm0, 4294967295, %v12677_v2  ;;  %vm409_vm2 = vcmask 23552   ;;  %v185_v7 = vld [vmem:[%s12690_s5 + $0x10] sm:$0xff]  ;;  %v186_v8 = vld [vmem:[%s12690_s5 + $0x18] sm:$0xff] }
  0x59   :  { %v605_v5 = vsel %vm603_vm1, %v604_v3, 0  ;;  %v339_v6 = vpack.c.bf16 %v184_v4, %v183_v1  ;;  %v187_v10 = vld [vmem:[%s12690_s5 + $0x20] sm:$0xff]  ;;  %v188_v11 = vld [vmem:[%s12690_s5 + $0x28] sm:$0xff]  ;;  %v340_v12 = vpack.c.bf16 %v186_v8, %v185_v7  ;;  %v189_v14 = vld [vmem:[%s12690_s5 + $0x30] sm:$0xff] }
  0x5a   :  { %v607_v9 = vand.u32 %v605_v5, %v311_v0  ;;  %v341_v13 = vpack.c.bf16 %v188_v11, %v187_v10  ;;  %v190_v15 = vld [vmem:[%s12690_s5 + $0x38] sm:$0xff]  ;;  %v191_v16 = vld [vmem:[%s12690_s5 + $0x40] sm:$0xff]  ;;  %v192_v17 = vld [vmem:[%s12690_s5 + $0x48] sm:$0xff] }
  0x5b   :  { %11135 = vmatprep.mubr.msk.bf16.mxu0 %vm409_vm2, %v339_v6  ;;  %v342_v18 = vpack.c.bf16 %v190_v15, %v189_v14  ;;  %v343_v19 = vpack.c.bf16 %v192_v17, %v191_v16  ;;  %v193_v20 = vld [vmem:[%s12690_s5 + $0x50] sm:$0xff]  ;;  %v194_v21 = vld [vmem:[%s12690_s5 + $0x58] sm:$0xff]  ;;  %v195_v22 = vld [vmem:[%s12690_s5 + $0x60] sm:$0xff] }
  0x5c   :  { %11133 = vmatprep.subr.bf16.mxu0 %v607_v9  ;;  %12175 = vmatprep.subr.bf16.mxu1 %v607_v9  ;;  %v196_v23 = vld [vmem:[%s12690_s5 + $0x68] sm:$0xff]  ;;  %v344_v24 = vpack.c.bf16 %v194_v21, %v193_v20  ;;  %v197_v26 = vld [vmem:[%s12690_s5 + $0x70] sm:$0xff]  ;;  %v198_v27 = vld [vmem:[%s12690_s5 + $0x78] sm:$0xff] }
  0x5d   :  { %11134 = vmatpush3.bf16.msra.mxu0 %v607_v9  ;;  %12176 = vmatpush3.bf16.msra.mxu1 %v607_v9  ;;  %v345_v25 = vpack.c.bf16 %v196_v23, %v195_v22  ;;  %v199_v28 = vld [vmem:[%s12690_s5 + $0x80] sm:$0xff]  ;;  %v200_v29 = vld [vmem:[%s12690_s5 + $0x88] sm:$0xff]  ;;  %v346_v30 = vpack.c.bf16 %v198_v27, %v197_v26  ;;  %v201_v32 = vld [vmem:[%s12690_s5 + $0x90] sm:$0xff] }
  0x5e   :  { %v347_v31 = vpack.c.bf16 %v200_v29, %v199_v28  ;;  %v202_v33 = vld [vmem:[%s12690_s5 + $0x98] sm:$0xff]  ;;  %v203_v34 = vld [vmem:[%s12690_s5 + $0xa0] sm:$0xff]  ;;  %v204_v35 = vld [vmem:[%s12690_s5 + $0xa8] sm:$0xff] }
  0x5f   :  { %v348_v36 = vpack.c.bf16 %v202_v33, %v201_v32  ;;  %v349_v37 = vpack.c.bf16 %v204_v35, %v203_v34  ;;  %v205_v38 = vld [vmem:[%s12690_s5 + $0xb0] sm:$0xff]  ;;  %v206_v39 = vld [vmem:[%s12690_s5 + $0xb8] sm:$0xff]  ;;  %v207_v40 = vld [vmem:[%s12690_s5 + $0xc0] sm:$0xff] }
  0x60   :  { %11136 = vmatmul.mubr.msk.bf16.vlgmr.msra.gmra.mrb[0].mxu0 %vm409_vm2, %v340_v12  ;;  %v208_v41 = vld [vmem:[%s12690_s5 + $0xc8] sm:$0xff]  ;;  %v350_v42 = vpack.c.bf16 %v206_v39, %v205_v38  ;;  %v209_v44 = vld [vmem:[%s12690_s5 + $0xd0] sm:$0xff]  ;;  %v210_v45 = vld [vmem:[%s12690_s5 + $0xd8] sm:$0xff] }
  0x61   :  { %11139 = vmatprep.mubr.msk.bf16.mxu0 %vm409_vm2, %v341_v13  ;;  %v351_v43 = vpack.c.bf16 %v208_v41, %v207_v40  ;;  %v211_v46 = vld [vmem:[%s12690_s5 + $0xe0] sm:$0xff]  ;;  %v212_v47 = vld [vmem:[%s12690_s5 + $0xe8] sm:$0xff]  ;;  %v352_v48 = vpack.c.bf16 %v210_v45, %v209_v44  ;;  %v213_v50 = vld [vmem:[%s12690_s5 + $0xf0] sm:$0xff] }
  0x62   :  { %v353_v49 = vpack.c.bf16 %v212_v47, %v211_v46  ;;  %v214_v51 = vld [vmem:[%s12690_s5 + $0xf8] sm:$0xff]  ;;  %v215_v52 = vld [vmem:[%s12690_s5 + $0x100] sm:$0xff]  ;;  %v216_v53 = vld [vmem:[%s12690_s5 + $0x108] sm:$0xff] }
  0x63   :  { %v354_v54 = vpack.c.bf16 %v214_v51, %v213_v50  ;;  %v355_v55 = vpack.c.bf16 %v216_v53, %v215_v52  ;;  %v217_v56 = vld [vmem:[%s12690_s5 + $0x110] sm:$0xff]  ;;  %v218_v57 = vld [vmem:[%s12690_s5 + $0x118] sm:$0xff]  ;;  %v219_v58 = vld [vmem:[%s12690_s5 + $0x120] sm:$0xff] }
  0x64   :  { %v220_v59 = vld [vmem:[%s12690_s5 + $0x128] sm:$0xff]  ;;  %v356_v60 = vpack.c.bf16 %v218_v57, %v217_v56  ;;  %v299_v62 = vld [vmem:[%s12690_s5 + $0x3a0] sm:$0xff]  ;;  %v221_v0 = vld [vmem:[%s12690_s5 + $0x130] sm:$0xff] }
  0x65   :  { %v357_v61 = vpack.c.bf16 %v220_v59, %v219_v58  ;;  %v300_v63 = vld [vmem:[%s12690_s5 + $0x3a8] sm:$0xff]  ;;  %v301_v2 = vld [vmem:[%s12690_s5 + $0x3b0] sm:$0xff]  ;;  %v302_v3 = vld [vmem:[%s12690_s5 + $0x3b8] sm:$0xff] }
  0x66   :  { %v397_v1 = vpack.c.bf16 %v300_v63, %v299_v62  ;;  %v222_v4 = vld [vmem:[%s12690_s5 + $0x138] sm:$0xff]  ;;  %v223_v5 = vld [vmem:[%s12690_s5 + $0x140] sm:$0xff]  ;;  %v224_v6 = vld [vmem:[%s12690_s5 + $0x148] sm:$0xff]  ;;  %v398_v7 = vpack.c.bf16 %v302_v3, %v301_v2 }
  0x67   :  { %v358_v8 = vpack.c.bf16 %v222_v4, %v221_v0  ;;  %v359_v9 = vpack.c.bf16 %v224_v6, %v223_v5  ;;  %v303_v10 = vld [vmem:[%s12690_s5 + $0x3c0] sm:$0xff]  ;;  %v304_v11 = vld [vmem:[%s12690_s5 + $0x3c8] sm:$0xff]  ;;  %v305_v13 = vld [vmem:[%s12690_s5 + $0x3d0] sm:$0xff] }
  0x68   :  { %11140 = vmatmul.mubr.msk.bf16.gmra.mrb[4].mxu0 %vm409_vm2, %v342_v18  ;;  %11251 = vmatprep.mubr.msk.bf16.mxu1 %vm409_vm2, %v397_v1  ;;  %v399_v12 = vpack.c.bf16 %v304_v11, %v303_v10  ;;  %v306_v14 = vld [vmem:[%s12690_s5 + $0x3d8] sm:$0xff]  ;;  %v12239_v15 = vld [vmem:[%s12725_s3] sm:$0xff]   ;;  %v225_v16 = vld [vmem:[%s12690_s5 + $0x150] sm:$0xff] }
  0x69   :  { %11143 = vmatprep.mubr.msk.bf16.mxu0 %vm409_vm2, %v343_v19  ;;  %11252 = vmatmul.mubr.msk.bf16.vlgmr.msra.gmra.mrb[0].mxu1 %vm409_vm2, %v398_v7  ;;  %v226_v17 = vld [vmem:[%s12690_s5 + $0x158] sm:$0xff]  ;;  %v227_v18 = vld [vmem:[%s12690_s5 + $0x160] sm:$0xff]  ;;  %v400_v19 = vpack.c.bf16 %v306_v14, %v305_v13  ;;  %v228_v20 = vld [vmem:[%s12690_s5 + $0x168] sm:$0xff] }
  0x6a   :  { %11255 = vmatprep.mubr.msk.bf16.mxu1 %vm409_vm2, %v399_v12  ;;  %11263 = vmatprep.subr.bf16.mxu1 %v12239_v15  ;;  %v360_v21 = vpack.c.bf16 %v226_v17, %v225_v16  ;;  %v361_v22 = vpack.c.bf16 %v228_v20, %v227_v18  ;;  %v229_v23 = vld [vmem:[%s12690_s5 + $0x170] sm:$0xff]  ;;  %v308_v26 = vld [vmem:[%s12690_s5 + $0x3e8] sm:$0xff]  ;;  %v231_v27 = vld [vmem:[%s12690_s5 + $0x180] sm:$0xff] }
  0x6b   :  { %11264 = vmatpush3.bf16.msra.mxu1 %v12239_v15  ;;  %v232_v28 = vld [vmem:[%s12690_s5 + $0x188] sm:$0xff]  ;;  %v310_v32 = vld [vmem:[%s12690_s5 + $0x3f8] sm:$0xff]  ;;  %v12241_v35 = vld [vmem:[%s12725_s3 + $0x10] sm:$0xff]  }
  0x6c   :  { %v234_v38 = vld [vmem:[%s12690_s5 + $0x198] sm:$0xff]  ;;  %v235_v39 = vld [vmem:[%s12690_s5 + $0x1a0] sm:$0xff]  ;;  %v236_v40 = vld [vmem:[%s12690_s5 + $0x1a8] sm:$0xff] }
  0x6d   :  { %v12242_v41 = vld [vmem:[%s12725_s3 + $0x18] sm:$0xff]   ;;  %v365_v44 = vpack.c.bf16 %v236_v40, %v235_v39  ;;  %v237_v45 = vld [vmem:[%s12690_s5 + $0x1b0] sm:$0xff]  ;;  %v239_v47 = vld [vmem:[%s12690_s5 + $0x1c0] sm:$0xff] }
  0x6e   :  { %v238_v46 = vld [vmem:[%s12690_s5 + $0x1b8] sm:$0xff]  ;;  %v241_v51 = vld [vmem:[%s12690_s5 + $0x1d0] sm:$0xff]  ;;  %v13025_v53 = vld [vmem:[%s12745_s24] sm:$0x3] }
  0x6f   :  { %v242_v52 = vld [vmem:[%s12690_s5 + $0x1d8] sm:$0xff]  ;;  %v245_v58 = vld [vmem:[%s12690_s5 + $0x1f0] sm:$0xff]  ;;  %v251_v2 = vld [vmem:[%s12690_s5 + $0x220] sm:$0xff] }
  0x70   :  { %11144 = vmatmul.mubr.msk.bf16.gmra.mrb[8].mxu0 %vm409_vm2, %v344_v24  ;;  %v230_v24 = vld [vmem:[%s12690_s5 + $0x178] sm:$0xff]  ;;  %v368_v56 = vpack.c.bf16 %v242_v52, %v241_v51  ;;  %v249_v0 = vld [vmem:[%s12690_s5 + $0x210] sm:$0xff]  ;;  %v252_v3 = vld [vmem:[%s12690_s5 + $0x228] sm:$0xff] }
  0x71   :  { %11147 = vmatprep.mubr.msk.bf16.mxu0 %vm409_vm2, %v345_v25  ;;  %11256 = vmatmul.mubr.msk.bf16.gmra.mrb[4].mxu1 %vm409_vm2, %v400_v19  ;;  %v307_v25 = vld [vmem:[%s12690_s5 + $0x3e0] sm:$0xff]  ;;  %v362_v34 = vpack.c.bf16 %v230_v24, %v229_v23  ;;  %v246_v59 = vld [vmem:[%s12690_s5 + $0x1f8] sm:$0xff]  ;;  %v12244_v4 = vld [vmem:[%s12735_s14 + $0x8] sm:$0xff]   ;;  %v373_v6 = vpack.c.bf16 %v252_v3, %v251_v2 }
  0x72   :  { %v401_v29 = vpack.c.bf16 %v308_v26, %v307_v25  ;;  %v370_v62 = vpack.c.bf16 %v246_v59, %v245_v58  ;;  %v250_v1 = vld [vmem:[%s12690_s5 + $0x218] sm:$0xff]  ;;  %v253_v7 = vld [vmem:[%s12690_s5 + $0x230] sm:$0xff]  ;;  %v256_v10 = vld [vmem:[%s12690_s5 + $0x248] sm:$0xff] }
  0x73   :  { %v372_v5 = vpack.c.bf16 %v250_v1, %v249_v0  ;;  %v257_v13 = vld [vmem:[%s12690_s5 + $0x250] sm:$0xff]  ;;  %v258_v14 = vld [vmem:[%s12690_s5 + $0x258] sm:$0xff]  ;;  %v259_v15 = vld [vmem:[%s12690_s5 + $0x260] sm:$0xff] }
  0x74   :  { %11259 = vmatprep.mubr.msk.bf16.mxu1 %vm409_vm2, %v401_v29  ;;  %v260_v16 = vld [vmem:[%s12690_s5 + $0x268] sm:$0xff]  ;;  %v376_v17 = vpack.c.bf16 %v258_v14, %v257_v13  ;;  %v261_v19 = vld [vmem:[%s12690_s5 + $0x270] sm:$0xff]  ;;  %v262_v20 = vld [vmem:[%s12690_s5 + $0x278] sm:$0xff] }
  0x75   :  { %v377_v18 = vpack.c.bf16 %v260_v16, %v259_v15  ;;  %v378_v23 = vpack.c.bf16 %v262_v20, %v261_v19  ;;  %v265_v25 = vld [vmem:[%s12690_s5 + $0x290] sm:$0xff]  ;;  %v266_v26 = vld [vmem:[%s12690_s5 + $0x298] sm:$0xff]  ;;  %v268_v29 = vld [vmem:[%s12690_s5 + $0x2a8] sm:$0xff] }
  0x76   :  { %v274_v39 = vld [vmem:[%s12690_s5 + $0x2d8] sm:$0xff]  ;;  %v275_v40 = vld [vmem:[%s12690_s5 + $0x2e0] sm:$0xff] }
  0x78   :  { %11148 = vmatmul.mubr.msk.bf16.gmra.mrb[12].mxu0 %vm409_vm2, %v346_v30  ;;  %v12240_v30 = vld [vmem:[%s12725_s3 + $0x8] sm:$0xff]  }
  0x79   :  { %11151 = vmatprep.mubr.msk.bf16.mxu0 %vm409_vm2, %v347_v31  ;;  %v309_v31 = vld [vmem:[%s12690_s5 + $0x3f0] sm:$0xff]  ;;  %11265 = vmatprep.subr.bf16.mxu1 %v12240_v30 }
  0x7a   :  { %v402_v33 = vpack.c.bf16 %v310_v32, %v309_v31  ;;  %11266 = vmatpush3.bf16.msra.mxu1 %v12240_v30  ;;  %v380_v30 = vpack.c.bf16 %v266_v26, %v265_v25  ;;  %v269_v32 = vld [vmem:[%s12690_s5 + $0x2b0] sm:$0xff] }
  0x7b   :  { %11267 = vmatprep.subr.bf16.mxu1 %v12241_v35 }
  0x7c   :  { %11260 = vmatmul.mubr.msk.bf16.gmra.mrb[8].mxu1 %vm409_vm2, %v402_v33  ;;  %v270_v33 = vld [vmem:[%s12690_s5 + $0x2b8] sm:$0xff] }
  0x7e   :  { %11268 = vmatpush3.bf16.msra.mxu1 %v12241_v35  ;;  %v272_v35 = vld [vmem:[%s12690_s5 + $0x2c8] sm:$0xff] }
  0x7f   :  { %11269 = vmatprep.subr.bf16.mxu1 %v12242_v41 }
  0x80   :  { %11152 = vmatmul.mubr.msk.bf16.gmra.mrb[16].mxu0 %vm409_vm2, %v348_v36  ;;  %v363_v36 = vpack.c.bf16 %v232_v28, %v231_v27  ;;  %v12245_v27 = vld [vmem:[%s12735_s14 + $0x10] sm:$0xff]   ;;  %v267_v28 = vld [vmem:[%s12690_s5 + $0x2a0] sm:$0xff] }
  0x81   :  { %11155 = vmatprep.mubr.msk.bf16.mxu0 %vm409_vm2, %v349_v37  ;;  %v233_v37 = vld [vmem:[%s12690_s5 + $0x190] sm:$0xff]  ;;  %v381_v31 = vpack.c.bf16 %v268_v29, %v267_v28 }
  0x82   :  { %11270 = vmatpush3.bf16.msra.mxu1 %v12242_v41  ;;  %v276_v41 = vld [vmem:[%s12690_s5 + $0x2e8] sm:$0xff] }
  0x83   :  { %12189 = vmatprep.subr.msk.bf16.mxu1 %vm603_vm1, %v13025_v53 }
  0x88   :  { %11156 = vmatmul.mubr.msk.bf16.gmra.mrb[20].mxu0 %vm409_vm2, %v350_v42  ;;  %v12243_v42 = vld [vmem:[%s12735_s14] sm:$0xff]  }
  0x89   :  { %11159 = vmatprep.mubr.msk.bf16.mxu0 %vm409_vm2, %v351_v43  ;;  %v364_v43 = vpack.c.bf16 %v234_v38, %v233_v37  ;;  %11399 = vmatprep.subr.bf16.mxu0 %v12243_v42  ;;  %v273_v38 = vld [vmem:[%s12690_s5 + $0x2d0] sm:$0xff] }
  0x8a   :  { %11400 = vmatpush3.bf16.msra.mxu0 %v12243_v42 }
  0x8b   :  { %11401 = vmatprep.subr.bf16.mxu0 %v12244_v4 }
  0x8e   :  { %11402 = vmatpush3.bf16.msra.mxu0 %v12244_v4 }
  0x8f   :  { %11403 = vmatprep.subr.bf16.mxu0 %v12245_v27 }
  0x90   :  { %11160 = vmatmul.mubr.msk.bf16.gmra.mrb[24].mxu0 %vm409_vm2, %v352_v48  ;;  %v240_v48 = vld [vmem:[%s12690_s5 + $0x1c8] sm:$0xff] }
  0x91   :  { %11163 = vmatprep.mubr.msk.bf16.mxu0 %vm409_vm2, %v353_v49  ;;  %v366_v49 = vpack.c.bf16 %v238_v46, %v237_v45  ;;  %v367_v50 = vpack.c.bf16 %v240_v48, %v239_v47 }
  0x92   :  { %11404 = vmatpush3.bf16.msra.mxu0 %v12245_v27 }
  0x98   :  { %11164 = vmatmul.mubr.msk.bf16.gmra.mrb[28].mxu0 %vm409_vm2, %v354_v54  ;;  %v243_v54 = vld [vmem:[%s12690_s5 + $0x1e0] sm:$0xff] }
  0x99   :  { %11167 = vmatprep.mubr.msk.bf16.mxu0 %vm409_vm2, %v355_v55  ;;  %v244_v55 = vld [vmem:[%s12690_s5 + $0x1e8] sm:$0xff] }
  0x9a   :  { %v369_v57 = vpack.c.bf16 %v244_v55, %v243_v54 }
  0xa0   :  { %11168 = vmatmul.mubr.msk.bf16.gmra.mrb[32].mxu0 %vm409_vm2, %v356_v60  ;;  %v247_v60 = vld [vmem:[%s12690_s5 + $0x200] sm:$0xff] }
  0xa1   :  { %11171 = vmatprep.mubr.msk.bf16.mxu0 %vm409_vm2, %v357_v61  ;;  %v248_v61 = vld [vmem:[%s12690_s5 + $0x208] sm:$0xff] }
  0xa2   :  { %v371_v63 = vpack.c.bf16 %v248_v61, %v247_v60 }
  0xa8   :  { %11172 = vmatmul.mubr.msk.bf16.gmra.mrb[36].mxu0 %vm409_vm2, %v358_v8  ;;  %v254_v8 = vld [vmem:[%s12690_s5 + $0x238] sm:$0xff] }
  0xa9   :  { %11175 = vmatprep.mubr.msk.bf16.mxu0 %vm409_vm2, %v359_v9  ;;  %v255_v9 = vld [vmem:[%s12690_s5 + $0x240] sm:$0xff]  ;;  %v374_v11 = vpack.c.bf16 %v254_v8, %v253_v7 }
  0xaa   :  { %v375_v12 = vpack.c.bf16 %v256_v10, %v255_v9 }
  0xb0   :  { %11176 = vmatmul.mubr.msk.bf16.gmra.mrb[40].mxu0 %vm409_vm2, %v360_v21  ;;  %v263_v21 = vld [vmem:[%s12690_s5 + $0x280] sm:$0xff] }
  0xb1   :  { %11179 = vmatprep.mubr.msk.bf16.mxu0 %vm409_vm2, %v361_v22  ;;  %v264_v22 = vld [vmem:[%s12690_s5 + $0x288] sm:$0xff] }
  0xb2   :  { %v379_v24 = vpack.c.bf16 %v264_v22, %v263_v21 }
  0xb8   :  { %11180 = vmatmul.mubr.msk.bf16.gmra.mrb[44].mxu0 %vm409_vm2, %v362_v34  ;;  %v271_v34 = vld [vmem:[%s12690_s5 + $0x2c0] sm:$0xff] }
  0xb9   :  { %11183 = vmatprep.mubr.msk.bf16.mxu0 %vm409_vm2, %v363_v36  ;;  %v382_v36 = vpack.c.bf16 %v270_v33, %v269_v32  ;;  %v383_v37 = vpack.c.bf16 %v272_v35, %v271_v34 }
  0xc0   :  { %11184 = vmatmul.mubr.msk.bf16.gmra.mrb[48].mxu0 %vm409_vm2, %v364_v43 }
  0xc1   :  { %11187 = vmatprep.mubr.msk.bf16.mxu0 %vm409_vm2, %v365_v44 }
  0xc8   :  { %11188 = vmatmul.mubr.msk.bf16.gmra.mrb[52].mxu0 %vm409_vm2, %v366_v49 }
  0xc9   :  { %11191 = vmatprep.mubr.msk.bf16.mxu0 %vm409_vm2, %v367_v50 }
  0xd0   :  { %11192 = vmatmul.mubr.msk.bf16.gmra.mrb[56].mxu0 %vm409_vm2, %v368_v56 }
  0xd1   :  { %11195 = vmatprep.mubr.msk.bf16.mxu0 %vm409_vm2, %v369_v57 }
  0xd8   :  { %11196 = vmatmul.mubr.msk.bf16.gmra.mrb[60].mxu0 %vm409_vm2, %v370_v62 }
  0xd9   :  { %11199 = vmatprep.mubr.msk.bf16.mxu0 %vm409_vm2, %v371_v63 }
  0xe0   :  { %11200 = vmatmul.mubr.msk.bf16.gmra.mrb[64].mxu0 %vm409_vm2, %v372_v5 }
  0xe1   :  { %11203 = vmatprep.mubr.msk.bf16.mxu0 %vm409_vm2, %v373_v6 }
  0xe8   :  { %11204 = vmatmul.mubr.msk.bf16.gmra.mrb[68].mxu0 %vm409_vm2, %v374_v11 }
  0xe9   :  { %11207 = vmatprep.mubr.msk.bf16.mxu0 %vm409_vm2, %v375_v12 }
  0xf0   :  { %11208 = vmatmul.mubr.msk.bf16.gmra.mrb[72].mxu0 %vm409_vm2, %v376_v17 }
  0xf1   :  { %11211 = vmatprep.mubr.msk.bf16.mxu0 %vm409_vm2, %v377_v18 }
  0xf8   :  { %11212 = vmatmul.mubr.msk.bf16.gmra.mrb[76].mxu0 %vm409_vm2, %v378_v23 }
  0xf9   :  { %11215 = vmatprep.mubr.msk.bf16.mxu0 %vm409_vm2, %v379_v24 }
 0x100   :  { %11216 = vmatmul.mubr.msk.bf16.gmra.mrb[80].mxu0 %vm409_vm2, %v380_v30 }
 0x101   :  { %11219 = vmatprep.mubr.msk.bf16.mxu0 %vm409_vm2, %v381_v31 }
 0x108   :  { %11220 = vmatmul.mubr.msk.bf16.gmra.mrb[84].mxu0 %vm409_vm2, %v382_v36 }
 0x109   :  { %11223 = vmatprep.mubr.msk.bf16.mxu0 %vm409_vm2, %v383_v37 }
 0x10a   :  { %95 = vsyncpa [#allocation3], 0  ;;  %v384_v42 = vpack.c.bf16 %v274_v39, %v273_v38  ;;  %v385_v43 = vpack.c.bf16 %v276_v41, %v275_v40  ;;  %v277_v44 = vld [vmem:[%s12690_s5 + $0x2f0] sm:$0xff]  ;;  %v278_v45 = vld [vmem:[%s12690_s5 + $0x2f8] sm:$0xff]  ;;  %vm1376_vm3 = vcmask 523264   ;;  %v3621_v34 = vsel %vm603_vm1, %v13025_v53, 0 }
 0x10b   :  { %v279_v46 = vld [vmem:[%s12690_s5 + $0x300] sm:$0xff]  ;;  %v280_v47 = vld [vmem:[%s12690_s5 + $0x308] sm:$0xff]  ;;  %v12246_v48 = vld [vmem:[%s12735_s14 + $0x18] sm:$0xff]   ;;  %v386_v49 = vpack.c.bf16 %v278_v45, %v277_v44  ;;  %vm3427_vm4 = vcmask 31744   ;;  %vm6225_vm5 = vcmask 1041409   ;;  %vm6227_vm6 = vcmask 1042434  }
 0x10c   :  { %v387_v50 = vpack.c.bf16 %v280_v47, %v279_v46  ;;  %11405 = vmatprep.subr.bf16.mxu0 %v12246_v48  ;;  %v281_v51 = vld [vmem:[%s12690_s5 + $0x310] sm:$0xff]  ;;  %v282_v52 = vld [vmem:[%s12690_s5 + $0x318] sm:$0xff]  ;;  %v283_v54 = vld [vmem:[%s12690_s5 + $0x320] sm:$0xff]  ;;  %vm6229_vm7 = vcmask 1043459   ;;  %vm6231_vm8 = vcmask 1044484   ;;  %vm6233_vm9 = vcmask 1045509  }
 0x10d   :  { %11406 = vmatpush3.bf16.msra.mxu0 %v12246_v48  ;;  %v284_v55 = vld [vmem:[%s12690_s5 + $0x328] sm:$0xff]  ;;  %v388_v56 = vpack.c.bf16 %v282_v52, %v281_v51  ;;  %v285_v58 = vld [vmem:[%s12690_s5 + $0x330] sm:$0xff]  ;;  %v286_v59 = vld [vmem:[%s12690_s5 + $0x338] sm:$0xff]  ;;  %vm6235_vm10 = vcmask 1046534   ;;  %vm6237_vm11 = vcmask 1047559   ;;  %vm12679_vm12 = vmmov 0  }
 0x10e   :  { %v389_v57 = vpack.c.bf16 %v284_v55, %v283_v54  ;;  %v287_v60 = vld [vmem:[%s12690_s5 + $0x340] sm:$0xff]  ;;  %v288_v61 = vld [vmem:[%s12690_s5 + $0x348] sm:$0xff]  ;;  %v390_v62 = vpack.c.bf16 %v286_v59, %v285_v58  ;;  %v289_v0 = vld [vmem:[%s12690_s5 + $0x350] sm:$0xff]  ;;  %vm6240_vm13 = vcmask 64512   ;;  %s15231_s0 = sld [smem:[#allocation9_spill]]  ;;  %s15234_s25 = sld [smem:[#allocation8_spill]] }
 0x10f   :  { %v391_v63 = vpack.c.bf16 %v288_v61, %v287_v60  ;;  %v290_v1 = vld [vmem:[%s12690_s5 + $0x358] sm:$0xff]  ;;  %v291_v2 = vld [vmem:[%s12690_s5 + $0x360] sm:$0xff]  ;;  %v292_v3 = vld [vmem:[%s12690_s5 + $0x368] sm:$0xff]  ;;  %s15236_s3 = sld [smem:[#allocation12_spill]]  ;;  %s15240_s24 = sld [smem:[#allocation18_spill]] }
 0x110   :  { %11224 = vmatmul.mubr.msk.bf16.gmra.mrb[88].mxu0 %vm409_vm2, %v384_v42  ;;  %v392_v4 = vpack.c.bf16 %v290_v1, %v289_v0  ;;  %v393_v5 = vpack.c.bf16 %v292_v3, %v291_v2  ;;  %v13110_v6 = vld [vmem:[%s12720_s29] ss:$0 sm:$0xff]  ;;  %v293_v7 = vld [vmem:[%s12690_s5 + $0x370] sm:$0xff]  ;;  %v294_v8 = vld [vmem:[%s12690_s5 + $0x378] sm:$0xff]  ;;  %s15245_s28 = sld [smem:[#allocation19_spill]]  ;;  %s15246_s1 = sld [smem:[#allocation21_spill]] }
 0x111   :  { %11227 = vmatprep.mubr.msk.bf16.mxu0 %vm409_vm2, %v385_v43  ;;  %v295_v9 = vld [vmem:[%s12690_s5 + $0x380] sm:$0xff]  ;;  %v296_v10 = vld [vmem:[%s12690_s5 + $0x388] sm:$0xff]  ;;  %v394_v15 = vpack.c.bf16 %v294_v8, %v293_v7  ;;  %v297_v26 = vld [vmem:[%s12690_s5 + $0x390] sm:$0xff]  ;;  %s15247_s2 = sld [smem:[#allocation16_spill]]  ;;  %s15250_s10 = sld [smem:[#allocation26_spill]] }
 0x112   :  { %v12247_v12 = vld [vmem:[%s12735_s14 + $0x20] sm:$0xff]   ;;  %v395_v18 = vpack.c.bf16 %v296_v10, %v295_v9  ;;  %v298_v27 = vld [vmem:[%s12690_s5 + $0x398] sm:$0xff]  ;;  %v12248_v3 = vld [vmem:[%s12735_s14 + $0x28] sm:$0xff]   ;;  %s15232_s5 = sld [smem:[#allocation5_spill]]  ;;  %s15249_s7 = sld [smem:[#allocation24_spill]] }
 0x113   :  { %11407 = vmatprep.subr.bf16.mxu0 %v12247_v12  ;;  %v396_v33 = vpack.c.bf16 %v298_v27, %v297_v26  ;;  %s15251_s11 = sld [smem:[#allocation23_spill]]  ;;  %s15252_s15 = sld [smem:[#allocation28_spill]] }
 0x114   :  { %11408 = vmatpush3.bf16.msra.mxu0 %v12247_v12  ;;  %s15253_s16 = sld [smem:[#allocation25_spill]]  ;;  %s15254_s18 = sld [smem:[#allocation30_spill]] }
 0x115   :  { %11409 = vmatprep.subr.bf16.mxu0 %v12248_v3  ;;  %s15255_s22 = sld [smem:[#allocation27_spill]]  ;;  %s15256_s23 = sld [smem:[#allocation29_spill]] }
 0x118   :  { %11228 = vmatmul.mubr.msk.bf16.gmra.mrb[92].mxu0 %vm409_vm2, %v386_v49 }
 0x119   :  { %11231 = vmatprep.mubr.msk.bf16.mxu0 %vm409_vm2, %v387_v50  ;;  %11410 = vmatpush3.bf16.msra.mxu0 %v12248_v3 }
 0x120   :  { %11232 = vmatmul.mubr.msk.bf16.gmra.mrb[96].mxu0 %vm409_vm2, %v388_v56 }
 0x121   :  { %11235 = vmatprep.mubr.msk.bf16.mxu0 %vm409_vm2, %v389_v57 }
 0x128   :  { %11236 = vmatmul.mubr.msk.bf16.gmra.mrb[100].mxu0 %vm409_vm2, %v390_v62 }
 0x129   :  { %11239 = vmatprep.mubr.msk.bf16.mxu0 %vm409_vm2, %v391_v63 }
 0x130   :  { %11240 = vmatmul.mubr.msk.bf16.gmra.mrb[104].mxu0 %vm409_vm2, %v392_v4 }
 0x131   :  { %11243 = vmatprep.mubr.msk.bf16.mxu0 %vm409_vm2, %v393_v5 }
 0x133   :  { %v11137_v11 = vpop.f32.mrb[0].mxu0 }
 0x134   :  { %v652_v13 = vadd.f32 %v11137_v11, %v13110_v6  ;;  %v643_v14 = vpop.f32.mrb[1].mxu0 }
 0x135   :  { %v644_v16 = vadd.f32 %v13110_v6, %v643_v14  ;;  %v11138_v17 = vpop.f32.mrb[2].mxu0 }
 0x136   :  { %v655_v19 = vadd.f32 %v11138_v17, %v13110_v6  ;;  %v646_v20 = vpop.f32.mrb[3].mxu0  ;;  %v1156_v22 = vmax.f32 %v652_v13, 0.0 }
 0x137   :  { %v647_v21 = vadd.f32 %v13110_v6, %v646_v20  ;;  %v1154_v24 = vmax.f32 %v644_v16, 0.0 }
 0x138   :  { %v1157_v23 = vmax.f32 %v655_v19, 0.0  ;;  %11244 = vmatmul.mubr.msk.bf16.gmra.mrb[108].mxu0 %vm409_vm2, %v394_v15 }
 0x139   :  { %v1155_v25 = vmax.f32 %v647_v21, 0.0  ;;  %11247 = vmatprep.mubr.msk.bf16.mxu0 %vm409_vm2, %v395_v18 }
 0x13a   :  { %v1283_v28 = vpack.c.bf16 %v1157_v23, %v1156_v22 }
 0x13b   :  { %v1282_v29 = vpack.c.bf16 %v1155_v25, %v1154_v24  ;;  %v11141_v30 = vpop.f32.mrb[4].mxu0 }
 0x13c   :  { %v668_v31 = vadd.f32 %v11141_v30, %v13110_v6  ;;  %v659_v32 = vpop.f32.mrb[5].mxu0 }
 0x13d   :  { %v660_v35 = vadd.f32 %v13110_v6, %v659_v32  ;;  %v11142_v36 = vpop.f32.mrb[6].mxu0  ;;  %11271 = vmatprep.mubr.msk.bf16.mxu1 %vm1376_vm3, %v1282_v29 }
 0x13e   :  { %v671_v37 = vadd.f32 %v11142_v36, %v13110_v6  ;;  %v662_v38 = vpop.f32.mrb[7].mxu0  ;;  %11272 = vmatmul.mubr.msk.bf16.vlgmr.msra.gmra.mrb[12].mxu1 %vm1376_vm3, %v1283_v28  ;;  %v1160_v40 = vmax.f32 %v668_v31, 0.0 }
 0x13f   :  { %v663_v39 = vadd.f32 %v13110_v6, %v662_v38  ;;  %11544 = vmatpush3.bf16.msra.mxu1 %v3621_v34  ;;  %v1158_v42 = vmax.f32 %v660_v35, 0.0 }
 0x140   :  { %v1161_v41 = vmax.f32 %v671_v37, 0.0  ;;  %11248 = vmatmul.mubr.msk.bf16.gmra.mrb[112].mxu0 %vm409_vm2, %v396_v33 }
 0x141   :  { %v1159_v43 = vmax.f32 %v663_v39, 0.0 }
 0x142   :  { %v1285_v53 = vpack.c.bf16 %v1161_v41, %v1160_v40 }
 0x143   :  { %v1284_v44 = vpack.c.bf16 %v1159_v43, %v1158_v42  ;;  %v11145_v45 = vpop.f32.mrb[8].mxu0 }
 0x144   :  { %v684_v46 = vadd.f32 %v11145_v45, %v13110_v6  ;;  %v675_v47 = vpop.f32.mrb[9].mxu0 }
 0x145   :  { %v676_v48 = vadd.f32 %v13110_v6, %v675_v47  ;;  %v11146_v49 = vpop.f32.mrb[10].mxu0  ;;  %11275 = vmatprep.mubr.msk.bf16.mxu1 %vm1376_vm3, %v1284_v44 }
 0x146   :  { %v687_v50 = vadd.f32 %v11146_v49, %v13110_v6  ;;  %v678_v51 = vpop.f32.mrb[11].mxu0  ;;  %11276 = vmatmul.mubr.msk.bf16.gmra.mrb[16].mxu1 %vm1376_vm3, %v1285_v53  ;;  %v1164_v54 = vmax.f32 %v684_v46, 0.0 }
 0x147   :  { %v679_v52 = vadd.f32 %v13110_v6, %v678_v51  ;;  %v1162_v56 = vmax.f32 %v676_v48, 0.0 }
 0x148   :  { %v1165_v55 = vmax.f32 %v687_v50, 0.0 }
 0x149   :  { %v1163_v57 = vmax.f32 %v679_v52, 0.0 }
 0x14a   :  { %v1287_v58 = vpack.c.bf16 %v1165_v55, %v1164_v54  ;;  %v12249_v55 = vld [vmem:[%s12735_s14 + $0x30] sm:$0xff]  }
 0x14b   :  { %v1286_v59 = vpack.c.bf16 %v1163_v57, %v1162_v56  ;;  %v11149_v60 = vpop.f32.mrb[12].mxu0  ;;  %11411 = vmatprep.subr.bf16.mxu0 %v12249_v55 }
 0x14c   :  { %v700_v61 = vadd.f32 %v11149_v60, %v13110_v6  ;;  %v691_v62 = vpop.f32.mrb[13].mxu0  ;;  %11412 = vmatpush3.bf16.msra.mxu0 %v12249_v55 }
 0x14d   :  { %v692_v63 = vadd.f32 %v13110_v6, %v691_v62  ;;  %v11150_v0 = vpop.f32.mrb[14].mxu0  ;;  %11279 = vmatprep.mubr.msk.bf16.mxu1 %vm1376_vm3, %v1286_v59 }
 0x14e   :  { %v703_v1 = vadd.f32 %v11150_v0, %v13110_v6  ;;  %v694_v2 = vpop.f32.mrb[15].mxu0  ;;  %11280 = vmatmul.mubr.msk.bf16.gmra.mrb[20].mxu1 %vm1376_vm3, %v1287_v58  ;;  %v1168_v5 = vmax.f32 %v700_v61, 0.0 }
 0x14f   :  { %v695_v4 = vadd.f32 %v13110_v6, %v694_v2  ;;  %v1166_v8 = vmax.f32 %v692_v63, 0.0 }
 0x150   :  { %v1169_v7 = vmax.f32 %v703_v1, 0.0 }
 0x151   :  { %v1167_v9 = vmax.f32 %v695_v4, 0.0 }
 0x152   :  { %v1289_v10 = vpack.c.bf16 %v1169_v7, %v1168_v5 }
 0x153   :  { %v1288_v11 = vpack.c.bf16 %v1167_v9, %v1166_v8  ;;  %v11153_v12 = vpop.f32.mrb[16].mxu0 }
 0x154   :  { %v716_v13 = vadd.f32 %v11153_v12, %v13110_v6  ;;  %v707_v14 = vpop.f32.mrb[17].mxu0 }
 0x155   :  { %v708_v15 = vadd.f32 %v13110_v6, %v707_v14  ;;  %v11154_v16 = vpop.f32.mrb[18].mxu0  ;;  %11283 = vmatprep.mubr.msk.bf16.mxu1 %vm1376_vm3, %v1288_v11 }
 0x156   :  { %v719_v17 = vadd.f32 %v11154_v16, %v13110_v6  ;;  %v710_v18 = vpop.f32.mrb[19].mxu0  ;;  %11284 = vmatmul.mubr.msk.bf16.gmra.mrb[24].mxu1 %vm1376_vm3, %v1289_v10  ;;  %v1172_v20 = vmax.f32 %v716_v13, 0.0  ;;  %v11253_v13 = vpop.f32.mrb[0].mxu1 }
 0x157   :  { %v711_v19 = vadd.f32 %v13110_v6, %v710_v18  ;;  %v1170_v22 = vmax.f32 %v708_v15, 0.0  ;;  %v1107_v15 = vpop.f32.mrb[1].mxu1 }
 0x158   :  { %v1173_v21 = vmax.f32 %v719_v17, 0.0  ;;  %v11254_v18 = vpop.f32.mrb[2].mxu1 }
 0x159   :  { %v1171_v23 = vmax.f32 %v711_v19, 0.0 }
 0x15a   :  { %v1291_v24 = vpack.c.bf16 %v1173_v21, %v1172_v20  ;;  %v1110_v21 = vpop.f32.mrb[3].mxu1 }
 0x15b   :  { %v1290_v25 = vpack.c.bf16 %v1171_v23, %v1170_v22  ;;  %v11157_v26 = vpop.f32.mrb[20].mxu0  ;;  %v1116_v23 = vadd.f32 %v11253_v13, %v13110_v6 }
 0x15c   :  { %v732_v27 = vadd.f32 %v11157_v26, %v13110_v6  ;;  %v723_v28 = vpop.f32.mrb[21].mxu0 }
 0x15d   :  { %v724_v29 = vadd.f32 %v13110_v6, %v723_v28  ;;  %v11158_v30 = vpop.f32.mrb[22].mxu0  ;;  %11287 = vmatprep.mubr.msk.bf16.mxu1 %vm1376_vm3, %v1290_v25  ;;  %v1119_v25 = vadd.f32 %v11254_v18, %v13110_v6  ;;  %v1111_v28 = vadd.f32 %v13110_v6, %v1110_v21 }
 0x15e   :  { %v735_v31 = vadd.f32 %v11158_v30, %v13110_v6  ;;  %v726_v32 = vpop.f32.mrb[23].mxu0  ;;  %11288 = vmatmul.mubr.msk.bf16.gmra.mrb[28].mxu1 %vm1376_vm3, %v1291_v24  ;;  %v1176_v34 = vmax.f32 %v732_v27, 0.0  ;;  %v1108_v24 = vadd.f32 %v13110_v6, %v1107_v15 }
 0x15f   :  { %v727_v33 = vadd.f32 %v13110_v6, %v726_v32  ;;  %v1174_v36 = vmax.f32 %v724_v29, 0.0 }
 0x160   :  { %v1177_v35 = vmax.f32 %v735_v31, 0.0  ;;  %v1272_v31 = vmax.f32 %v1116_v23, 0.0  ;;  %v1270_v32 = vmax.f32 %v1108_v24, 0.0 }
 0x161   :  { %v1175_v37 = vmax.f32 %v727_v33, 0.0  ;;  %v1273_v33 = vmax.f32 %v1119_v25, 0.0 }
 0x162   :  { %v1293_v38 = vpack.c.bf16 %v1177_v35, %v1176_v34 }
 0x163   :  { %v1292_v39 = vpack.c.bf16 %v1175_v37, %v1174_v36  ;;  %v11161_v40 = vpop.f32.mrb[24].mxu0  ;;  %v1271_v36 = vmax.f32 %v1111_v28, 0.0 }
 0x164   :  { %v748_v41 = vadd.f32 %v11161_v40, %v13110_v6  ;;  %v739_v42 = vpop.f32.mrb[25].mxu0  ;;  %v11257_v40 = vpop.f32.mrb[4].mxu1 }
 0x165   :  { %v740_v43 = vadd.f32 %v13110_v6, %v739_v42  ;;  %v11162_v53 = vpop.f32.mrb[26].mxu0  ;;  %11291 = vmatprep.mubr.msk.bf16.mxu1 %vm1376_vm3, %v1292_v39  ;;  %v13188_v39 = vpack.c.bf16 %v1273_v33, %v1272_v31  ;;  %v13191_v42 = vpack.c.bf16 %v1271_v36, %v1270_v32 }
 0x166   :  { %v751_v44 = vadd.f32 %v11162_v53, %v13110_v6  ;;  %v742_v45 = vpop.f32.mrb[27].mxu0  ;;  %11292 = vmatmul.mubr.msk.bf16.gmra.mrb[32].mxu1 %vm1376_vm3, %v1293_v38  ;;  %v1180_v47 = vmax.f32 %v748_v41, 0.0 }
 0x167   :  { %v743_v46 = vadd.f32 %v13110_v6, %v742_v45  ;;  %v1178_v49 = vmax.f32 %v740_v43, 0.0  ;;  %v1123_v43 = vpop.f32.mrb[5].mxu1 }
 0x168   :  { %v1181_v48 = vmax.f32 %v751_v44, 0.0  ;;  %v11258_v45 = vpop.f32.mrb[6].mxu1 }
 0x169   :  { %v1179_v50 = vmax.f32 %v743_v46, 0.0 }
 0x16a   :  { %v1295_v51 = vpack.c.bf16 %v1181_v48, %v1180_v47  ;;  %v1126_v48 = vpop.f32.mrb[7].mxu1 }
 0x16b   :  { %v1294_v52 = vpack.c.bf16 %v1179_v50, %v1178_v49  ;;  %v11165_v54 = vpop.f32.mrb[28].mxu0  ;;  %v1132_v50 = vadd.f32 %v11257_v40, %v13110_v6 }
 0x16c   :  { %v764_v56 = vadd.f32 %v11165_v54, %v13110_v6  ;;  %v755_v57 = vpop.f32.mrb[29].mxu0 }
 0x16d   :  { %v756_v58 = vadd.f32 %v13110_v6, %v755_v57  ;;  %v11166_v59 = vpop.f32.mrb[30].mxu0  ;;  %11295 = vmatprep.mubr.msk.bf16.mxu1 %vm1376_vm3, %v1294_v52  ;;  %v1135_v52 = vadd.f32 %v11258_v45, %v13110_v6 }
 0x16e   :  { %v767_v60 = vadd.f32 %v11166_v59, %v13110_v6  ;;  %v758_v61 = vpop.f32.mrb[31].mxu0  ;;  %11296 = vmatmul.mubr.msk.bf16.gmra.mrb[36].mxu1 %vm1376_vm3, %v1295_v51  ;;  %v1184_v63 = vmax.f32 %v764_v56, 0.0  ;;  %v1124_v51 = vadd.f32 %v13110_v6, %v1123_v43  ;;  %v1127_v56 = vadd.f32 %v13110_v6, %v1126_v48 }
 0x16f   :  { %v759_v62 = vadd.f32 %v13110_v6, %v758_v61  ;;  %v1182_v1 = vmax.f32 %v756_v58, 0.0  ;;  %v1276_v59 = vmax.f32 %v1132_v50, 0.0  ;;  %v1277_v61 = vmax.f32 %v1135_v52, 0.0 }
 0x170   :  { %v1185_v0 = vmax.f32 %v767_v60, 0.0  ;;  %v1274_v60 = vmax.f32 %v1124_v51, 0.0 }
 0x171   :  { %v1183_v2 = vmax.f32 %v759_v62, 0.0 }
 0x172   :  { %v1297_v3 = vpack.c.bf16 %v1185_v0, %v1184_v63  ;;  %v1275_v0 = vmax.f32 %v1127_v56, 0.0 }
 0x173   :  { %v1296_v4 = vpack.c.bf16 %v1183_v2, %v1182_v1  ;;  %v11169_v5 = vpop.f32.mrb[32].mxu0 }
 0x174   :  { %v780_v7 = vadd.f32 %v11169_v5, %v13110_v6  ;;  %v771_v8 = vpop.f32.mrb[33].mxu0 }
 0x175   :  { %v772_v9 = vadd.f32 %v13110_v6, %v771_v8  ;;  %v11170_v10 = vpop.f32.mrb[34].mxu0  ;;  %11299 = vmatprep.mubr.msk.bf16.mxu1 %vm1376_vm3, %v1296_v4  ;;  %v11261_v4 = vpop.f32.mrb[8].mxu1 }
 0x176   :  { %v783_v11 = vadd.f32 %v11170_v10, %v13110_v6  ;;  %v774_v12 = vpop.f32.mrb[35].mxu0  ;;  %11300 = vmatmul.mubr.msk.bf16.gmra.mrb[40].mxu1 %vm1376_vm3, %v1297_v3  ;;  %v1188_v16 = vmax.f32 %v780_v7, 0.0  ;;  %v13202_v3 = vpack.c.bf16 %v1277_v61, %v1276_v59  ;;  %v13205_v7 = vpack.c.bf16 %v1275_v0, %v1274_v60  ;;  %v1139_v8 = vpop.f32.mrb[9].mxu1 }
 0x177   :  { %v775_v14 = vadd.f32 %v13110_v6, %v774_v12  ;;  %v1186_v19 = vmax.f32 %v772_v9, 0.0  ;;  %v1140_v18 = vadd.f32 %v13110_v6, %v1139_v8 }
 0x178   :  { %v1189_v17 = vmax.f32 %v783_v11, 0.0  ;;  %v11262_v11 = vpop.f32.mrb[10].mxu1 }
 0x179   :  { %v1187_v20 = vmax.f32 %v775_v14, 0.0  ;;  %v1142_v14 = vpop.f32.mrb[11].mxu1 }
 0x17a   :  { %v1299_v22 = vpack.c.bf16 %v1189_v17, %v1188_v16  ;;  %v12250_v16 = vld [vmem:[%s12735_s14 + $0x38] sm:$0xff]   ;;  %v1148_v17 = vadd.f32 %v11261_v4, %v13110_v6  ;;  %s15238_s14 = sld [smem:[#allocation11_spill]] }
 0x17b   :  { %v1298_v26 = vpack.c.bf16 %v1187_v20, %v1186_v19  ;;  %v11173_v27 = vpop.f32.mrb[36].mxu0  ;;  %v1151_v19 = vadd.f32 %v11262_v11, %v13110_v6  ;;  %11413 = vmatprep.subr.bf16.mxu0 %v12250_v16 }
 0x17c   :  { %v796_v29 = vadd.f32 %v11173_v27, %v13110_v6  ;;  %v787_v30 = vpop.f32.mrb[37].mxu0  ;;  %v1280_v25 = vmax.f32 %v1148_v17, 0.0  ;;  %11414 = vmatpush3.bf16.msra.mxu0 %v12250_v16  ;;  %v13238_v16 = vld [vmem:[%s12755_s6] sm:$0xff]  }
 0x17d   :  { %v788_v34 = vadd.f32 %v13110_v6, %v787_v30  ;;  %v11174_v35 = vpop.f32.mrb[38].mxu0  ;;  %11303 = vmatprep.mubr.msk.bf16.mxu1 %vm1376_vm3, %v1298_v26  ;;  %v1278_v26 = vmax.f32 %v1140_v18, 0.0  ;;  %v1281_v27 = vmax.f32 %v1151_v19, 0.0  ;;  %11673 = vmatprep.subr.bf16.mxu0 %v13238_v16 }
 0x17e   :  { %v799_v37 = vadd.f32 %v11174_v35, %v13110_v6  ;;  %v790_v38 = vpop.f32.mrb[39].mxu0  ;;  %11304 = vmatmul.mubr.msk.bf16.gmra.mrb[44].mxu1 %vm1376_vm3, %v1299_v22  ;;  %v1192_v53 = vmax.f32 %v796_v29, 0.0  ;;  %v1143_v22 = vadd.f32 %v13110_v6, %v1142_v14 }
 0x17f   :  { %v791_v41 = vadd.f32 %v13110_v6, %v790_v38  ;;  %v1190_v46 = vmax.f32 %v788_v34, 0.0  ;;  %v13217_v33 = vpack.c.bf16 %v1281_v27, %v1280_v25 }
 0x180   :  { %v1193_v44 = vmax.f32 %v799_v37, 0.0  ;;  %v1279_v30 = vmax.f32 %v1143_v22, 0.0 }
 0x181   :  { %v1191_v47 = vmax.f32 %v791_v41, 0.0 }
 0x182   :  { %v1301_v49 = vpack.c.bf16 %v1193_v44, %v1192_v53  ;;  %v13220_v35 = vpack.c.bf16 %v1279_v30, %v1278_v26 }
 0x183   :  { %v1300_v54 = vpack.c.bf16 %v1191_v47, %v1190_v46  ;;  %v11177_v55 = vpop.f32.mrb[40].mxu0 }
 0x184   :  { %v812_v57 = vadd.f32 %v11177_v55, %v13110_v6  ;;  %v803_v58 = vpop.f32.mrb[41].mxu0 }
 0x185   :  { %v804_v62 = vadd.f32 %v13110_v6, %v803_v58  ;;  %v11178_v63 = vpop.f32.mrb[42].mxu0  ;;  %11307 = vmatprep.mubr.msk.bf16.mxu1 %vm1376_vm3, %v1300_v54 }
 0x186   :  { %v815_v1 = vadd.f32 %v11178_v63, %v13110_v6  ;;  %v806_v2 = vpop.f32.mrb[43].mxu0  ;;  %11308 = vmatmul.mubr.msk.bf16.gmra.mrb[48].mxu1 %vm1376_vm3, %v1301_v49  ;;  %v1196_v9 = vmax.f32 %v812_v57, 0.0 }
 0x187   :  { %v807_v5 = vadd.f32 %v13110_v6, %v806_v2  ;;  %v1194_v12 = vmax.f32 %v804_v62, 0.0 }
 0x188   :  { %v1197_v10 = vmax.f32 %v815_v1, 0.0 }
 0x189   :  { %v1195_v13 = vmax.f32 %v807_v5, 0.0 }
 0x18a   :  { %v1303_v15 = vpack.c.bf16 %v1197_v10, %v1196_v9 }
 0x18b   :  { %v1302_v20 = vpack.c.bf16 %v1195_v13, %v1194_v12  ;;  %v11181_v21 = vpop.f32.mrb[44].mxu0 }
 0x18c   :  { %v828_v23 = vadd.f32 %v11181_v21, %v13110_v6  ;;  %v819_v24 = vpop.f32.mrb[45].mxu0 }
 0x18d   :  { %v820_v28 = vadd.f32 %v13110_v6, %v819_v24  ;;  %v11182_v29 = vpop.f32.mrb[46].mxu0  ;;  %11311 = vmatprep.mubr.msk.bf16.mxu1 %vm1376_vm3, %v1302_v20 }
 0x18e   :  { %v831_v31 = vadd.f32 %v11182_v29, %v13110_v6  ;;  %v822_v32 = vpop.f32.mrb[47].mxu0  ;;  %11312 = vmatmul.mubr.msk.bf16.gmra.mrb[52].mxu1 %vm1376_vm3, %v1303_v15  ;;  %v1200_v36 = vmax.f32 %v828_v23, 0.0 }
 0x18f   :  { %v823_v34 = vadd.f32 %v13110_v6, %v822_v32  ;;  %v1198_v38 = vmax.f32 %v820_v28, 0.0 }
 0x190   :  { %v1201_v37 = vmax.f32 %v831_v31, 0.0 }
 0x191   :  { %v1199_v40 = vmax.f32 %v823_v34, 0.0 }
 0x192   :  { %v1305_v41 = vpack.c.bf16 %v1201_v37, %v1200_v36 }
 0x193   :  { %v1304_v43 = vpack.c.bf16 %v1199_v40, %v1198_v38  ;;  %v11185_v53 = vpop.f32.mrb[48].mxu0 }
 0x194   :  { %v844_v44 = vadd.f32 %v11185_v53, %v13110_v6  ;;  %v835_v45 = vpop.f32.mrb[49].mxu0 }
 0x195   :  { %v836_v46 = vadd.f32 %v13110_v6, %v835_v45  ;;  %v11186_v47 = vpop.f32.mrb[50].mxu0  ;;  %11315 = vmatprep.mubr.msk.bf16.mxu1 %vm1376_vm3, %v1304_v43 }
 0x196   :  { %v847_v48 = vadd.f32 %v11186_v47, %v13110_v6  ;;  %v838_v49 = vpop.f32.mrb[51].mxu0  ;;  %11316 = vmatmul.mubr.msk.bf16.gmra.mrb[56].mxu1 %vm1376_vm3, %v1305_v41  ;;  %v1204_v51 = vmax.f32 %v844_v44, 0.0 }
 0x197   :  { %v839_v50 = vadd.f32 %v13110_v6, %v838_v49  ;;  %v1202_v54 = vmax.f32 %v836_v46, 0.0 }
 0x198   :  { %v1205_v52 = vmax.f32 %v847_v48, 0.0 }
 0x199   :  { %v1203_v55 = vmax.f32 %v839_v50, 0.0 }
 0x19a   :  { %v1307_v56 = vpack.c.bf16 %v1205_v52, %v1204_v51 }
 0x19b   :  { %v1306_v57 = vpack.c.bf16 %v1203_v55, %v1202_v54  ;;  %v11189_v58 = vpop.f32.mrb[52].mxu0 }
 0x19c   :  { %v860_v59 = vadd.f32 %v11189_v58, %v13110_v6  ;;  %v851_v60 = vpop.f32.mrb[53].mxu0 }
 0x19d   :  { %v852_v61 = vadd.f32 %v13110_v6, %v851_v60  ;;  %v11190_v62 = vpop.f32.mrb[54].mxu0  ;;  %11319 = vmatprep.mubr.msk.bf16.mxu1 %vm1376_vm3, %v1306_v57 }
 0x19e   :  { %v863_v63 = vadd.f32 %v11190_v62, %v13110_v6  ;;  %v854_v0 = vpop.f32.mrb[55].mxu0  ;;  %11320 = vmatmul.mubr.msk.bf16.gmra.mrb[60].mxu1 %vm1376_vm3, %v1307_v56  ;;  %v1208_v2 = vmax.f32 %v860_v59, 0.0 }
 0x19f   :  { %v855_v1 = vadd.f32 %v13110_v6, %v854_v0  ;;  %v1206_v5 = vmax.f32 %v852_v61, 0.0 }
 0x1a0   :  { %v1209_v4 = vmax.f32 %v863_v63, 0.0 }
 0x1a1   :  { %v1207_v8 = vmax.f32 %v855_v1, 0.0 }
 0x1a2   :  { %v1309_v9 = vpack.c.bf16 %v1209_v4, %v1208_v2 }
 0x1a3   :  { %v1308_v10 = vpack.c.bf16 %v1207_v8, %v1206_v5  ;;  %v11193_v11 = vpop.f32.mrb[56].mxu0 }
 0x1a4   :  { %v876_v12 = vadd.f32 %v11193_v11, %v13110_v6  ;;  %v867_v13 = vpop.f32.mrb[57].mxu0 }
 0x1a5   :  { %v868_v14 = vadd.f32 %v13110_v6, %v867_v13  ;;  %v11194_v15 = vpop.f32.mrb[58].mxu0  ;;  %11323 = vmatprep.mubr.msk.bf16.mxu1 %vm1376_vm3, %v1308_v10 }
 0x1a6   :  { %v879_v17 = vadd.f32 %v11194_v15, %v13110_v6  ;;  %v870_v18 = vpop.f32.mrb[59].mxu0  ;;  %11324 = vmatmul.mubr.msk.bf16.gmra.mrb[64].mxu1 %vm1376_vm3, %v1309_v9  ;;  %v1212_v20 = vmax.f32 %v876_v12, 0.0 }
 0x1a7   :  { %v871_v19 = vadd.f32 %v13110_v6, %v870_v18  ;;  %v1210_v22 = vmax.f32 %v868_v14, 0.0 }
 0x1a8   :  { %v1213_v21 = vmax.f32 %v879_v17, 0.0 }
 0x1a9   :  { %v1211_v23 = vmax.f32 %v871_v19, 0.0 }
 0x1aa   :  { %v1311_v24 = vpack.c.bf16 %v1213_v21, %v1212_v20 }
 0x1ab   :  { %v1310_v25 = vpack.c.bf16 %v1211_v23, %v1210_v22  ;;  %v11197_v26 = vpop.f32.mrb[60].mxu0 }
 0x1ac   :  { %v892_v27 = vadd.f32 %v11197_v26, %v13110_v6  ;;  %v883_v28 = vpop.f32.mrb[61].mxu0 }
 0x1ad   :  { %v884_v29 = vadd.f32 %v13110_v6, %v883_v28  ;;  %v11198_v30 = vpop.f32.mrb[62].mxu0  ;;  %11327 = vmatprep.mubr.msk.bf16.mxu1 %vm1376_vm3, %v1310_v25 }
 0x1ae   :  { %v895_v31 = vadd.f32 %v11198_v30, %v13110_v6  ;;  %v886_v32 = vpop.f32.mrb[63].mxu0  ;;  %11328 = vmatmul.mubr.msk.bf16.gmra.mrb[68].mxu1 %vm1376_vm3, %v1311_v24  ;;  %v1216_v36 = vmax.f32 %v892_v27, 0.0 }
 0x1af   :  { %v887_v34 = vadd.f32 %v13110_v6, %v886_v32  ;;  %v1214_v38 = vmax.f32 %v884_v29, 0.0 }
 0x1b0   :  { %v1217_v37 = vmax.f32 %v895_v31, 0.0 }
 0x1b1   :  { %v1215_v40 = vmax.f32 %v887_v34, 0.0 }
 0x1b2   :  { %v1313_v41 = vpack.c.bf16 %v1217_v37, %v1216_v36 }
 0x1b3   :  { %v1312_v43 = vpack.c.bf16 %v1215_v40, %v1214_v38  ;;  %v11201_v53 = vpop.f32.mrb[64].mxu0 }
 0x1b4   :  { %v908_v44 = vadd.f32 %v11201_v53, %v13110_v6  ;;  %v899_v45 = vpop.f32.mrb[65].mxu0 }
 0x1b5   :  { %v900_v46 = vadd.f32 %v13110_v6, %v899_v45  ;;  %v11202_v47 = vpop.f32.mrb[66].mxu0  ;;  %11331 = vmatprep.mubr.msk.bf16.mxu1 %vm1376_vm3, %v1312_v43 }
 0x1b6   :  { %v911_v48 = vadd.f32 %v11202_v47, %v13110_v6  ;;  %v902_v49 = vpop.f32.mrb[67].mxu0  ;;  %11332 = vmatmul.mubr.msk.bf16.gmra.mrb[72].mxu1 %vm1376_vm3, %v1313_v41  ;;  %v1220_v51 = vmax.f32 %v908_v44, 0.0 }
 0x1b7   :  { %v903_v50 = vadd.f32 %v13110_v6, %v902_v49  ;;  %v1218_v54 = vmax.f32 %v900_v46, 0.0 }
 0x1b8   :  { %v1221_v52 = vmax.f32 %v911_v48, 0.0 }
 0x1b9   :  { %v1219_v55 = vmax.f32 %v903_v50, 0.0 }
 0x1ba   :  { %v1315_v56 = vpack.c.bf16 %v1221_v52, %v1220_v51 }
 0x1bb   :  { %v1314_v57 = vpack.c.bf16 %v1219_v55, %v1218_v54  ;;  %v11205_v58 = vpop.f32.mrb[68].mxu0 }
 0x1bc   :  { %v924_v59 = vadd.f32 %v11205_v58, %v13110_v6  ;;  %v915_v60 = vpop.f32.mrb[69].mxu0 }
 0x1bd   :  { %v916_v61 = vadd.f32 %v13110_v6, %v915_v60  ;;  %v11206_v62 = vpop.f32.mrb[70].mxu0  ;;  %11335 = vmatprep.mubr.msk.bf16.mxu1 %vm1376_vm3, %v1314_v57 }
 0x1be   :  { %v927_v63 = vadd.f32 %v11206_v62, %v13110_v6  ;;  %v918_v0 = vpop.f32.mrb[71].mxu0  ;;  %11336 = vmatmul.mubr.msk.bf16.gmra.mrb[76].mxu1 %vm1376_vm3, %v1315_v56  ;;  %v1224_v2 = vmax.f32 %v924_v59, 0.0 }
 0x1bf   :  { %v919_v1 = vadd.f32 %v13110_v6, %v918_v0  ;;  %v1222_v5 = vmax.f32 %v916_v61, 0.0 }
 0x1c0   :  { %v1225_v4 = vmax.f32 %v927_v63, 0.0 }
 0x1c1   :  { %v1223_v8 = vmax.f32 %v919_v1, 0.0 }
 0x1c2   :  { %v1317_v9 = vpack.c.bf16 %v1225_v4, %v1224_v2 }
 0x1c3   :  { %v1316_v10 = vpack.c.bf16 %v1223_v8, %v1222_v5  ;;  %v11209_v11 = vpop.f32.mrb[72].mxu0 }
 0x1c4   :  { %v940_v12 = vadd.f32 %v11209_v11, %v13110_v6  ;;  %v931_v13 = vpop.f32.mrb[73].mxu0 }
 0x1c5   :  { %v932_v14 = vadd.f32 %v13110_v6, %v931_v13  ;;  %v11210_v15 = vpop.f32.mrb[74].mxu0  ;;  %11339 = vmatprep.mubr.msk.bf16.mxu1 %vm1376_vm3, %v1316_v10 }
 0x1c6   :  { %v943_v17 = vadd.f32 %v11210_v15, %v13110_v6  ;;  %v934_v18 = vpop.f32.mrb[75].mxu0  ;;  %11340 = vmatmul.mubr.msk.bf16.gmra.mrb[80].mxu1 %vm1376_vm3, %v1317_v9  ;;  %v1228_v20 = vmax.f32 %v940_v12, 0.0 }
 0x1c7   :  { %v935_v19 = vadd.f32 %v13110_v6, %v934_v18  ;;  %v1226_v22 = vmax.f32 %v932_v14, 0.0 }
 0x1c8   :  { %v1229_v21 = vmax.f32 %v943_v17, 0.0 }
 0x1c9   :  { %v1227_v23 = vmax.f32 %v935_v19, 0.0 }
 0x1ca   :  { %v1319_v24 = vpack.c.bf16 %v1229_v21, %v1228_v20 }
 0x1cb   :  { %v1318_v25 = vpack.c.bf16 %v1227_v23, %v1226_v22  ;;  %v11213_v26 = vpop.f32.mrb[76].mxu0 }
 0x1cc   :  { %v956_v27 = vadd.f32 %v11213_v26, %v13110_v6  ;;  %v947_v28 = vpop.f32.mrb[77].mxu0 }
 0x1cd   :  { %v948_v29 = vadd.f32 %v13110_v6, %v947_v28  ;;  %v11214_v30 = vpop.f32.mrb[78].mxu0  ;;  %11343 = vmatprep.mubr.msk.bf16.mxu1 %vm1376_vm3, %v1318_v25 }
 0x1ce   :  { %v959_v31 = vadd.f32 %v11214_v30, %v13110_v6  ;;  %v950_v32 = vpop.f32.mrb[79].mxu0  ;;  %11344 = vmatmul.mubr.msk.bf16.gmra.mrb[84].mxu1 %vm1376_vm3, %v1319_v24  ;;  %v1232_v36 = vmax.f32 %v956_v27, 0.0 }
 0x1cf   :  { %v951_v34 = vadd.f32 %v13110_v6, %v950_v32  ;;  %v1230_v38 = vmax.f32 %v948_v29, 0.0 }
 0x1d0   :  { %v1233_v37 = vmax.f32 %v959_v31, 0.0 }
 0x1d1   :  { %v1231_v40 = vmax.f32 %v951_v34, 0.0 }
 0x1d2   :  { %v1321_v41 = vpack.c.bf16 %v1233_v37, %v1232_v36 }
 0x1d3   :  { %v1320_v43 = vpack.c.bf16 %v1231_v40, %v1230_v38  ;;  %v11217_v53 = vpop.f32.mrb[80].mxu0 }
 0x1d4   :  { %v972_v44 = vadd.f32 %v11217_v53, %v13110_v6  ;;  %v963_v45 = vpop.f32.mrb[81].mxu0 }
 0x1d5   :  { %v964_v46 = vadd.f32 %v13110_v6, %v963_v45  ;;  %v11218_v47 = vpop.f32.mrb[82].mxu0  ;;  %11347 = vmatprep.mubr.msk.bf16.mxu1 %vm1376_vm3, %v1320_v43 }
 0x1d6   :  { %v975_v48 = vadd.f32 %v11218_v47, %v13110_v6  ;;  %v966_v49 = vpop.f32.mrb[83].mxu0  ;;  %11348 = vmatmul.mubr.msk.bf16.gmra.mrb[88].mxu1 %vm1376_vm3, %v1321_v41  ;;  %v1236_v51 = vmax.f32 %v972_v44, 0.0 }
 0x1d7   :  { %v967_v50 = vadd.f32 %v13110_v6, %v966_v49  ;;  %v1234_v54 = vmax.f32 %v964_v46, 0.0 }
 0x1d8   :  { %v1237_v52 = vmax.f32 %v975_v48, 0.0 }
 0x1d9   :  { %v1235_v55 = vmax.f32 %v967_v50, 0.0 }
 0x1da   :  { %v1323_v56 = vpack.c.bf16 %v1237_v52, %v1236_v51 }
 0x1db   :  { %v1322_v57 = vpack.c.bf16 %v1235_v55, %v1234_v54  ;;  %v11221_v58 = vpop.f32.mrb[84].mxu0 }
 0x1dc   :  { %v988_v59 = vadd.f32 %v11221_v58, %v13110_v6  ;;  %v979_v60 = vpop.f32.mrb[85].mxu0 }
 0x1dd   :  { %v980_v61 = vadd.f32 %v13110_v6, %v979_v60  ;;  %v11222_v62 = vpop.f32.mrb[86].mxu0  ;;  %11351 = vmatprep.mubr.msk.bf16.mxu1 %vm1376_vm3, %v1322_v57 }
 0x1de   :  { %v991_v63 = vadd.f32 %v11222_v62, %v13110_v6  ;;  %v982_v0 = vpop.f32.mrb[87].mxu0  ;;  %11352 = vmatmul.mubr.msk.bf16.gmra.mrb[92].mxu1 %vm1376_vm3, %v1323_v56  ;;  %v1240_v2 = vmax.f32 %v988_v59, 0.0 }
 0x1df   :  { %v983_v1 = vadd.f32 %v13110_v6, %v982_v0  ;;  %v1238_v5 = vmax.f32 %v980_v61, 0.0 }
 0x1e0   :  { %v1241_v4 = vmax.f32 %v991_v63, 0.0 }
 0x1e1   :  { %v1239_v8 = vmax.f32 %v983_v1, 0.0 }
 0x1e2   :  { %v1325_v9 = vpack.c.bf16 %v1241_v4, %v1240_v2 }
 0x1e3   :  { %v1324_v10 = vpack.c.bf16 %v1239_v8, %v1238_v5  ;;  %v11225_v11 = vpop.f32.mrb[88].mxu0 }
 0x1e4   :  { %v1004_v12 = vadd.f32 %v11225_v11, %v13110_v6  ;;  %v995_v13 = vpop.f32.mrb[89].mxu0 }
 0x1e5   :  { %v996_v14 = vadd.f32 %v13110_v6, %v995_v13  ;;  %v11226_v15 = vpop.f32.mrb[90].mxu0  ;;  %11355 = vmatprep.mubr.msk.bf16.mxu1 %vm1376_vm3, %v1324_v10 }
 0x1e6   :  { %v1007_v17 = vadd.f32 %v11226_v15, %v13110_v6  ;;  %v998_v18 = vpop.f32.mrb[91].mxu0  ;;  %11356 = vmatmul.mubr.msk.bf16.gmra.mrb[96].mxu1 %vm1376_vm3, %v1325_v9  ;;  %v1244_v20 = vmax.f32 %v1004_v12, 0.0 }
 0x1e7   :  { %v999_v19 = vadd.f32 %v13110_v6, %v998_v18  ;;  %v1242_v22 = vmax.f32 %v996_v14, 0.0 }
 0x1e8   :  { %v1245_v21 = vmax.f32 %v1007_v17, 0.0 }
 0x1e9   :  { %v1243_v23 = vmax.f32 %v999_v19, 0.0 }
 0x1ea   :  { %v1327_v24 = vpack.c.bf16 %v1245_v21, %v1244_v20 }
 0x1eb   :  { %v1326_v25 = vpack.c.bf16 %v1243_v23, %v1242_v22  ;;  %v11229_v26 = vpop.f32.mrb[92].mxu0 }
 0x1ec   :  { %v1020_v27 = vadd.f32 %v11229_v26, %v13110_v6  ;;  %v1011_v28 = vpop.f32.mrb[93].mxu0 }
 0x1ed   :  { %v1012_v29 = vadd.f32 %v13110_v6, %v1011_v28  ;;  %v11230_v30 = vpop.f32.mrb[94].mxu0  ;;  %11359 = vmatprep.mubr.msk.bf16.mxu1 %vm1376_vm3, %v1326_v25 }
 0x1ee   :  { %v1023_v31 = vadd.f32 %v11230_v30, %v13110_v6  ;;  %v1014_v32 = vpop.f32.mrb[95].mxu0  ;;  %11360 = vmatmul.mubr.msk.bf16.gmra.mrb[100].mxu1 %vm1376_vm3, %v1327_v24  ;;  %v1248_v36 = vmax.f32 %v1020_v27, 0.0 }
 0x1ef   :  { %v1015_v34 = vadd.f32 %v13110_v6, %v1014_v32  ;;  %v1246_v38 = vmax.f32 %v1012_v29, 0.0 }
 0x1f0   :  { %v1249_v37 = vmax.f32 %v1023_v31, 0.0 }
 0x1f1   :  { %v1247_v40 = vmax.f32 %v1015_v34, 0.0  ;;  %v12599_v34 = vld [vmem:[%s12720_s29] ss:$0 sm:$0xff]  ;;  %s15235_s29 = sld [smem:[#allocation10_spill]] }
 0x1f2   :  { %v1329_v41 = vpack.c.bf16 %v1249_v37, %v1248_v36  ;;  %v13323_v37 = vld [vmem:[%s12730_s8] ss:$0 sm:$0xff] }
 0x1f3   :  { %v1328_v43 = vpack.c.bf16 %v1247_v40, %v1246_v38  ;;  %v11233_v53 = vpop.f32.mrb[96].mxu0 }
 0x1f4   :  { %v1036_v44 = vadd.f32 %v11233_v53, %v13110_v6  ;;  %v1027_v45 = vpop.f32.mrb[97].mxu0 }
 0x1f5   :  { %v1028_v46 = vadd.f32 %v13110_v6, %v1027_v45  ;;  %v11234_v47 = vpop.f32.mrb[98].mxu0  ;;  %11363 = vmatprep.mubr.msk.bf16.mxu1 %vm1376_vm3, %v1328_v43 }
 0x1f6   :  { %v1039_v48 = vadd.f32 %v11234_v47, %v13110_v6  ;;  %v1030_v49 = vpop.f32.mrb[99].mxu0  ;;  %11364 = vmatmul.mubr.msk.bf16.gmra.mrb[104].mxu1 %vm1376_vm3, %v1329_v41  ;;  %v1252_v51 = vmax.f32 %v1036_v44, 0.0 }
 0x1f7   :  { %v1031_v50 = vadd.f32 %v13110_v6, %v1030_v49  ;;  %v1250_v54 = vmax.f32 %v1028_v46, 0.0 }
 0x1f8   :  { %v1253_v52 = vmax.f32 %v1039_v48, 0.0 }
 0x1f9   :  { %v1251_v55 = vmax.f32 %v1031_v50, 0.0 }
 0x1fa   :  { %v1331_v56 = vpack.c.bf16 %v1253_v52, %v1252_v51 }
 0x1fb   :  { %v1330_v57 = vpack.c.bf16 %v1251_v55, %v1250_v54  ;;  %v11237_v58 = vpop.f32.mrb[100].mxu0 }
 0x1fc   :  { %v1052_v59 = vadd.f32 %v11237_v58, %v13110_v6  ;;  %v1043_v60 = vpop.f32.mrb[101].mxu0 }
 0x1fd   :  { %v1044_v61 = vadd.f32 %v13110_v6, %v1043_v60  ;;  %v11238_v62 = vpop.f32.mrb[102].mxu0  ;;  %11367 = vmatprep.mubr.msk.bf16.mxu1 %vm1376_vm3, %v1330_v57 }
 0x1fe   :  { %v1055_v63 = vadd.f32 %v11238_v62, %v13110_v6  ;;  %v1046_v0 = vpop.f32.mrb[103].mxu0  ;;  %11368 = vmatmul.mubr.msk.bf16.gmra.mrb[108].mxu1 %vm1376_vm3, %v1331_v56  ;;  %v1256_v2 = vmax.f32 %v1052_v59, 0.0 }
 0x1ff   :  { %v1047_v1 = vadd.f32 %v13110_v6, %v1046_v0  ;;  %v1254_v5 = vmax.f32 %v1044_v61, 0.0 }
 0x200   :  { %v1257_v4 = vmax.f32 %v1055_v63, 0.0 }
 0x201   :  { %v1255_v8 = vmax.f32 %v1047_v1, 0.0 }
 0x202   :  { %v1333_v9 = vpack.c.bf16 %v1257_v4, %v1256_v2 }
 0x203   :  { %v1332_v10 = vpack.c.bf16 %v1255_v8, %v1254_v5  ;;  %v11241_v11 = vpop.f32.mrb[104].mxu0 }
 0x204   :  { %v1068_v12 = vadd.f32 %v11241_v11, %v13110_v6  ;;  %v1059_v13 = vpop.f32.mrb[105].mxu0 }
 0x205   :  { %v1060_v14 = vadd.f32 %v13110_v6, %v1059_v13  ;;  %v11242_v15 = vpop.f32.mrb[106].mxu0  ;;  %11371 = vmatprep.mubr.msk.bf16.mxu1 %vm1376_vm3, %v1332_v10 }
 0x206   :  { %v1071_v17 = vadd.f32 %v11242_v15, %v13110_v6  ;;  %v1062_v18 = vpop.f32.mrb[107].mxu0  ;;  %11372 = vmatmul.mubr.msk.bf16.gmra.mrb[112].mxu1 %vm1376_vm3, %v1333_v9  ;;  %v1260_v20 = vmax.f32 %v1068_v12, 0.0 }
 0x207   :  { %v1063_v19 = vadd.f32 %v13110_v6, %v1062_v18  ;;  %v1258_v22 = vmax.f32 %v1060_v14, 0.0  ;;  %v12252_v14 = vld [vmem:[%s12755_s6 + $0x8] sm:$0xff]  }
 0x208   :  { %v1261_v21 = vmax.f32 %v1071_v17, 0.0 }
 0x209   :  { %v1259_v23 = vmax.f32 %v1063_v19, 0.0 }
 0x20a   :  { %v1335_v24 = vpack.c.bf16 %v1261_v21, %v1260_v20 }
 0x20b   :  { %v1334_v25 = vpack.c.bf16 %v1259_v23, %v1258_v22  ;;  %v11245_v26 = vpop.f32.mrb[108].mxu0 }
 0x20c   :  { %v1084_v27 = vadd.f32 %v11245_v26, %v13110_v6  ;;  %v1075_v28 = vpop.f32.mrb[109].mxu0 }
 0x20d   :  { %v1076_v29 = vadd.f32 %v13110_v6, %v1075_v28  ;;  %v11246_v30 = vpop.f32.mrb[110].mxu0  ;;  %11375 = vmatprep.mubr.msk.bf16.mxu1 %vm1376_vm3, %v1334_v25 }
 0x20e   :  { %v1087_v31 = vadd.f32 %v11246_v30, %v13110_v6  ;;  %v1078_v32 = vpop.f32.mrb[111].mxu0  ;;  %11376 = vmatmul.mubr.msk.bf16.gmra.mrb[116].mxu1 %vm1376_vm3, %v1335_v24  ;;  %v1264_v38 = vmax.f32 %v1084_v27, 0.0 }
 0x20f   :  { %v1079_v36 = vadd.f32 %v12599_v34, %v1078_v32  ;;  %v1262_v41 = vmax.f32 %v1076_v29, 0.0 }
 0x210   :  { %v1265_v40 = vmax.f32 %v1087_v31, 0.0 }
 0x211   :  { %v1263_v43 = vmax.f32 %v1079_v36, 0.0  ;;  %v11273_v53 = vpop.f32.mrb[12].mxu1 }
 0x212   :  { %v1337_v44 = vpack.c.bf16 %v1265_v40, %v1264_v38  ;;  %v1612_v45 = vadd.f32 %v11273_v53, %v13323_v37  ;;  %v1603_v46 = vpop.f32.mrb[13].mxu1  ;;  %v12253_v38 = vld [vmem:[%s12755_s6 + $0x10] sm:$0xff]  }
 0x213   :  { %v1336_v47 = vpack.c.bf16 %v1263_v43, %v1262_v41  ;;  %v1604_v48 = vadd.f32 %v13323_v37, %v1603_v46  ;;  %v11249_v6 = vpop.f32.mrb[112].mxu0  ;;  %v11274_v49 = vpop.f32.mrb[14].mxu1 }
 0x214   :  { %v1100_v50 = vadd.f32 %v12599_v34, %v11249_v6  ;;  %v1615_v51 = vadd.f32 %v11274_v49, %v13323_v37  ;;  %v1091_v52 = vpop.f32.mrb[113].mxu0  ;;  %v1606_v54 = vpop.f32.mrb[15].mxu1  ;;  %v2116_v58 = vmax.f32 %v1612_v45, 0.0 }
 0x215   :  { %v1092_v55 = vadd.f32 %v12599_v34, %v1091_v52  ;;  %v1607_v56 = vadd.f32 %v13323_v37, %v1606_v54  ;;  %v11250_v57 = vpop.f32.mrb[114].mxu0  ;;  %11379 = vmatprep.mubr.msk.bf16.mxu1 %vm1376_vm3, %v1336_v47  ;;  %v2114_v62 = vmax.f32 %v1604_v48, 0.0 }
 0x216   :  { %v2117_v59 = vmax.f32 %v1615_v51, 0.0  ;;  %v1103_v60 = vadd.f32 %v12599_v34, %v11250_v57  ;;  %v1094_v61 = vpop.f32.mrb[115].mxu0  ;;  %11380 = vmatmul.mubr.msk.bf16.gmra.mrb[120].mxu1 %vm1376_vm3, %v1337_v44  ;;  %v1268_v1 = vmax.f32 %v1100_v50, 0.0  ;;  %v3202_v57 = vld [vmem:[%s12695_s9 + $0x8] sm:$0xff] }
 0x217   :  { %v2115_v63 = vmax.f32 %v1607_v56, 0.0  ;;  %v1095_v0 = vadd.f32 %v12599_v34, %v1094_v61  ;;  %v1266_v5 = vmax.f32 %v1092_v55, 0.0  ;;  %v3201_v56 = vld [vmem:[%s12695_s9] sm:$0xff] }
 0x218   :  { %v2243_v2 = vpack.c.bf16 %v2117_v59, %v2116_v58  ;;  %v1269_v4 = vmax.f32 %v1103_v60, 0.0 }
 0x219   :  { %v1267_v8 = vmax.f32 %v1095_v0, 0.0  ;;  %v11277_v9 = vpop.f32.mrb[16].mxu1  ;;  %v2242_v10 = vpack.c.bf16 %v2115_v63, %v2114_v62 }
 0x21a   :  { %v1339_v11 = vpack.c.bf16 %v1269_v4, %v1268_v1  ;;  %v1628_v12 = vadd.f32 %v11277_v9, %v13323_v37  ;;  %v1619_v13 = vpop.f32.mrb[17].mxu1  ;;  %v3203_v9 = vld [vmem:[%s12695_s9 + $0x10] sm:$0xff] }
 0x21b   :  { %v1338_v15 = vpack.c.bf16 %v1267_v8, %v1266_v5  ;;  %v1620_v17 = vadd.f32 %v13323_v37, %v1619_v13  ;;  %v11278_v18 = vpop.f32.mrb[18].mxu1  ;;  %11415 = vmatprep.mubr.bf16.mxu0 %v2242_v10  ;;  %v3204_v10 = vld [vmem:[%s12695_s9 + $0x18] sm:$0xff]  ;;  %v3206_v13 = vld [vmem:[%s12695_s9 + $0x28] sm:$0xff] }
 0x21c   :  { %v1631_v19 = vadd.f32 %v11278_v18, %v13323_v37  ;;  %v1622_v20 = vpop.f32.mrb[19].mxu1  ;;  %11416 = vmatmul.mubr.bf16.vlgmr.msra.gmra.mrb[116].mxu0 %v2243_v2  ;;  %v2120_v22 = vmax.f32 %v1628_v12, 0.0  ;;  %v3205_v12 = vld [vmem:[%s12695_s9 + $0x20] sm:$0xff] }
 0x21d   :  { %v1623_v21 = vadd.f32 %v13323_v37, %v1622_v20  ;;  %11383 = vmatprep.mubr.msk.bf16.mxu1 %vm1376_vm3, %v1338_v15  ;;  %11674 = vmatpush3.bf16.msra.mxu0 %v13238_v16  ;;  %v2118_v24 = vmax.f32 %v1620_v17, 0.0 }
 0x21e   :  { %v2121_v23 = vmax.f32 %v1631_v19, 0.0  ;;  %11384 = vmatmul.mubr.msk.bf16.gmra.mrb[124].mxu1 %vm1376_vm3, %v1339_v11  ;;  %11675 = vmatprep.subr.bf16.mxu0 %v12252_v14  ;;  %v3358_v19 = vpack.c.bf16 %v3204_v10, %v3203_v9  ;;  %v3217_v9 = vld [vmem:[%s12695_s9 + $0x80] sm:$0xff]  ;;  %v3218_v10 = vld [vmem:[%s12695_s9 + $0x88] sm:$0xff] }
 0x21f   :  { %v2119_v25 = vmax.f32 %v1623_v21, 0.0  ;;  %11387 = vmatprep.mubr.msk.bf16.mxu1 %vm1376_vm3, %v13191_v42  ;;  %v3359_v21 = vpack.c.bf16 %v3206_v13, %v3205_v12 }
 0x220   :  { %v2245_v26 = vpack.c.bf16 %v2121_v23, %v2120_v22 }
 0x221   :  { %v11281_v27 = vpop.f32.mrb[20].mxu1  ;;  %v2244_v28 = vpack.c.bf16 %v2119_v25, %v2118_v24  ;;  %11676 = vmatpush3.bf16.msra.mxu0 %v12252_v14 }
 0x222   :  { %v1644_v29 = vadd.f32 %v11281_v27, %v13323_v37  ;;  %v1635_v30 = vpop.f32.mrb[21].mxu1  ;;  %11677 = vmatprep.subr.bf16.mxu0 %v12253_v38 }
 0x223   :  { %v1636_v16 = vadd.f32 %v13323_v37, %v1635_v30  ;;  %v11282_v31 = vpop.f32.mrb[22].mxu1  ;;  %11419 = vmatprep.mubr.bf16.mxu0 %v2244_v28  ;;  %v3208_v30 = vld [vmem:[%s12695_s9 + $0x38] sm:$0xff] }
 0x224   :  { %v1647_v32 = vadd.f32 %v11282_v31, %v13323_v37  ;;  %v1638_v34 = vpop.f32.mrb[23].mxu1  ;;  %11420 = vmatmul.mubr.bf16.gmra.mrb[120].mxu0 %v2245_v26  ;;  %v2124_v40 = vmax.f32 %v1644_v29, 0.0  ;;  %v3207_v29 = vld [vmem:[%s12695_s9 + $0x30] sm:$0xff]  ;;  %v3209_v31 = vld [vmem:[%s12695_s9 + $0x40] sm:$0xff] }
 0x225   :  { %v1639_v36 = vadd.f32 %v13323_v37, %v1638_v34  ;;  %v2122_v41 = vmax.f32 %v1636_v16, 0.0  ;;  %11678 = vmatpush3.bf16.msra.mxu0 %v12253_v38 }
 0x226   :  { %v2125_v42 = vmax.f32 %v1647_v32, 0.0  ;;  %11388 = vmatmul.mubr.msk.bf16.gmra.mrb[128].mxu1 %vm1376_vm3, %v13188_v39  ;;  %v3210_v32 = vld [vmem:[%s12695_s9 + $0x48] sm:$0xff] }
 0x227   :  { %v2123_v43 = vmax.f32 %v1639_v36, 0.0  ;;  %11391 = vmatprep.mubr.msk.bf16.mxu1 %vm1376_vm3, %v13205_v7 }
 0x228   :  { %v2247_v53 = vpack.c.bf16 %v2125_v42, %v2124_v40  ;;  %v3360_v42 = vpack.c.bf16 %v3208_v30, %v3207_v29  ;;  %v3221_v29 = vld [vmem:[%s12695_s9 + $0xa0] sm:$0xff]  ;;  %v3222_v30 = vld [vmem:[%s12695_s9 + $0xa8] sm:$0xff] }
 0x229   :  { %v11285_v44 = vpop.f32.mrb[24].mxu1  ;;  %v2246_v45 = vpack.c.bf16 %v2123_v43, %v2122_v41 }
 0x22a   :  { %v1660_v46 = vadd.f32 %v11285_v44, %v13323_v37  ;;  %v1651_v47 = vpop.f32.mrb[25].mxu1 }
 0x22b   :  { %v1652_v48 = vadd.f32 %v13323_v37, %v1651_v47  ;;  %v11286_v6 = vpop.f32.mrb[26].mxu1  ;;  %11423 = vmatprep.mubr.bf16.mxu0 %v2246_v45 }
 0x22c   :  { %v1663_v39 = vadd.f32 %v11286_v6, %v13323_v37  ;;  %v1654_v49 = vpop.f32.mrb[27].mxu1  ;;  %11424 = vmatmul.mubr.bf16.gmra.mrb[124].mxu0 %v2247_v53  ;;  %v2128_v50 = vmax.f32 %v1660_v46, 0.0  ;;  %v3361_v53 = vpack.c.bf16 %v3210_v32, %v3209_v31 }
 0x22d   :  { %v1655_v7 = vadd.f32 %v13323_v37, %v1654_v49  ;;  %v2126_v52 = vmax.f32 %v1652_v48, 0.0  ;;  %v3211_v49 = vld [vmem:[%s12695_s9 + $0x50] sm:$0xff] }
 0x22e   :  { %v2129_v51 = vmax.f32 %v1663_v39, 0.0  ;;  %11392 = vmatmul.mubr.msk.bf16.gmra.mrb[132].mxu1 %vm1376_vm3, %v13202_v3  ;;  %v3357_v3 = vpack.c.bf16 %v3202_v57, %v3201_v56 }
 0x22f   :  { %v2127_v54 = vmax.f32 %v1655_v7, 0.0  ;;  %11395 = vmatprep.mubr.msk.bf16.mxu1 %vm1376_vm3, %v13220_v35  ;;  %v3212_v7 = vld [vmem:[%s12695_s9 + $0x58] sm:$0xff] }
 0x230   :  { %v2249_v55 = vpack.c.bf16 %v2129_v51, %v2128_v50  ;;  %v3213_v51 = vld [vmem:[%s12695_s9 + $0x60] sm:$0xff] }
 0x231   :  { %v11289_v58 = vpop.f32.mrb[28].mxu1  ;;  %v2248_v59 = vpack.c.bf16 %v2127_v54, %v2126_v52  ;;  %v3214_v52 = vld [vmem:[%s12695_s9 + $0x68] sm:$0xff] }
 0x232   :  { %v1676_v60 = vadd.f32 %v11289_v58, %v13323_v37  ;;  %v1667_v61 = vpop.f32.mrb[29].mxu1  ;;  %v3362_v58 = vpack.c.bf16 %v3212_v7, %v3211_v49  ;;  %v3225_v49 = vld [vmem:[%s12695_s9 + $0xc0] sm:$0xff]  ;;  %v3226_v7 = vld [vmem:[%s12695_s9 + $0xc8] sm:$0xff] }
 0x233   :  { %v1668_v62 = vadd.f32 %v13323_v37, %v1667_v61  ;;  %v11290_v63 = vpop.f32.mrb[30].mxu1  ;;  %11427 = vmatprep.mubr.bf16.mxu0 %v2248_v59  ;;  %v3363_v61 = vpack.c.bf16 %v3214_v52, %v3213_v51 }
 0x234   :  { %v1679_v0 = vadd.f32 %v11290_v63, %v13323_v37  ;;  %v1670_v35 = vpop.f32.mrb[31].mxu1  ;;  %11428 = vmatmul.mubr.bf16.gmra.mrb[128].mxu0 %v2249_v55  ;;  %v2132_v2 = vmax.f32 %v1676_v60, 0.0 }
 0x235   :  { %v1671_v1 = vadd.f32 %v13323_v37, %v1670_v35  ;;  %v2130_v5 = vmax.f32 %v1668_v62, 0.0 }
 0x236   :  { %v2133_v4 = vmax.f32 %v1679_v0, 0.0  ;;  %11396 = vmatmul.mubr.msk.bf16.gmra.mrb[136].mxu1 %vm1376_vm3, %v13217_v33 }
 0x237   :  { %v2131_v8 = vmax.f32 %v1671_v1, 0.0  ;;  %11545 = vmatprep.mubr.msk.bf16.mxu1 %vm3427_vm4, %v3357_v3 }
 0x238   :  { %v2251_v11 = vpack.c.bf16 %v2133_v4, %v2132_v2  ;;  %v3215_v4 = vld [vmem:[%s12695_s9 + $0x70] sm:$0xff] }
 0x239   :  { %v11293_v14 = vpop.f32.mrb[32].mxu1  ;;  %v2250_v15 = vpack.c.bf16 %v2131_v8, %v2130_v5  ;;  %v3216_v5 = vld [vmem:[%s12695_s9 + $0x78] sm:$0xff] }
 0x23a   :  { %v1692_v17 = vadd.f32 %v11293_v14, %v13323_v37  ;;  %v1683_v18 = vpop.f32.mrb[33].mxu1 }
 0x23b   :  { %v1684_v20 = vadd.f32 %v13323_v37, %v1683_v18  ;;  %v11294_v33 = vpop.f32.mrb[34].mxu1  ;;  %11431 = vmatprep.mubr.bf16.mxu0 %v2250_v15  ;;  %v3364_v15 = vpack.c.bf16 %v3216_v5, %v3215_v4  ;;  %v3229_v5 = vld [vmem:[%s12695_s9 + $0xe0] sm:$0xff] }
 0x23c   :  { %v1695_v22 = vadd.f32 %v11294_v33, %v13323_v37  ;;  %v1686_v23 = vpop.f32.mrb[35].mxu1  ;;  %11432 = vmatmul.mubr.bf16.gmra.mrb[132].mxu0 %v2251_v11  ;;  %v2136_v25 = vmax.f32 %v1692_v17, 0.0 }
 0x23d   :  { %v1687_v24 = vadd.f32 %v13323_v37, %v1686_v23  ;;  %v2134_v27 = vmax.f32 %v1684_v20, 0.0 }
 0x23e   :  { %v2137_v26 = vmax.f32 %v1695_v22, 0.0  ;;  %11546 = vmatmul.mubr.msk.bf16.vlgmr.msra.gmra.mrb[140].mxu1 %vm3427_vm4, %v3358_v19  ;;  %v3365_v19 = vpack.c.bf16 %v3218_v10, %v3217_v9 }
 0x23f   :  { %v2135_v28 = vmax.f32 %v1687_v24, 0.0  ;;  %11549 = vmatprep.mubr.msk.bf16.mxu1 %vm3427_vm4, %v3359_v21 }
 0x240   :  { %v2253_v16 = vpack.c.bf16 %v2137_v26, %v2136_v25  ;;  %v3219_v26 = vld [vmem:[%s12695_s9 + $0x90] sm:$0xff] }
 0x241   :  { %v11297_v34 = vpop.f32.mrb[36].mxu1  ;;  %v2252_v36 = vpack.c.bf16 %v2135_v28, %v2134_v27  ;;  %v3220_v27 = vld [vmem:[%s12695_s9 + $0x98] sm:$0xff] }
 0x242   :  { %v1708_v38 = vadd.f32 %v11297_v34, %v13323_v37  ;;  %v1699_v40 = vpop.f32.mrb[37].mxu1 }
 0x243   :  { %v1700_v41 = vadd.f32 %v13323_v37, %v1699_v40  ;;  %v11298_v43 = vpop.f32.mrb[38].mxu1  ;;  %11435 = vmatprep.mubr.bf16.mxu0 %v2252_v36  ;;  %v3366_v36 = vpack.c.bf16 %v3220_v27, %v3219_v26  ;;  %v3233_v27 = vld [vmem:[%s12695_s9 + $0x100] sm:$0xff] }
 0x244   :  { %v1711_v44 = vadd.f32 %v11298_v43, %v13323_v37  ;;  %v1702_v45 = vpop.f32.mrb[39].mxu1  ;;  %11436 = vmatmul.mubr.bf16.gmra.mrb[136].mxu0 %v2253_v16  ;;  %v2140_v47 = vmax.f32 %v1708_v38, 0.0 }
 0x245   :  { %v1703_v46 = vadd.f32 %v13323_v37, %v1702_v45  ;;  %v2138_v6 = vmax.f32 %v1700_v41, 0.0 }
 0x246   :  { %v2141_v48 = vmax.f32 %v1711_v44, 0.0  ;;  %11550 = vmatmul.mubr.msk.bf16.gmra.mrb[144].mxu1 %vm3427_vm4, %v3360_v42  ;;  %v3367_v42 = vpack.c.bf16 %v3222_v30, %v3221_v29 }
 0x247   :  { %v2139_v39 = vmax.f32 %v1703_v46, 0.0  ;;  %11553 = vmatprep.mubr.msk.bf16.mxu1 %vm3427_vm4, %v3361_v53 }
 0x248   :  { %v2255_v50 = vpack.c.bf16 %v2141_v48, %v2140_v47  ;;  %v3223_v48 = vld [vmem:[%s12695_s9 + $0xb0] sm:$0xff] }
 0x249   :  { %v11301_v54 = vpop.f32.mrb[40].mxu1  ;;  %v2254_v55 = vpack.c.bf16 %v2139_v39, %v2138_v6  ;;  %v3224_v6 = vld [vmem:[%s12695_s9 + $0xb8] sm:$0xff] }
 0x24a   :  { %v1724_v56 = vadd.f32 %v11301_v54, %v13323_v37  ;;  %v1715_v57 = vpop.f32.mrb[41].mxu1 }
 0x24b   :  { %v1716_v59 = vadd.f32 %v13323_v37, %v1715_v57  ;;  %v11302_v60 = vpop.f32.mrb[42].mxu1  ;;  %11439 = vmatprep.mubr.bf16.mxu0 %v2254_v55  ;;  %v3368_v55 = vpack.c.bf16 %v3224_v6, %v3223_v48  ;;  %v3237_v6 = vld [vmem:[%s12695_s9 + $0x120] sm:$0xff] }
 0x24c   :  { %v1727_v62 = vadd.f32 %v11302_v60, %v13323_v37  ;;  %v1718_v63 = vpop.f32.mrb[43].mxu1  ;;  %11440 = vmatmul.mubr.bf16.gmra.mrb[140].mxu0 %v2255_v50  ;;  %v2144_v0 = vmax.f32 %v1724_v56, 0.0 }
 0x24d   :  { %v1719_v3 = vadd.f32 %v13323_v37, %v1718_v63  ;;  %v2142_v1 = vmax.f32 %v1716_v59, 0.0 }
 0x24e   :  { %v2145_v35 = vmax.f32 %v1727_v62, 0.0  ;;  %11554 = vmatmul.mubr.msk.bf16.gmra.mrb[148].mxu1 %vm3427_vm4, %v3362_v58  ;;  %v3369_v58 = vpack.c.bf16 %v3226_v7, %v3225_v49  ;;  %v12254_v62 = vld [vmem:[%s12755_s6 + $0x18] sm:$0xff]   ;;  %s15242_s6 = sld [smem:[#allocation17_spill]] }
 0x24f   :  { %v2143_v2 = vmax.f32 %v1719_v3, 0.0  ;;  %11557 = vmatprep.mubr.msk.bf16.mxu1 %vm3427_vm4, %v3363_v61  ;;  %11679 = vmatprep.subr.bf16.mxu0 %v12254_v62 }
 0x250   :  { %v2257_v8 = vpack.c.bf16 %v2145_v35, %v2144_v0  ;;  %11680 = vmatpush3.bf16.msra.mxu0 %v12254_v62 }
 0x251   :  { %v11305_v11 = vpop.f32.mrb[44].mxu1  ;;  %v2256_v12 = vpack.c.bf16 %v2143_v2, %v2142_v1  ;;  %v3227_v1 = vld [vmem:[%s12695_s9 + $0xd0] sm:$0xff]  ;;  %v3228_v2 = vld [vmem:[%s12695_s9 + $0xd8] sm:$0xff] }
 0x252   :  { %v1740_v13 = vadd.f32 %v11305_v11, %v13323_v37  ;;  %v1731_v14 = vpop.f32.mrb[45].mxu1 }
 0x253   :  { %v1732_v17 = vadd.f32 %v13323_v37, %v1731_v14  ;;  %v11306_v18 = vpop.f32.mrb[46].mxu1  ;;  %11443 = vmatprep.mubr.bf16.mxu0 %v2256_v12 }
 0x254   :  { %v1743_v20 = vadd.f32 %v11306_v18, %v13323_v37  ;;  %v1734_v33 = vpop.f32.mrb[47].mxu1  ;;  %11444 = vmatmul.mubr.bf16.gmra.mrb[144].mxu0 %v2257_v8  ;;  %v2148_v22 = vmax.f32 %v1740_v13, 0.0  ;;  %v3230_v8 = vld [vmem:[%s12695_s9 + $0xe8] sm:$0xff]  ;;  %v3370_v13 = vpack.c.bf16 %v3228_v2, %v3227_v1  ;;  %v3241_v1 = vld [vmem:[%s12695_s9 + $0x140] sm:$0xff] }
 0x255   :  { %v1735_v21 = vadd.f32 %v13323_v37, %v1734_v33  ;;  %v2146_v24 = vmax.f32 %v1732_v17, 0.0  ;;  %v3371_v17 = vpack.c.bf16 %v3230_v8, %v3229_v5  ;;  %v3242_v2 = vld [vmem:[%s12695_s9 + $0x148] sm:$0xff] }
 0x256   :  { %v2149_v23 = vmax.f32 %v1743_v20, 0.0  ;;  %11558 = vmatmul.mubr.msk.bf16.gmra.mrb[152].mxu1 %vm3427_vm4, %v3364_v15 }
 0x257   :  { %v2147_v25 = vmax.f32 %v1735_v21, 0.0  ;;  %11561 = vmatprep.mubr.msk.bf16.mxu1 %vm3427_vm4, %v3365_v19 }
 0x258   :  { %v2259_v28 = vpack.c.bf16 %v2149_v23, %v2148_v22 }
 0x259   :  { %v11309_v16 = vpop.f32.mrb[48].mxu1  ;;  %v2258_v31 = vpack.c.bf16 %v2147_v25, %v2146_v24  ;;  %v3231_v24 = vld [vmem:[%s12695_s9 + $0xf0] sm:$0xff]  ;;  %v3232_v25 = vld [vmem:[%s12695_s9 + $0xf8] sm:$0xff] }
 0x25a   :  { %v1756_v32 = vadd.f32 %v11309_v16, %v13323_v37  ;;  %v1747_v34 = vpop.f32.mrb[49].mxu1 }
 0x25b   :  { %v1748_v38 = vadd.f32 %v13323_v37, %v1747_v34  ;;  %v11310_v40 = vpop.f32.mrb[50].mxu1  ;;  %11447 = vmatprep.mubr.bf16.mxu0 %v2258_v31 }
 0x25c   :  { %v1759_v41 = vadd.f32 %v11310_v40, %v13323_v37  ;;  %v1750_v43 = vpop.f32.mrb[51].mxu1  ;;  %11448 = vmatmul.mubr.bf16.gmra.mrb[148].mxu0 %v2259_v28  ;;  %v2152_v44 = vmax.f32 %v1756_v32, 0.0  ;;  %v3234_v28 = vld [vmem:[%s12695_s9 + $0x108] sm:$0xff]  ;;  %v3372_v32 = vpack.c.bf16 %v3232_v25, %v3231_v24  ;;  %v3245_v25 = vld [vmem:[%s12695_s9 + $0x160] sm:$0xff] }
 0x25d   :  { %v1751_v53 = vadd.f32 %v13323_v37, %v1750_v43  ;;  %v2150_v46 = vmax.f32 %v1748_v38, 0.0  ;;  %v3373_v38 = vpack.c.bf16 %v3234_v28, %v3233_v27 }
 0x25e   :  { %v2153_v45 = vmax.f32 %v1759_v41, 0.0  ;;  %11562 = vmatmul.mubr.msk.bf16.gmra.mrb[156].mxu1 %vm3427_vm4, %v3366_v36 }
 0x25f   :  { %v2151_v47 = vmax.f32 %v1751_v53, 0.0  ;;  %11565 = vmatprep.mubr.msk.bf16.mxu1 %vm3427_vm4, %v3367_v42 }
 0x260   :  { %v2261_v39 = vpack.c.bf16 %v2153_v45, %v2152_v44 }
 0x261   :  { %v11313_v50 = vpop.f32.mrb[52].mxu1  ;;  %v2260_v51 = vpack.c.bf16 %v2151_v47, %v2150_v46  ;;  %v3235_v46 = vld [vmem:[%s12695_s9 + $0x110] sm:$0xff]  ;;  %v3236_v47 = vld [vmem:[%s12695_s9 + $0x118] sm:$0xff] }
 0x262   :  { %v1772_v52 = vadd.f32 %v11313_v50, %v13323_v37  ;;  %v1763_v54 = vpop.f32.mrb[53].mxu1 }
 0x263   :  { %v1764_v56 = vadd.f32 %v13323_v37, %v1763_v54  ;;  %v11314_v57 = vpop.f32.mrb[54].mxu1  ;;  %11451 = vmatprep.mubr.bf16.mxu0 %v2260_v51 }
 0x264   :  { %v1775_v59 = vadd.f32 %v11314_v57, %v13323_v37  ;;  %v1766_v60 = vpop.f32.mrb[55].mxu1  ;;  %11452 = vmatmul.mubr.bf16.gmra.mrb[152].mxu0 %v2261_v39  ;;  %v2156_v63 = vmax.f32 %v1772_v52, 0.0  ;;  %v3238_v39 = vld [vmem:[%s12695_s9 + $0x128] sm:$0xff]  ;;  %v3374_v52 = vpack.c.bf16 %v3236_v47, %v3235_v46  ;;  %v3249_v47 = vld [vmem:[%s12695_s9 + $0x180] sm:$0xff] }
 0x265   :  { %v1767_v61 = vadd.f32 %v13323_v37, %v1766_v60  ;;  %v2154_v0 = vmax.f32 %v1764_v56, 0.0  ;;  %v3375_v56 = vpack.c.bf16 %v3238_v39, %v3237_v6 }
 0x266   :  { %v2157_v3 = vmax.f32 %v1775_v59, 0.0  ;;  %11566 = vmatmul.mubr.msk.bf16.gmra.mrb[160].mxu1 %vm3427_vm4, %v3368_v55 }
 0x267   :  { %v2155_v35 = vmax.f32 %v1767_v61, 0.0  ;;  %11569 = vmatprep.mubr.msk.bf16.mxu1 %vm3427_vm4, %v3369_v58 }
 0x268   :  { %v2263_v4 = vpack.c.bf16 %v2157_v3, %v2156_v63  ;;  %v3239_v3 = vld [vmem:[%s12695_s9 + $0x130] sm:$0xff] }
 0x269   :  { %v11317_v9 = vpop.f32.mrb[56].mxu1  ;;  %v2262_v10 = vpack.c.bf16 %v2155_v35, %v2154_v0  ;;  %v3240_v0 = vld [vmem:[%s12695_s9 + $0x138] sm:$0xff] }
 0x26a   :  { %v1788_v11 = vadd.f32 %v11317_v9, %v13323_v37  ;;  %v1779_v12 = vpop.f32.mrb[57].mxu1 }
 0x26b   :  { %v1780_v14 = vadd.f32 %v13323_v37, %v1779_v12  ;;  %v11318_v15 = vpop.f32.mrb[58].mxu1  ;;  %11455 = vmatprep.mubr.bf16.mxu0 %v2262_v10  ;;  %v3376_v10 = vpack.c.bf16 %v3240_v0, %v3239_v3  ;;  %v3253_v0 = vld [vmem:[%s12695_s9 + $0x1a0] sm:$0xff] }
 0x26c   :  { %v1791_v18 = vadd.f32 %v11318_v15, %v13323_v37  ;;  %v1782_v19 = vpop.f32.mrb[59].mxu1  ;;  %11456 = vmatmul.mubr.bf16.gmra.mrb[156].mxu0 %v2263_v4  ;;  %v2160_v33 = vmax.f32 %v1788_v11, 0.0 }
 0x26d   :  { %v1783_v20 = vadd.f32 %v13323_v37, %v1782_v19  ;;  %v2158_v22 = vmax.f32 %v1780_v14, 0.0 }
 0x26e   :  { %v2161_v21 = vmax.f32 %v1791_v18, 0.0  ;;  %11570 = vmatmul.mubr.msk.bf16.gmra.mrb[164].mxu1 %vm3427_vm4, %v3370_v13  ;;  %v3377_v13 = vpack.c.bf16 %v3242_v2, %v3241_v1 }
 0x26f   :  { %v2159_v23 = vmax.f32 %v1783_v20, 0.0  ;;  %11573 = vmatprep.mubr.msk.bf16.mxu1 %vm3427_vm4, %v3371_v17  ;;  %v12255_v17 = vld [vmem:[%s12765_s20] sm:$0xff]  }
 0x270   :  { %v2265_v26 = vpack.c.bf16 %v2161_v21, %v2160_v33  ;;  %11809 = vmatprep.subr.bf16.mxu1 %v12255_v17 }
 0x271   :  { %v11321_v29 = vpop.f32.mrb[60].mxu1  ;;  %v2264_v30 = vpack.c.bf16 %v2159_v23, %v2158_v22  ;;  %v3243_v22 = vld [vmem:[%s12695_s9 + $0x150] sm:$0xff]  ;;  %v3244_v23 = vld [vmem:[%s12695_s9 + $0x158] sm:$0xff]  ;;  %11810 = vmatpush3.bf16.msra.mxu1 %v12255_v17 }
 0x272   :  { %v1804_v16 = vadd.f32 %v11321_v29, %v13323_v37  ;;  %v1795_v31 = vpop.f32.mrb[61].mxu1 }
 0x273   :  { %v1796_v34 = vadd.f32 %v13323_v37, %v1795_v31  ;;  %v11322_v36 = vpop.f32.mrb[62].mxu1  ;;  %11459 = vmatprep.mubr.bf16.mxu0 %v2264_v30 }
 0x274   :  { %v1807_v40 = vadd.f32 %v11322_v36, %v13323_v37  ;;  %v1798_v42 = vpop.f32.mrb[63].mxu1  ;;  %11460 = vmatmul.mubr.bf16.gmra.mrb[160].mxu0 %v2265_v26  ;;  %v2164_v43 = vmax.f32 %v1804_v16, 0.0  ;;  %v3246_v26 = vld [vmem:[%s12695_s9 + $0x168] sm:$0xff]  ;;  %v3378_v16 = vpack.c.bf16 %v3244_v23, %v3243_v22  ;;  %v3257_v22 = vld [vmem:[%s12695_s9 + $0x1c0] sm:$0xff] }
 0x275   :  { %v1799_v41 = vadd.f32 %v13323_v37, %v1798_v42  ;;  %v2162_v44 = vmax.f32 %v1796_v34, 0.0  ;;  %v3379_v34 = vpack.c.bf16 %v3246_v26, %v3245_v25  ;;  %v3258_v23 = vld [vmem:[%s12695_s9 + $0x1c8] sm:$0xff] }
 0x276   :  { %v2165_v53 = vmax.f32 %v1807_v40, 0.0  ;;  %11574 = vmatmul.mubr.msk.bf16.gmra.mrb[168].mxu1 %vm3427_vm4, %v3372_v32 }
 0x277   :  { %v2163_v45 = vmax.f32 %v1799_v41, 0.0  ;;  %11577 = vmatprep.mubr.msk.bf16.mxu1 %vm3427_vm4, %v3373_v38 }
 0x278   :  { %v2267_v48 = vpack.c.bf16 %v2165_v53, %v2164_v43 }
 0x279   :  { %v11325_v49 = vpop.f32.mrb[64].mxu1  ;;  %v2266_v7 = vpack.c.bf16 %v2163_v45, %v2162_v44  ;;  %v3247_v44 = vld [vmem:[%s12695_s9 + $0x170] sm:$0xff]  ;;  %v3248_v45 = vld [vmem:[%s12695_s9 + $0x178] sm:$0xff] }
 0x27a   :  { %v1820_v50 = vadd.f32 %v11325_v49, %v13323_v37  ;;  %v1811_v51 = vpop.f32.mrb[65].mxu1 }
 0x27b   :  { %v1812_v54 = vadd.f32 %v13323_v37, %v1811_v51  ;;  %v11326_v55 = vpop.f32.mrb[66].mxu1  ;;  %11463 = vmatprep.mubr.bf16.mxu0 %v2266_v7 }
 0x27c   :  { %v1823_v57 = vadd.f32 %v11326_v55, %v13323_v37  ;;  %v1814_v58 = vpop.f32.mrb[67].mxu1  ;;  %11464 = vmatmul.mubr.bf16.gmra.mrb[164].mxu0 %v2267_v48  ;;  %v2168_v60 = vmax.f32 %v1820_v50, 0.0  ;;  %v3250_v48 = vld [vmem:[%s12695_s9 + $0x188] sm:$0xff]  ;;  %v3380_v50 = vpack.c.bf16 %v3248_v45, %v3247_v44  ;;  %v3261_v45 = vld [vmem:[%s12695_s9 + $0x1e0] sm:$0xff] }
 0x27d   :  { %v1815_v59 = vadd.f32 %v13323_v37, %v1814_v58  ;;  %v2166_v62 = vmax.f32 %v1812_v54, 0.0  ;;  %v3381_v54 = vpack.c.bf16 %v3250_v48, %v3249_v47 }
 0x27e   :  { %v2169_v61 = vmax.f32 %v1823_v57, 0.0  ;;  %11578 = vmatmul.mubr.msk.bf16.gmra.mrb[172].mxu1 %vm3427_vm4, %v3374_v52 }
 0x27f   :  { %v2167_v63 = vmax.f32 %v1815_v59, 0.0  ;;  %11581 = vmatprep.mubr.msk.bf16.mxu1 %vm3427_vm4, %v3375_v56 }
 0x280   :  { %v2269_v35 = vpack.c.bf16 %v2169_v61, %v2168_v60 }
 0x281   :  { %v11329_v4 = vpop.f32.mrb[68].mxu1  ;;  %v2268_v5 = vpack.c.bf16 %v2167_v63, %v2166_v62  ;;  %v3251_v62 = vld [vmem:[%s12695_s9 + $0x190] sm:$0xff]  ;;  %v3252_v63 = vld [vmem:[%s12695_s9 + $0x198] sm:$0xff] }
 0x282   :  { %v1836_v8 = vadd.f32 %v11329_v4, %v13323_v37  ;;  %v1827_v9 = vpop.f32.mrb[69].mxu1 }
 0x283   :  { %v1828_v11 = vadd.f32 %v13323_v37, %v1827_v9  ;;  %v11330_v12 = vpop.f32.mrb[70].mxu1  ;;  %11467 = vmatprep.mubr.bf16.mxu0 %v2268_v5 }
 0x284   :  { %v1839_v14 = vadd.f32 %v11330_v12, %v13323_v37  ;;  %v1830_v15 = vpop.f32.mrb[71].mxu1  ;;  %11468 = vmatmul.mubr.bf16.gmra.mrb[168].mxu0 %v2269_v35  ;;  %v2172_v19 = vmax.f32 %v1836_v8, 0.0  ;;  %v3254_v35 = vld [vmem:[%s12695_s9 + $0x1a8] sm:$0xff]  ;;  %v3382_v8 = vpack.c.bf16 %v3252_v63, %v3251_v62  ;;  %v3265_v63 = vld [vmem:[%s12695_s9 + $0x200] sm:$0xff] }
 0x285   :  { %v1831_v18 = vadd.f32 %v13323_v37, %v1830_v15  ;;  %v2170_v33 = vmax.f32 %v1828_v11, 0.0  ;;  %v3383_v11 = vpack.c.bf16 %v3254_v35, %v3253_v0 }
 0x286   :  { %v2173_v20 = vmax.f32 %v1839_v14, 0.0  ;;  %11582 = vmatmul.mubr.msk.bf16.gmra.mrb[176].mxu1 %vm3427_vm4, %v3376_v10 }
 0x287   :  { %v2171_v21 = vmax.f32 %v1831_v18, 0.0  ;;  %11585 = vmatprep.mubr.msk.bf16.mxu1 %vm3427_vm4, %v3377_v13 }
 0x288   :  { %v2271_v24 = vpack.c.bf16 %v2173_v20, %v2172_v19  ;;  %v3255_v20 = vld [vmem:[%s12695_s9 + $0x1b0] sm:$0xff] }
 0x289   :  { %v11333_v27 = vpop.f32.mrb[72].mxu1  ;;  %v2270_v28 = vpack.c.bf16 %v2171_v21, %v2170_v33  ;;  %v3256_v33 = vld [vmem:[%s12695_s9 + $0x1b8] sm:$0xff] }
 0x28a   :  { %v1852_v29 = vadd.f32 %v11333_v27, %v13323_v37  ;;  %v1843_v30 = vpop.f32.mrb[73].mxu1 }
 0x28b   :  { %v1844_v31 = vadd.f32 %v13323_v37, %v1843_v30  ;;  %v11334_v32 = vpop.f32.mrb[74].mxu1  ;;  %11471 = vmatprep.mubr.bf16.mxu0 %v2270_v28  ;;  %v3384_v28 = vpack.c.bf16 %v3256_v33, %v3255_v20  ;;  %v3269_v33 = vld [vmem:[%s12695_s9 + $0x220] sm:$0xff] }
 0x28c   :  { %v1855_v36 = vadd.f32 %v11334_v32, %v13323_v37  ;;  %v1846_v38 = vpop.f32.mrb[75].mxu1  ;;  %11472 = vmatmul.mubr.bf16.gmra.mrb[172].mxu0 %v2271_v24  ;;  %v2176_v42 = vmax.f32 %v1852_v29, 0.0 }
 0x28d   :  { %v1847_v40 = vadd.f32 %v13323_v37, %v1846_v38  ;;  %v2174_v43 = vmax.f32 %v1844_v31, 0.0 }
 0x28e   :  { %v2177_v41 = vmax.f32 %v1855_v36, 0.0  ;;  %11586 = vmatmul.mubr.msk.bf16.gmra.mrb[180].mxu1 %vm3427_vm4, %v3378_v16  ;;  %v3385_v16 = vpack.c.bf16 %v3258_v23, %v3257_v22 }
 0x28f   :  { %v2175_v53 = vmax.f32 %v1847_v40, 0.0  ;;  %11589 = vmatprep.mubr.msk.bf16.mxu1 %vm3427_vm4, %v3379_v34  ;;  %v12256_v34 = vld [vmem:[%s12765_s20 + $0x8] sm:$0xff]  }
 0x290   :  { %v2273_v46 = vpack.c.bf16 %v2177_v41, %v2176_v42  ;;  %11811 = vmatprep.subr.bf16.mxu1 %v12256_v34 }
 0x291   :  { %v11337_v6 = vpop.f32.mrb[76].mxu1  ;;  %v2272_v39 = vpack.c.bf16 %v2175_v53, %v2174_v43  ;;  %v3259_v43 = vld [vmem:[%s12695_s9 + $0x1d0] sm:$0xff]  ;;  %v3260_v53 = vld [vmem:[%s12695_s9 + $0x1d8] sm:$0xff]  ;;  %11812 = vmatpush3.bf16.msra.mxu1 %v12256_v34 }
 0x292   :  { %v1868_v49 = vadd.f32 %v11337_v6, %v13323_v37  ;;  %v1859_v7 = vpop.f32.mrb[77].mxu1 }
 0x293   :  { %v1860_v51 = vadd.f32 %v13323_v37, %v1859_v7  ;;  %v11338_v52 = vpop.f32.mrb[78].mxu1  ;;  %11475 = vmatprep.mubr.bf16.mxu0 %v2272_v39 }
 0x294   :  { %v1871_v55 = vadd.f32 %v11338_v52, %v13323_v37  ;;  %v1862_v56 = vpop.f32.mrb[79].mxu1  ;;  %11476 = vmatmul.mubr.bf16.gmra.mrb[176].mxu0 %v2273_v46  ;;  %v2180_v58 = vmax.f32 %v1868_v49, 0.0  ;;  %v3262_v46 = vld [vmem:[%s12695_s9 + $0x1e8] sm:$0xff]  ;;  %v3386_v49 = vpack.c.bf16 %v3260_v53, %v3259_v43  ;;  %v3273_v43 = vld [vmem:[%s12695_s9 + $0x240] sm:$0xff] }
 0x295   :  { %v1863_v57 = vadd.f32 %v13323_v37, %v1862_v56  ;;  %v2178_v60 = vmax.f32 %v1860_v51, 0.0  ;;  %v3387_v51 = vpack.c.bf16 %v3262_v46, %v3261_v45  ;;  %v3274_v53 = vld [vmem:[%s12695_s9 + $0x248] sm:$0xff] }
 0x296   :  { %v2181_v59 = vmax.f32 %v1871_v55, 0.0  ;;  %11590 = vmatmul.mubr.msk.bf16.gmra.mrb[184].mxu1 %vm3427_vm4, %v3380_v50 }
 0x297   :  { %v2179_v61 = vmax.f32 %v1863_v57, 0.0  ;;  %11593 = vmatprep.mubr.msk.bf16.mxu1 %vm3427_vm4, %v3381_v54 }
 0x298   :  { %v2275_v3 = vpack.c.bf16 %v2181_v59, %v2180_v58 }
 0x299   :  { %v11341_v1 = vpop.f32.mrb[80].mxu1  ;;  %v2274_v2 = vpack.c.bf16 %v2179_v61, %v2178_v60  ;;  %v3263_v60 = vld [vmem:[%s12695_s9 + $0x1f0] sm:$0xff]  ;;  %v3264_v61 = vld [vmem:[%s12695_s9 + $0x1f8] sm:$0xff] }
 0x29a   :  { %v1884_v4 = vadd.f32 %v11341_v1, %v13323_v37  ;;  %v1875_v5 = vpop.f32.mrb[81].mxu1 }
 0x29b   :  { %v1876_v9 = vadd.f32 %v13323_v37, %v1875_v5  ;;  %v11342_v10 = vpop.f32.mrb[82].mxu1  ;;  %11479 = vmatprep.mubr.bf16.mxu0 %v2274_v2 }
 0x29c   :  { %v1887_v12 = vadd.f32 %v11342_v10, %v13323_v37  ;;  %v1878_v13 = vpop.f32.mrb[83].mxu1  ;;  %11480 = vmatmul.mubr.bf16.gmra.mrb[180].mxu0 %v2275_v3  ;;  %v2184_v15 = vmax.f32 %v1884_v4, 0.0  ;;  %v3266_v3 = vld [vmem:[%s12695_s9 + $0x208] sm:$0xff]  ;;  %v3388_v4 = vpack.c.bf16 %v3264_v61, %v3263_v60  ;;  %v3277_v61 = vld [vmem:[%s12695_s9 + $0x260] sm:$0xff] }
 0x29d   :  { %v1879_v14 = vadd.f32 %v13323_v37, %v1878_v13  ;;  %v2182_v18 = vmax.f32 %v1876_v9, 0.0  ;;  %v3389_v9 = vpack.c.bf16 %v3266_v3, %v3265_v63 }
 0x29e   :  { %v2185_v17 = vmax.f32 %v1887_v12, 0.0  ;;  %11594 = vmatmul.mubr.msk.bf16.gmra.mrb[188].mxu1 %vm3427_vm4, %v3382_v8 }
 0x29f   :  { %v2183_v19 = vmax.f32 %v1879_v14, 0.0  ;;  %11597 = vmatprep.mubr.msk.bf16.mxu1 %vm3427_vm4, %v3383_v11 }
 0x2a0   :  { %v2277_v21 = vpack.c.bf16 %v2185_v17, %v2184_v15 }
 0x2a1   :  { %v11345_v24 = vpop.f32.mrb[84].mxu1  ;;  %v2276_v25 = vpack.c.bf16 %v2183_v19, %v2182_v18  ;;  %v3267_v18 = vld [vmem:[%s12695_s9 + $0x210] sm:$0xff]  ;;  %v3268_v19 = vld [vmem:[%s12695_s9 + $0x218] sm:$0xff] }
 0x2a2   :  { %v1900_v26 = vadd.f32 %v11345_v24, %v13323_v37  ;;  %v1891_v27 = vpop.f32.mrb[85].mxu1  ;;  %v13535_v24 = vld [vmem:[%s12730_s8] ss:$0 sm:$0xff]  ;;  %s15237_s8 = sld [smem:[#allocation13_spill]] }
 0x2a3   :  { %v1892_v29 = vadd.f32 %v13323_v37, %v1891_v27  ;;  %v11346_v30 = vpop.f32.mrb[86].mxu1  ;;  %11483 = vmatprep.mubr.bf16.mxu0 %v2276_v25 }
 0x2a4   :  { %v1903_v31 = vadd.f32 %v11346_v30, %v13323_v37  ;;  %v1894_v32 = vpop.f32.mrb[87].mxu1  ;;  %11484 = vmatmul.mubr.bf16.gmra.mrb[184].mxu0 %v2277_v21  ;;  %v2188_v38 = vmax.f32 %v1900_v26, 0.0  ;;  %v3270_v21 = vld [vmem:[%s12695_s9 + $0x228] sm:$0xff]  ;;  %v3390_v26 = vpack.c.bf16 %v3268_v19, %v3267_v18  ;;  %v3281_v19 = vld [vmem:[%s12695_s9 + $0x280] sm:$0xff] }
 0x2a5   :  { %v1895_v36 = vadd.f32 %v13323_v37, %v1894_v32  ;;  %v2186_v42 = vmax.f32 %v1892_v29, 0.0  ;;  %v3391_v29 = vpack.c.bf16 %v3270_v21, %v3269_v33 }
 0x2a6   :  { %v2189_v40 = vmax.f32 %v1903_v31, 0.0  ;;  %11598 = vmatmul.mubr.msk.bf16.gmra.mrb[192].mxu1 %vm3427_vm4, %v3384_v28 }
 0x2a7   :  { %v2187_v41 = vmax.f32 %v1895_v36, 0.0  ;;  %11601 = vmatprep.mubr.msk.bf16.mxu1 %vm3427_vm4, %v3385_v16 }
 0x2a8   :  { %v2279_v44 = vpack.c.bf16 %v2189_v40, %v2188_v38  ;;  %v3271_v40 = vld [vmem:[%s12695_s9 + $0x230] sm:$0xff] }
 0x2a9   :  { %v11349_v47 = vpop.f32.mrb[88].mxu1  ;;  %v2278_v48 = vpack.c.bf16 %v2187_v41, %v2186_v42  ;;  %v3272_v42 = vld [vmem:[%s12695_s9 + $0x238] sm:$0xff] }
 0x2aa   :  { %v1916_v6 = vadd.f32 %v11349_v47, %v13323_v37  ;;  %v1907_v39 = vpop.f32.mrb[89].mxu1 }
 0x2ab   :  { %v1908_v7 = vadd.f32 %v13323_v37, %v1907_v39  ;;  %v11350_v50 = vpop.f32.mrb[90].mxu1  ;;  %11487 = vmatprep.mubr.bf16.mxu0 %v2278_v48  ;;  %v3392_v48 = vpack.c.bf16 %v3272_v42, %v3271_v40  ;;  %v3285_v42 = vld [vmem:[%s12695_s9 + $0x2a0] sm:$0xff] }
 0x2ac   :  { %v1919_v52 = vadd.f32 %v11350_v50, %v13323_v37  ;;  %v1910_v54 = vpop.f32.mrb[91].mxu1  ;;  %11488 = vmatmul.mubr.bf16.gmra.mrb[188].mxu0 %v2279_v44  ;;  %v2192_v56 = vmax.f32 %v1916_v6, 0.0 }
 0x2ad   :  { %v1911_v55 = vadd.f32 %v13323_v37, %v1910_v54  ;;  %v2190_v58 = vmax.f32 %v1908_v7, 0.0 }
 0x2ae   :  { %v2193_v57 = vmax.f32 %v1919_v52, 0.0  ;;  %11602 = vmatmul.mubr.msk.bf16.gmra.mrb[196].mxu1 %vm3427_vm4, %v3386_v49  ;;  %v3393_v49 = vpack.c.bf16 %v3274_v53, %v3273_v43 }
 0x2af   :  { %v2191_v59 = vmax.f32 %v1911_v55, 0.0  ;;  %11605 = vmatprep.mubr.msk.bf16.mxu1 %vm3427_vm4, %v3387_v51  ;;  %v12257_v51 = vld [vmem:[%s12765_s20 + $0x10] sm:$0xff]  }
 0x2b0   :  { %v2281_v62 = vpack.c.bf16 %v2193_v57, %v2192_v56  ;;  %11813 = vmatprep.subr.bf16.mxu1 %v12257_v51 }
 0x2b1   :  { %v11353_v0 = vpop.f32.mrb[92].mxu1  ;;  %v2280_v35 = vpack.c.bf16 %v2191_v59, %v2190_v58  ;;  %v3275_v58 = vld [vmem:[%s12695_s9 + $0x250] sm:$0xff]  ;;  %v3276_v59 = vld [vmem:[%s12695_s9 + $0x258] sm:$0xff]  ;;  %11814 = vmatpush3.bf16.msra.mxu1 %v12257_v51 }
 0x2b2   :  { %v1932_v1 = vadd.f32 %v11353_v0, %v13323_v37  ;;  %v1923_v2 = vpop.f32.mrb[93].mxu1 }
 0x2b3   :  { %v1924_v5 = vadd.f32 %v13323_v37, %v1923_v2  ;;  %v11354_v8 = vpop.f32.mrb[94].mxu1  ;;  %11491 = vmatprep.mubr.bf16.mxu0 %v2280_v35 }
 0x2b4   :  { %v1935_v10 = vadd.f32 %v11354_v8, %v13323_v37  ;;  %v1926_v11 = vpop.f32.mrb[95].mxu1  ;;  %11492 = vmatmul.mubr.bf16.gmra.mrb[192].mxu0 %v2281_v62  ;;  %v2196_v13 = vmax.f32 %v1932_v1, 0.0  ;;  %v3278_v62 = vld [vmem:[%s12695_s9 + $0x268] sm:$0xff]  ;;  %v3394_v1 = vpack.c.bf16 %v3276_v59, %v3275_v58  ;;  %v3289_v58 = vld [vmem:[%s12695_s9 + $0x2c0] sm:$0xff] }
 0x2b5   :  { %v1927_v12 = vadd.f32 %v13323_v37, %v1926_v11  ;;  %v2194_v15 = vmax.f32 %v1924_v5, 0.0  ;;  %v3395_v5 = vpack.c.bf16 %v3278_v62, %v3277_v61  ;;  %v3290_v59 = vld [vmem:[%s12695_s9 + $0x2c8] sm:$0xff] }
 0x2b6   :  { %v2197_v14 = vmax.f32 %v1935_v10, 0.0  ;;  %11606 = vmatmul.mubr.msk.bf16.gmra.mrb[200].mxu1 %vm3427_vm4, %v3388_v4 }
 0x2b7   :  { %v2195_v17 = vmax.f32 %v1927_v12, 0.0  ;;  %11609 = vmatprep.mubr.msk.bf16.mxu1 %vm3427_vm4, %v3389_v9 }
 0x2b8   :  { %v2283_v20 = vpack.c.bf16 %v2197_v14, %v2196_v13 }
 0x2b9   :  { %v11357_v22 = vpop.f32.mrb[96].mxu1  ;;  %v2282_v23 = vpack.c.bf16 %v2195_v17, %v2194_v15  ;;  %v3279_v15 = vld [vmem:[%s12695_s9 + $0x270] sm:$0xff]  ;;  %v3280_v17 = vld [vmem:[%s12695_s9 + $0x278] sm:$0xff] }
 0x2ba   :  { %v1948_v25 = vadd.f32 %v13535_v24, %v11357_v22  ;;  %v1939_v37 = vpop.f32.mrb[97].mxu1 }
 0x2bb   :  { %v1940_v27 = vadd.f32 %v13535_v24, %v1939_v37  ;;  %v11358_v28 = vpop.f32.mrb[98].mxu1  ;;  %11495 = vmatprep.mubr.bf16.mxu0 %v2282_v23 }
 0x2bc   :  { %v1951_v30 = vadd.f32 %v13535_v24, %v11358_v28  ;;  %v1942_v16 = vpop.f32.mrb[99].mxu1  ;;  %11496 = vmatmul.mubr.bf16.gmra.mrb[196].mxu0 %v2283_v20  ;;  %v2200_v32 = vmax.f32 %v1948_v25, 0.0  ;;  %v3282_v20 = vld [vmem:[%s12695_s9 + $0x288] sm:$0xff]  ;;  %v3396_v25 = vpack.c.bf16 %v3280_v17, %v3279_v15  ;;  %v3293_v17 = vld [vmem:[%s12695_s9 + $0x2e0] sm:$0xff] }
 0x2bd   :  { %v1943_v31 = vadd.f32 %v13535_v24, %v1942_v16  ;;  %v2198_v36 = vmax.f32 %v1940_v27, 0.0  ;;  %v3397_v27 = vpack.c.bf16 %v3282_v20, %v3281_v19 }
 0x2be   :  { %v2201_v34 = vmax.f32 %v1951_v30, 0.0  ;;  %11610 = vmatmul.mubr.msk.bf16.gmra.mrb[204].mxu1 %vm3427_vm4, %v3390_v26 }
 0x2bf   :  { %v2199_v38 = vmax.f32 %v1943_v31, 0.0  ;;  %11613 = vmatprep.mubr.msk.bf16.mxu1 %vm3427_vm4, %v3391_v29 }
 0x2c0   :  { %v2285_v41 = vpack.c.bf16 %v2201_v34, %v2200_v32 }
 0x2c1   :  { %v11361_v44 = vpop.f32.mrb[100].mxu1  ;;  %v2284_v45 = vpack.c.bf16 %v2199_v38, %v2198_v36  ;;  %v3283_v36 = vld [vmem:[%s12695_s9 + $0x290] sm:$0xff]  ;;  %v3284_v38 = vld [vmem:[%s12695_s9 + $0x298] sm:$0xff] }
 0x2c2   :  { %v1964_v46 = vadd.f32 %v13535_v24, %v11361_v44  ;;  %v1955_v47 = vpop.f32.mrb[101].mxu1 }
 0x2c3   :  { %v1956_v6 = vadd.f32 %v13535_v24, %v1955_v47  ;;  %v11362_v39 = vpop.f32.mrb[102].mxu1  ;;  %11499 = vmatprep.mubr.bf16.mxu0 %v2284_v45 }
 0x2c4   :  { %v1967_v7 = vadd.f32 %v13535_v24, %v11362_v39  ;;  %v1958_v50 = vpop.f32.mrb[103].mxu1  ;;  %11500 = vmatmul.mubr.bf16.gmra.mrb[200].mxu0 %v2285_v41  ;;  %v2204_v54 = vmax.f32 %v1964_v46, 0.0  ;;  %v3286_v41 = vld [vmem:[%s12695_s9 + $0x2a8] sm:$0xff]  ;;  %v3398_v46 = vpack.c.bf16 %v3284_v38, %v3283_v36  ;;  %v3295_v36 = vld [vmem:[%s12695_s9 + $0x2f0] sm:$0xff]  ;;  %v3296_v38 = vld [vmem:[%s12695_s9 + $0x2f8] sm:$0xff] }
 0x2c5   :  { %v1959_v52 = vadd.f32 %v13535_v24, %v1958_v50  ;;  %v2202_v56 = vmax.f32 %v1956_v6, 0.0  ;;  %v3399_v6 = vpack.c.bf16 %v3286_v41, %v3285_v42  ;;  %v3297_v41 = vld [vmem:[%s12695_s9 + $0x300] sm:$0xff] }
 0x2c6   :  { %v2205_v55 = vmax.f32 %v1967_v7, 0.0  ;;  %11614 = vmatmul.mubr.msk.bf16.gmra.mrb[208].mxu1 %vm3427_vm4, %v3392_v48 }
 0x2c7   :  { %v2203_v57 = vmax.f32 %v1959_v52, 0.0  ;;  %11617 = vmatprep.mubr.msk.bf16.mxu1 %vm3427_vm4, %v3393_v49 }
 0x2c8   :  { %v2287_v60 = vpack.c.bf16 %v2205_v55, %v2204_v54  ;;  %v3287_v55 = vld [vmem:[%s12695_s9 + $0x2b0] sm:$0xff] }
 0x2c9   :  { %v11365_v63 = vpop.f32.mrb[104].mxu1  ;;  %v2286_v3 = vpack.c.bf16 %v2203_v57, %v2202_v56  ;;  %v3288_v56 = vld [vmem:[%s12695_s9 + $0x2b8] sm:$0xff] }
 0x2ca   :  { %v1980_v0 = vadd.f32 %v13535_v24, %v11365_v63  ;;  %v1971_v35 = vpop.f32.mrb[105].mxu1 }
 0x2cb   :  { %v1972_v2 = vadd.f32 %v13535_v24, %v1971_v35  ;;  %v11366_v4 = vpop.f32.mrb[106].mxu1  ;;  %11503 = vmatprep.mubr.bf16.mxu0 %v2286_v3  ;;  %v3400_v3 = vpack.c.bf16 %v3288_v56, %v3287_v55 }
 0x2cc   :  { %v1983_v8 = vadd.f32 %v13535_v24, %v11366_v4  ;;  %v1974_v9 = vpop.f32.mrb[107].mxu1  ;;  %11504 = vmatmul.mubr.bf16.gmra.mrb[204].mxu0 %v2287_v60  ;;  %v2208_v11 = vmax.f32 %v1980_v0, 0.0 }
 0x2cd   :  { %v1975_v10 = vadd.f32 %v13535_v24, %v1974_v9  ;;  %v2206_v13 = vmax.f32 %v1972_v2, 0.0 }
 0x2ce   :  { %v2209_v12 = vmax.f32 %v1983_v8, 0.0  ;;  %11618 = vmatmul.mubr.msk.bf16.gmra.mrb[212].mxu1 %vm3427_vm4, %v3394_v1  ;;  %v3401_v1 = vpack.c.bf16 %v3290_v59, %v3289_v58 }
 0x2cf   :  { %v2207_v14 = vmax.f32 %v1975_v10, 0.0  ;;  %11621 = vmatprep.mubr.msk.bf16.mxu1 %vm3427_vm4, %v3395_v5  ;;  %v12258_v5 = vld [vmem:[%s12765_s20 + $0x18] sm:$0xff]  }
 0x2d0   :  { %v2289_v18 = vpack.c.bf16 %v2209_v12, %v2208_v11  ;;  %11815 = vmatprep.subr.bf16.mxu1 %v12258_v5 }
 0x2d1   :  { %v11369_v33 = vpop.f32.mrb[108].mxu1  ;;  %v2288_v21 = vpack.c.bf16 %v2207_v14, %v2206_v13  ;;  %v3291_v13 = vld [vmem:[%s12695_s9 + $0x2d0] sm:$0xff]  ;;  %v3292_v14 = vld [vmem:[%s12695_s9 + $0x2d8] sm:$0xff]  ;;  %11816 = vmatpush3.bf16.msra.mxu1 %v12258_v5  ;;  %v3302_v5 = vld [vmem:[%s12695_s9 + $0x328] sm:$0xff] }
 0x2d2   :  { %v1996_v22 = vadd.f32 %v13535_v24, %v11369_v33  ;;  %v1987_v23 = vpop.f32.mrb[109].mxu1 }
 0x2d3   :  { %v1988_v37 = vadd.f32 %v13535_v24, %v1987_v23  ;;  %v11370_v26 = vpop.f32.mrb[110].mxu1  ;;  %11507 = vmatprep.mubr.bf16.mxu0 %v2288_v21 }
 0x2d4   :  { %v1999_v28 = vadd.f32 %v13535_v24, %v11370_v26  ;;  %v1990_v29 = vpop.f32.mrb[111].mxu1  ;;  %11508 = vmatmul.mubr.bf16.gmra.mrb[208].mxu0 %v2289_v18  ;;  %v2212_v16 = vmax.f32 %v1996_v22, 0.0  ;;  %v3294_v18 = vld [vmem:[%s12695_s9 + $0x2e8] sm:$0xff]  ;;  %v3402_v22 = vpack.c.bf16 %v3292_v14, %v3291_v13 }
 0x2d5   :  { %v1991_v30 = vadd.f32 %v13535_v24, %v1990_v29  ;;  %v2210_v32 = vmax.f32 %v1988_v37, 0.0  ;;  %v3403_v37 = vpack.c.bf16 %v3294_v18, %v3293_v17 }
 0x2d6   :  { %v2213_v31 = vmax.f32 %v1999_v28, 0.0  ;;  %11622 = vmatmul.mubr.msk.bf16.gmra.mrb[216].mxu1 %vm3427_vm4, %v3396_v25 }
 0x2d7   :  { %v2211_v34 = vmax.f32 %v1991_v30, 0.0  ;;  %11625 = vmatprep.mubr.msk.bf16.mxu1 %vm3427_vm4, %v3397_v27 }
 0x2d8   :  { %v2291_v40 = vpack.c.bf16 %v2213_v31, %v2212_v16  ;;  %v13605_v16 = vld [vmem:[%s12740_s19] ss:$0 sm:$0xff] }
 0x2d9   :  { %v11373_v43 = vpop.f32.mrb[112].mxu1  ;;  %v2290_v53 = vpack.c.bf16 %v2211_v34, %v2210_v32 }
 0x2da   :  { %v2012_v44 = vadd.f32 %v13535_v24, %v11373_v43  ;;  %v2003_v45 = vpop.f32.mrb[113].mxu1  ;;  %v3298_v43 = vld [vmem:[%s12695_s9 + $0x308] sm:$0xff] }
 0x2db   :  { %v2004_v47 = vadd.f32 %v13535_v24, %v2003_v45  ;;  %v11374_v48 = vpop.f32.mrb[114].mxu1  ;;  %11511 = vmatprep.mubr.bf16.mxu0 %v2290_v53 }
 0x2dc   :  { %v2015_v39 = vadd.f32 %v13535_v24, %v11374_v48  ;;  %v2006_v49 = vpop.f32.mrb[115].mxu1  ;;  %11512 = vmatmul.mubr.bf16.gmra.mrb[212].mxu0 %v2291_v40  ;;  %v2216_v50 = vmax.f32 %v2012_v44, 0.0 }
 0x2dd   :  { %v2007_v7 = vadd.f32 %v13535_v24, %v2006_v49  ;;  %v2214_v52 = vmax.f32 %v2004_v47, 0.0 }
 0x2de   :  { %v2217_v51 = vmax.f32 %v2015_v39, 0.0  ;;  %11626 = vmatmul.mubr.msk.bf16.gmra.mrb[220].mxu1 %vm3427_vm4, %v3398_v46  ;;  %v3404_v39 = vpack.c.bf16 %v3296_v38, %v3295_v36 }
 0x2df   :  { %v2215_v54 = vmax.f32 %v2007_v7, 0.0  ;;  %11629 = vmatprep.mubr.msk.bf16.mxu1 %vm3427_vm4, %v3399_v6 }
 0x2e0   :  { %v2293_v57 = vpack.c.bf16 %v2217_v51, %v2216_v50 }
 0x2e1   :  { %v11377_v60 = vpop.f32.mrb[116].mxu1  ;;  %v2292_v61 = vpack.c.bf16 %v2215_v54, %v2214_v52  ;;  %v3405_v52 = vpack.c.bf16 %v3298_v43, %v3297_v41 }
 0x2e2   :  { %v2028_v62 = vadd.f32 %v13535_v24, %v11377_v60  ;;  %v2019_v63 = vpop.f32.mrb[117].mxu1 }
 0x2e3   :  { %v2020_v0 = vadd.f32 %v13535_v24, %v2019_v63  ;;  %v11378_v35 = vpop.f32.mrb[118].mxu1  ;;  %11515 = vmatprep.mubr.bf16.mxu0 %v2292_v61  ;;  %v3299_v63 = vld [vmem:[%s12695_s9 + $0x310] sm:$0xff] }
 0x2e4   :  { %v2031_v2 = vadd.f32 %v13535_v24, %v11378_v35  ;;  %v2022_v4 = vpop.f32.mrb[119].mxu1  ;;  %11516 = vmatmul.mubr.bf16.gmra.mrb[216].mxu0 %v2293_v57  ;;  %v2220_v9 = vmax.f32 %v2028_v62, 0.0 }
 0x2e5   :  { %v2023_v8 = vadd.f32 %v13535_v24, %v2022_v4  ;;  %v2218_v11 = vmax.f32 %v2020_v0, 0.0  ;;  %v3301_v4 = vld [vmem:[%s12695_s9 + $0x320] sm:$0xff] }
 0x2e6   :  { %v2221_v10 = vmax.f32 %v2031_v2, 0.0  ;;  %11630 = vmatmul.mubr.msk.bf16.gmra.mrb[224].mxu1 %vm3427_vm4, %v3400_v3  ;;  %v3300_v3 = vld [vmem:[%s12695_s9 + $0x318] sm:$0xff] }
 0x2e7   :  { %v2219_v12 = vmax.f32 %v2023_v8, 0.0  ;;  %11633 = vmatprep.mubr.msk.bf16.mxu1 %vm3427_vm4, %v3401_v1 }
 0x2e8   :  { %v2295_v15 = vpack.c.bf16 %v2221_v10, %v2220_v9 }
 0x2e9   :  { %v11381_v19 = vpop.f32.mrb[120].mxu1  ;;  %v2294_v20 = vpack.c.bf16 %v2219_v12, %v2218_v11 }
 0x2ea   :  { %v2044_v33 = vadd.f32 %v13535_v24, %v11381_v19  ;;  %v2035_v21 = vpop.f32.mrb[121].mxu1 }
 0x2eb   :  { %v2036_v23 = vadd.f32 %v13535_v24, %v2035_v21  ;;  %v11382_v25 = vpop.f32.mrb[122].mxu1  ;;  %11519 = vmatprep.mubr.bf16.mxu0 %v2294_v20  ;;  %v3407_v21 = vpack.c.bf16 %v3302_v5, %v3301_v4 }
 0x2ec   :  { %v2047_v26 = vadd.f32 %v13535_v24, %v11382_v25  ;;  %v2038_v27 = vpop.f32.mrb[123].mxu1  ;;  %11520 = vmatmul.mubr.bf16.gmra.mrb[220].mxu0 %v2295_v15  ;;  %v2224_v29 = vmax.f32 %v2044_v33, 0.0  ;;  %v3406_v33 = vpack.c.bf16 %v3300_v3, %v3299_v63 }
 0x2ed   :  { %v2039_v28 = vadd.f32 %v13535_v24, %v2038_v27  ;;  %v2222_v31 = vmax.f32 %v2036_v23, 0.0 }
 0x2ee   :  { %v2225_v30 = vmax.f32 %v2047_v26, 0.0  ;;  %11634 = vmatmul.mubr.msk.bf16.gmra.mrb[228].mxu1 %vm3427_vm4, %v3402_v22 }
 0x2ef   :  { %v2223_v32 = vmax.f32 %v2039_v28, 0.0  ;;  %v11417_v34 = vpop.f32.mrb[116].mxu0  ;;  %11637 = vmatprep.mubr.msk.bf16.mxu1 %vm3427_vm4, %v3403_v37 }
 0x2f0   :  { %v2394_v40 = vpop.f32.mrb[117].mxu0  ;;  %v2297_v42 = vpack.c.bf16 %v2225_v30, %v2224_v29  ;;  %v2403_v49 = vadd.f32 %v11417_v34, %v13605_v16 }
 0x2f1   :  { %v2395_v53 = vadd.f32 %v13605_v16, %v2394_v40  ;;  %v11385_v44 = vpop.f32.mrb[124].mxu1  ;;  %v11418_v45 = vpop.f32.mrb[118].mxu0  ;;  %v2296_v46 = vpack.c.bf16 %v2223_v32, %v2222_v31  ;;  %v3303_v40 = vld [vmem:[%s12695_s9 + $0x330] sm:$0xff] }
 0x2f2   :  { %v2060_v47 = vadd.f32 %v13535_v24, %v11385_v44  ;;  %v2051_v48 = vpop.f32.mrb[125].mxu1  ;;  %v2397_v6 = vpop.f32.mrb[119].mxu0  ;;  %v2406_v57 = vadd.f32 %v11418_v45, %v13605_v16  ;;  %v2908_v0 = vsel %vm1376_vm3, %v2403_v49, -inf  ;;  %v3305_v45 = vld [vmem:[%s12695_s9 + $0x340] sm:$0xff] }
 0x2f3   :  { %v2052_v7 = vadd.f32 %v13535_v24, %v2051_v48  ;;  %v2398_v50 = vadd.f32 %v13605_v16, %v2397_v6  ;;  %v11386_v51 = vpop.f32.mrb[126].mxu1  ;;  %11523 = vmatprep.mubr.bf16.mxu0 %v2296_v46  ;;  %v2905_v56 = vsel %vm1376_vm3, %v2395_v53, -inf  ;;  %v3306_v46 = vld [vmem:[%s12695_s9 + $0x348] sm:$0xff] }
 0x2f4   :  { %v2063_v54 = vadd.f32 %v13535_v24, %v11386_v51  ;;  %v2054_v55 = vpop.f32.mrb[127].mxu1  ;;  %11524 = vmatmul.mubr.bf16.gmra.mrb[224].mxu0 %v2297_v42  ;;  %v2228_v60 = vmax.f32 %v2060_v47, 0.0  ;;  %v2910_v11 = vsel %vm1376_vm3, %v2406_v57, -inf  ;;  %v3304_v42 = vld [vmem:[%s12695_s9 + $0x338] sm:$0xff] }
 0x2f5   :  { %v2906_v58 = vsel %vm1376_vm3, %v2398_v50, -inf  ;;  %v2055_v59 = vadd.f32 %v13535_v24, %v2054_v55  ;;  %v2226_v35 = vmax.f32 %v2052_v7, 0.0  ;;  %v3408_v57 = vpack.c.bf16 %v3304_v42, %v3303_v40 }
 0x2f6   :  { %v2907_v61 = vmax.f32 %v2905_v56, %v2906_v58  ;;  %v2229_v62 = vmax.f32 %v2063_v54, 0.0  ;;  %11638 = vmatmul.mubr.msk.bf16.gmra.mrb[232].mxu1 %vm3427_vm4, %v3404_v39  ;;  %v3409_v58 = vpack.c.bf16 %v3306_v46, %v3305_v45 }
 0x2f7   :  { %v2227_v1 = vmax.f32 %v2055_v59, 0.0  ;;  %v11421_v2 = vpop.f32.mrb[120].mxu0  ;;  %11641 = vmatprep.mubr.msk.bf16.mxu1 %vm3427_vm4, %v3405_v52 }
 0x2f8   :  { %v2909_v8 = vmax.f32 %v2907_v61, %v2908_v0  ;;  %v2410_v9 = vpop.f32.mrb[121].mxu0  ;;  %v2299_v10 = vpack.c.bf16 %v2229_v62, %v2228_v60  ;;  %v2419_v22 = vadd.f32 %v11421_v2, %v13605_v16 }
 0x2f9   :  { %v2411_v12 = vadd.f32 %v13605_v16, %v2410_v9  ;;  %v11389_v13 = vpop.f32.mrb[128].mxu1  ;;  %v11422_v14 = vpop.f32.mrb[122].mxu0  ;;  %v2298_v15 = vpack.c.bf16 %v2227_v1, %v2226_v35  ;;  %v12259_v1 = vld [vmem:[%s12765_s20 + $0x20] sm:$0xff]  }
 0x2fa   :  { %v2911_v17 = vmax.f32 %v2909_v8, %v2910_v11  ;;  %v2076_v18 = vadd.f32 %v13535_v24, %v11389_v13  ;;  %v2067_v19 = vpop.f32.mrb[129].mxu1  ;;  %v2413_v20 = vpop.f32.mrb[123].mxu0  ;;  %v2422_v30 = vadd.f32 %v11422_v14, %v13605_v16  ;;  %v2916_v41 = vsel %vm1376_vm3, %v2419_v22, -inf  ;;  %v3307_v11 = vld [vmem:[%s12695_s9 + $0x350] sm:$0xff]  ;;  %11817 = vmatprep.subr.bf16.mxu1 %v12259_v1 }
 0x2fb   :  { %v2912_v23 = vsel %vm1376_vm3, %v2411_v12, -inf  ;;  %v2068_v25 = vadd.f32 %v13535_v24, %v2067_v19  ;;  %v2414_v37 = vadd.f32 %v13605_v16, %v2413_v20  ;;  %v11390_v26 = vpop.f32.mrb[130].mxu1  ;;  %11527 = vmatprep.mubr.bf16.mxu0 %v2298_v15  ;;  %v3308_v12 = vld [vmem:[%s12695_s9 + $0x358] sm:$0xff]  ;;  %v3310_v19 = vld [vmem:[%s12695_s9 + $0x368] sm:$0xff]  ;;  %11818 = vmatpush3.bf16.msra.mxu1 %v12259_v1 }
 0x2fc   :  { %v2913_v27 = vmax.f32 %v2911_v17, %v2912_v23  ;;  %v2079_v28 = vadd.f32 %v13535_v24, %v11390_v26  ;;  %v2070_v29 = vpop.f32.mrb[131].mxu1  ;;  %11528 = vmatmul.mubr.bf16.gmra.mrb[228].mxu0 %v2299_v10  ;;  %v2232_v34 = vmax.f32 %v2076_v18, 0.0  ;;  %v2918_v39 = vsel %vm1376_vm3, %v2422_v30, -inf  ;;  %v3309_v18 = vld [vmem:[%s12695_s9 + $0x360] sm:$0xff] }
 0x2fd   :  { %v2914_v31 = vsel %vm1376_vm3, %v2414_v37, -inf  ;;  %v2071_v32 = vadd.f32 %v13535_v24, %v2070_v29  ;;  %v2230_v43 = vmax.f32 %v2068_v25, 0.0 }
 0x2fe   :  { %v2915_v36 = vmax.f32 %v2913_v27, %v2914_v31  ;;  %v2233_v38 = vmax.f32 %v2079_v28, 0.0  ;;  %11642 = vmatmul.mubr.msk.bf16.gmra.mrb[236].mxu1 %vm3427_vm4, %v3406_v33  ;;  %v3410_v31 = vpack.c.bf16 %v3308_v12, %v3307_v11 }
 0x2ff   :  { %v2231_v53 = vmax.f32 %v2071_v32, 0.0  ;;  %v11425_v44 = vpop.f32.mrb[124].mxu0  ;;  %11645 = vmatprep.mubr.msk.bf16.mxu1 %vm3427_vm4, %v3407_v21  ;;  %v3411_v32 = vpack.c.bf16 %v3310_v19, %v3309_v18 }
 0x300   :  { %v2917_v47 = vmax.f32 %v2915_v36, %v2916_v41  ;;  %v2426_v48 = vpop.f32.mrb[125].mxu0  ;;  %v2301_v6 = vpack.c.bf16 %v2233_v38, %v2232_v34  ;;  %v2435_v59 = vadd.f32 %v11425_v44, %v13605_v16 }
 0x301   :  { %v2427_v49 = vadd.f32 %v13605_v16, %v2426_v48  ;;  %v11393_v7 = vpop.f32.mrb[132].mxu1  ;;  %v11426_v50 = vpop.f32.mrb[126].mxu0  ;;  %v2300_v51 = vpack.c.bf16 %v2231_v53, %v2230_v43 }
 0x302   :  { %v2919_v52 = vmax.f32 %v2917_v47, %v2918_v39  ;;  %v2092_v54 = vadd.f32 %v13535_v24, %v11393_v7  ;;  %v2083_v55 = vpop.f32.mrb[133].mxu1  ;;  %v2429_v56 = vpop.f32.mrb[127].mxu0  ;;  %v2438_v2 = vadd.f32 %v11426_v50, %v13605_v16  ;;  %v2924_v13 = vsel %vm1376_vm3, %v2435_v59, -inf  ;;  %v13679_v39 = vld [vmem:[%s12750_s30] ss:$0 sm:$0xff] }
 0x303   :  { %v2920_v60 = vsel %vm1376_vm3, %v2427_v49, -inf  ;;  %v2084_v61 = vadd.f32 %v13535_v24, %v2083_v55  ;;  %v2430_v62 = vadd.f32 %v13605_v16, %v2429_v56  ;;  %v11394_v63 = vpop.f32.mrb[134].mxu1  ;;  %11531 = vmatprep.mubr.bf16.mxu0 %v2300_v51 }
 0x304   :  { %v2921_v3 = vmax.f32 %v2919_v52, %v2920_v60  ;;  %v2095_v0 = vadd.f32 %v13535_v24, %v11394_v63  ;;  %v2086_v35 = vpop.f32.mrb[135].mxu1  ;;  %11532 = vmatmul.mubr.bf16.gmra.mrb[232].mxu0 %v2301_v6  ;;  %v2236_v8 = vmax.f32 %v2092_v54, 0.0  ;;  %v2926_v22 = vsel %vm1376_vm3, %v2438_v2, -inf  ;;  %v3311_v52 = vld [vmem:[%s12695_s9 + $0x370] sm:$0xff]  ;;  %v3312_v54 = vld [vmem:[%s12695_s9 + $0x378] sm:$0xff] }
 0x305   :  { %v2922_v4 = vsel %vm1376_vm3, %v2430_v62, -inf  ;;  %v2087_v5 = vadd.f32 %v13535_v24, %v2086_v35  ;;  %v2234_v14 = vmax.f32 %v2084_v61, 0.0  ;;  %v3412_v2 = vpack.c.bf16 %v3312_v54, %v3311_v52 }
 0x306   :  { %v2923_v9 = vmax.f32 %v2921_v3, %v2922_v4  ;;  %v2237_v10 = vmax.f32 %v2095_v0, 0.0  ;;  %11646 = vmatmul.mubr.msk.bf16.gmra.mrb[240].mxu1 %vm3427_vm4, %v3408_v57  ;;  %v3313_v57 = vld [vmem:[%s12695_s9 + $0x380] sm:$0xff] }
 0x307   :  { %v2235_v15 = vmax.f32 %v2087_v5, 0.0  ;;  %v11429_v17 = vpop.f32.mrb[128].mxu0  ;;  %11649 = vmatprep.mubr.msk.bf16.mxu1 %vm3427_vm4, %v3409_v58  ;;  %v3314_v58 = vld [vmem:[%s12695_s9 + $0x388] sm:$0xff] }
 0x308   :  { %v2925_v20 = vmax.f32 %v2923_v9, %v2924_v13  ;;  %v2442_v33 = vpop.f32.mrb[129].mxu0  ;;  %v2303_v21 = vpack.c.bf16 %v2237_v10, %v2236_v8  ;;  %v2451_v34 = vadd.f32 %v11429_v17, %v13605_v16  ;;  %v3413_v10 = vpack.c.bf16 %v3314_v58, %v3313_v57  ;;  %v3319_v57 = vld [vmem:[%s12695_s9 + $0x3b0] sm:$0xff]  ;;  %v3320_v58 = vld [vmem:[%s12695_s9 + $0x3b8] sm:$0xff] }
 0x309   :  { %v2443_v23 = vadd.f32 %v13605_v16, %v2442_v33  ;;  %v11397_v25 = vpop.f32.mrb[136].mxu1  ;;  %v11430_v37 = vpop.f32.mrb[130].mxu0  ;;  %v2302_v26 = vpack.c.bf16 %v2235_v15, %v2234_v14  ;;  %v3315_v33 = vld [vmem:[%s12695_s9 + $0x390] sm:$0xff] }
 0x30a   :  { %v2927_v27 = vmax.f32 %v2925_v20, %v2926_v22  ;;  %v2108_v28 = vadd.f32 %v13535_v24, %v11397_v25  ;;  %v2099_v29 = vpop.f32.mrb[137].mxu1  ;;  %v2445_v30 = vpop.f32.mrb[131].mxu0  ;;  %v2454_v44 = vadd.f32 %v11430_v37, %v13605_v16  ;;  %v2932_v49 = vsel %vm1376_vm3, %v2451_v34, -inf }
 0x30b   :  { %v2928_v36 = vsel %vm1376_vm3, %v2443_v23, -inf  ;;  %v2100_v38 = vadd.f32 %v13535_v24, %v2099_v29  ;;  %v2446_v40 = vadd.f32 %v13605_v16, %v2445_v30  ;;  %v11398_v42 = vpop.f32.mrb[138].mxu1  ;;  %11535 = vmatprep.mubr.bf16.mxu0 %v2302_v26  ;;  %v3317_v26 = vld [vmem:[%s12695_s9 + $0x3a0] sm:$0xff] }
 0x30c   :  { %v2929_v41 = vmax.f32 %v2927_v27, %v2928_v36  ;;  %v2111_v43 = vadd.f32 %v13535_v24, %v11398_v42  ;;  %v2102_v53 = vpop.f32.mrb[139].mxu1  ;;  %11536 = vmatmul.mubr.bf16.gmra.mrb[236].mxu0 %v2303_v21  ;;  %v2240_v47 = vmax.f32 %v2108_v28, 0.0  ;;  %v2934_v59 = vsel %vm1376_vm3, %v2454_v44, -inf  ;;  %v3316_v21 = vld [vmem:[%s12695_s9 + $0x398] sm:$0xff]  ;;  %v3318_v27 = vld [vmem:[%s12695_s9 + $0x3a8] sm:$0xff] }
 0x30d   :  { %v2930_v45 = vsel %vm1376_vm3, %v2446_v40, -inf  ;;  %v2103_v46 = vadd.f32 %v13535_v24, %v2102_v53  ;;  %v2238_v7 = vmax.f32 %v2100_v38, 0.0  ;;  %v3414_v53 = vpack.c.bf16 %v3316_v21, %v3315_v33 }
 0x30e   :  { %v2931_v48 = vmax.f32 %v2929_v41, %v2930_v45  ;;  %v2241_v6 = vmax.f32 %v2111_v43, 0.0  ;;  %11650 = vmatmul.mubr.msk.bf16.gmra.mrb[244].mxu1 %vm3427_vm4, %v3410_v31  ;;  %v3415_v44 = vpack.c.bf16 %v3318_v27, %v3317_v26 }
 0x30f   :  { %v2239_v50 = vmax.f32 %v2103_v46, 0.0  ;;  %v11433_v51 = vpop.f32.mrb[132].mxu0  ;;  %11653 = vmatprep.mubr.msk.bf16.mxu1 %vm3427_vm4, %v3411_v32 }
 0x310   :  { %v2933_v55 = vmax.f32 %v2931_v48, %v2932_v49  ;;  %v2458_v24 = vpop.f32.mrb[133].mxu0  ;;  %v2305_v56 = vpack.c.bf16 %v2241_v6, %v2240_v47  ;;  %v2467_v4 = vadd.f32 %v11433_v51, %v13605_v16 }
 0x311   :  { %v2459_v60 = vadd.f32 %v13605_v16, %v2458_v24  ;;  %v11434_v61 = vpop.f32.mrb[134].mxu0  ;;  %v11547_v62 = vpop.f32.mrb[140].mxu1  ;;  %v2304_v63 = vpack.c.bf16 %v2239_v50, %v2238_v7 }
 0x312   :  { %v13689_v3 = vmax.f32 %v2933_v55, %v2934_v59  ;;  %v3666_v0 = vadd.f32 %v11547_v62, %v13679_v39  ;;  %v2461_v35 = vpop.f32.mrb[135].mxu0  ;;  %v3657_v1 = vpop.f32.mrb[141].mxu1  ;;  %v2470_v14 = vadd.f32 %v11434_v61, %v13605_v16  ;;  %v2945_v22 = vsel %vm1376_vm3, %v2467_v4, -inf }
 0x313   :  { %v2462_v5 = vadd.f32 %v13605_v16, %v2461_v35  ;;  %v3658_v8 = vadd.f32 %v13679_v39, %v3657_v1  ;;  %11539 = vmatprep.mubr.bf16.mxu0 %v2304_v63  ;;  %v11548_v9 = vpop.f32.mrb[142].mxu1  ;;  %v2942_v13 = vsel %vm1376_vm3, %v2459_v60, -inf  ;;  %v3321_v63 = vld [vmem:[%s12695_s9 + $0x3c0] sm:$0xff] }
 0x314   :  { %v3669_v11 = vadd.f32 %v11548_v9, %v13679_v39  ;;  %11540 = vmatmul.mubr.bf16.gmra.mrb[240].mxu0 %v2305_v56  ;;  %v3660_v12 = vpop.f32.mrb[143].mxu1  ;;  %v4170_v18 = vmax.f32 %v3666_v0, 0.0  ;;  %v2947_v31 = vsel %vm1376_vm3, %v2470_v14, -inf  ;;  %v3322_v0 = vld [vmem:[%s12695_s9 + $0x3c8] sm:$0xff] }
 0x315   :  { %v2943_v15 = vsel %vm1376_vm3, %v2462_v5, -inf  ;;  %v3661_v17 = vadd.f32 %v13679_v39, %v3660_v12  ;;  %v4168_v23 = vmax.f32 %v3658_v8, 0.0 }
 0x316   :  { %v2944_v19 = vmax.f32 %v2942_v13, %v2943_v15  ;;  %v4171_v20 = vmax.f32 %v3669_v11, 0.0  ;;  %11654 = vmatmul.mubr.msk.bf16.gmra.mrb[248].mxu1 %vm3427_vm4, %v3412_v2  ;;  %v3416_v15 = vpack.c.bf16 %v3320_v58, %v3319_v57 }
 0x317   :  { %v4169_v25 = vmax.f32 %v3661_v17, 0.0  ;;  %v11437_v37 = vpop.f32.mrb[136].mxu0  ;;  %11657 = vmatprep.mubr.msk.bf16.mxu1 %vm3427_vm4, %v3413_v10  ;;  %v3417_v17 = vpack.c.bf16 %v3322_v0, %v3321_v63 }
 0x318   :  { %v2946_v28 = vmax.f32 %v2944_v19, %v2945_v22  ;;  %v4297_v29 = vpack.c.bf16 %v4171_v20, %v4170_v18  ;;  %v2474_v30 = vpop.f32.mrb[137].mxu0  ;;  %v2483_v40 = vadd.f32 %v11437_v37, %v13605_v16  ;;  %v12260_v37 = vld [vmem:[%s12765_s20 + $0x28] sm:$0xff]  }
 0x319   :  { %v4296_v32 = vpack.c.bf16 %v4169_v25, %v4168_v23  ;;  %v2475_v34 = vadd.f32 %v13605_v16, %v2474_v30  ;;  %v11438_v36 = vpop.f32.mrb[138].mxu0  ;;  %v11551_v38 = vpop.f32.mrb[144].mxu1  ;;  %11819 = vmatprep.subr.bf16.mxu1 %v12260_v37 }
 0x31a   :  { %v2948_v42 = vmax.f32 %v2946_v28, %v2947_v31  ;;  %v2477_v41 = vpop.f32.mrb[139].mxu0  ;;  %v3673_v43 = vpop.f32.mrb[145].mxu1  ;;  %v3682_v46 = vadd.f32 %v11551_v38, %v13679_v39  ;;  %v2486_v51 = vadd.f32 %v11438_v36, %v13605_v16  ;;  %v2953_v59 = vsel %vm1376_vm3, %v2483_v40, -inf  ;;  %11820 = vmatpush3.bf16.msra.mxu1 %v12260_v37 }
 0x31b   :  { %v2949_v45 = vsel %vm1376_vm3, %v2475_v34, -inf  ;;  %v2478_v47 = vadd.f32 %v13605_v16, %v2477_v41  ;;  %v3674_v48 = vadd.f32 %v13679_v39, %v3673_v43  ;;  %v11552_v6 = vpop.f32.mrb[146].mxu1  ;;  %11681 = vmatprep.mubr.msk.bf16.mxu0 %vm1376_vm3, %v4296_v32  ;;  %v3323_v32 = vld [vmem:[%s12695_s9 + $0x3d0] sm:$0xff]  ;;  %v3324_v34 = vld [vmem:[%s12695_s9 + $0x3d8] sm:$0xff]  ;;  %v3325_v41 = vld [vmem:[%s12695_s9 + $0x3e0] sm:$0xff] }
 0x31c   :  { %v2950_v49 = vmax.f32 %v2948_v42, %v2949_v45  ;;  %v3685_v7 = vadd.f32 %v11552_v6, %v13679_v39  ;;  %v3676_v50 = vpop.f32.mrb[147].mxu1  ;;  %11682 = vmatmul.mubr.msk.bf16.vlgmr.msra.gmra.mrb[244].mxu0 %vm1376_vm3, %v4297_v29  ;;  %v4174_v55 = vmax.f32 %v3682_v46, 0.0  ;;  %v2955_v4 = vsel %vm1376_vm3, %v2486_v51, -inf  ;;  %v3326_v43 = vld [vmem:[%s12695_s9 + $0x3e8] sm:$0xff] }
 0x31d   :  { %v2951_v52 = vsel %vm1376_vm3, %v2478_v47, -inf  ;;  %v3677_v54 = vadd.f32 %v13679_v39, %v3676_v50  ;;  %v4172_v60 = vmax.f32 %v3674_v48, 0.0 }
 0x31e   :  { %v2952_v24 = vmax.f32 %v2950_v49, %v2951_v52  ;;  %v4175_v56 = vmax.f32 %v3685_v7, 0.0  ;;  %11658 = vmatmul.mubr.msk.bf16.gmra.mrb[252].mxu1 %vm3427_vm4, %v3414_v53 }
 0x31f   :  { %v4173_v61 = vmax.f32 %v3677_v54, 0.0  ;;  %v11441_v62 = vpop.f32.mrb[140].mxu0  ;;  %11661 = vmatprep.mubr.msk.bf16.mxu1 %vm3427_vm4, %v3415_v44  ;;  %v3418_v54 = vpack.c.bf16 %v3324_v34, %v3323_v32 }
 0x320   :  { %v2954_v35 = vmax.f32 %v2952_v24, %v2953_v59  ;;  %v4299_v1 = vpack.c.bf16 %v4175_v56, %v4174_v55  ;;  %v2490_v2 = vpop.f32.mrb[141].mxu0  ;;  %v2499_v18 = vadd.f32 %v11441_v62, %v13605_v16  ;;  %v3419_v55 = vpack.c.bf16 %v3326_v43, %v3325_v41 }
 0x321   :  { %v4298_v5 = vpack.c.bf16 %v4173_v61, %v4172_v60  ;;  %v2491_v8 = vadd.f32 %v13605_v16, %v2490_v2  ;;  %v11442_v9 = vpop.f32.mrb[142].mxu0  ;;  %v11555_v10 = vpop.f32.mrb[148].mxu1 }
 0x322   :  { %v2956_v11 = vmax.f32 %v2954_v35, %v2955_v4  ;;  %v3698_v12 = vadd.f32 %v11555_v10, %v13679_v39  ;;  %v2493_v13 = vpop.f32.mrb[143].mxu0  ;;  %v3689_v14 = vpop.f32.mrb[149].mxu1  ;;  %v2502_v26 = vadd.f32 %v11442_v9, %v13605_v16  ;;  %v2961_v36 = vsel %vm1376_vm3, %v2499_v18, -inf }
 0x323   :  { %v2957_v19 = vsel %vm1376_vm3, %v2491_v8, -inf  ;;  %v2494_v20 = vadd.f32 %v13605_v16, %v2493_v13  ;;  %v3690_v33 = vadd.f32 %v13679_v39, %v3689_v14  ;;  %v11556_v21 = vpop.f32.mrb[150].mxu1  ;;  %11685 = vmatprep.mubr.msk.bf16.mxu0 %vm1376_vm3, %v4298_v5 }
 0x324   :  { %v2958_v22 = vmax.f32 %v2956_v11, %v2957_v19  ;;  %v3701_v23 = vadd.f32 %v11556_v21, %v13679_v39  ;;  %v3692_v25 = vpop.f32.mrb[151].mxu1  ;;  %11686 = vmatmul.mubr.msk.bf16.gmra.mrb[248].mxu0 %vm1376_vm3, %v4299_v1  ;;  %v4178_v29 = vmax.f32 %v3698_v12, 0.0  ;;  %v2963_v46 = vsel %vm1376_vm3, %v2502_v26, -inf  ;;  %v3327_v11 = vld [vmem:[%s12695_s9 + $0x3f0] sm:$0xff]  ;;  %v3328_v12 = vld [vmem:[%s12695_s9 + $0x3f8] sm:$0xff]  ;;  %s15233_s9 = sld [smem:[#allocation7_spill]] }
 0x325   :  { %v2959_v27 = vsel %vm1376_vm3, %v2494_v20, -inf  ;;  %v3693_v28 = vadd.f32 %v13679_v39, %v3692_v25  ;;  %v4176_v38 = vmax.f32 %v3690_v33, 0.0  ;;  %v3420_v37 = vpack.c.bf16 %v3328_v12, %v3327_v11 }
 0x326   :  { %v2960_v30 = vmax.f32 %v2958_v22, %v2959_v27  ;;  %v4179_v31 = vmax.f32 %v3701_v23, 0.0  ;;  %11662 = vmatmul.mubr.msk.bf16.gmra.mrb[0].mxu1 %vm3427_vm4, %v3416_v15 }
 0x327   :  { %v4177_v40 = vmax.f32 %v3693_v28, 0.0  ;;  %v11445_v42 = vpop.f32.mrb[144].mxu0  ;;  %11665 = vmatprep.mubr.msk.bf16.mxu1 %vm3427_vm4, %v3417_v17 }
 0x328   :  { %v2962_v53 = vmax.f32 %v2960_v30, %v2961_v36  ;;  %v4301_v44 = vpack.c.bf16 %v4179_v31, %v4178_v29  ;;  %v2506_v45 = vpop.f32.mrb[145].mxu0  ;;  %v2515_v24 = vadd.f32 %v11445_v42, %v13605_v16 }
 0x329   :  { %v4300_v47 = vpack.c.bf16 %v4177_v40, %v4176_v38  ;;  %v2507_v48 = vadd.f32 %v13605_v16, %v2506_v45  ;;  %v11446_v6 = vpop.f32.mrb[146].mxu0  ;;  %v11559_v49 = vpop.f32.mrb[152].mxu1 }
 0x32a   :  { %v2964_v7 = vmax.f32 %v2962_v53, %v2963_v46  ;;  %v3714_v50 = vadd.f32 %v11559_v49, %v13679_v39  ;;  %v2509_v51 = vpop.f32.mrb[147].mxu0  ;;  %v3705_v52 = vpop.f32.mrb[153].mxu1  ;;  %v2518_v63 = vadd.f32 %v11446_v6, %v13605_v16  ;;  %v2969_v5 = vsel %vm1376_vm3, %v2515_v24, -inf }
 0x32b   :  { %v2965_v56 = vsel %vm1376_vm3, %v2507_v48, -inf  ;;  %v2510_v57 = vadd.f32 %v13605_v16, %v2509_v51  ;;  %v3706_v58 = vadd.f32 %v13679_v39, %v3705_v52  ;;  %v11560_v59 = vpop.f32.mrb[154].mxu1  ;;  %11689 = vmatprep.mubr.msk.bf16.mxu0 %vm1376_vm3, %v4300_v47 }
 0x32c   :  { %v2966_v60 = vmax.f32 %v2964_v7, %v2965_v56  ;;  %v3717_v61 = vadd.f32 %v11560_v59, %v13679_v39  ;;  %v3708_v62 = vpop.f32.mrb[155].mxu1  ;;  %11690 = vmatmul.mubr.msk.bf16.gmra.mrb[252].mxu0 %vm1376_vm3, %v4301_v44  ;;  %v4182_v1 = vmax.f32 %v3714_v50, 0.0  ;;  %v2971_v17 = vsel %vm1376_vm3, %v2518_v63, -inf }
 0x32d   :  { %v2967_v0 = vsel %vm1376_vm3, %v2510_v57, -inf  ;;  %v3709_v35 = vadd.f32 %v13679_v39, %v3708_v62  ;;  %v4180_v8 = vmax.f32 %v3706_v58, 0.0 }
 0x32e   :  { %v2968_v2 = vmax.f32 %v2966_v60, %v2967_v0  ;;  %v4183_v4 = vmax.f32 %v3717_v61, 0.0  ;;  %11666 = vmatmul.mubr.msk.bf16.gmra.mrb[4].mxu1 %vm3427_vm4, %v3418_v54 }
 0x32f   :  { %v4181_v9 = vmax.f32 %v3709_v35, 0.0  ;;  %v11449_v10 = vpop.f32.mrb[148].mxu0  ;;  %11669 = vmatprep.mubr.msk.bf16.mxu1 %vm3427_vm4, %v3419_v55 }
 0x330   :  { %v2970_v13 = vmax.f32 %v2968_v2, %v2969_v5  ;;  %v4303_v14 = vpack.c.bf16 %v4183_v4, %v4182_v1  ;;  %v2522_v15 = vpop.f32.mrb[149].mxu0  ;;  %v2531_v26 = vadd.f32 %v11449_v10, %v13605_v16 }
 0x331   :  { %v4302_v18 = vpack.c.bf16 %v4181_v9, %v4180_v8  ;;  %v2523_v19 = vadd.f32 %v13605_v16, %v2522_v15  ;;  %v11450_v20 = vpop.f32.mrb[150].mxu0  ;;  %v11563_v33 = vpop.f32.mrb[156].mxu1 }
 0x332   :  { %v13768_v21 = vmax.f32 %v2970_v13, %v2971_v17  ;;  %v3730_v22 = vadd.f32 %v11563_v33, %v13679_v39  ;;  %v2525_v23 = vpop.f32.mrb[151].mxu0  ;;  %v3721_v25 = vpop.f32.mrb[157].mxu1  ;;  %v2534_v34 = vadd.f32 %v11450_v20, %v13605_v16  ;;  %v2982_v43 = vsel %vm1376_vm3, %v2531_v26, -inf }
 0x333   :  { %v2526_v27 = vadd.f32 %v13605_v16, %v2525_v23  ;;  %v3722_v28 = vadd.f32 %v13679_v39, %v3721_v25  ;;  %v11564_v29 = vpop.f32.mrb[158].mxu1  ;;  %11693 = vmatprep.mubr.msk.bf16.mxu0 %vm1376_vm3, %v4302_v18  ;;  %v2979_v32 = vsel %vm1376_vm3, %v2523_v19, -inf }
 0x334   :  { %v3733_v30 = vadd.f32 %v11564_v29, %v13679_v39  ;;  %v3724_v31 = vpop.f32.mrb[159].mxu1  ;;  %11694 = vmatmul.mubr.msk.bf16.gmra.mrb[0].mxu0 %vm1376_vm3, %v4303_v14  ;;  %v4186_v40 = vmax.f32 %v3730_v22, 0.0  ;;  %v2984_v6 = vsel %vm1376_vm3, %v2534_v34, -inf  ;;  %v12261_v34 = vld [vmem:[%s12765_s20 + $0x30] sm:$0xff]  }
 0x335   :  { %v2980_v36 = vsel %vm1376_vm3, %v2526_v27, -inf  ;;  %v3725_v38 = vadd.f32 %v13679_v39, %v3724_v31  ;;  %v4184_v53 = vmax.f32 %v3722_v28, 0.0  ;;  %11821 = vmatprep.subr.bf16.mxu1 %v12261_v34 }
 0x336   :  { %v2981_v42 = vmax.f32 %v2979_v32, %v2980_v36  ;;  %v4187_v41 = vmax.f32 %v3733_v30, 0.0  ;;  %11670 = vmatmul.mubr.msk.bf16.gmra.mrb[8].mxu1 %vm3427_vm4, %v3420_v37 }
 0x337   :  { %v4185_v44 = vmax.f32 %v3725_v38, 0.0  ;;  %v11453_v45 = vpop.f32.mrb[152].mxu0  ;;  %11822 = vmatpush3.bf16.msra.mxu1 %v12261_v34 }
 0x338   :  { %v2983_v46 = vmax.f32 %v2981_v42, %v2982_v43  ;;  %v4305_v47 = vpack.c.bf16 %v4187_v41, %v4186_v40  ;;  %v2538_v48 = vpop.f32.mrb[153].mxu0  ;;  %v2547_v52 = vadd.f32 %v11453_v45, %v13605_v16 }
 0x339   :  { %v4304_v49 = vpack.c.bf16 %v4185_v44, %v4184_v53  ;;  %v2539_v7 = vadd.f32 %v13605_v16, %v2538_v48  ;;  %v11454_v50 = vpop.f32.mrb[154].mxu0  ;;  %v11567_v51 = vpop.f32.mrb[160].mxu1 }
 0x33a   :  { %v2985_v54 = vmax.f32 %v2983_v46, %v2984_v6  ;;  %v2541_v55 = vpop.f32.mrb[155].mxu0  ;;  %v3737_v24 = vpop.f32.mrb[161].mxu1  ;;  %v3746_v57 = vadd.f32 %v11567_v51, %v13679_v39  ;;  %v2550_v0 = vadd.f32 %v11454_v50, %v13605_v16  ;;  %v2990_v8 = vsel %vm1376_vm3, %v2547_v52, -inf }
 0x33b   :  { %v2986_v56 = vsel %vm1376_vm3, %v2539_v7, -inf  ;;  %v2542_v58 = vadd.f32 %v13605_v16, %v2541_v55  ;;  %v3738_v59 = vadd.f32 %v13679_v39, %v3737_v24  ;;  %v11568_v60 = vpop.f32.mrb[162].mxu1  ;;  %11697 = vmatprep.mubr.msk.bf16.mxu0 %vm1376_vm3, %v4304_v49 }
 0x33c   :  { %v2987_v61 = vmax.f32 %v2985_v54, %v2986_v56  ;;  %v3749_v62 = vadd.f32 %v11568_v60, %v13679_v39  ;;  %v3740_v63 = vpop.f32.mrb[163].mxu1  ;;  %11698 = vmatmul.mubr.msk.bf16.gmra.mrb[4].mxu0 %vm1376_vm3, %v4305_v47  ;;  %v4190_v2 = vmax.f32 %v3746_v57, 0.0  ;;  %v2992_v15 = vsel %vm1376_vm3, %v2550_v0, -inf }
 0x33d   :  { %v2988_v35 = vsel %vm1376_vm3, %v2542_v58, -inf  ;;  %v3741_v1 = vadd.f32 %v13679_v39, %v3740_v63  ;;  %v4188_v9 = vmax.f32 %v3738_v59, 0.0 }
 0x33e   :  { %v2989_v4 = vmax.f32 %v2987_v61, %v2988_v35  ;;  %v4191_v5 = vmax.f32 %v3749_v62, 0.0 }
 0x33f   :  { %v4189_v10 = vmax.f32 %v3741_v1, 0.0  ;;  %v11457_v11 = vpop.f32.mrb[156].mxu0 }
 0x340   :  { %v2991_v12 = vmax.f32 %v2989_v4, %v2990_v8  ;;  %v4307_v13 = vpack.c.bf16 %v4191_v5, %v4190_v2  ;;  %v2554_v14 = vpop.f32.mrb[157].mxu0  ;;  %v2563_v37 = vadd.f32 %v11457_v11, %v13605_v16 }
 0x341   :  { %v4306_v17 = vpack.c.bf16 %v4189_v10, %v4188_v9  ;;  %v2555_v18 = vadd.f32 %v13605_v16, %v2554_v14  ;;  %v11458_v19 = vpop.f32.mrb[158].mxu0  ;;  %v11571_v20 = vpop.f32.mrb[164].mxu1 }
 0x342   :  { %v2993_v33 = vmax.f32 %v2991_v12, %v2992_v15  ;;  %v3762_v22 = vadd.f32 %v11571_v20, %v13679_v39  ;;  %v2557_v23 = vpop.f32.mrb[159].mxu0  ;;  %v3753_v25 = vpop.f32.mrb[165].mxu1  ;;  %v2566_v36 = vadd.f32 %v11458_v19, %v13605_v16  ;;  %v2998_v53 = vsel %vm1376_vm3, %v2563_v37, -inf }
 0x343   :  { %v2994_v26 = vsel %vm1376_vm3, %v2555_v18, -inf  ;;  %v2558_v27 = vadd.f32 %v13605_v16, %v2557_v23  ;;  %v3754_v28 = vadd.f32 %v13679_v39, %v3753_v25  ;;  %v11572_v29 = vpop.f32.mrb[166].mxu1  ;;  %11701 = vmatprep.mubr.msk.bf16.mxu0 %vm1376_vm3, %v4306_v17 }
 0x344   :  { %v2995_v30 = vmax.f32 %v2993_v33, %v2994_v26  ;;  %v3765_v31 = vadd.f32 %v11572_v29, %v13679_v39  ;;  %v3756_v32 = vpop.f32.mrb[167].mxu1  ;;  %11702 = vmatmul.mubr.msk.bf16.gmra.mrb[8].mxu0 %vm1376_vm3, %v4307_v13  ;;  %v4194_v42 = vmax.f32 %v3762_v22, 0.0  ;;  %v3000_v49 = vsel %vm1376_vm3, %v2566_v36, -inf }
 0x345   :  { %v2996_v38 = vsel %vm1376_vm3, %v2558_v27, -inf  ;;  %v3757_v40 = vadd.f32 %v13679_v39, %v3756_v32  ;;  %v4192_v44 = vmax.f32 %v3754_v28, 0.0 }
 0x346   :  { %v2997_v41 = vmax.f32 %v2995_v30, %v2996_v38  ;;  %v4195_v43 = vmax.f32 %v3765_v31, 0.0 }
 0x347   :  { %v4193_v45 = vmax.f32 %v3757_v40, 0.0  ;;  %v11461_v46 = vpop.f32.mrb[160].mxu0 }
 0x348   :  { %v2999_v47 = vmax.f32 %v2997_v41, %v2998_v53  ;;  %v4309_v48 = vpack.c.bf16 %v4195_v43, %v4194_v42  ;;  %v2570_v6 = vpop.f32.mrb[161].mxu0  ;;  %v2579_v57 = vadd.f32 %v11461_v46, %v13605_v16 }
 0x349   :  { %v4308_v7 = vpack.c.bf16 %v4193_v45, %v4192_v44  ;;  %v2571_v50 = vadd.f32 %v13605_v16, %v2570_v6  ;;  %v11462_v51 = vpop.f32.mrb[162].mxu0  ;;  %v11575_v52 = vpop.f32.mrb[168].mxu1 }
 0x34a   :  { %v3001_v54 = vmax.f32 %v2999_v47, %v3000_v49  ;;  %v3778_v55 = vadd.f32 %v11575_v52, %v13679_v39  ;;  %v2573_v24 = vpop.f32.mrb[163].mxu0  ;;  %v3769_v56 = vpop.f32.mrb[169].mxu1  ;;  %v2582_v35 = vadd.f32 %v11462_v51, %v13605_v16  ;;  %v3006_v9 = vsel %vm1376_vm3, %v2579_v57, -inf }
 0x34b   :  { %v3002_v58 = vsel %vm1376_vm3, %v2571_v50, -inf  ;;  %v2574_v59 = vadd.f32 %v13605_v16, %v2573_v24  ;;  %v3770_v60 = vadd.f32 %v13679_v39, %v3769_v56  ;;  %v11576_v61 = vpop.f32.mrb[170].mxu1  ;;  %11705 = vmatprep.mubr.msk.bf16.mxu0 %vm1376_vm3, %v4308_v7 }
 0x34c   :  { %v3003_v62 = vmax.f32 %v3001_v54, %v3002_v58  ;;  %v3781_v63 = vadd.f32 %v11576_v61, %v13679_v39  ;;  %v3772_v0 = vpop.f32.mrb[171].mxu1  ;;  %11706 = vmatmul.mubr.msk.bf16.gmra.mrb[12].mxu0 %vm1376_vm3, %v4309_v48  ;;  %v4198_v4 = vmax.f32 %v3778_v55, 0.0  ;;  %v3008_v17 = vsel %vm1376_vm3, %v2582_v35, -inf }
 0x34d   :  { %v3004_v1 = vsel %vm1376_vm3, %v2574_v59, -inf  ;;  %v3773_v2 = vadd.f32 %v13679_v39, %v3772_v0  ;;  %v4196_v10 = vmax.f32 %v3770_v60, 0.0  ;;  %v13853_v0 = vld [vmem:[%s12740_s19] ss:$0 sm:$0xff] }
 0x34e   :  { %v3005_v5 = vmax.f32 %v3003_v62, %v3004_v1  ;;  %v4199_v8 = vmax.f32 %v3781_v63, 0.0 }
 0x34f   :  { %v4197_v11 = vmax.f32 %v3773_v2, 0.0  ;;  %v11465_v12 = vpop.f32.mrb[164].mxu0 }
 0x350   :  { %v3007_v13 = vmax.f32 %v3005_v5, %v3006_v9  ;;  %v4311_v14 = vpack.c.bf16 %v4199_v8, %v4198_v4  ;;  %v2586_v15 = vpop.f32.mrb[165].mxu0  ;;  %v2595_v26 = vadd.f32 %v11465_v12, %v13605_v16 }
 0x351   :  { %v4310_v18 = vpack.c.bf16 %v4197_v11, %v4196_v10  ;;  %v2587_v19 = vadd.f32 %v13605_v16, %v2586_v15  ;;  %v11466_v20 = vpop.f32.mrb[166].mxu0  ;;  %v11579_v33 = vpop.f32.mrb[172].mxu1 }
 0x352   :  { %v13828_v22 = vmax.f32 %v3007_v13, %v3008_v17  ;;  %v3794_v23 = vadd.f32 %v11579_v33, %v13679_v39  ;;  %v2589_v25 = vpop.f32.mrb[167].mxu0  ;;  %v3785_v37 = vpop.f32.mrb[173].mxu1  ;;  %v2598_v34 = vadd.f32 %v11466_v20, %v13605_v16  ;;  %v3019_v43 = vsel %vm1376_vm3, %v2595_v26, -inf }
 0x353   :  { %v2590_v27 = vadd.f32 %v13605_v16, %v2589_v25  ;;  %v3786_v28 = vadd.f32 %v13679_v39, %v3785_v37  ;;  %v11580_v29 = vpop.f32.mrb[174].mxu1  ;;  %11709 = vmatprep.mubr.msk.bf16.mxu0 %vm1376_vm3, %v4310_v18  ;;  %v3016_v32 = vsel %vm1376_vm3, %v2587_v19, -inf }
 0x354   :  { %v3797_v30 = vadd.f32 %v11580_v29, %v13679_v39  ;;  %v3788_v31 = vpop.f32.mrb[175].mxu1  ;;  %11710 = vmatmul.mubr.msk.bf16.gmra.mrb[16].mxu0 %vm1376_vm3, %v4311_v14  ;;  %v4202_v40 = vmax.f32 %v3794_v23, 0.0  ;;  %v3021_v6 = vsel %vm1376_vm3, %v2598_v34, -inf }
 0x355   :  { %v3017_v36 = vsel %vm1376_vm3, %v2590_v27, -inf  ;;  %v3789_v38 = vadd.f32 %v13679_v39, %v3788_v31  ;;  %v4200_v53 = vmax.f32 %v3786_v28, 0.0 }
 0x356   :  { %v3018_v42 = vmax.f32 %v3016_v32, %v3017_v36  ;;  %v4203_v41 = vmax.f32 %v3797_v30, 0.0  ;;  %v12262_v36 = vld [vmem:[%s12765_s20 + $0x38] sm:$0xff]   ;;  %s15244_s20 = sld [smem:[#allocation20_spill]] }
 0x357   :  { %v4201_v44 = vmax.f32 %v3789_v38, 0.0  ;;  %v11469_v45 = vpop.f32.mrb[168].mxu0  ;;  %11823 = vmatprep.subr.bf16.mxu1 %v12262_v36 }
 0x358   :  { %v3020_v46 = vmax.f32 %v3018_v42, %v3019_v43  ;;  %v4313_v47 = vpack.c.bf16 %v4203_v41, %v4202_v40  ;;  %v2602_v48 = vpop.f32.mrb[169].mxu0  ;;  %v2611_v52 = vadd.f32 %v11469_v45, %v13605_v16  ;;  %11824 = vmatpush3.bf16.msra.mxu1 %v12262_v36 }
 0x359   :  { %v4312_v49 = vpack.c.bf16 %v4201_v44, %v4200_v53  ;;  %v2603_v7 = vadd.f32 %v13605_v16, %v2602_v48  ;;  %v11470_v50 = vpop.f32.mrb[170].mxu0  ;;  %v11583_v51 = vpop.f32.mrb[176].mxu1 }
 0x35a   :  { %v3022_v54 = vmax.f32 %v3020_v46, %v3021_v6  ;;  %v2605_v55 = vpop.f32.mrb[171].mxu0  ;;  %v3801_v24 = vpop.f32.mrb[177].mxu1  ;;  %v3810_v57 = vadd.f32 %v11583_v51, %v13679_v39  ;;  %v2614_v35 = vadd.f32 %v13853_v0, %v11470_v50  ;;  %v3027_v8 = vsel %vm1376_vm3, %v2611_v52, -inf }
 0x35b   :  { %v3023_v56 = vsel %vm1376_vm3, %v2603_v7, -inf  ;;  %v2606_v58 = vadd.f32 %v13605_v16, %v2605_v55  ;;  %v3802_v59 = vadd.f32 %v13679_v39, %v3801_v24  ;;  %v11584_v60 = vpop.f32.mrb[178].mxu1  ;;  %11713 = vmatprep.mubr.msk.bf16.mxu0 %vm1376_vm3, %v4312_v49 }
 0x35c   :  { %v3024_v61 = vmax.f32 %v3022_v54, %v3023_v56  ;;  %v3813_v62 = vadd.f32 %v11584_v60, %v13679_v39  ;;  %v3804_v63 = vpop.f32.mrb[179].mxu1  ;;  %11714 = vmatmul.mubr.msk.bf16.gmra.mrb[20].mxu0 %vm1376_vm3, %v4313_v47  ;;  %v4206_v16 = vmax.f32 %v3810_v57, 0.0  ;;  %v3029_v15 = vsel %vm1376_vm3, %v2614_v35, -inf }
 0x35d   :  { %v3025_v1 = vsel %vm1376_vm3, %v2606_v58, -inf  ;;  %v3805_v2 = vadd.f32 %v13679_v39, %v3804_v63  ;;  %v4204_v9 = vmax.f32 %v3802_v59, 0.0 }
 0x35e   :  { %v3026_v4 = vmax.f32 %v3024_v61, %v3025_v1  ;;  %v4207_v5 = vmax.f32 %v3813_v62, 0.0 }
 0x35f   :  { %v4205_v10 = vmax.f32 %v3805_v2, 0.0  ;;  %v11473_v11 = vpop.f32.mrb[172].mxu0 }
 0x360   :  { %v3028_v12 = vmax.f32 %v3026_v4, %v3027_v8  ;;  %v4315_v13 = vpack.c.bf16 %v4207_v5, %v4206_v16  ;;  %v2618_v14 = vpop.f32.mrb[173].mxu0  ;;  %v2627_v26 = vadd.f32 %v13853_v0, %v11473_v11 }
 0x361   :  { %v4314_v17 = vpack.c.bf16 %v4205_v10, %v4204_v9  ;;  %v2619_v18 = vadd.f32 %v13853_v0, %v2618_v14  ;;  %v11474_v19 = vpop.f32.mrb[174].mxu0  ;;  %v11587_v20 = vpop.f32.mrb[180].mxu1 }
 0x362   :  { %v3030_v33 = vmax.f32 %v3028_v12, %v3029_v15  ;;  %v3826_v23 = vadd.f32 %v11587_v20, %v13679_v39  ;;  %v2621_v25 = vpop.f32.mrb[175].mxu0  ;;  %v3817_v37 = vpop.f32.mrb[181].mxu1  ;;  %v2630_v38 = vadd.f32 %v13853_v0, %v11474_v19  ;;  %v3035_v44 = vsel %vm1376_vm3, %v2627_v26, -inf }
 0x363   :  { %v3031_v27 = vsel %vm1376_vm3, %v2619_v18, -inf  ;;  %v2622_v28 = vadd.f32 %v13853_v0, %v2621_v25  ;;  %v3818_v29 = vadd.f32 %v13679_v39, %v3817_v37  ;;  %v11588_v30 = vpop.f32.mrb[182].mxu1  ;;  %11717 = vmatprep.mubr.msk.bf16.mxu0 %vm1376_vm3, %v4314_v17 }
 0x364   :  { %v3032_v31 = vmax.f32 %v3030_v33, %v3031_v27  ;;  %v3829_v32 = vadd.f32 %v11588_v30, %v13679_v39  ;;  %v3820_v34 = vpop.f32.mrb[183].mxu1  ;;  %11718 = vmatmul.mubr.msk.bf16.gmra.mrb[24].mxu0 %vm1376_vm3, %v4315_v13  ;;  %v4210_v41 = vmax.f32 %v3826_v23, 0.0  ;;  %v3037_v50 = vsel %vm1376_vm3, %v2630_v38, -inf }
 0x365   :  { %v3033_v40 = vsel %vm1376_vm3, %v2622_v28, -inf  ;;  %v3821_v42 = vadd.f32 %v13679_v39, %v3820_v34  ;;  %v4208_v45 = vmax.f32 %v3818_v29, 0.0 }
 0x366   :  { %v3034_v43 = vmax.f32 %v3032_v31, %v3033_v40  ;;  %v4211_v53 = vmax.f32 %v3829_v32, 0.0 }
 0x367   :  { %v4209_v46 = vmax.f32 %v3821_v42, 0.0  ;;  %v11477_v47 = vpop.f32.mrb[176].mxu0 }
 0x368   :  { %v4317_v48 = vpack.c.bf16 %v4211_v53, %v4210_v41  ;;  %v2634_v6 = vpop.f32.mrb[177].mxu0  ;;  %v3036_v49 = vmax.f32 %v3034_v43, %v3035_v44  ;;  %v2643_v58 = vadd.f32 %v13853_v0, %v11477_v47 }
 0x369   :  { %v2635_v7 = vadd.f32 %v13853_v0, %v2634_v6  ;;  %v11478_v51 = vpop.f32.mrb[178].mxu0  ;;  %v11591_v52 = vpop.f32.mrb[184].mxu1  ;;  %v4316_v54 = vpack.c.bf16 %v4209_v46, %v4208_v45 }
 0x36a   :  { %v3038_v55 = vmax.f32 %v3036_v49, %v3037_v50  ;;  %v3842_v24 = vadd.f32 %v11591_v52, %v13679_v39  ;;  %v2637_v56 = vpop.f32.mrb[179].mxu0  ;;  %v3833_v57 = vpop.f32.mrb[185].mxu1  ;;  %v2646_v2 = vadd.f32 %v13853_v0, %v11478_v51  ;;  %v3043_v10 = vsel %vm1376_vm3, %v2643_v58, -inf }
 0x36b   :  { %v3039_v59 = vsel %vm1376_vm3, %v2635_v7, -inf  ;;  %v2638_v60 = vadd.f32 %v13853_v0, %v2637_v56  ;;  %v3834_v61 = vadd.f32 %v13679_v39, %v3833_v57  ;;  %v11592_v62 = vpop.f32.mrb[186].mxu1  ;;  %11721 = vmatprep.mubr.msk.bf16.mxu0 %vm1376_vm3, %v4316_v54 }
 0x36c   :  { %v3040_v63 = vmax.f32 %v3038_v55, %v3039_v59  ;;  %v3845_v35 = vadd.f32 %v11592_v62, %v13679_v39  ;;  %v3836_v1 = vpop.f32.mrb[187].mxu1  ;;  %11722 = vmatmul.mubr.msk.bf16.gmra.mrb[28].mxu0 %vm1376_vm3, %v4317_v48  ;;  %v4214_v5 = vmax.f32 %v3842_v24, 0.0  ;;  %v3045_v18 = vsel %vm1376_vm3, %v2646_v2, -inf }
 0x36d   :  { %v3041_v16 = vsel %vm1376_vm3, %v2638_v60, -inf  ;;  %v3837_v4 = vadd.f32 %v13679_v39, %v3836_v1  ;;  %v4212_v11 = vmax.f32 %v3834_v61, 0.0 }
 0x36e   :  { %v3042_v8 = vmax.f32 %v3040_v63, %v3041_v16  ;;  %v4215_v9 = vmax.f32 %v3845_v35, 0.0 }
 0x36f   :  { %v4213_v12 = vmax.f32 %v3837_v4, 0.0  ;;  %v11481_v13 = vpop.f32.mrb[180].mxu0 }
 0x370   :  { %v3044_v14 = vmax.f32 %v3042_v8, %v3043_v10  ;;  %v4319_v15 = vpack.c.bf16 %v4215_v9, %v4214_v5  ;;  %v2650_v17 = vpop.f32.mrb[181].mxu0  ;;  %v2659_v28 = vadd.f32 %v13853_v0, %v11481_v13 }
 0x371   :  { %v4318_v19 = vpack.c.bf16 %v4213_v12, %v4212_v11  ;;  %v2651_v20 = vadd.f32 %v13853_v0, %v2650_v17  ;;  %v11482_v33 = vpop.f32.mrb[182].mxu0  ;;  %v11595_v23 = vpop.f32.mrb[188].mxu1 }
 0x372   :  { %v13890_v25 = vmax.f32 %v3044_v14, %v3045_v18  ;;  %v3858_v37 = vadd.f32 %v11595_v23, %v13679_v39  ;;  %v2653_v26 = vpop.f32.mrb[183].mxu0  ;;  %v3849_v27 = vpop.f32.mrb[189].mxu1  ;;  %v2662_v38 = vadd.f32 %v13853_v0, %v11482_v33  ;;  %v3056_v44 = vsel %vm1376_vm3, %v2659_v28, -inf }
 0x373   :  { %v2654_v29 = vadd.f32 %v13853_v0, %v2653_v26  ;;  %v3850_v30 = vadd.f32 %v13679_v39, %v3849_v27  ;;  %v11596_v31 = vpop.f32.mrb[190].mxu1  ;;  %11725 = vmatprep.mubr.msk.bf16.mxu0 %vm1376_vm3, %v4318_v19  ;;  %v3053_v36 = vsel %vm1376_vm3, %v2651_v20, -inf }
 0x374   :  { %v3861_v32 = vadd.f32 %v11596_v31, %v13679_v39  ;;  %v3852_v34 = vpop.f32.mrb[191].mxu1  ;;  %11726 = vmatmul.mubr.msk.bf16.gmra.mrb[32].mxu0 %vm1376_vm3, %v4319_v15  ;;  %v4218_v41 = vmax.f32 %v3858_v37, 0.0  ;;  %v3058_v7 = vsel %vm1376_vm3, %v2662_v38, -inf  ;;  %v12678_v37 = vmov 0.0  }
 0x375   :  { %v3054_v40 = vsel %vm1376_vm3, %v2654_v29, -inf  ;;  %v3853_v42 = vadd.f32 %v13679_v39, %v3852_v34  ;;  %v4216_v45 = vmax.f32 %v3850_v30, 0.0  ;;  %11953 = vmatprep.subr.mxu0 %v12678_v37  ;;  %11963 = vmatprep.subr.bf16.mxu1 %v12678_v37  ;;  %v13927_v34 = vld [vmem:[%s12750_s30] ss:$0 sm:$0xff] }
 0x376   :  { %v3055_v43 = vmax.f32 %v3053_v36, %v3054_v40  ;;  %v4219_v53 = vmax.f32 %v3861_v32, 0.0 }
 0x377   :  { %v4217_v46 = vmax.f32 %v3853_v42, 0.0  ;;  %v11485_v47 = vpop.f32.mrb[184].mxu0 }
 0x378   :  { %v3057_v48 = vmax.f32 %v3055_v43, %v3056_v44  ;;  %v4321_v6 = vpack.c.bf16 %v4219_v53, %v4218_v41  ;;  %v2666_v49 = vpop.f32.mrb[185].mxu0  ;;  %v2675_v55 = vadd.f32 %v13853_v0, %v11485_v47 }
 0x379   :  { %v4320_v50 = vpack.c.bf16 %v4217_v46, %v4216_v45  ;;  %v2667_v51 = vadd.f32 %v13853_v0, %v2666_v49  ;;  %v11486_v52 = vpop.f32.mrb[186].mxu0  ;;  %v11599_v54 = vpop.f32.mrb[192].mxu1 }
 0x37a   :  { %v3059_v24 = vmax.f32 %v3057_v48, %v3058_v7  ;;  %v2669_v56 = vpop.f32.mrb[187].mxu0  ;;  %v3865_v57 = vpop.f32.mrb[193].mxu1  ;;  %v3874_v59 = vadd.f32 %v11599_v54, %v13679_v39  ;;  %v2678_v2 = vadd.f32 %v13853_v0, %v11486_v52  ;;  %v3064_v10 = vsel %vm1376_vm3, %v2675_v55, -inf }
 0x37b   :  { %v3060_v58 = vsel %vm1376_vm3, %v2667_v51, -inf  ;;  %v2670_v60 = vadd.f32 %v13853_v0, %v2669_v56  ;;  %v3866_v61 = vadd.f32 %v13679_v39, %v3865_v57  ;;  %v11600_v62 = vpop.f32.mrb[194].mxu1  ;;  %11729 = vmatprep.mubr.msk.bf16.mxu0 %vm1376_vm3, %v4320_v50 }
 0x37c   :  { %v3061_v63 = vmax.f32 %v3059_v24, %v3060_v58  ;;  %v3877_v35 = vadd.f32 %v11600_v62, %v13679_v39  ;;  %v3868_v1 = vpop.f32.mrb[195].mxu1  ;;  %11730 = vmatmul.mubr.msk.bf16.gmra.mrb[36].mxu0 %vm1376_vm3, %v4321_v6  ;;  %v4222_v5 = vmax.f32 %v3874_v59, 0.0  ;;  %v3066_v18 = vsel %vm1376_vm3, %v2678_v2, -inf }
 0x37d   :  { %v3062_v16 = vsel %vm1376_vm3, %v2670_v60, -inf  ;;  %v3869_v4 = vadd.f32 %v13679_v39, %v3868_v1  ;;  %v4220_v11 = vmax.f32 %v3866_v61, 0.0 }
 0x37e   :  { %v3063_v8 = vmax.f32 %v3061_v63, %v3062_v16  ;;  %v4223_v9 = vmax.f32 %v3877_v35, 0.0 }
 0x37f   :  { %v4221_v12 = vmax.f32 %v3869_v4, 0.0  ;;  %v11489_v13 = vpop.f32.mrb[188].mxu0 }
 0x380   :  { %v3065_v14 = vmax.f32 %v3063_v8, %v3064_v10  ;;  %v4323_v15 = vpack.c.bf16 %v4223_v9, %v4222_v5  ;;  %v2682_v17 = vpop.f32.mrb[189].mxu0  ;;  %v2691_v30 = vadd.f32 %v13853_v0, %v11489_v13 }
 0x381   :  { %v4322_v19 = vpack.c.bf16 %v4221_v12, %v4220_v11  ;;  %v2683_v20 = vadd.f32 %v13853_v0, %v2682_v17  ;;  %v11490_v33 = vpop.f32.mrb[190].mxu0  ;;  %v11603_v23 = vpop.f32.mrb[196].mxu1 }
 0x382   :  { %v3067_v26 = vmax.f32 %v3065_v14, %v3066_v18  ;;  %v3890_v27 = vadd.f32 %v11603_v23, %v13679_v39  ;;  %v2685_v28 = vpop.f32.mrb[191].mxu0  ;;  %v3881_v29 = vpop.f32.mrb[197].mxu1  ;;  %v2694_v39 = vadd.f32 %v13853_v0, %v11490_v33  ;;  %v3072_v47 = vsel %vm1376_vm3, %v2691_v30, -inf }
 0x383   :  { %v3068_v31 = vsel %vm1376_vm3, %v2683_v20, -inf  ;;  %v2686_v32 = vadd.f32 %v13853_v0, %v2685_v28  ;;  %v3882_v36 = vadd.f32 %v13927_v34, %v3881_v29  ;;  %v11604_v38 = vpop.f32.mrb[198].mxu1  ;;  %11733 = vmatprep.mubr.msk.bf16.mxu0 %vm1376_vm3, %v4322_v19 }
 0x384   :  { %v3069_v40 = vmax.f32 %v3067_v26, %v3068_v31  ;;  %v3893_v42 = vadd.f32 %v13927_v34, %v11604_v38  ;;  %v3884_v41 = vpop.f32.mrb[199].mxu1  ;;  %11734 = vmatmul.mubr.msk.bf16.gmra.mrb[40].mxu0 %vm1376_vm3, %v4323_v15  ;;  %v4226_v44 = vmax.f32 %v3890_v27, 0.0  ;;  %v3074_v52 = vsel %vm1376_vm3, %v2694_v39, -inf }
 0x385   :  { %v3070_v43 = vsel %vm1376_vm3, %v2686_v32, -inf  ;;  %v3885_v53 = vadd.f32 %v13927_v34, %v3884_v41  ;;  %v4224_v48 = vmax.f32 %v3882_v36, 0.0 }
 0x386   :  { %v3071_v45 = vmax.f32 %v3069_v40, %v3070_v43  ;;  %v4227_v46 = vmax.f32 %v3893_v42, 0.0 }
 0x387   :  { %v4225_v6 = vmax.f32 %v3885_v53, 0.0  ;;  %v11493_v49 = vpop.f32.mrb[192].mxu0 }
 0x388   :  { %v3073_v7 = vmax.f32 %v3071_v45, %v3072_v47  ;;  %v4325_v50 = vpack.c.bf16 %v4227_v46, %v4226_v44  ;;  %v2698_v51 = vpop.f32.mrb[193].mxu0  ;;  %v2707_v61 = vadd.f32 %v13853_v0, %v11493_v49 }
 0x389   :  { %v4324_v54 = vpack.c.bf16 %v4225_v6, %v4224_v48  ;;  %v2699_v55 = vadd.f32 %v13853_v0, %v2698_v51  ;;  %v11494_v24 = vpop.f32.mrb[194].mxu0  ;;  %v11607_v56 = vpop.f32.mrb[200].mxu1 }
 0x38a   :  { %v3075_v57 = vmax.f32 %v3073_v7, %v3074_v52  ;;  %v3906_v58 = vadd.f32 %v13927_v34, %v11607_v56  ;;  %v2701_v59 = vpop.f32.mrb[195].mxu0  ;;  %v3897_v60 = vpop.f32.mrb[201].mxu1  ;;  %v2710_v5 = vadd.f32 %v13853_v0, %v11494_v24  ;;  %v3080_v13 = vsel %vm1376_vm3, %v2707_v61, -inf }
 0x38b   :  { %v3076_v62 = vsel %vm1376_vm3, %v2699_v55, -inf  ;;  %v2702_v63 = vadd.f32 %v13853_v0, %v2701_v59  ;;  %v3898_v35 = vadd.f32 %v13927_v34, %v3897_v60  ;;  %v11608_v1 = vpop.f32.mrb[202].mxu1  ;;  %11737 = vmatprep.mubr.msk.bf16.mxu0 %vm1376_vm3, %v4324_v54 }
 0x38c   :  { %v3077_v2 = vmax.f32 %v3075_v57, %v3076_v62  ;;  %v3909_v16 = vadd.f32 %v13927_v34, %v11608_v1  ;;  %v3900_v4 = vpop.f32.mrb[203].mxu1  ;;  %11738 = vmatmul.mubr.msk.bf16.gmra.mrb[44].mxu0 %vm1376_vm3, %v4325_v50  ;;  %v4230_v10 = vmax.f32 %v3906_v58, 0.0  ;;  %v3082_v33 = vsel %vm1376_vm3, %v2710_v5, -inf }
 0x38d   :  { %v3078_v8 = vsel %vm1376_vm3, %v2702_v63, -inf  ;;  %v3901_v9 = vadd.f32 %v13927_v34, %v3900_v4  ;;  %v4228_v14 = vmax.f32 %v3898_v35, 0.0 }
 0x38e   :  { %v3079_v11 = vmax.f32 %v3077_v2, %v3078_v8  ;;  %v4231_v12 = vmax.f32 %v3909_v16, 0.0 }
 0x38f   :  { %v4229_v15 = vmax.f32 %v3901_v9, 0.0  ;;  %v11497_v17 = vpop.f32.mrb[196].mxu0 }
 0x390   :  { %v3081_v18 = vmax.f32 %v3079_v11, %v3080_v13  ;;  %v4327_v19 = vpack.c.bf16 %v4231_v12, %v4230_v10  ;;  %v2714_v20 = vpop.f32.mrb[197].mxu0  ;;  %v2723_v36 = vadd.f32 %v13853_v0, %v11497_v17 }
 0x391   :  { %v4326_v23 = vpack.c.bf16 %v4229_v15, %v4228_v14  ;;  %v2715_v26 = vadd.f32 %v13853_v0, %v2714_v20  ;;  %v11498_v27 = vpop.f32.mrb[198].mxu0  ;;  %v11611_v28 = vpop.f32.mrb[204].mxu1 }
 0x392   :  { %v13953_v29 = vmax.f32 %v3081_v18, %v3082_v33  ;;  %v3922_v30 = vadd.f32 %v13927_v34, %v11611_v28  ;;  %v2717_v31 = vpop.f32.mrb[199].mxu0  ;;  %v3913_v32 = vpop.f32.mrb[205].mxu1  ;;  %v2726_v53 = vadd.f32 %v13853_v0, %v11498_v27  ;;  %v3093_v6 = vsel %vm1376_vm3, %v2723_v36, -inf }
 0x393   :  { %v2718_v38 = vadd.f32 %v13853_v0, %v2717_v31  ;;  %v3914_v40 = vadd.f32 %v13927_v34, %v3913_v32  ;;  %v11612_v42 = vpop.f32.mrb[206].mxu1  ;;  %11741 = vmatprep.mubr.msk.bf16.mxu0 %vm1376_vm3, %v4326_v23  ;;  %v3090_v43 = vsel %vm1376_vm3, %v2715_v26, -inf }
 0x394   :  { %v3925_v41 = vadd.f32 %v13927_v34, %v11612_v42  ;;  %v3916_v39 = vpop.f32.mrb[207].mxu1  ;;  %11742 = vmatmul.mubr.msk.bf16.gmra.mrb[48].mxu0 %vm1376_vm3, %v4327_v19  ;;  %v4234_v46 = vmax.f32 %v3922_v30, 0.0  ;;  %v3095_v55 = vsel %vm1376_vm3, %v2726_v53, -inf }
 0x395   :  { %v3091_v44 = vsel %vm1376_vm3, %v2718_v38, -inf  ;;  %v3917_v45 = vadd.f32 %v13927_v34, %v3916_v39  ;;  %v4232_v49 = vmax.f32 %v3914_v40, 0.0 }
 0x396   :  { %v3092_v47 = vmax.f32 %v3090_v43, %v3091_v44  ;;  %v4235_v48 = vmax.f32 %v3925_v41, 0.0 }
 0x397   :  { %v4233_v7 = vmax.f32 %v3917_v45, 0.0  ;;  %v11501_v50 = vpop.f32.mrb[200].mxu0 }
 0x398   :  { %v3094_v51 = vmax.f32 %v3092_v47, %v3093_v6  ;;  %v4329_v52 = vpack.c.bf16 %v4235_v48, %v4234_v46  ;;  %v2730_v54 = vpop.f32.mrb[201].mxu0  ;;  %v2739_v59 = vadd.f32 %v13853_v0, %v11501_v50 }
 0x399   :  { %v4328_v24 = vpack.c.bf16 %v4233_v7, %v4232_v49  ;;  %v2731_v56 = vadd.f32 %v13853_v0, %v2730_v54  ;;  %v11502_v57 = vpop.f32.mrb[202].mxu0  ;;  %v11615_v58 = vpop.f32.mrb[208].mxu1 }
 0x39a   :  { %v3096_v60 = vmax.f32 %v3094_v51, %v3095_v55  ;;  %v2733_v61 = vpop.f32.mrb[203].mxu0  ;;  %v3929_v62 = vpop.f32.mrb[209].mxu1  ;;  %v3938_v35 = vadd.f32 %v13927_v34, %v11615_v58  ;;  %v2742_v9 = vadd.f32 %v13853_v0, %v11502_v57  ;;  %v3101_v15 = vsel %vm1376_vm3, %v2739_v59, -inf }
 0x39b   :  { %v3097_v63 = vsel %vm1376_vm3, %v2731_v56, -inf  ;;  %v2734_v1 = vadd.f32 %v13853_v0, %v2733_v61  ;;  %v3930_v2 = vadd.f32 %v13927_v34, %v3929_v62  ;;  %v11616_v16 = vpop.f32.mrb[210].mxu1  ;;  %11745 = vmatprep.mubr.msk.bf16.mxu0 %vm1376_vm3, %v4328_v24 }
 0x39c   :  { %v3098_v4 = vmax.f32 %v3096_v60, %v3097_v63  ;;  %v3941_v5 = vadd.f32 %v13927_v34, %v11616_v16  ;;  %v3932_v8 = vpop.f32.mrb[211].mxu1  ;;  %11746 = vmatmul.mubr.msk.bf16.gmra.mrb[52].mxu0 %vm1376_vm3, %v4329_v52  ;;  %v4238_v12 = vmax.f32 %v3938_v35, 0.0  ;;  %v3103_v26 = vsel %vm1376_vm3, %v2742_v9, -inf }
 0x39d   :  { %v3099_v10 = vsel %vm1376_vm3, %v2734_v1, -inf  ;;  %v3933_v11 = vadd.f32 %v13927_v34, %v3932_v8  ;;  %v4236_v17 = vmax.f32 %v3930_v2, 0.0 }
 0x39e   :  { %v3100_v13 = vmax.f32 %v3098_v4, %v3099_v10  ;;  %v4239_v14 = vmax.f32 %v3941_v5, 0.0 }
 0x39f   :  { %v4237_v18 = vmax.f32 %v3933_v11, 0.0  ;;  %v11505_v19 = vpop.f32.mrb[204].mxu0 }
 0x3a0   :  { %v3102_v20 = vmax.f32 %v3100_v13, %v3101_v15  ;;  %v4331_v33 = vpack.c.bf16 %v4239_v14, %v4238_v12  ;;  %v2746_v23 = vpop.f32.mrb[205].mxu0  ;;  %v2755_v42 = vadd.f32 %v13853_v0, %v11505_v19 }
 0x3a1   :  { %v4330_v27 = vpack.c.bf16 %v4237_v18, %v4236_v17  ;;  %v2747_v28 = vadd.f32 %v13853_v0, %v2746_v23  ;;  %v11506_v30 = vpop.f32.mrb[206].mxu0  ;;  %v11619_v31 = vpop.f32.mrb[212].mxu1 }
 0x3a2   :  { %v3104_v32 = vmax.f32 %v3102_v20, %v3103_v26  ;;  %v3954_v36 = vadd.f32 %v13927_v34, %v11619_v31  ;;  %v2749_v38 = vpop.f32.mrb[207].mxu0  ;;  %v3945_v40 = vpop.f32.mrb[213].mxu1  ;;  %v2758_v47 = vadd.f32 %v13853_v0, %v11506_v30  ;;  %v3109_v51 = vsel %vm1376_vm3, %v2755_v42, -inf }
 0x3a3   :  { %v3105_v41 = vsel %vm1376_vm3, %v2747_v28, -inf  ;;  %v2750_v39 = vadd.f32 %v13853_v0, %v2749_v38  ;;  %v3946_v43 = vadd.f32 %v13927_v34, %v3945_v40  ;;  %v11620_v53 = vpop.f32.mrb[214].mxu1  ;;  %11749 = vmatprep.mubr.msk.bf16.mxu0 %vm1376_vm3, %v4330_v27 }
 0x3a4   :  { %v3106_v44 = vmax.f32 %v3104_v32, %v3105_v41  ;;  %v3957_v45 = vadd.f32 %v13927_v34, %v11620_v53  ;;  %v3948_v46 = vpop.f32.mrb[215].mxu1  ;;  %11750 = vmatmul.mubr.msk.bf16.gmra.mrb[56].mxu0 %vm1376_vm3, %v4331_v33  ;;  %v4242_v49 = vmax.f32 %v3954_v36, 0.0  ;;  %v3111_v58 = vsel %vm1376_vm3, %v2758_v47, -inf }
 0x3a5   :  { %v3107_v48 = vsel %vm1376_vm3, %v2750_v39, -inf  ;;  %v3949_v6 = vadd.f32 %v13927_v34, %v3948_v46  ;;  %v4240_v52 = vmax.f32 %v3946_v43, 0.0 }
 0x3a6   :  { %v3108_v7 = vmax.f32 %v3106_v44, %v3107_v48  ;;  %v4243_v50 = vmax.f32 %v3957_v45, 0.0 }
 0x3a7   :  { %v4241_v54 = vmax.f32 %v3949_v6, 0.0  ;;  %v11509_v55 = vpop.f32.mrb[208].mxu0 }
 0x3a8   :  { %v3110_v24 = vmax.f32 %v3108_v7, %v3109_v51  ;;  %v4333_v56 = vpack.c.bf16 %v4243_v50, %v4242_v49  ;;  %v2762_v57 = vpop.f32.mrb[209].mxu0  ;;  %v2771_v16 = vadd.f32 %v13853_v0, %v11509_v55 }
 0x3a9   :  { %v4332_v59 = vpack.c.bf16 %v4241_v54, %v4240_v52  ;;  %v2763_v60 = vadd.f32 %v13853_v0, %v2762_v57  ;;  %v11510_v61 = vpop.f32.mrb[210].mxu0  ;;  %v11623_v62 = vpop.f32.mrb[216].mxu1 }
 0x3aa   :  { %v3112_v63 = vmax.f32 %v3110_v24, %v3111_v58  ;;  %v3970_v35 = vadd.f32 %v13927_v34, %v11623_v62  ;;  %v2765_v1 = vpop.f32.mrb[211].mxu0  ;;  %v3961_v2 = vpop.f32.mrb[217].mxu1  ;;  %v2774_v13 = vadd.f32 %v13853_v0, %v11510_v61  ;;  %v3117_v20 = vsel %vm1376_vm3, %v2771_v16, -inf }
 0x3ab   :  { %v3113_v4 = vsel %vm1376_vm3, %v2763_v60, -inf  ;;  %v2766_v5 = vadd.f32 %v13853_v0, %v2765_v1  ;;  %v3962_v8 = vadd.f32 %v13927_v34, %v3961_v2  ;;  %v11624_v9 = vpop.f32.mrb[218].mxu1  ;;  %11753 = vmatprep.mubr.msk.bf16.mxu0 %vm1376_vm3, %v4332_v59 }
 0x3ac   :  { %v3114_v10 = vmax.f32 %v3112_v63, %v3113_v4  ;;  %v3973_v11 = vadd.f32 %v13927_v34, %v11624_v9  ;;  %v3964_v12 = vpop.f32.mrb[219].mxu1  ;;  %11754 = vmatmul.mubr.msk.bf16.gmra.mrb[60].mxu0 %vm1376_vm3, %v4333_v56  ;;  %v4246_v17 = vmax.f32 %v3970_v35, 0.0  ;;  %v3119_v31 = vsel %vm1376_vm3, %v2774_v13, -inf }
 0x3ad   :  { %v3115_v14 = vsel %vm1376_vm3, %v2766_v5, -inf  ;;  %v3965_v15 = vadd.f32 %v13927_v34, %v3964_v12  ;;  %v4244_v33 = vmax.f32 %v3962_v8, 0.0 }
 0x3ae   :  { %v3116_v18 = vmax.f32 %v3114_v10, %v3115_v14  ;;  %v4247_v19 = vmax.f32 %v3973_v11, 0.0 }
 0x3af   :  { %v4245_v23 = vmax.f32 %v3965_v15, 0.0  ;;  %v11513_v26 = vpop.f32.mrb[212].mxu0 }
 0x3b0   :  { %v3118_v27 = vmax.f32 %v3116_v18, %v3117_v20  ;;  %v4335_v28 = vpack.c.bf16 %v4247_v19, %v4246_v17  ;;  %v2778_v30 = vpop.f32.mrb[213].mxu0  ;;  %v2787_v53 = vadd.f32 %v13853_v0, %v11513_v26 }
 0x3b1   :  { %v4334_v32 = vpack.c.bf16 %v4245_v23, %v4244_v33  ;;  %v2779_v36 = vadd.f32 %v13853_v0, %v2778_v30  ;;  %v11514_v38 = vpop.f32.mrb[214].mxu0  ;;  %v11627_v40 = vpop.f32.mrb[220].mxu1 }
 0x3b2   :  { %v14011_v42 = vmax.f32 %v3118_v27, %v3119_v31  ;;  %v3986_v41 = vadd.f32 %v13927_v34, %v11627_v40  ;;  %v2781_v39 = vpop.f32.mrb[215].mxu0  ;;  %v3977_v43 = vpop.f32.mrb[221].mxu1  ;;  %v2790_v49 = vadd.f32 %v13853_v0, %v11514_v38  ;;  %v3130_v55 = vsel %vm1376_vm3, %v2787_v53, -inf }
 0x3b3   :  { %v2782_v44 = vadd.f32 %v13853_v0, %v2781_v39  ;;  %v3978_v45 = vadd.f32 %v13927_v34, %v3977_v43  ;;  %v11628_v46 = vpop.f32.mrb[222].mxu1  ;;  %11757 = vmatprep.mubr.msk.bf16.mxu0 %vm1376_vm3, %v4334_v32  ;;  %v3127_v6 = vsel %vm1376_vm3, %v2779_v36, -inf }
 0x3b4   :  { %v3989_v47 = vadd.f32 %v13927_v34, %v11628_v46  ;;  %v3980_v48 = vpop.f32.mrb[223].mxu1  ;;  %11758 = vmatmul.mubr.msk.bf16.gmra.mrb[64].mxu0 %vm1376_vm3, %v4335_v28  ;;  %v4250_v51 = vmax.f32 %v3986_v41, 0.0  ;;  %v3132_v61 = vsel %vm1376_vm3, %v2790_v49, -inf }
 0x3b5   :  { %v3128_v7 = vsel %vm1376_vm3, %v2782_v44, -inf  ;;  %v3981_v50 = vadd.f32 %v13927_v34, %v3980_v48  ;;  %v4248_v24 = vmax.f32 %v3978_v45, 0.0 }
 0x3b6   :  { %v3129_v52 = vmax.f32 %v3127_v6, %v3128_v7  ;;  %v4251_v54 = vmax.f32 %v3989_v47, 0.0 }
 0x3b7   :  { %v4249_v56 = vmax.f32 %v3981_v50, 0.0  ;;  %v11517_v57 = vpop.f32.mrb[216].mxu0 }
 0x3b8   :  { %v3131_v58 = vmax.f32 %v3129_v52, %v3130_v55  ;;  %v4337_v59 = vpack.c.bf16 %v4251_v54, %v4250_v51  ;;  %v2794_v60 = vpop.f32.mrb[217].mxu0  ;;  %v2803_v2 = vadd.f32 %v13853_v0, %v11517_v57 }
 0x3b9   :  { %v4336_v62 = vpack.c.bf16 %v4249_v56, %v4248_v24  ;;  %v2795_v63 = vadd.f32 %v13853_v0, %v2794_v60  ;;  %v11518_v35 = vpop.f32.mrb[218].mxu0  ;;  %v11631_v1 = vpop.f32.mrb[224].mxu1 }
 0x3ba   :  { %v3133_v16 = vmax.f32 %v3131_v58, %v3132_v61  ;;  %v2797_v4 = vpop.f32.mrb[219].mxu0  ;;  %v3993_v5 = vpop.f32.mrb[225].mxu1  ;;  %v4002_v9 = vadd.f32 %v13927_v34, %v11631_v1  ;;  %v2806_v17 = vadd.f32 %v13853_v0, %v11518_v35  ;;  %v3138_v26 = vsel %vm1376_vm3, %v2803_v2, -inf }
 0x3bb   :  { %v3134_v8 = vsel %vm1376_vm3, %v2795_v63, -inf  ;;  %v2798_v10 = vadd.f32 %v13853_v0, %v2797_v4  ;;  %v3994_v11 = vadd.f32 %v13927_v34, %v3993_v5  ;;  %v11632_v12 = vpop.f32.mrb[226].mxu1  ;;  %11761 = vmatprep.mubr.msk.bf16.mxu0 %vm1376_vm3, %v4336_v62  ;;  %v2936_v63 = vrot.slane %v13689_v3, 4 }
 0x3bc   :  { %v3135_v13 = vmax.f32 %v3133_v16, %v3134_v8  ;;  %v4005_v14 = vadd.f32 %v13927_v34, %v11632_v12  ;;  %v3996_v15 = vpop.f32.mrb[227].mxu1  ;;  %11762 = vmatmul.mubr.msk.bf16.gmra.mrb[68].mxu0 %vm1376_vm3, %v4337_v59  ;;  %v4254_v20 = vmax.f32 %v4002_v9, 0.0  ;;  %v3140_v38 = vsel %vm1376_vm3, %v2806_v17, -inf }
 0x3bd   :  { %v3136_v18 = vsel %vm1376_vm3, %v2798_v10, -inf  ;;  %v3997_v19 = vadd.f32 %v13927_v34, %v3996_v15  ;;  %v4252_v27 = vmax.f32 %v3994_v11, 0.0 }
 0x3be   :  { %v3137_v33 = vmax.f32 %v3135_v13, %v3136_v18  ;;  %v4255_v23 = vmax.f32 %v4005_v14, 0.0 }
 0x3bf   :  { %v4253_v28 = vmax.f32 %v3997_v19, 0.0  ;;  %v11521_v30 = vpop.f32.mrb[220].mxu0 }
 0x3c0   :  { %v3139_v31 = vmax.f32 %v3137_v33, %v3138_v26  ;;  %v4339_v32 = vpack.c.bf16 %v4255_v23, %v4254_v20  ;;  %v2810_v36 = vpop.f32.mrb[221].mxu0  ;;  %v2819_v47 = vadd.f32 %v13853_v0, %v11521_v30  ;;  %v2937_v20 = vmax.f32 %v13689_v3, %v2936_v63 }
 0x3c1   :  { %v4338_v40 = vpack.c.bf16 %v4253_v28, %v4252_v27  ;;  %v2811_v41 = vadd.f32 %v13853_v0, %v2810_v36  ;;  %v11522_v39 = vpop.f32.mrb[222].mxu0  ;;  %v11635_v43 = vpop.f32.mrb[228].mxu1  ;;  %v2973_v33 = vrot.slane %v13768_v21, 4 }
 0x3c2   :  { %v3141_v53 = vmax.f32 %v3139_v31, %v3140_v38  ;;  %v4018_v44 = vadd.f32 %v13927_v34, %v11635_v43  ;;  %v2813_v45 = vpop.f32.mrb[223].mxu0  ;;  %v4009_v46 = vpop.f32.mrb[229].mxu1  ;;  %v2822_v54 = vadd.f32 %v13853_v0, %v11522_v39  ;;  %v3146_v59 = vsel %vm1376_vm3, %v2819_v47, -inf }
 0x3c3   :  { %v3142_v48 = vsel %vm1376_vm3, %v2811_v41, -inf  ;;  %v2814_v6 = vadd.f32 %v13853_v0, %v2813_v45  ;;  %v4010_v49 = vadd.f32 %v13927_v34, %v4009_v46  ;;  %v11636_v7 = vpop.f32.mrb[230].mxu1  ;;  %11765 = vmatprep.mubr.msk.bf16.mxu0 %vm1376_vm3, %v4338_v40  ;;  %v2938_v43 = vrot.slane %v2937_v20, 2 }
 0x3c4   :  { %v3143_v50 = vmax.f32 %v3141_v53, %v3142_v48  ;;  %v4021_v51 = vadd.f32 %v13927_v34, %v11636_v7  ;;  %v4012_v52 = vpop.f32.mrb[231].mxu1  ;;  %11766 = vmatmul.mubr.msk.bf16.gmra.mrb[72].mxu0 %vm1376_vm3, %v4339_v32  ;;  %v4258_v56 = vmax.f32 %v4018_v44, 0.0  ;;  %v3148_v16 = vsel %vm1376_vm3, %v2822_v54, -inf }
 0x3c5   :  { %v3144_v55 = vsel %vm1376_vm3, %v2814_v6, -inf  ;;  %v4013_v24 = vadd.f32 %v13927_v34, %v4012_v52  ;;  %v4256_v60 = vmax.f32 %v4010_v49, 0.0  ;;  %v2974_v53 = vmax.f32 %v13768_v21, %v2973_v33 }
 0x3c6   :  { %v3145_v57 = vmax.f32 %v3143_v50, %v3144_v55  ;;  %v4259_v58 = vmax.f32 %v4021_v51, 0.0 }
 0x3c7   :  { %v4257_v61 = vmax.f32 %v4013_v24, 0.0  ;;  %v11525_v62 = vpop.f32.mrb[224].mxu0 }
 0x3c8   :  { %v3147_v35 = vmax.f32 %v3145_v57, %v3146_v59  ;;  %v4341_v1 = vpack.c.bf16 %v4259_v58, %v4258_v56  ;;  %v2826_v2 = vpop.f32.mrb[225].mxu0  ;;  %v2835_v14 = vadd.f32 %v13853_v0, %v11525_v62  ;;  %v14080_v57 = vmax.f32 %v2937_v20, %v2938_v43 }
 0x3c9   :  { %v4340_v4 = vpack.c.bf16 %v4257_v61, %v4256_v60  ;;  %v2827_v5 = vadd.f32 %v13853_v0, %v2826_v2  ;;  %v11526_v8 = vpop.f32.mrb[226].mxu0  ;;  %v11639_v9 = vpop.f32.mrb[232].mxu1  ;;  %v2975_v58 = vrot.slane %v2974_v53, 2 }
 0x3ca   :  { %v3149_v10 = vmax.f32 %v3147_v35, %v3148_v16  ;;  %v4034_v11 = vadd.f32 %v13927_v34, %v11639_v9  ;;  %v2829_v12 = vpop.f32.mrb[227].mxu0  ;;  %v4025_v13 = vpop.f32.mrb[233].mxu1  ;;  %v2838_v28 = vadd.f32 %v13853_v0, %v11526_v8  ;;  %v3154_v40 = vsel %vm1376_vm3, %v2835_v14, -inf }
 0x3cb   :  { %v3150_v15 = vsel %vm1376_vm3, %v2827_v5, -inf  ;;  %v2830_v17 = vadd.f32 %v13853_v0, %v2829_v12  ;;  %v4026_v18 = vadd.f32 %v13927_v34, %v4025_v13  ;;  %v11640_v19 = vpop.f32.mrb[234].mxu1  ;;  %11769 = vmatprep.mubr.msk.bf16.mxu0 %vm1376_vm3, %v4340_v4  ;;  %v2976_v14 = vmax.f32 %v2974_v53, %v2975_v58 }
 0x3cc   :  { %v3151_v23 = vmax.f32 %v3149_v10, %v3150_v15  ;;  %v4037_v26 = vadd.f32 %v13927_v34, %v11640_v19  ;;  %v4028_v27 = vpop.f32.mrb[235].mxu1  ;;  %11770 = vmatmul.mubr.msk.bf16.gmra.mrb[76].mxu0 %vm1376_vm3, %v4341_v1  ;;  %v4262_v32 = vmax.f32 %v4034_v11, 0.0  ;;  %v3156_v47 = vsel %vm1376_vm3, %v2838_v28, -inf }
 0x3cd   :  { %v3152_v30 = vsel %vm1376_vm3, %v2830_v17, -inf  ;;  %v4029_v31 = vadd.f32 %v13927_v34, %v4028_v27  ;;  %v4260_v3 = vmax.f32 %v4026_v18, 0.0  ;;  %v3010_v1 = vrot.slane %v13828_v22, 4 }
 0x3ce   :  { %v3153_v36 = vmax.f32 %v3151_v23, %v3152_v30  ;;  %v4263_v38 = vmax.f32 %v4037_v26, 0.0  ;;  %v2940_v33 = vrot.slane %v14080_v57, 1  ;;  %v2977_v53 = vrot.slane %v2976_v14, 1 }
 0x3cf   :  { %v4261_v41 = vmax.f32 %v4029_v31, 0.0  ;;  %v11529_v39 = vpop.f32.mrb[228].mxu0  ;;  %v3011_v23 = vmax.f32 %v13828_v22, %v3010_v1  ;;  %v3047_v22 = vrot.slane %v13890_v25, 4 }
 0x3d0   :  { %v3155_v44 = vmax.f32 %v3153_v36, %v3154_v40  ;;  %v4343_v45 = vpack.c.bf16 %v4263_v38, %v4262_v32  ;;  %v2842_v46 = vpop.f32.mrb[229].mxu0  ;;  %v2851_v55 = vadd.f32 %v13853_v0, %v11529_v39  ;;  %v14098_v36 = vld [vmem:[%s12740_s19] ss:$0 sm:$0xff]  ;;  %v14118_v1 = vmax.f32 %v2976_v14, %v2977_v53  ;;  %s15239_s19 = sld [smem:[#allocation14_spill]] }
 0x3d1   :  { %v4342_v48 = vpack.c.bf16 %v4261_v41, %v4260_v3  ;;  %v2843_v6 = vadd.f32 %v13853_v0, %v2842_v46  ;;  %v11530_v49 = vpop.f32.mrb[230].mxu0  ;;  %v11643_v7 = vpop.f32.mrb[236].mxu1 }
 0x3d2   :  { %v14073_v50 = vmax.f32 %v3155_v44, %v3156_v47  ;;  %v4050_v51 = vadd.f32 %v13927_v34, %v11643_v7  ;;  %v2845_v52 = vpop.f32.mrb[231].mxu0  ;;  %v4041_v54 = vpop.f32.mrb[237].mxu1  ;;  %v2854_v62 = vadd.f32 %v13853_v0, %v11530_v49  ;;  %v3167_v5 = vsel %vm1376_vm3, %v2851_v55, -inf }
 0x3d3   :  { %v2846_v21 = vadd.f32 %v13853_v0, %v2845_v52  ;;  %v4042_v24 = vadd.f32 %v13927_v34, %v4041_v54  ;;  %v11644_v56 = vpop.f32.mrb[238].mxu1  ;;  %11773 = vmatprep.mubr.msk.bf16.mxu0 %vm1376_vm3, %v4342_v48  ;;  %v3164_v61 = vsel %vm1376_vm3, %v2843_v6, -inf  ;;  %v3012_v47 = vrot.slane %v3011_v23, 2 }
 0x3d4   :  { %v4053_v59 = vadd.f32 %v13927_v34, %v11644_v56  ;;  %v4044_v60 = vpop.f32.mrb[239].mxu1  ;;  %11774 = vmatmul.mubr.msk.bf16.gmra.mrb[80].mxu0 %vm1376_vm3, %v4343_v45  ;;  %v4266_v2 = vmax.f32 %v4050_v51, 0.0  ;;  %v3169_v15 = vsel %vm1376_vm3, %v2854_v62, -inf  ;;  %v3048_v55 = vmax.f32 %v13890_v25, %v3047_v22 }
 0x3d5   :  { %v3165_v63 = vsel %vm1376_vm3, %v2846_v21, -inf  ;;  %v4045_v35 = vadd.f32 %v13927_v34, %v4044_v60  ;;  %v4264_v8 = vmax.f32 %v4042_v24, 0.0 }
 0x3d6   :  { %v3166_v16 = vmax.f32 %v3164_v61, %v3165_v63  ;;  %v4267_v4 = vmax.f32 %v4053_v59, 0.0  ;;  %v14114_v59 = vmax.f32 %v14080_v57, %v2940_v33  ;;  %v3158_v33 = vrot.slane %v14073_v50, 4 }
 0x3d7   :  { %v4265_v9 = vmax.f32 %v4045_v35, 0.0  ;;  %v11533_v10 = vpop.f32.mrb[232].mxu0 }
 0x3d8   :  { %v3168_v11 = vmax.f32 %v3166_v16, %v3167_v5  ;;  %v4345_v12 = vpack.c.bf16 %v4267_v4, %v4266_v2  ;;  %v2858_v13 = vpop.f32.mrb[233].mxu0  ;;  %v2867_v26 = vadd.f32 %v13853_v0, %v11533_v10  ;;  %v3013_v2 = vmax.f32 %v3011_v23, %v3012_v47 }
 0x3d9   :  { %v4344_v17 = vpack.c.bf16 %v4265_v9, %v4264_v8  ;;  %v2859_v18 = vadd.f32 %v13853_v0, %v2858_v13  ;;  %v11534_v19 = vpop.f32.mrb[234].mxu0  ;;  %v11647_v20 = vpop.f32.mrb[240].mxu1  ;;  %v3084_v0 = vrot.slane %v13953_v29, 4 }
 0x3da   :  { %v3170_v27 = vmax.f32 %v3168_v11, %v3169_v15  ;;  %v2861_v28 = vpop.f32.mrb[235].mxu0  ;;  %v4057_v30 = vpop.f32.mrb[241].mxu1  ;;  %v4066_v32 = vadd.f32 %v13927_v34, %v11647_v20  ;;  %v2870_v44 = vadd.f32 %v14098_v36, %v11534_v19  ;;  %v3175_v7 = vsel %vm1376_vm3, %v2867_v26, -inf }
 0x3db   :  { %v3171_v31 = vsel %vm1376_vm3, %v2859_v18, -inf  ;;  %v2862_v38 = vadd.f32 %v14098_v36, %v2861_v28  ;;  %v4058_v40 = vadd.f32 %v13927_v34, %v4057_v30  ;;  %v11648_v3 = vpop.f32.mrb[242].mxu1  ;;  %11777 = vmatprep.mubr.msk.bf16.mxu0 %vm1376_vm3, %v4344_v17  ;;  %v3085_v21 = vmax.f32 %v13953_v29, %v3084_v0 }
 0x3dc   :  { %v3172_v41 = vmax.f32 %v3170_v27, %v3171_v31  ;;  %v4069_v39 = vadd.f32 %v13927_v34, %v11648_v3  ;;  %v4060_v43 = vpop.f32.mrb[243].mxu1  ;;  %11778 = vmatmul.mubr.msk.bf16.gmra.mrb[84].mxu0 %vm1376_vm3, %v4345_v12  ;;  %v4270_v48 = vmax.f32 %v4066_v32, 0.0  ;;  %v3177_v60 = vsel %vm1376_vm3, %v2870_v44, -inf }
 0x3dd   :  { %v3173_v45 = vsel %vm1376_vm3, %v2862_v38, -inf  ;;  %v4061_v46 = vadd.f32 %v13927_v34, %v4060_v43  ;;  %v4268_v51 = vmax.f32 %v4058_v40, 0.0  ;;  %v3049_v11 = vrot.slane %v3048_v55, 2 }
 0x3de   :  { %v3174_v6 = vmax.f32 %v3172_v41, %v3173_v45  ;;  %v4271_v49 = vmax.f32 %v4069_v39, 0.0  ;;  %v3086_v12 = vrot.slane %v3085_v21, 2  ;;  %v3121_v17 = vrot.slane %v14011_v42, 4 }
 0x3df   :  { %v4269_v52 = vmax.f32 %v4061_v46, 0.0  ;;  %v11537_v54 = vpop.f32.mrb[236].mxu0  ;;  %v6226_v38 = vsel %vm6225_vm5, %v14118_v1, %v14114_v59  ;;  %v3014_v40 = vrot.slane %v3013_v2, 1  ;;  %v3050_v3 = vmax.f32 %v3048_v55, %v3049_v11 }
 0x3e0   :  { %v3176_v24 = vmax.f32 %v3174_v6, %v3175_v7  ;;  %v4347_v56 = vpack.c.bf16 %v4271_v49, %v4270_v48  ;;  %v2874_v58 = vpop.f32.mrb[237].mxu0  ;;  %v2883_v5 = vadd.f32 %v14098_v36, %v11537_v54  ;;  %v3122_v39 = vmax.f32 %v14011_v42, %v3121_v17 }
 0x3e1   :  { %v4346_v61 = vpack.c.bf16 %v4269_v52, %v4268_v51  ;;  %v2875_v62 = vadd.f32 %v14098_v36, %v2874_v58  ;;  %v11538_v63 = vpop.f32.mrb[238].mxu0  ;;  %v11651_v35 = vpop.f32.mrb[244].mxu1  ;;  %v3087_v47 = vmax.f32 %v3085_v21, %v3086_v12  ;;  %v3159_v48 = vmax.f32 %v14073_v50, %v3158_v33 }
 0x3e2   :  { %v3178_v16 = vmax.f32 %v3176_v24, %v3177_v60  ;;  %v4082_v25 = vadd.f32 %v13927_v34, %v11651_v35  ;;  %v2877_v29 = vpop.f32.mrb[239].mxu0  ;;  %v4073_v4 = vpop.f32.mrb[245].mxu1  ;;  %v2886_v18 = vadd.f32 %v14098_v36, %v11538_v63  ;;  %v3183_v28 = vsel %vm1376_vm3, %v2883_v5, -inf }
 0x3e3   :  { %v3179_v57 = vsel %vm1376_vm3, %v2875_v62, -inf  ;;  %v2878_v8 = vadd.f32 %v14098_v36, %v2877_v29  ;;  %v4074_v9 = vadd.f32 %v13927_v34, %v4073_v4  ;;  %v11652_v10 = vpop.f32.mrb[246].mxu1  ;;  %11781 = vmatprep.mubr.msk.bf16.mxu0 %vm1376_vm3, %v4346_v61  ;;  %v14147_v21 = vmax.f32 %v3013_v2, %v3014_v40 }
 0x3e4   :  { %v3180_v13 = vmax.f32 %v3178_v16, %v3179_v57  ;;  %v4085_v14 = vadd.f32 %v13927_v34, %v11652_v10  ;;  %v4076_v15 = vpop.f32.mrb[247].mxu1  ;;  %11782 = vmatmul.mubr.msk.bf16.gmra.mrb[88].mxu0 %vm1376_vm3, %v4347_v56  ;;  %v4274_v23 = vmax.f32 %v4082_v25, 0.0  ;;  %v3185_v43 = vsel %vm1376_vm3, %v2886_v18, -inf  ;;  %v14155_v16 = vld [vmem:[%s12760_s12] ss:$0 sm:$0xff] }
 0x3e5   :  { %v3181_v19 = vsel %vm1376_vm3, %v2878_v8, -inf  ;;  %v4077_v20 = vadd.f32 %v13927_v34, %v4076_v15  ;;  %v4272_v30 = vmax.f32 %v4074_v9, 0.0  ;;  %v3051_v50 = vrot.slane %v3050_v3, 1 }
 0x3e6   :  { %v3182_v26 = vmax.f32 %v3180_v13, %v3181_v19  ;;  %v4275_v27 = vmax.f32 %v4085_v14, 0.0  ;;  %v3123_v61 = vrot.slane %v3122_v39, 2  ;;  %v3088_v25 = vrot.slane %v3087_v47, 1 }
 0x3e7   :  { %v4273_v31 = vmax.f32 %v4077_v20, 0.0  ;;  %v11541_v32 = vpop.f32.mrb[240].mxu0  ;;  %v3160_v5 = vrot.slane %v3159_v48, 2  ;;  %v6228_v14 = vsel %vm6227_vm6, %v14147_v21, %v6226_v38 }
 0x3e8   :  { %v3184_v22 = vmax.f32 %v3182_v26, %v3183_v28  ;;  %v4349_v0 = vpack.c.bf16 %v4275_v27, %v4274_v23  ;;  %v2890_v41 = vpop.f32.mrb[241].mxu0  ;;  %v2899_v52 = vadd.f32 %v14098_v36, %v11541_v32  ;;  %v3124_v15 = vmax.f32 %v3122_v39, %v3123_v61 }
 0x3e9   :  { %v4348_v53 = vpack.c.bf16 %v4273_v31, %v4272_v30  ;;  %v2891_v44 = vadd.f32 %v14098_v36, %v2890_v41  ;;  %v11542_v45 = vpop.f32.mrb[242].mxu0  ;;  %v11655_v46 = vpop.f32.mrb[248].mxu1  ;;  %v14163_v23 = vmax.f32 %v3050_v3, %v3051_v50  ;;  %v14167_v32 = vmax.f32 %v3087_v47, %v3088_v25  ;;  %v14182_v25 = vld [vmem:[%s12750_s30] ss:$0 sm:$0xff]  ;;  %s15241_s30 = sld [smem:[#allocation15_spill]] }
 0x3ea   :  { %v3186_v6 = vmax.f32 %v3184_v22, %v3185_v43  ;;  %v4098_v49 = vadd.f32 %v13927_v34, %v11655_v46  ;;  %v2893_v7 = vpop.f32.mrb[243].mxu0  ;;  %v4089_v51 = vpop.f32.mrb[249].mxu1  ;;  %v2902_v62 = vadd.f32 %v14098_v36, %v11542_v45  ;;  %v3191_v57 = vsel %vm1376_vm3, %v2899_v52, -inf }
 0x3eb   :  { %v3187_v42 = vsel %vm1376_vm3, %v2891_v44, -inf  ;;  %v2894_v54 = vadd.f32 %v14098_v36, %v2893_v7  ;;  %v4090_v55 = vadd.f32 %v13927_v34, %v4089_v51  ;;  %v11656_v24 = vpop.f32.mrb[250].mxu1  ;;  %11785 = vmatprep.mubr.msk.bf16.mxu0 %vm1376_vm3, %v4348_v53  ;;  %v3161_v38 = vmax.f32 %v3159_v48, %v3160_v5 }
 0x3ec   :  { %v3188_v56 = vmax.f32 %v3186_v6, %v3187_v42  ;;  %v4101_v58 = vadd.f32 %v13927_v34, %v11656_v24  ;;  %v4092_v60 = vpop.f32.mrb[251].mxu1  ;;  %11786 = vmatmul.mubr.msk.bf16.gmra.mrb[92].mxu0 %vm1376_vm3, %v4349_v0  ;;  %v4278_v29 = vmax.f32 %v4098_v49, 0.0  ;;  %v3193_v17 = vsel %vm1376_vm3, %v2902_v62, -inf }
 0x3ed   :  { %v3189_v63 = vsel %vm1376_vm3, %v2894_v54, -inf  ;;  %v4093_v35 = vadd.f32 %v13927_v34, %v4092_v60  ;;  %v4276_v8 = vmax.f32 %v4090_v55, 0.0  ;;  %v3125_v44 = vrot.slane %v3124_v15, 1 }
 0x3ee   :  { %v3190_v2 = vmax.f32 %v3188_v56, %v3189_v63  ;;  %v4279_v4 = vmax.f32 %v4101_v58, 0.0  ;;  %v3162_v55 = vrot.slane %v3161_v38, 1 }
 0x3ef   :  { %v4277_v9 = vmax.f32 %v4093_v35, 0.0  ;;  %v11683_v10 = vpop.f32.mrb[244].mxu0  ;;  %v14177_v63 = vmax.f32 %v3124_v15, %v3125_v44  ;;  %v6230_v35 = vsel %vm6229_vm7, %v14163_v23, %v6228_v14 }
 0x3f0   :  { %v3192_v11 = vmax.f32 %v3190_v2, %v3191_v57  ;;  %v4351_v12 = vpack.c.bf16 %v4279_v4, %v4278_v29  ;;  %v4625_v36 = vadd.f32 %v11683_v10, %v14155_v16  ;;  %v4616_v13 = vpop.f32.mrb[245].mxu0 }
 0x3f1   :  { %v4350_v18 = vpack.c.bf16 %v4277_v9, %v4276_v8  ;;  %v4617_v19 = vadd.f32 %v14155_v16, %v4616_v13  ;;  %v11659_v20 = vpop.f32.mrb[252].mxu1  ;;  %v11684_v33 = vpop.f32.mrb[246].mxu0 }
 0x3f2   :  { %v3194_v26 = vmax.f32 %v3192_v11, %v3193_v17  ;;  %v4114_v27 = vadd.f32 %v13927_v34, %v11659_v20  ;;  %v4628_v28 = vadd.f32 %v11684_v33, %v14155_v16  ;;  %v4105_v30 = vpop.f32.mrb[253].mxu1  ;;  %v4619_v31 = vpop.f32.mrb[247].mxu0  ;;  %v5129_v41 = vmax.f32 %v4625_v36, 0.0 }
 0x3f3   :  { %v4106_v40 = vadd.f32 %v13927_v34, %v4105_v30  ;;  %v4620_v22 = vadd.f32 %v14155_v16, %v4619_v31  ;;  %v11660_v0 = vpop.f32.mrb[254].mxu1  ;;  %11789 = vmatprep.mubr.msk.bf16.mxu0 %vm1376_vm3, %v4350_v18  ;;  %v5127_v45 = vmax.f32 %v4617_v19, 0.0  ;;  %v14189_v11 = vmax.f32 %v3161_v38, %v3162_v55 }
 0x3f4   :  { %v3195_v3 = vrot.slane %v3194_v26, 4  ;;  %v5130_v39 = vmax.f32 %v4628_v28, 0.0  ;;  %v4117_v43 = vadd.f32 %v13927_v34, %v11660_v0  ;;  %v4108_v53 = vpop.f32.mrb[255].mxu1  ;;  %11790 = vmatmul.mubr.msk.bf16.gmra.mrb[96].mxu0 %vm1376_vm3, %v4351_v12  ;;  %v4282_v6 = vmax.f32 %v4114_v27, 0.0 }
 0x3f5   :  { %v5128_v46 = vmax.f32 %v4620_v22, 0.0  ;;  %v4109_v47 = vadd.f32 %v13927_v34, %v4108_v53  ;;  %v4280_v51 = vmax.f32 %v4106_v40, 0.0  ;;  %v6232_v12 = vsel %vm6231_vm8, %v14167_v32, %v6230_v35 }
 0x3f6   :  { %v3196_v48 = vmax.f32 %v3194_v26, %v3195_v3  ;;  %v5256_v49 = vpack.c.bf16 %v5130_v39, %v5129_v41  ;;  %v4283_v7 = vmax.f32 %v4117_v43, 0.0  ;;  %v6234_v33 = vsel %vm6233_vm9, %v14177_v63, %v6232_v12 }
 0x3f7   :  { %v5255_v52 = vpack.c.bf16 %v5128_v46, %v5127_v45  ;;  %v4281_v42 = vmax.f32 %v4109_v47, 0.0  ;;  %v11687_v54 = vpop.f32.mrb[248].mxu0  ;;  %v6236_v0 = vsel %vm6235_vm10, %v14189_v11, %v6234_v33 }
 0x3f8   :  { %v3197_v24 = vrot.slane %v3196_v48, 2  ;;  %v4353_v50 = vpack.c.bf16 %v4283_v7, %v4282_v6  ;;  %v4641_v56 = vadd.f32 %v11687_v54, %v14155_v16  ;;  %v4632_v58 = vpop.f32.mrb[249].mxu0 }
 0x3f9   :  { %v4352_v60 = vpack.c.bf16 %v4281_v42, %v4280_v51  ;;  %v4633_v61 = vadd.f32 %v14155_v16, %v4632_v58  ;;  %v11663_v34 = vpop.f32.mrb[0].mxu1  ;;  %v11688_v62 = vpop.f32.mrb[250].mxu0  ;;  %11825 = vmatprep.mubr.bf16.mxu1 %v5255_v52 }
 0x3fa   :  { %v4130_v29 = vadd.f32 %v14182_v25, %v11663_v34  ;;  %v4644_v2 = vadd.f32 %v11688_v62, %v14155_v16  ;;  %v4121_v4 = vpop.f32.mrb[1].mxu1  ;;  %v4635_v5 = vpop.f32.mrb[251].mxu0  ;;  %11826 = vmatmul.mubr.bf16.vlgmr.msra.gmra.mrb[12].mxu1 %v5256_v49  ;;  %v3198_v57 = vmax.f32 %v3196_v48, %v3197_v24  ;;  %v5133_v36 = vmax.f32 %v4641_v56, 0.0 }
 0x3fb   :  { %v4122_v8 = vadd.f32 %v14182_v25, %v4121_v4  ;;  %v4636_v9 = vadd.f32 %v14155_v16, %v4635_v5  ;;  %v11664_v10 = vpop.f32.mrb[2].mxu1  ;;  %11793 = vmatprep.mubr.msk.bf16.mxu0 %vm1376_vm3, %v4352_v60  ;;  %v5131_v18 = vmax.f32 %v4633_v61, 0.0 }
 0x3fc   :  { %v5134_v13 = vmax.f32 %v4644_v2, 0.0  ;;  %v4133_v14 = vadd.f32 %v14182_v25, %v11664_v10  ;;  %v4124_v15 = vpop.f32.mrb[3].mxu1  ;;  %11794 = vmatmul.mubr.msk.bf16.gmra.mrb[100].mxu0 %vm1376_vm3, %v4353_v50  ;;  %v3199_v17 = vrot.slane %v3198_v57, 1  ;;  %v4286_v26 = vmax.f32 %v4130_v29, 0.0 }
 0x3fd   :  { %v5132_v19 = vmax.f32 %v4636_v9, 0.0  ;;  %v4125_v20 = vadd.f32 %v14182_v25, %v4124_v15  ;;  %v4284_v31 = vmax.f32 %v4122_v8, 0.0 }
 0x3fe   :  { %v5258_v27 = vpack.c.bf16 %v5134_v13, %v5133_v36  ;;  %v4287_v28 = vmax.f32 %v4133_v14, 0.0  ;;  %v14198_v30 = vmax.f32 %v3198_v57, %v3199_v17 }
 0x3ff   :  { %v5257_v38 = vpack.c.bf16 %v5132_v19, %v5131_v18  ;;  %v4285_v40 = vmax.f32 %v4125_v20, 0.0  ;;  %v11691_v22 = vpop.f32.mrb[252].mxu0 }
 0x400   :  { %v4355_v3 = vpack.c.bf16 %v4287_v28, %v4286_v26  ;;  %v4657_v41 = vadd.f32 %v11691_v22, %v14155_v16  ;;  %v4648_v39 = vpop.f32.mrb[253].mxu0  ;;  %v14205_v43 = vsel %vm6237_vm11, %v14198_v30, %v6236_v0 }
 0x401   :  { %v4354_v53 = vpack.c.bf16 %v4285_v40, %v4284_v31  ;;  %v4649_v44 = vadd.f32 %v14155_v16, %v4648_v39  ;;  %v11667_v45 = vpop.f32.mrb[4].mxu1  ;;  %v11692_v46 = vpop.f32.mrb[254].mxu0  ;;  %11829 = vmatprep.mubr.bf16.mxu1 %v5257_v38  ;;  %11954 = vmatpush3.msra.mxu0 %v14205_v43 }
 0x402   :  { %v4146_v47 = vadd.f32 %v14182_v25, %v11667_v45  ;;  %v4660_v48 = vadd.f32 %v11692_v46, %v14155_v16  ;;  %v4137_v6 = vpop.f32.mrb[5].mxu1  ;;  %v4651_v49 = vpop.f32.mrb[255].mxu0  ;;  %11830 = vmatmul.mubr.bf16.gmra.mrb[16].mxu1 %v5258_v27  ;;  %11958 = vmatprep.subr.mxu0 %v12678_v37  ;;  %v5137_v42 = vmax.f32 %v4657_v41, 0.0 }
 0x403   :  { %v4138_v7 = vadd.f32 %v14182_v25, %v4137_v6  ;;  %v4652_v51 = vadd.f32 %v14155_v16, %v4651_v49  ;;  %v11668_v52 = vpop.f32.mrb[6].mxu1  ;;  %11797 = vmatprep.mubr.msk.bf16.mxu0 %vm1376_vm3, %v4354_v53  ;;  %v5135_v50 = vmax.f32 %v4649_v44, 0.0 }
 0x404   :  { %v5138_v54 = vmax.f32 %v4660_v48, 0.0  ;;  %v4149_v55 = vadd.f32 %v14182_v25, %v11668_v52  ;;  %v4140_v24 = vpop.f32.mrb[7].mxu1  ;;  %11798 = vmatmul.mubr.msk.bf16.gmra.mrb[104].mxu0 %vm1376_vm3, %v4355_v3  ;;  %v4290_v60 = vmax.f32 %v4146_v47, 0.0 }
 0x405   :  { %v5136_v56 = vmax.f32 %v4652_v51, 0.0  ;;  %v4141_v58 = vadd.f32 %v14182_v25, %v4140_v24  ;;  %v4288_v62 = vmax.f32 %v4138_v7, 0.0 }
 0x406   :  { %v5260_v61 = vpack.c.bf16 %v5138_v54, %v5137_v42  ;;  %v4291_v34 = vmax.f32 %v4149_v55, 0.0 }
 0x407   :  { %v5259_v35 = vpack.c.bf16 %v5136_v56, %v5135_v50  ;;  %v4289_v29 = vmax.f32 %v4141_v58, 0.0  ;;  %v11695_v2 = vpop.f32.mrb[0].mxu0 }
 0x408   :  { %v4357_v4 = vpack.c.bf16 %v4291_v34, %v4290_v60  ;;  %v4673_v5 = vadd.f32 %v11695_v2, %v14155_v16  ;;  %v4664_v57 = vpop.f32.mrb[1].mxu0  ;;  %v6214_v34 = vld [vmem:[%s12700_s13] sm:$0xff] }
 0x409   :  { %v4356_v8 = vpack.c.bf16 %v4289_v29, %v4288_v62  ;;  %v4665_v9 = vadd.f32 %v14155_v16, %v4664_v57  ;;  %v11671_v10 = vpop.f32.mrb[8].mxu1  ;;  %v11696_v12 = vpop.f32.mrb[2].mxu0  ;;  %11833 = vmatprep.mubr.bf16.mxu1 %v5259_v35 }
 0x40a   :  { %v4162_v36 = vadd.f32 %v14182_v25, %v11671_v10  ;;  %v4676_v13 = vadd.f32 %v11696_v12, %v14155_v16  ;;  %v4153_v14 = vpop.f32.mrb[9].mxu1  ;;  %v4667_v15 = vpop.f32.mrb[3].mxu0  ;;  %11834 = vmatmul.mubr.bf16.gmra.mrb[20].mxu1 %v5260_v61  ;;  %v5141_v20 = vmax.f32 %v4673_v5, 0.0 }
 0x40b   :  { %v4154_v17 = vadd.f32 %v14182_v25, %v4153_v14  ;;  %v4668_v18 = vadd.f32 %v14155_v16, %v4667_v15  ;;  %v11672_v19 = vpop.f32.mrb[10].mxu1  ;;  %11801 = vmatprep.mubr.msk.bf16.mxu0 %vm1376_vm3, %v4356_v8  ;;  %v5139_v28 = vmax.f32 %v4665_v9, 0.0 }
 0x40c   :  { %v5142_v33 = vmax.f32 %v4676_v13, 0.0  ;;  %v4165_v26 = vadd.f32 %v14182_v25, %v11672_v19  ;;  %v4156_v27 = vpop.f32.mrb[11].mxu1  ;;  %11802 = vmatmul.mubr.msk.bf16.gmra.mrb[108].mxu0 %vm1376_vm3, %v4357_v4  ;;  %v4294_v40 = vmax.f32 %v4162_v36, 0.0 }
 0x40d   :  { %v5140_v31 = vmax.f32 %v4668_v18, 0.0  ;;  %v4157_v38 = vadd.f32 %v14182_v25, %v4156_v27  ;;  %v4292_v3 = vmax.f32 %v4154_v17, 0.0 }
 0x40e   :  { %v5262_v22 = vpack.c.bf16 %v5142_v33, %v5141_v20  ;;  %v4295_v0 = vmax.f32 %v4165_v26, 0.0 }
 0x40f   :  { %v5261_v41 = vpack.c.bf16 %v5140_v31, %v5139_v28  ;;  %v4293_v39 = vmax.f32 %v4157_v38, 0.0  ;;  %v11699_v53 = vpop.f32.mrb[4].mxu0 }
 0x410   :  { %v4359_v44 = vpack.c.bf16 %v4295_v0, %v4294_v40  ;;  %v4689_v45 = vadd.f32 %v11699_v53, %v14155_v16  ;;  %v4680_v46 = vpop.f32.mrb[5].mxu0 }
 0x411   :  { %v4358_v47 = vpack.c.bf16 %v4293_v39, %v4292_v3  ;;  %v4681_v48 = vadd.f32 %v14155_v16, %v4680_v46  ;;  %v11700_v6 = vpop.f32.mrb[6].mxu0  ;;  %11837 = vmatprep.mubr.bf16.mxu1 %v5261_v41 }
 0x412   :  { %v4692_v49 = vadd.f32 %v11700_v6, %v14155_v16  ;;  %v4683_v7 = vpop.f32.mrb[7].mxu0  ;;  %11838 = vmatmul.mubr.bf16.gmra.mrb[24].mxu1 %v5262_v22  ;;  %v5145_v51 = vmax.f32 %v4689_v45, 0.0 }
 0x413   :  { %v4684_v25 = vadd.f32 %v14155_v16, %v4683_v7  ;;  %11805 = vmatprep.mubr.msk.bf16.mxu0 %vm1376_vm3, %v4358_v47  ;;  %v5143_v42 = vmax.f32 %v4681_v48, 0.0 }
 0x414   :  { %v5146_v52 = vmax.f32 %v4692_v49, 0.0  ;;  %11806 = vmatmul.mubr.msk.bf16.gmra.mrb[112].mxu0 %vm1376_vm3, %v4359_v44 }
 0x415   :  { %v5144_v54 = vmax.f32 %v4684_v25, 0.0  ;;  %11955 = vmatprep.mubr.msk.f32.mxu0 %vm12679_vm12, %v12678_v37 }
 0x416   :  { %v5264_v55 = vpack.c.bf16 %v5146_v52, %v5145_v51 }
 0x417   :  { %v5263_v24 = vpack.c.bf16 %v5144_v54, %v5143_v42  ;;  %v11703_v50 = vpop.f32.mrb[8].mxu0 }
 0x418   :  { %v4705_v56 = vadd.f32 %v11703_v50, %v14155_v16  ;;  %v4696_v58 = vpop.f32.mrb[9].mxu0 }
 0x419   :  { %v4697_v60 = vadd.f32 %v14155_v16, %v4696_v58  ;;  %v11704_v61 = vpop.f32.mrb[10].mxu0  ;;  %11841 = vmatprep.mubr.bf16.mxu1 %v5263_v24 }
 0x41a   :  { %v4708_v62 = vadd.f32 %v11704_v61, %v14155_v16  ;;  %v4699_v35 = vpop.f32.mrb[11].mxu0  ;;  %11842 = vmatmul.mubr.bf16.gmra.mrb[28].mxu1 %v5264_v55  ;;  %v5149_v2 = vmax.f32 %v4705_v56, 0.0 }
 0x41b   :  { %v4700_v29 = vadd.f32 %v14155_v16, %v4699_v35  ;;  %v5147_v5 = vmax.f32 %v4697_v60, 0.0 }
 0x41c   :  { %v5150_v4 = vmax.f32 %v4708_v62, 0.0  ;;  %11956 = vmatmul.mubr.msk.f32.vlgmr.msra.gmra.mrb[116].mxu0 %vm6240_vm13, %v6214_v34 }
 0x41d   :  { %v5148_v57 = vmax.f32 %v4700_v29, 0.0  ;;  %11959 = vmatpush3.msra.mxu0 %v14205_v43  ;;  %11960 = vmatprep.mubr.msk.f32.mxu0 %vm12679_vm12, %v12678_v37 }
 0x41e   :  { %v5266_v8 = vpack.c.bf16 %v5150_v4, %v5149_v2  ;;  %11975 = vmatprep.subr.bf16.mxu0 %v12678_v37 }
 0x41f   :  { %v5265_v9 = vpack.c.bf16 %v5148_v57, %v5147_v5  ;;  %v11707_v10 = vpop.f32.mrb[12].mxu0 }
 0x420   :  { %v4721_v12 = vadd.f32 %v11707_v10, %v14155_v16  ;;  %v4712_v36 = vpop.f32.mrb[13].mxu0 }
 0x421   :  { %v4713_v13 = vadd.f32 %v14155_v16, %v4712_v36  ;;  %v11708_v14 = vpop.f32.mrb[14].mxu0  ;;  %11845 = vmatprep.mubr.bf16.mxu1 %v5265_v9 }
 0x422   :  { %v4724_v15 = vadd.f32 %v11708_v14, %v14155_v16  ;;  %v4715_v17 = vpop.f32.mrb[15].mxu0  ;;  %11846 = vmatmul.mubr.bf16.gmra.mrb[32].mxu1 %v5266_v8  ;;  %v5153_v18 = vmax.f32 %v4721_v12, 0.0 }
 0x423   :  { %v4716_v43 = vadd.f32 %v14155_v16, %v4715_v17  ;;  %v5151_v20 = vmax.f32 %v4713_v13, 0.0 }
 0x424   :  { %v5154_v19 = vmax.f32 %v4724_v15, 0.0 }
 0x425   :  { %v5152_v33 = vmax.f32 %v4716_v43, 0.0 }
 0x426   :  { %v5268_v26 = vpack.c.bf16 %v5154_v19, %v5153_v18 }
 0x427   :  { %v5267_v27 = vpack.c.bf16 %v5152_v33, %v5151_v20  ;;  %v11711_v28 = vpop.f32.mrb[16].mxu0 }
 0x428   :  { %v4737_v31 = vadd.f32 %v11711_v28, %v14155_v16  ;;  %v4728_v38 = vpop.f32.mrb[17].mxu0 }
 0x429   :  { %v4729_v40 = vadd.f32 %v14155_v16, %v4728_v38  ;;  %v11712_v22 = vpop.f32.mrb[18].mxu0  ;;  %11849 = vmatprep.mubr.bf16.mxu1 %v5267_v27 }
 0x42a   :  { %v4740_v0 = vadd.f32 %v11712_v22, %v14155_v16  ;;  %v4731_v3 = vpop.f32.mrb[19].mxu0  ;;  %11850 = vmatmul.mubr.bf16.gmra.mrb[36].mxu1 %v5268_v26  ;;  %v5157_v39 = vmax.f32 %v4737_v31, 0.0 }
 0x42b   :  { %v4732_v41 = vadd.f32 %v14155_v16, %v4731_v3  ;;  %v5155_v44 = vmax.f32 %v4729_v40, 0.0 }
 0x42c   :  { %v5158_v53 = vmax.f32 %v4740_v0, 0.0 }
 0x42d   :  { %v5156_v45 = vmax.f32 %v4732_v41, 0.0 }
 0x42e   :  { %v5270_v46 = vpack.c.bf16 %v5158_v53, %v5157_v39 }
 0x42f   :  { %v5269_v47 = vpack.c.bf16 %v5156_v45, %v5155_v44  ;;  %v11715_v48 = vpop.f32.mrb[20].mxu0 }
 0x430   :  { %v4753_v6 = vadd.f32 %v11715_v48, %v14155_v16  ;;  %v4744_v49 = vpop.f32.mrb[21].mxu0 }
 0x431   :  { %v4745_v7 = vadd.f32 %v14155_v16, %v4744_v49  ;;  %v11716_v25 = vpop.f32.mrb[22].mxu0  ;;  %11853 = vmatprep.mubr.bf16.mxu1 %v5269_v47 }
 0x432   :  { %v4756_v51 = vadd.f32 %v11716_v25, %v14155_v16  ;;  %v4747_v52 = vpop.f32.mrb[23].mxu0  ;;  %11854 = vmatmul.mubr.bf16.gmra.mrb[40].mxu1 %v5270_v46  ;;  %v5161_v54 = vmax.f32 %v4753_v6, 0.0 }
 0x433   :  { %v4748_v42 = vadd.f32 %v14155_v16, %v4747_v52  ;;  %v5159_v24 = vmax.f32 %v4745_v7, 0.0 }
 0x434   :  { %v5162_v55 = vmax.f32 %v4756_v51, 0.0 }
 0x435   :  { %v5160_v50 = vmax.f32 %v4748_v42, 0.0 }
 0x436   :  { %v5272_v56 = vpack.c.bf16 %v5162_v55, %v5161_v54 }
 0x437   :  { %v5271_v58 = vpack.c.bf16 %v5160_v50, %v5159_v24  ;;  %v11719_v60 = vpop.f32.mrb[24].mxu0 }
 0x438   :  { %v4769_v61 = vadd.f32 %v11719_v60, %v14155_v16  ;;  %v4760_v34 = vpop.f32.mrb[25].mxu0 }
 0x439   :  { %v4761_v62 = vadd.f32 %v14155_v16, %v4760_v34  ;;  %v11720_v35 = vpop.f32.mrb[26].mxu0  ;;  %11857 = vmatprep.mubr.bf16.mxu1 %v5271_v58 }
 0x43a   :  { %v4772_v29 = vadd.f32 %v11720_v35, %v14155_v16  ;;  %v4763_v2 = vpop.f32.mrb[27].mxu0  ;;  %11858 = vmatmul.mubr.bf16.gmra.mrb[44].mxu1 %v5272_v56  ;;  %v5165_v5 = vmax.f32 %v4769_v61, 0.0 }
 0x43b   :  { %v4764_v4 = vadd.f32 %v14155_v16, %v4763_v2  ;;  %v5163_v8 = vmax.f32 %v4761_v62, 0.0 }
 0x43c   :  { %v5166_v57 = vmax.f32 %v4772_v29, 0.0 }
 0x43d   :  { %v5164_v9 = vmax.f32 %v4764_v4, 0.0 }
 0x43e   :  { %v5274_v10 = vpack.c.bf16 %v5166_v57, %v5165_v5 }
 0x43f   :  { %v5273_v12 = vpack.c.bf16 %v5164_v9, %v5163_v8  ;;  %v11723_v36 = vpop.f32.mrb[28].mxu0 }
 0x440   :  { %v4785_v13 = vadd.f32 %v11723_v36, %v14155_v16  ;;  %v4776_v14 = vpop.f32.mrb[29].mxu0 }
 0x441   :  { %v4777_v15 = vadd.f32 %v14155_v16, %v4776_v14  ;;  %v11724_v17 = vpop.f32.mrb[30].mxu0  ;;  %11861 = vmatprep.mubr.bf16.mxu1 %v5273_v12 }
 0x442   :  { %v4788_v43 = vadd.f32 %v11724_v17, %v14155_v16  ;;  %v4779_v18 = vpop.f32.mrb[31].mxu0  ;;  %11862 = vmatmul.mubr.bf16.gmra.mrb[48].mxu1 %v5274_v10  ;;  %v5169_v20 = vmax.f32 %v4785_v13, 0.0 }
 0x443   :  { %v4780_v19 = vadd.f32 %v14155_v16, %v4779_v18  ;;  %v5167_v26 = vmax.f32 %v4777_v15, 0.0 }
 0x444   :  { %v5170_v33 = vmax.f32 %v4788_v43, 0.0 }
 0x445   :  { %v5168_v27 = vmax.f32 %v4780_v19, 0.0 }
 0x446   :  { %v5276_v28 = vpack.c.bf16 %v5170_v33, %v5169_v20 }
 0x447   :  { %v5275_v31 = vpack.c.bf16 %v5168_v27, %v5167_v26  ;;  %v11727_v38 = vpop.f32.mrb[32].mxu0 }
 0x448   :  { %v4801_v40 = vadd.f32 %v11727_v38, %v14155_v16  ;;  %v4792_v22 = vpop.f32.mrb[33].mxu0 }
 0x449   :  { %v4793_v0 = vadd.f32 %v14155_v16, %v4792_v22  ;;  %v11728_v3 = vpop.f32.mrb[34].mxu0  ;;  %11865 = vmatprep.mubr.bf16.mxu1 %v5275_v31 }
 0x44a   :  { %v4804_v41 = vadd.f32 %v11728_v3, %v14155_v16  ;;  %v4795_v39 = vpop.f32.mrb[35].mxu0  ;;  %11866 = vmatmul.mubr.bf16.gmra.mrb[52].mxu1 %v5276_v28  ;;  %v5173_v44 = vmax.f32 %v4801_v40, 0.0 }
 0x44b   :  { %v4796_v53 = vadd.f32 %v14155_v16, %v4795_v39  ;;  %v5171_v46 = vmax.f32 %v4793_v0, 0.0 }
 0x44c   :  { %v5174_v45 = vmax.f32 %v4804_v41, 0.0 }
 0x44d   :  { %v5172_v47 = vmax.f32 %v4796_v53, 0.0 }
 0x44e   :  { %v5278_v48 = vpack.c.bf16 %v5174_v45, %v5173_v44 }
 0x44f   :  { %v5277_v6 = vpack.c.bf16 %v5172_v47, %v5171_v46  ;;  %v11731_v49 = vpop.f32.mrb[36].mxu0 }
 0x450   :  { %v4817_v7 = vadd.f32 %v11731_v49, %v14155_v16  ;;  %v4808_v25 = vpop.f32.mrb[37].mxu0 }
 0x451   :  { %v4809_v51 = vadd.f32 %v14155_v16, %v4808_v25  ;;  %v11732_v52 = vpop.f32.mrb[38].mxu0  ;;  %11869 = vmatprep.mubr.bf16.mxu1 %v5277_v6 }
 0x452   :  { %v4820_v42 = vadd.f32 %v11732_v52, %v14155_v16  ;;  %v4811_v54 = vpop.f32.mrb[39].mxu0  ;;  %11870 = vmatmul.mubr.bf16.gmra.mrb[56].mxu1 %v5278_v48  ;;  %v5177_v24 = vmax.f32 %v4817_v7, 0.0 }
 0x453   :  { %v4812_v55 = vadd.f32 %v14155_v16, %v4811_v54  ;;  %v5175_v56 = vmax.f32 %v4809_v51, 0.0 }
 0x454   :  { %v5178_v50 = vmax.f32 %v4820_v42, 0.0 }
 0x455   :  { %v5176_v58 = vmax.f32 %v4812_v55, 0.0 }
 0x456   :  { %v5280_v60 = vpack.c.bf16 %v5178_v50, %v5177_v24 }
 0x457   :  { %v5279_v61 = vpack.c.bf16 %v5176_v58, %v5175_v56  ;;  %v11735_v34 = vpop.f32.mrb[40].mxu0 }
 0x458   :  { %v4833_v62 = vadd.f32 %v11735_v34, %v14155_v16  ;;  %v4824_v35 = vpop.f32.mrb[41].mxu0 }
 0x459   :  { %v4825_v29 = vadd.f32 %v14155_v16, %v4824_v35  ;;  %v11736_v2 = vpop.f32.mrb[42].mxu0  ;;  %11873 = vmatprep.mubr.bf16.mxu1 %v5279_v61 }
 0x45a   :  { %v4836_v4 = vadd.f32 %v11736_v2, %v14155_v16  ;;  %v4827_v5 = vpop.f32.mrb[43].mxu0  ;;  %11874 = vmatmul.mubr.bf16.gmra.mrb[60].mxu1 %v5280_v60  ;;  %v5181_v8 = vmax.f32 %v4833_v62, 0.0 }
 0x45b   :  { %v4828_v57 = vadd.f32 %v14155_v16, %v4827_v5  ;;  %v5179_v10 = vmax.f32 %v4825_v29, 0.0 }
 0x45c   :  { %v5182_v9 = vmax.f32 %v4836_v4, 0.0 }
 0x45d   :  { %v5180_v12 = vmax.f32 %v4828_v57, 0.0 }
 0x45e   :  { %v5282_v36 = vpack.c.bf16 %v5182_v9, %v5181_v8 }
 0x45f   :  { %v5281_v13 = vpack.c.bf16 %v5180_v12, %v5179_v10  ;;  %v11739_v14 = vpop.f32.mrb[44].mxu0 }
 0x460   :  { %v4849_v15 = vadd.f32 %v11739_v14, %v14155_v16  ;;  %v4840_v17 = vpop.f32.mrb[45].mxu0 }
 0x461   :  { %v4841_v43 = vadd.f32 %v14155_v16, %v4840_v17  ;;  %v11740_v18 = vpop.f32.mrb[46].mxu0  ;;  %11877 = vmatprep.mubr.bf16.mxu1 %v5281_v13 }
 0x462   :  { %v4852_v19 = vadd.f32 %v11740_v18, %v14155_v16  ;;  %v4843_v20 = vpop.f32.mrb[47].mxu0  ;;  %11878 = vmatmul.mubr.bf16.gmra.mrb[64].mxu1 %v5282_v36  ;;  %v5185_v26 = vmax.f32 %v4849_v15, 0.0 }
 0x463   :  { %v4844_v33 = vadd.f32 %v14155_v16, %v4843_v20  ;;  %v5183_v28 = vmax.f32 %v4841_v43, 0.0 }
 0x464   :  { %v5186_v27 = vmax.f32 %v4852_v19, 0.0  ;;  %v12263_v19 = vld [vmem:[%s15231_s0] sm:$0xff]  }
 0x465   :  { %v5184_v31 = vmax.f32 %v4844_v33, 0.0  ;;  %11964 = vmatpush3.bf16.msra.mxu1 %v12263_v19 }
 0x466   :  { %v5284_v38 = vpack.c.bf16 %v5186_v27, %v5185_v26  ;;  %11965 = vmatprep.subr.bf16.mxu1 %v12678_v37 }
 0x467   :  { %v5283_v40 = vpack.c.bf16 %v5184_v31, %v5183_v28  ;;  %v11743_v22 = vpop.f32.mrb[48].mxu0 }
 0x468   :  { %v4865_v0 = vadd.f32 %v11743_v22, %v14155_v16  ;;  %v4856_v3 = vpop.f32.mrb[49].mxu0 }
 0x469   :  { %v4857_v41 = vadd.f32 %v14155_v16, %v4856_v3  ;;  %v11744_v39 = vpop.f32.mrb[50].mxu0  ;;  %11881 = vmatprep.mubr.bf16.mxu1 %v5283_v40 }
 0x46a   :  { %v4868_v53 = vadd.f32 %v11744_v39, %v14155_v16  ;;  %v4859_v44 = vpop.f32.mrb[51].mxu0  ;;  %11882 = vmatmul.mubr.bf16.gmra.mrb[68].mxu1 %v5284_v38  ;;  %v5189_v46 = vmax.f32 %v4865_v0, 0.0 }
 0x46b   :  { %v4860_v45 = vadd.f32 %v14155_v16, %v4859_v44  ;;  %v5187_v48 = vmax.f32 %v4857_v41, 0.0 }
 0x46c   :  { %v5190_v47 = vmax.f32 %v4868_v53, 0.0 }
 0x46d   :  { %v5188_v6 = vmax.f32 %v4860_v45, 0.0 }
 0x46e   :  { %v5286_v49 = vpack.c.bf16 %v5190_v47, %v5189_v46 }
 0x46f   :  { %v5285_v7 = vpack.c.bf16 %v5188_v6, %v5187_v48  ;;  %v11747_v25 = vpop.f32.mrb[52].mxu0 }
 0x470   :  { %v4881_v51 = vadd.f32 %v11747_v25, %v14155_v16  ;;  %v4872_v52 = vpop.f32.mrb[53].mxu0 }
 0x471   :  { %v4873_v42 = vadd.f32 %v14155_v16, %v4872_v52  ;;  %v11748_v54 = vpop.f32.mrb[54].mxu0  ;;  %11885 = vmatprep.mubr.bf16.mxu1 %v5285_v7 }
 0x472   :  { %v4884_v55 = vadd.f32 %v11748_v54, %v14155_v16  ;;  %v4875_v24 = vpop.f32.mrb[55].mxu0  ;;  %11886 = vmatmul.mubr.bf16.gmra.mrb[72].mxu1 %v5286_v49  ;;  %v5193_v56 = vmax.f32 %v4881_v51, 0.0 }
 0x473   :  { %v4876_v50 = vadd.f32 %v14155_v16, %v4875_v24  ;;  %v5191_v60 = vmax.f32 %v4873_v42, 0.0 }
 0x474   :  { %v5194_v58 = vmax.f32 %v4884_v55, 0.0 }
 0x475   :  { %v5192_v61 = vmax.f32 %v4876_v50, 0.0 }
 0x476   :  { %v5288_v34 = vpack.c.bf16 %v5194_v58, %v5193_v56 }
 0x477   :  { %v5287_v62 = vpack.c.bf16 %v5192_v61, %v5191_v60  ;;  %v11751_v35 = vpop.f32.mrb[56].mxu0 }
 0x478   :  { %v4897_v29 = vadd.f32 %v11751_v35, %v14155_v16  ;;  %v4888_v2 = vpop.f32.mrb[57].mxu0 }
 0x479   :  { %v4889_v4 = vadd.f32 %v14155_v16, %v4888_v2  ;;  %v11752_v5 = vpop.f32.mrb[58].mxu0  ;;  %11889 = vmatprep.mubr.bf16.mxu1 %v5287_v62 }
 0x47a   :  { %v4900_v57 = vadd.f32 %v11752_v5, %v14155_v16  ;;  %v4891_v8 = vpop.f32.mrb[59].mxu0  ;;  %11890 = vmatmul.mubr.bf16.gmra.mrb[76].mxu1 %v5288_v34  ;;  %v5197_v10 = vmax.f32 %v4897_v29, 0.0 }
 0x47b   :  { %v4892_v9 = vadd.f32 %v14155_v16, %v4891_v8  ;;  %v5195_v36 = vmax.f32 %v4889_v4, 0.0 }
 0x47c   :  { %v5198_v12 = vmax.f32 %v4900_v57, 0.0 }
 0x47d   :  { %v5196_v13 = vmax.f32 %v4892_v9, 0.0 }
 0x47e   :  { %v5290_v14 = vpack.c.bf16 %v5198_v12, %v5197_v10 }
 0x47f   :  { %v5289_v15 = vpack.c.bf16 %v5196_v13, %v5195_v36  ;;  %v11755_v17 = vpop.f32.mrb[60].mxu0 }
 0x480   :  { %v4913_v43 = vadd.f32 %v11755_v17, %v14155_v16  ;;  %v4904_v18 = vpop.f32.mrb[61].mxu0 }
 0x481   :  { %v4905_v20 = vadd.f32 %v14155_v16, %v4904_v18  ;;  %v11756_v33 = vpop.f32.mrb[62].mxu0  ;;  %11893 = vmatprep.mubr.bf16.mxu1 %v5289_v15 }
 0x482   :  { %v4916_v26 = vadd.f32 %v11756_v33, %v14155_v16  ;;  %v4907_v27 = vpop.f32.mrb[63].mxu0  ;;  %11894 = vmatmul.mubr.bf16.gmra.mrb[80].mxu1 %v5290_v14  ;;  %v5201_v31 = vmax.f32 %v4913_v43, 0.0  ;;  %v6215_v43 = vld [vmem:[%s15232_s5] sm:$0xff] }
 0x483   :  { %v4908_v28 = vadd.f32 %v14155_v16, %v4907_v27  ;;  %v5199_v40 = vmax.f32 %v4905_v20, 0.0  ;;  %11961 = vmatmul.mubr.msk.f32.vlgmr.msra.gmra.mrb[118].mxu0 %vm6240_vm13, %v6215_v43 }
 0x484   :  { %v5202_v38 = vmax.f32 %v4916_v26, 0.0  ;;  %11983 = vmatprep.mubr.msk.bf16.mxu0 %vm12679_vm12, %v12678_v37 }
 0x485   :  { %v5200_v22 = vmax.f32 %v4908_v28, 0.0 }
 0x486   :  { %v5292_v0 = vpack.c.bf16 %v5202_v38, %v5201_v31 }
 0x487   :  { %v5291_v3 = vpack.c.bf16 %v5200_v22, %v5199_v40  ;;  %v11759_v41 = vpop.f32.mrb[64].mxu0 }
 0x488   :  { %v4929_v39 = vadd.f32 %v11759_v41, %v14155_v16  ;;  %v4920_v53 = vpop.f32.mrb[65].mxu0 }
 0x489   :  { %v4921_v44 = vadd.f32 %v14155_v16, %v4920_v53  ;;  %v11760_v45 = vpop.f32.mrb[66].mxu0  ;;  %11897 = vmatprep.mubr.bf16.mxu1 %v5291_v3 }
 0x48a   :  { %v4932_v46 = vadd.f32 %v11760_v45, %v14155_v16  ;;  %v4923_v47 = vpop.f32.mrb[67].mxu0  ;;  %11898 = vmatmul.mubr.bf16.gmra.mrb[84].mxu1 %v5292_v0  ;;  %v5205_v6 = vmax.f32 %v4929_v39, 0.0 }
 0x48b   :  { %v4924_v48 = vadd.f32 %v14155_v16, %v4923_v47  ;;  %v5203_v7 = vmax.f32 %v4921_v44, 0.0 }
 0x48c   :  { %v5206_v49 = vmax.f32 %v4932_v46, 0.0 }
 0x48d   :  { %v5204_v25 = vmax.f32 %v4924_v48, 0.0 }
 0x48e   :  { %v5294_v51 = vpack.c.bf16 %v5206_v49, %v5205_v6 }
 0x48f   :  { %v5293_v52 = vpack.c.bf16 %v5204_v25, %v5203_v7  ;;  %v11763_v42 = vpop.f32.mrb[68].mxu0 }
 0x490   :  { %v4945_v54 = vadd.f32 %v11763_v42, %v14155_v16  ;;  %v4936_v55 = vpop.f32.mrb[69].mxu0 }
 0x491   :  { %v4937_v24 = vadd.f32 %v14155_v16, %v4936_v55  ;;  %v11764_v50 = vpop.f32.mrb[70].mxu0  ;;  %11901 = vmatprep.mubr.bf16.mxu1 %v5293_v52 }
 0x492   :  { %v4948_v56 = vadd.f32 %v11764_v50, %v14155_v16  ;;  %v4939_v58 = vpop.f32.mrb[71].mxu0  ;;  %11902 = vmatmul.mubr.bf16.gmra.mrb[88].mxu1 %v5294_v51  ;;  %v5209_v61 = vmax.f32 %v4945_v54, 0.0 }
 0x493   :  { %v4940_v60 = vadd.f32 %v14155_v16, %v4939_v58  ;;  %v5207_v62 = vmax.f32 %v4937_v24, 0.0 }
 0x494   :  { %v5210_v34 = vmax.f32 %v4948_v56, 0.0 }
 0x495   :  { %v5208_v35 = vmax.f32 %v4940_v60, 0.0 }
 0x496   :  { %v5296_v29 = vpack.c.bf16 %v5210_v34, %v5209_v61 }
 0x497   :  { %v5295_v2 = vpack.c.bf16 %v5208_v35, %v5207_v62  ;;  %v11767_v4 = vpop.f32.mrb[72].mxu0  ;;  %v14328_v62 = vld [vmem:[%s12760_s12] ss:$0 sm:$0xff]  ;;  %s15243_s12 = sld [smem:[#allocation6_spill]] }
 0x498   :  { %v4961_v5 = vadd.f32 %v11767_v4, %v14155_v16  ;;  %v4952_v57 = vpop.f32.mrb[73].mxu0 }
 0x499   :  { %v4953_v8 = vadd.f32 %v14155_v16, %v4952_v57  ;;  %v11768_v9 = vpop.f32.mrb[74].mxu0  ;;  %11905 = vmatprep.mubr.bf16.mxu1 %v5295_v2 }
 0x49a   :  { %v4964_v10 = vadd.f32 %v11768_v9, %v14155_v16  ;;  %v4955_v12 = vpop.f32.mrb[75].mxu0  ;;  %11906 = vmatmul.mubr.bf16.gmra.mrb[92].mxu1 %v5296_v29  ;;  %v5213_v13 = vmax.f32 %v4961_v5, 0.0 }
 0x49b   :  { %v4956_v36 = vadd.f32 %v14155_v16, %v4955_v12  ;;  %v5211_v15 = vmax.f32 %v4953_v8, 0.0 }
 0x49c   :  { %v5214_v14 = vmax.f32 %v4964_v10, 0.0 }
 0x49d   :  { %v5212_v17 = vmax.f32 %v4956_v36, 0.0 }
 0x49e   :  { %v5298_v18 = vpack.c.bf16 %v5214_v14, %v5213_v13 }
 0x49f   :  { %v5297_v19 = vpack.c.bf16 %v5212_v17, %v5211_v15  ;;  %v11771_v20 = vpop.f32.mrb[76].mxu0 }
 0x4a0   :  { %v4977_v33 = vadd.f32 %v11771_v20, %v14155_v16  ;;  %v4968_v26 = vpop.f32.mrb[77].mxu0 }
 0x4a1   :  { %v4969_v27 = vadd.f32 %v14155_v16, %v4968_v26  ;;  %v11772_v28 = vpop.f32.mrb[78].mxu0  ;;  %11909 = vmatprep.mubr.bf16.mxu1 %v5297_v19 }
 0x4a2   :  { %v4980_v31 = vadd.f32 %v11772_v28, %v14155_v16  ;;  %v4971_v38 = vpop.f32.mrb[79].mxu0  ;;  %11910 = vmatmul.mubr.bf16.gmra.mrb[96].mxu1 %v5298_v18  ;;  %v5217_v22 = vmax.f32 %v4977_v33, 0.0 }
 0x4a3   :  { %v4972_v40 = vadd.f32 %v14155_v16, %v4971_v38  ;;  %v5215_v3 = vmax.f32 %v4969_v27, 0.0 }
 0x4a4   :  { %v5218_v0 = vmax.f32 %v4980_v31, 0.0 }
 0x4a5   :  { %v5216_v41 = vmax.f32 %v4972_v40, 0.0 }
 0x4a6   :  { %v5300_v39 = vpack.c.bf16 %v5218_v0, %v5217_v22  ;;  %v12264_v0 = vld [vmem:[%s15231_s0 + $0x8] sm:$0xff]  }
 0x4a7   :  { %v5299_v53 = vpack.c.bf16 %v5216_v41, %v5215_v3  ;;  %v11775_v44 = vpop.f32.mrb[80].mxu0  ;;  %11966 = vmatpush3.bf16.msra.mxu1 %v12264_v0 }
 0x4a8   :  { %v4993_v45 = vadd.f32 %v11775_v44, %v14155_v16  ;;  %v4984_v46 = vpop.f32.mrb[81].mxu0  ;;  %11967 = vmatprep.subr.bf16.mxu1 %v12678_v37 }
 0x4a9   :  { %v4985_v47 = vadd.f32 %v14155_v16, %v4984_v46  ;;  %v11776_v48 = vpop.f32.mrb[82].mxu0  ;;  %11913 = vmatprep.mubr.bf16.mxu1 %v5299_v53 }
 0x4aa   :  { %v4996_v6 = vadd.f32 %v11776_v48, %v14155_v16  ;;  %v4987_v49 = vpop.f32.mrb[83].mxu0  ;;  %11914 = vmatmul.mubr.bf16.gmra.mrb[100].mxu1 %v5300_v39  ;;  %v5221_v25 = vmax.f32 %v4993_v45, 0.0 }
 0x4ab   :  { %v4988_v7 = vadd.f32 %v14155_v16, %v4987_v49  ;;  %v5219_v52 = vmax.f32 %v4985_v47, 0.0 }
 0x4ac   :  { %v5222_v51 = vmax.f32 %v4996_v6, 0.0 }
 0x4ad   :  { %v5220_v42 = vmax.f32 %v4988_v7, 0.0 }
 0x4ae   :  { %v5302_v54 = vpack.c.bf16 %v5222_v51, %v5221_v25 }
 0x4af   :  { %v5301_v55 = vpack.c.bf16 %v5220_v42, %v5219_v52  ;;  %v11779_v24 = vpop.f32.mrb[84].mxu0 }
 0x4b0   :  { %v5009_v50 = vadd.f32 %v11779_v24, %v14155_v16  ;;  %v5000_v56 = vpop.f32.mrb[85].mxu0 }
 0x4b1   :  { %v5001_v58 = vadd.f32 %v14155_v16, %v5000_v56  ;;  %v11780_v60 = vpop.f32.mrb[86].mxu0  ;;  %11917 = vmatprep.mubr.bf16.mxu1 %v5301_v55  ;;  %v14346_v55 = vld [vmem:[%s15233_s9] ss:$0 sm:$0xff] }
 0x4b2   :  { %v5012_v61 = vadd.f32 %v11780_v60, %v14155_v16  ;;  %v5003_v34 = vpop.f32.mrb[87].mxu0  ;;  %11918 = vmatmul.mubr.bf16.gmra.mrb[104].mxu1 %v5302_v54  ;;  %v5225_v29 = vmax.f32 %v5009_v50, 0.0 }
 0x4b3   :  { %v5004_v35 = vadd.f32 %v14328_v62, %v5003_v34  ;;  %v5223_v4 = vmax.f32 %v5001_v58, 0.0 }
 0x4b4   :  { %v5226_v2 = vmax.f32 %v5012_v61, 0.0 }
 0x4b5   :  { %v5224_v5 = vmax.f32 %v5004_v35, 0.0 }
 0x4b6   :  { %v5304_v57 = vpack.c.bf16 %v5226_v2, %v5225_v29 }
 0x4b7   :  { %v5303_v8 = vpack.c.bf16 %v5224_v5, %v5223_v4  ;;  %v11783_v9 = vpop.f32.mrb[88].mxu0 }
 0x4b8   :  { %v5025_v10 = vadd.f32 %v14328_v62, %v11783_v9  ;;  %v5016_v12 = vpop.f32.mrb[89].mxu0 }
 0x4b9   :  { %v5017_v36 = vadd.f32 %v14328_v62, %v5016_v12  ;;  %v11784_v13 = vpop.f32.mrb[90].mxu0  ;;  %11921 = vmatprep.mubr.bf16.mxu1 %v5303_v8 }
 0x4ba   :  { %v5028_v16 = vadd.f32 %v14328_v62, %v11784_v13  ;;  %v5019_v14 = vpop.f32.mrb[91].mxu0  ;;  %11922 = vmatmul.mubr.bf16.gmra.mrb[108].mxu1 %v5304_v57  ;;  %v5229_v17 = vmax.f32 %v5025_v10, 0.0 }
 0x4bb   :  { %v5020_v15 = vadd.f32 %v14328_v62, %v5019_v14  ;;  %v5227_v18 = vmax.f32 %v5017_v36, 0.0 }
 0x4bc   :  { %v5230_v43 = vmax.f32 %v5028_v16, 0.0 }
 0x4bd   :  { %v5228_v19 = vmax.f32 %v5020_v15, 0.0 }
 0x4be   :  { %v5306_v20 = vpack.c.bf16 %v5230_v43, %v5229_v17 }
 0x4bf   :  { %v5305_v33 = vpack.c.bf16 %v5228_v19, %v5227_v18  ;;  %v11787_v26 = vpop.f32.mrb[92].mxu0 }
 0x4c0   :  { %v5041_v27 = vadd.f32 %v14328_v62, %v11787_v26  ;;  %v5032_v28 = vpop.f32.mrb[93].mxu0 }
 0x4c1   :  { %v5033_v31 = vadd.f32 %v14328_v62, %v5032_v28  ;;  %v11788_v38 = vpop.f32.mrb[94].mxu0  ;;  %11925 = vmatprep.mubr.bf16.mxu1 %v5305_v33 }
 0x4c2   :  { %v5044_v40 = vadd.f32 %v14328_v62, %v11788_v38  ;;  %v5035_v22 = vpop.f32.mrb[95].mxu0  ;;  %11926 = vmatmul.mubr.bf16.gmra.mrb[112].mxu1 %v5306_v20  ;;  %v5233_v41 = vmax.f32 %v5041_v27, 0.0 }
 0x4c3   :  { %v5036_v3 = vadd.f32 %v14328_v62, %v5035_v22  ;;  %v5231_v53 = vmax.f32 %v5033_v31, 0.0 }
 0x4c4   :  { %v5234_v39 = vmax.f32 %v5044_v40, 0.0 }
 0x4c5   :  { %v5232_v44 = vmax.f32 %v5036_v3, 0.0 }
 0x4c6   :  { %v5308_v45 = vpack.c.bf16 %v5234_v39, %v5233_v41 }
 0x4c7   :  { %v5307_v46 = vpack.c.bf16 %v5232_v44, %v5231_v53  ;;  %v11791_v47 = vpop.f32.mrb[96].mxu0 }
 0x4c8   :  { %v5057_v48 = vadd.f32 %v14328_v62, %v11791_v47  ;;  %v5048_v6 = vpop.f32.mrb[97].mxu0 }
 0x4c9   :  { %v5049_v49 = vadd.f32 %v14328_v62, %v5048_v6  ;;  %v11792_v7 = vpop.f32.mrb[98].mxu0  ;;  %11929 = vmatprep.mubr.bf16.mxu1 %v5307_v46 }
 0x4ca   :  { %v5060_v25 = vadd.f32 %v14328_v62, %v11792_v7  ;;  %v5051_v51 = vpop.f32.mrb[99].mxu0  ;;  %11930 = vmatmul.mubr.bf16.gmra.mrb[116].mxu1 %v5308_v45  ;;  %v5237_v42 = vmax.f32 %v5057_v48, 0.0 }
 0x4cb   :  { %v5052_v52 = vadd.f32 %v14328_v62, %v5051_v51  ;;  %v5235_v24 = vmax.f32 %v5049_v49, 0.0 }
 0x4cc   :  { %v5238_v54 = vmax.f32 %v5060_v25, 0.0 }
 0x4cd   :  { %v5236_v50 = vmax.f32 %v5052_v52, 0.0  ;;  %v11827_v56 = vpop.f32.mrb[12].mxu1 }
 0x4ce   :  { %v5310_v58 = vpack.c.bf16 %v5238_v54, %v5237_v42  ;;  %v5407_v60 = vpop.f32.mrb[13].mxu1  ;;  %v5416_v57 = vadd.f32 %v11827_v56, %v14346_v55 }
 0x4cf   :  { %v5309_v61 = vpack.c.bf16 %v5236_v50, %v5235_v24  ;;  %v5408_v34 = vadd.f32 %v14346_v55, %v5407_v60  ;;  %v11795_v35 = vpop.f32.mrb[100].mxu0  ;;  %v11828_v29 = vpop.f32.mrb[14].mxu1 }
 0x4d0   :  { %v5073_v2 = vadd.f32 %v14328_v62, %v11795_v35  ;;  %v5064_v4 = vpop.f32.mrb[101].mxu0  ;;  %v5410_v5 = vpop.f32.mrb[15].mxu1  ;;  %v5419_v16 = vadd.f32 %v11828_v29, %v14346_v55  ;;  %v5921_v19 = vsel %vm1376_vm3, %v5416_v57, -inf }
 0x4d1   :  { %v5065_v8 = vadd.f32 %v14328_v62, %v5064_v4  ;;  %v5411_v9 = vadd.f32 %v14346_v55, %v5410_v5  ;;  %v11796_v10 = vpop.f32.mrb[102].mxu0  ;;  %11933 = vmatprep.mubr.bf16.mxu1 %v5309_v61  ;;  %v5918_v13 = vsel %vm1376_vm3, %v5408_v34, -inf }
 0x4d2   :  { %v5076_v12 = vadd.f32 %v14328_v62, %v11796_v10  ;;  %v5067_v36 = vpop.f32.mrb[103].mxu0  ;;  %11934 = vmatmul.mubr.bf16.gmra.mrb[120].mxu1 %v5310_v58  ;;  %v5241_v17 = vmax.f32 %v5073_v2, 0.0  ;;  %v5923_v38 = vsel %vm1376_vm3, %v5419_v16, -inf }
 0x4d3   :  { %v5919_v14 = vsel %vm1376_vm3, %v5411_v9, -inf  ;;  %v5068_v15 = vadd.f32 %v14328_v62, %v5067_v36  ;;  %v5239_v20 = vmax.f32 %v5065_v8, 0.0 }
 0x4d4   :  { %v5920_v43 = vmax.f32 %v5918_v13, %v5919_v14  ;;  %v5242_v18 = vmax.f32 %v5076_v12, 0.0 }
 0x4d5   :  { %v5240_v33 = vmax.f32 %v5068_v15, 0.0  ;;  %v11831_v26 = vpop.f32.mrb[16].mxu1 }
 0x4d6   :  { %v5922_v27 = vmax.f32 %v5920_v43, %v5921_v19  ;;  %v5312_v28 = vpack.c.bf16 %v5242_v18, %v5241_v17  ;;  %v5423_v31 = vpop.f32.mrb[17].mxu1  ;;  %v5432_v45 = vadd.f32 %v11831_v26, %v14346_v55 }
 0x4d7   :  { %v5311_v40 = vpack.c.bf16 %v5240_v33, %v5239_v20  ;;  %v5424_v22 = vadd.f32 %v14346_v55, %v5423_v31  ;;  %v11799_v0 = vpop.f32.mrb[104].mxu0  ;;  %v11832_v3 = vpop.f32.mrb[18].mxu1 }
 0x4d8   :  { %v5924_v41 = vmax.f32 %v5922_v27, %v5923_v38  ;;  %v5089_v39 = vadd.f32 %v14328_v62, %v11799_v0  ;;  %v5080_v53 = vpop.f32.mrb[105].mxu0  ;;  %v5426_v44 = vpop.f32.mrb[19].mxu1  ;;  %v5435_v51 = vadd.f32 %v11832_v3, %v14346_v55  ;;  %v5929_v56 = vsel %vm1376_vm3, %v5432_v45, -inf }
 0x4d9   :  { %v5925_v46 = vsel %vm1376_vm3, %v5424_v22, -inf  ;;  %v5081_v47 = vadd.f32 %v14328_v62, %v5080_v53  ;;  %v5427_v48 = vadd.f32 %v14346_v55, %v5426_v44  ;;  %v11800_v6 = vpop.f32.mrb[106].mxu0  ;;  %11937 = vmatprep.mubr.bf16.mxu1 %v5311_v40 }
 0x4da   :  { %v5926_v49 = vmax.f32 %v5924_v41, %v5925_v46  ;;  %v5092_v7 = vadd.f32 %v14328_v62, %v11800_v6  ;;  %v5083_v25 = vpop.f32.mrb[107].mxu0  ;;  %11938 = vmatmul.mubr.bf16.gmra.mrb[124].mxu1 %v5312_v28  ;;  %v5245_v54 = vmax.f32 %v5089_v39, 0.0  ;;  %v5931_v2 = vsel %vm1376_vm3, %v5435_v51, -inf }
 0x4db   :  { %v5927_v52 = vsel %vm1376_vm3, %v5427_v48, -inf  ;;  %v5084_v42 = vadd.f32 %v14328_v62, %v5083_v25  ;;  %v5243_v58 = vmax.f32 %v5081_v47, 0.0 }
 0x4dc   :  { %v5928_v24 = vmax.f32 %v5926_v49, %v5927_v52  ;;  %v5246_v50 = vmax.f32 %v5092_v7, 0.0 }
 0x4dd   :  { %v5244_v60 = vmax.f32 %v5084_v42, 0.0  ;;  %v11835_v61 = vpop.f32.mrb[20].mxu1 }
 0x4de   :  { %v5930_v34 = vmax.f32 %v5928_v24, %v5929_v56  ;;  %v5314_v35 = vpack.c.bf16 %v5246_v50, %v5245_v54  ;;  %v5439_v29 = vpop.f32.mrb[21].mxu1  ;;  %v5448_v13 = vadd.f32 %v11835_v61, %v14346_v55 }
 0x4df   :  { %v5313_v4 = vpack.c.bf16 %v5244_v60, %v5243_v58  ;;  %v5440_v5 = vadd.f32 %v14346_v55, %v5439_v29  ;;  %v11803_v57 = vpop.f32.mrb[108].mxu0  ;;  %v11836_v8 = vpop.f32.mrb[22].mxu1 }
 0x4e0   :  { %v5932_v9 = vmax.f32 %v5930_v34, %v5931_v2  ;;  %v5105_v10 = vadd.f32 %v14328_v62, %v11803_v57  ;;  %v5096_v12 = vpop.f32.mrb[109].mxu0  ;;  %v5442_v36 = vpop.f32.mrb[23].mxu1  ;;  %v5451_v20 = vadd.f32 %v11836_v8, %v14346_v55  ;;  %v5937_v38 = vsel %vm1376_vm3, %v5448_v13, -inf }
 0x4e1   :  { %v5933_v16 = vsel %vm1376_vm3, %v5440_v5, -inf  ;;  %v5097_v14 = vadd.f32 %v14328_v62, %v5096_v12  ;;  %v5443_v15 = vadd.f32 %v14346_v55, %v5442_v36  ;;  %v11804_v17 = vpop.f32.mrb[110].mxu0  ;;  %11941 = vmatprep.mubr.bf16.mxu1 %v5313_v4 }
 0x4e2   :  { %v5934_v43 = vmax.f32 %v5932_v9, %v5933_v16  ;;  %v5108_v18 = vadd.f32 %v14328_v62, %v11804_v17  ;;  %v5099_v19 = vpop.f32.mrb[111].mxu0  ;;  %11942 = vmatmul.mubr.bf16.gmra.mrb[128].mxu1 %v5314_v35  ;;  %v5249_v27 = vmax.f32 %v5105_v10, 0.0  ;;  %v5939_v53 = vsel %vm1376_vm3, %v5451_v20, -inf }
 0x4e3   :  { %v5935_v33 = vsel %vm1376_vm3, %v5443_v15, -inf  ;;  %v5100_v26 = vadd.f32 %v14328_v62, %v5099_v19  ;;  %v5247_v40 = vmax.f32 %v5097_v14, 0.0 }
 0x4e4   :  { %v5936_v28 = vmax.f32 %v5934_v43, %v5935_v33  ;;  %v5250_v31 = vmax.f32 %v5108_v18, 0.0 }
 0x4e5   :  { %v5248_v22 = vmax.f32 %v5100_v26, 0.0  ;;  %v11839_v0 = vpop.f32.mrb[24].mxu1 }
 0x4e6   :  { %v5938_v3 = vmax.f32 %v5936_v28, %v5937_v38  ;;  %v5316_v41 = vpack.c.bf16 %v5250_v31, %v5249_v27  ;;  %v5455_v39 = vpop.f32.mrb[25].mxu1  ;;  %v5464_v25 = vadd.f32 %v11839_v0, %v14346_v55 }
 0x4e7   :  { %v5315_v44 = vpack.c.bf16 %v5248_v22, %v5247_v40  ;;  %v5456_v45 = vadd.f32 %v14346_v55, %v5455_v39  ;;  %v11807_v46 = vpop.f32.mrb[112].mxu0  ;;  %v11840_v47 = vpop.f32.mrb[26].mxu1 }
 0x4e8   :  { %v5940_v48 = vmax.f32 %v5938_v3, %v5939_v53  ;;  %v5121_v6 = vadd.f32 %v14328_v62, %v11807_v46  ;;  %v5112_v49 = vpop.f32.mrb[113].mxu0  ;;  %v5458_v7 = vpop.f32.mrb[27].mxu1  ;;  %v5467_v58 = vadd.f32 %v11840_v47, %v14346_v55  ;;  %v5945_v2 = vsel %vm1376_vm3, %v5464_v25, -inf }
 0x4e9   :  { %v5941_v51 = vsel %vm1376_vm3, %v5456_v45, -inf  ;;  %v5113_v52 = vadd.f32 %v14328_v62, %v5112_v49  ;;  %v5459_v42 = vadd.f32 %v14346_v55, %v5458_v7  ;;  %v11808_v54 = vpop.f32.mrb[114].mxu0  ;;  %11945 = vmatprep.mubr.bf16.mxu1 %v5315_v44 }
 0x4ea   :  { %v5942_v24 = vmax.f32 %v5940_v48, %v5941_v51  ;;  %v5124_v50 = vadd.f32 %v14328_v62, %v11808_v54  ;;  %v5115_v56 = vpop.f32.mrb[115].mxu0  ;;  %11946 = vmatmul.mubr.bf16.gmra.mrb[132].mxu1 %v5316_v41  ;;  %v5253_v34 = vmax.f32 %v5121_v6, 0.0  ;;  %v5947_v12 = vsel %vm1376_vm3, %v5467_v58, -inf  ;;  %v12265_v58 = vld [vmem:[%s15231_s0 + $0x10] sm:$0xff]  }
 0x4eb   :  { %v5943_v60 = vsel %vm1376_vm3, %v5459_v42, -inf  ;;  %v5116_v61 = vadd.f32 %v14328_v62, %v5115_v56  ;;  %v5251_v4 = vmax.f32 %v5113_v52, 0.0  ;;  %11968 = vmatpush3.bf16.msra.mxu1 %v12265_v58 }
 0x4ec   :  { %v5944_v35 = vmax.f32 %v5942_v24, %v5943_v60  ;;  %v5254_v29 = vmax.f32 %v5124_v50, 0.0  ;;  %11969 = vmatprep.subr.bf16.mxu1 %v12678_v37 }
 0x4ed   :  { %v5252_v5 = vmax.f32 %v5116_v61, 0.0  ;;  %v11843_v57 = vpop.f32.mrb[28].mxu1 }
 0x4ee   :  { %v5946_v8 = vmax.f32 %v5944_v35, %v5945_v2  ;;  %v5318_v9 = vpack.c.bf16 %v5254_v29, %v5253_v34  ;;  %v5471_v10 = vpop.f32.mrb[29].mxu1  ;;  %v5480_v62 = vadd.f32 %v11843_v57, %v14346_v55 }
 0x4ef   :  { %v5317_v36 = vpack.c.bf16 %v5252_v5, %v5251_v4  ;;  %v5472_v13 = vadd.f32 %v14346_v55, %v5471_v10  ;;  %v11844_v16 = vpop.f32.mrb[30].mxu1 }
 0x4f0   :  { %v5948_v14 = vmax.f32 %v5946_v8, %v5947_v12  ;;  %v5474_v15 = vpop.f32.mrb[31].mxu1  ;;  %v5483_v18 = vadd.f32 %v11844_v16, %v14346_v55  ;;  %v5958_v33 = vsel %vm1376_vm3, %v5480_v62, -inf }
 0x4f1   :  { %v5475_v17 = vadd.f32 %v14346_v55, %v5474_v15  ;;  %11949 = vmatprep.mubr.bf16.mxu1 %v5317_v36  ;;  %v5955_v43 = vsel %vm1376_vm3, %v5472_v13, -inf }
 0x4f2   :  { %11950 = vmatmul.mubr.bf16.gmra.mrb[136].mxu1 %v5318_v9  ;;  %v5960_v31 = vsel %vm1376_vm3, %v5483_v18, -inf  ;;  %v5949_v34 = vrot.slane %v5948_v14, 4 }
 0x4f3   :  { %v5956_v19 = vsel %vm1376_vm3, %v5475_v17, -inf  ;;  %11971 = vmatprep.mubr.msk.bf16.mxu1 %vm12679_vm12, %v12678_v37 }
 0x4f4   :  { %v5957_v20 = vmax.f32 %v5955_v43, %v5956_v19  ;;  %v5950_v10 = vmax.f32 %v5948_v14, %v5949_v34 }
 0x4f5   :  { %v11847_v26 = vpop.f32.mrb[32].mxu1 }
 0x4f6   :  { %v5959_v27 = vmax.f32 %v5957_v20, %v5958_v33  ;;  %v5487_v28 = vpop.f32.mrb[33].mxu1  ;;  %v5496_v3 = vadd.f32 %v11847_v26, %v14346_v55  ;;  %v5951_v18 = vrot.slane %v5950_v10, 2 }
 0x4f7   :  { %v5488_v38 = vadd.f32 %v14346_v55, %v5487_v28  ;;  %v11848_v40 = vpop.f32.mrb[34].mxu1 }
 0x4f8   :  { %v5961_v22 = vmax.f32 %v5959_v27, %v5960_v31  ;;  %v5490_v0 = vpop.f32.mrb[35].mxu1  ;;  %v5499_v44 = vadd.f32 %v11848_v40, %v14346_v55  ;;  %v5966_v47 = vsel %vm1376_vm3, %v5496_v3, -inf }
 0x4f9   :  { %v5962_v41 = vsel %vm1376_vm3, %v5488_v38, -inf  ;;  %v5491_v39 = vadd.f32 %v14346_v55, %v5490_v0  ;;  %v5952_v38 = vmax.f32 %v5950_v10, %v5951_v18 }
 0x4fa   :  { %v5963_v53 = vmax.f32 %v5961_v22, %v5962_v41  ;;  %v5968_v7 = vsel %vm1376_vm3, %v5499_v44, -inf }
 0x4fb   :  { %v5964_v45 = vsel %vm1376_vm3, %v5491_v39, -inf }
 0x4fc   :  { %v5965_v46 = vmax.f32 %v5963_v53, %v5964_v45  ;;  %v5953_v45 = vrot.slane %v5952_v38, 1 }
 0x4fd   :  { %v11851_v48 = vpop.f32.mrb[36].mxu1 }
 0x4fe   :  { %v5967_v6 = vmax.f32 %v5965_v46, %v5966_v47  ;;  %v5503_v49 = vpop.f32.mrb[37].mxu1  ;;  %v5512_v54 = vadd.f32 %v11851_v48, %v14346_v55 }
 0x4ff   :  { %v5504_v25 = vadd.f32 %v14346_v55, %v5503_v49  ;;  %v11852_v51 = vpop.f32.mrb[38].mxu1 }
 0x500   :  { %v5969_v52 = vmax.f32 %v5967_v6, %v5968_v7  ;;  %v5506_v42 = vpop.f32.mrb[39].mxu1  ;;  %v5515_v60 = vadd.f32 %v11852_v51, %v14346_v55  ;;  %v5974_v29 = vsel %vm1376_vm3, %v5512_v54, -inf  ;;  %v5954_v54 = vmax.f32 %v5952_v38, %v5953_v45 }
 0x501   :  { %v5970_v24 = vsel %vm1376_vm3, %v5504_v25, -inf  ;;  %v5507_v50 = vadd.f32 %v14346_v55, %v5506_v42 }
 0x502   :  { %v5971_v56 = vmax.f32 %v5969_v52, %v5970_v24  ;;  %v5976_v57 = vsel %vm1376_vm3, %v5515_v60, -inf }
 0x503   :  { %v5972_v61 = vsel %vm1376_vm3, %v5507_v50, -inf }
 0x504   :  { %v5973_v35 = vmax.f32 %v5971_v56, %v5972_v61 }
 0x505   :  { %v11855_v2 = vpop.f32.mrb[40].mxu1 }
 0x506   :  { %v5975_v4 = vmax.f32 %v5973_v35, %v5974_v29  ;;  %v5519_v5 = vpop.f32.mrb[41].mxu1  ;;  %v5528_v13 = vadd.f32 %v11855_v2, %v14346_v55 }
 0x507   :  { %v5520_v8 = vadd.f32 %v14346_v55, %v5519_v5  ;;  %v11856_v9 = vpop.f32.mrb[42].mxu1 }
 0x508   :  { %v5977_v12 = vmax.f32 %v5975_v4, %v5976_v57  ;;  %v5522_v36 = vpop.f32.mrb[43].mxu1  ;;  %v5531_v17 = vadd.f32 %v11856_v9, %v14346_v55  ;;  %v5982_v20 = vsel %vm1376_vm3, %v5528_v13, -inf  ;;  %v6404_v4 = vpack.c.bf16 %v5954_v54, %v5954_v54 }
 0x509   :  { %v5978_v16 = vsel %vm1376_vm3, %v5520_v8, -inf  ;;  %v5523_v15 = vadd.f32 %v14346_v55, %v5522_v36 }
 0x50a   :  { %v5979_v62 = vmax.f32 %v5977_v12, %v5978_v16  ;;  %v5984_v27 = vsel %vm1376_vm3, %v5531_v17, -inf }
 0x50b   :  { %v5980_v43 = vsel %vm1376_vm3, %v5523_v15, -inf }
 0x50c   :  { %v5981_v19 = vmax.f32 %v5979_v62, %v5980_v43  ;;  %v6420_v62 = vunpack.c.l.b16 %v6404_v4 }
 0x50d   :  { %v11859_v33 = vpop.f32.mrb[44].mxu1 }
 0x50e   :  { %v5983_v26 = vmax.f32 %v5981_v19, %v5982_v20  ;;  %v5535_v14 = vpop.f32.mrb[45].mxu1  ;;  %v5544_v0 = vadd.f32 %v11859_v33, %v14346_v55 }
 0x50f   :  { %v5536_v28 = vadd.f32 %v14346_v55, %v5535_v14  ;;  %v11860_v31 = vpop.f32.mrb[46].mxu1 }
 0x510   :  { %v5985_v40 = vmax.f32 %v5983_v26, %v5984_v27  ;;  %v5538_v22 = vpop.f32.mrb[47].mxu1  ;;  %v5547_v53 = vadd.f32 %v11860_v31, %v14346_v55  ;;  %v5995_v48 = vsel %vm1376_vm3, %v5544_v0, -inf }
 0x511   :  { %v5539_v3 = vadd.f32 %v14346_v55, %v5538_v22  ;;  %v5992_v39 = vsel %vm1376_vm3, %v5536_v28, -inf }
 0x512   :  { %v5986_v41 = vrot.slane %v5985_v40, 4  ;;  %v5997_v51 = vsel %vm1376_vm3, %v5547_v53, -inf }
 0x513   :  { %v5993_v44 = vsel %vm1376_vm3, %v5539_v3, -inf }
 0x514   :  { %v5987_v46 = vmax.f32 %v5985_v40, %v5986_v41  ;;  %v5994_v47 = vmax.f32 %v5992_v39, %v5993_v44 }
 0x515   :  { %v11863_v6 = vpop.f32.mrb[48].mxu1 }
 0x516   :  { %v5988_v49 = vrot.slane %v5987_v46, 2  ;;  %v5996_v7 = vmax.f32 %v5994_v47, %v5995_v48  ;;  %v5551_v25 = vpop.f32.mrb[49].mxu1  ;;  %v5560_v58 = vadd.f32 %v11863_v6, %v14346_v55 }
 0x517   :  { %v5552_v52 = vadd.f32 %v14346_v55, %v5551_v25  ;;  %v11864_v42 = vpop.f32.mrb[50].mxu1 }
 0x518   :  { %v5989_v24 = vmax.f32 %v5987_v46, %v5988_v49  ;;  %v5998_v50 = vmax.f32 %v5996_v7, %v5997_v51  ;;  %v5554_v56 = vpop.f32.mrb[51].mxu1  ;;  %v5563_v29 = vadd.f32 %v11864_v42, %v14346_v55  ;;  %v6003_v8 = vsel %vm1376_vm3, %v5560_v58, -inf }
 0x519   :  { %v5999_v60 = vsel %vm1376_vm3, %v5552_v52, -inf  ;;  %v5555_v61 = vadd.f32 %v14346_v55, %v5554_v56 }
 0x51a   :  { %v5990_v34 = vrot.slane %v5989_v24, 1  ;;  %v6000_v35 = vmax.f32 %v5998_v50, %v5999_v60  ;;  %v6005_v13 = vsel %vm1376_vm3, %v5563_v29, -inf }
 0x51b   :  { %v6001_v2 = vsel %vm1376_vm3, %v5555_v61, -inf }
 0x51c   :  { %v5991_v5 = vmax.f32 %v5989_v24, %v5990_v34  ;;  %v6002_v57 = vmax.f32 %v6000_v35, %v6001_v2 }
 0x51d   :  { %v11867_v9 = vpop.f32.mrb[52].mxu1 }
 0x51e   :  { %v6405_v10 = vpack.c.bf16 %v5991_v5, %v5991_v5  ;;  %v6004_v12 = vmax.f32 %v6002_v57, %v6003_v8  ;;  %v5567_v36 = vpop.f32.mrb[53].mxu1  ;;  %v5576_v19 = vadd.f32 %v11867_v9, %v14346_v55 }
 0x51f   :  { %v5568_v16 = vadd.f32 %v14346_v55, %v5567_v36  ;;  %v11868_v15 = vpop.f32.mrb[54].mxu1 }
 0x520   :  { %v6421_v17 = vunpack.c.l.b16 %v6405_v10  ;;  %v6006_v43 = vmax.f32 %v6004_v12, %v6005_v13  ;;  %v5570_v18 = vpop.f32.mrb[55].mxu1  ;;  %v5579_v27 = vadd.f32 %v11868_v15, %v14346_v55  ;;  %v6011_v38 = vsel %vm1376_vm3, %v5576_v19, -inf }
 0x521   :  { %v6007_v20 = vsel %vm1376_vm3, %v5568_v16, -inf  ;;  %v5571_v33 = vadd.f32 %v14346_v55, %v5570_v18 }
 0x522   :  { %v14453_v26 = vsel %vm6225_vm5, %v6421_v17, %v6420_v62  ;;  %v6008_v14 = vmax.f32 %v6006_v43, %v6007_v20  ;;  %v6013_v3 = vsel %vm1376_vm3, %v5579_v27, -inf }
 0x523   :  { %v6009_v28 = vsel %vm1376_vm3, %v5571_v33, -inf }
 0x524   :  { %v6010_v31 = vmax.f32 %v6008_v14, %v6009_v28 }
 0x525   :  { %v11871_v40 = vpop.f32.mrb[56].mxu1 }
 0x526   :  { %v6012_v22 = vmax.f32 %v6010_v31, %v6011_v38  ;;  %v5583_v0 = vpop.f32.mrb[57].mxu1  ;;  %v5592_v45 = vadd.f32 %v11871_v40, %v14346_v55 }
 0x527   :  { %v5584_v41 = vadd.f32 %v14346_v55, %v5583_v0  ;;  %v11872_v39 = vpop.f32.mrb[58].mxu1 }
 0x528   :  { %v6014_v53 = vmax.f32 %v6012_v22, %v6013_v3  ;;  %v5586_v44 = vpop.f32.mrb[59].mxu1  ;;  %v5595_v6 = vadd.f32 %v11872_v39, %v14346_v55  ;;  %v6019_v25 = vsel %vm1376_vm3, %v5592_v45, -inf }
 0x529   :  { %v6015_v46 = vsel %vm1376_vm3, %v5584_v41, -inf  ;;  %v5587_v47 = vadd.f32 %v14346_v55, %v5586_v44 }
 0x52a   :  { %v6016_v48 = vmax.f32 %v6014_v53, %v6015_v46  ;;  %v6021_v54 = vsel %vm1376_vm3, %v5595_v6, -inf }
 0x52b   :  { %v6017_v49 = vsel %vm1376_vm3, %v5587_v47, -inf }
 0x52c   :  { %v6018_v7 = vmax.f32 %v6016_v48, %v6017_v49 }
 0x52d   :  { %v11875_v51 = vpop.f32.mrb[60].mxu1 }
 0x52e   :  { %v6020_v52 = vmax.f32 %v6018_v7, %v6019_v25  ;;  %v5599_v42 = vpop.f32.mrb[61].mxu1  ;;  %v5608_v60 = vadd.f32 %v11875_v51, %v14346_v55  ;;  %v12266_v25 = vld [vmem:[%s15231_s0 + $0x18] sm:$0xff]  }
 0x52f   :  { %v5600_v24 = vadd.f32 %v14346_v55, %v5599_v42  ;;  %v11876_v50 = vpop.f32.mrb[62].mxu1  ;;  %11970 = vmatpush3.bf16.msra.mxu1 %v12266_v25 }
 0x530   :  { %v6022_v56 = vmax.f32 %v6020_v52, %v6021_v54  ;;  %v5602_v58 = vpop.f32.mrb[63].mxu1  ;;  %v5611_v29 = vadd.f32 %v11876_v50, %v14346_v55  ;;  %v6032_v57 = vsel %vm1376_vm3, %v5608_v60, -inf  ;;  %11987 = vmatprep.subr.bf16.mxu1 %v12678_v37 }
 0x531   :  { %v5603_v61 = vadd.f32 %v14346_v55, %v5602_v58  ;;  %v6029_v35 = vsel %vm1376_vm3, %v5600_v24, -inf }
 0x532   :  { %v6023_v34 = vrot.slane %v6022_v56, 4  ;;  %v6034_v36 = vsel %vm1376_vm3, %v5611_v29, -inf }
 0x533   :  { %v6030_v2 = vsel %vm1376_vm3, %v5603_v61, -inf }
 0x534   :  { %v6024_v4 = vmax.f32 %v6022_v56, %v6023_v34  ;;  %v6031_v5 = vmax.f32 %v6029_v35, %v6030_v2 }
 0x535   :  { %v11879_v8 = vpop.f32.mrb[64].mxu1 }
 0x536   :  { %v6025_v9 = vrot.slane %v6024_v4, 2  ;;  %v6033_v10 = vmax.f32 %v6031_v5, %v6032_v57  ;;  %v5615_v12 = vpop.f32.mrb[65].mxu1  ;;  %v5624_v43 = vadd.f32 %v11879_v8, %v14346_v55 }
 0x537   :  { %v5616_v13 = vadd.f32 %v14346_v55, %v5615_v12  ;;  %v11880_v16 = vpop.f32.mrb[66].mxu1 }
 0x538   :  { %v6026_v15 = vmax.f32 %v6024_v4, %v6025_v9  ;;  %v6035_v62 = vmax.f32 %v6033_v10, %v6034_v36  ;;  %v5618_v17 = vpop.f32.mrb[67].mxu1  ;;  %v5627_v14 = vadd.f32 %v11880_v16, %v14346_v55  ;;  %v6040_v38 = vsel %vm1376_vm3, %v5624_v43, -inf }
 0x539   :  { %v6036_v18 = vsel %vm1376_vm3, %v5616_v13, -inf  ;;  %v5619_v19 = vadd.f32 %v14346_v55, %v5618_v17 }
 0x53a   :  { %v6027_v20 = vrot.slane %v6026_v15, 1  ;;  %v6037_v33 = vmax.f32 %v6035_v62, %v6036_v18  ;;  %v6042_v41 = vsel %vm1376_vm3, %v5627_v14, -inf }
 0x53b   :  { %v6038_v27 = vsel %vm1376_vm3, %v5619_v19, -inf }
 0x53c   :  { %v6028_v28 = vmax.f32 %v6026_v15, %v6027_v20  ;;  %v6039_v31 = vmax.f32 %v6037_v33, %v6038_v27 }
 0x53d   :  { %v11883_v40 = vpop.f32.mrb[68].mxu1 }
 0x53e   :  { %v6406_v22 = vpack.c.bf16 %v6028_v28, %v6028_v28  ;;  %v6041_v0 = vmax.f32 %v6039_v31, %v6040_v38  ;;  %v5631_v3 = vpop.f32.mrb[69].mxu1  ;;  %v5640_v47 = vadd.f32 %v11883_v40, %v14346_v55  ;;  %v12267_v40 = vld [vmem:[%s15234_s25] sm:$0xff]  }
 0x53f   :  { %v5632_v39 = vadd.f32 %v14346_v55, %v5631_v3  ;;  %v11884_v53 = vpop.f32.mrb[70].mxu1  ;;  %11976 = vmatpush3.bf16.msra.mxu0 %v12267_v40 }
 0x540   :  { %v6422_v44 = vunpack.c.l.b16 %v6406_v22  ;;  %v6043_v45 = vmax.f32 %v6041_v0, %v6042_v41  ;;  %v5634_v46 = vpop.f32.mrb[71].mxu1  ;;  %v5643_v51 = vadd.f32 %v11884_v53, %v14346_v55  ;;  %v6048_v54 = vsel %vm1376_vm3, %v5640_v47, -inf  ;;  %11977 = vmatprep.subr.bf16.mxu0 %v12678_v37 }
 0x541   :  { %v6044_v48 = vsel %vm1376_vm3, %v5632_v39, -inf  ;;  %v5635_v6 = vadd.f32 %v14346_v55, %v5634_v46 }
 0x542   :  { %v14489_v49 = vsel %vm6227_vm6, %v6422_v44, %v14453_v26  ;;  %v6045_v7 = vmax.f32 %v6043_v45, %v6044_v48  ;;  %v6050_v58 = vsel %vm1376_vm3, %v5643_v51, -inf }
 0x543   :  { %v6046_v52 = vsel %vm1376_vm3, %v5635_v6, -inf }
 0x544   :  { %v6047_v42 = vmax.f32 %v6045_v7, %v6046_v52  ;;  %v12268_v7 = vld [vmem:[%s15234_s25 + $0x8] sm:$0xff]  }
 0x545   :  { %v11887_v24 = vpop.f32.mrb[72].mxu1  ;;  %11978 = vmatpush3.bf16.msra.mxu0 %v12268_v7 }
 0x546   :  { %v6049_v50 = vmax.f32 %v6047_v42, %v6048_v54  ;;  %v5647_v56 = vpop.f32.mrb[73].mxu1  ;;  %v5656_v35 = vadd.f32 %v11887_v24, %v14346_v55  ;;  %11979 = vmatprep.subr.bf16.mxu0 %v12678_v37 }
 0x547   :  { %v5648_v26 = vadd.f32 %v14346_v55, %v5647_v56  ;;  %v11888_v60 = vpop.f32.mrb[74].mxu1 }
 0x548   :  { %v6051_v61 = vmax.f32 %v6049_v50, %v6050_v58  ;;  %v5650_v34 = vpop.f32.mrb[75].mxu1  ;;  %v5659_v5 = vadd.f32 %v11888_v60, %v14346_v55  ;;  %v6056_v9 = vsel %vm1376_vm3, %v5656_v35, -inf  ;;  %v12269_v58 = vld [vmem:[%s15234_s25 + $0x10] sm:$0xff]  }
 0x549   :  { %v6052_v29 = vsel %vm1376_vm3, %v5648_v26, -inf  ;;  %v5651_v2 = vadd.f32 %v14346_v55, %v5650_v34  ;;  %11980 = vmatpush3.bf16.msra.mxu0 %v12269_v58 }
 0x54a   :  { %v6053_v4 = vmax.f32 %v6051_v61, %v6052_v29  ;;  %v6058_v13 = vsel %vm1376_vm3, %v5659_v5, -inf  ;;  %11981 = vmatprep.subr.bf16.mxu0 %v12678_v37 }
 0x54b   :  { %v6054_v57 = vsel %vm1376_vm3, %v5651_v2, -inf }
 0x54c   :  { %v6055_v8 = vmax.f32 %v6053_v4, %v6054_v57 }
 0x54d   :  { %v11891_v10 = vpop.f32.mrb[76].mxu1 }
 0x54e   :  { %v6057_v12 = vmax.f32 %v6055_v8, %v6056_v9  ;;  %v5663_v36 = vpop.f32.mrb[77].mxu1  ;;  %v5672_v43 = vadd.f32 %v11891_v10, %v14346_v55  ;;  %v12270_v10 = vld [vmem:[%s15234_s25 + $0x18] sm:$0xff]  }
 0x54f   :  { %v5664_v16 = vadd.f32 %v14346_v55, %v5663_v36  ;;  %v11892_v15 = vpop.f32.mrb[78].mxu1  ;;  %11982 = vmatpush3.bf16.msra.mxu0 %v12270_v10 }
 0x550   :  { %v6059_v62 = vmax.f32 %v6057_v12, %v6058_v13  ;;  %v5666_v17 = vpop.f32.mrb[79].mxu1  ;;  %v5675_v33 = vadd.f32 %v11892_v15, %v14346_v55  ;;  %v6069_v31 = vsel %vm1376_vm3, %v5672_v43, -inf  ;;  %v6310_v15 = vpop.f32.mrb[116].mxu0  ;;  %11999 = vmatprep.subr.bf16.mxu0 %v12678_v37 }
 0x551   :  { %v5667_v18 = vadd.f32 %v14346_v55, %v5666_v17  ;;  %v6066_v20 = vsel %vm1376_vm3, %v5664_v16, -inf  ;;  %v6395_v17 = vpack.c.bf16 %v6310_v15, %v6310_v15  ;;  %v11957_v43 = vpop.f32.mrb[117].mxu0 }
 0x552   :  { %v6060_v19 = vrot.slane %v6059_v62, 4  ;;  %v6071_v41 = vsel %vm1376_vm3, %v5675_v33, -inf }
 0x553   :  { %v6067_v14 = vsel %vm1376_vm3, %v5667_v18, -inf  ;;  %11984 = vmatmul.mubr.msk.bf16.vlgmr.msra.gmra.mrb[120].mxu0 %vm1376_vm3, %v6395_v17 }
 0x554   :  { %v6061_v27 = vmax.f32 %v6059_v62, %v6060_v19  ;;  %v6068_v28 = vmax.f32 %v6066_v20, %v6067_v14  ;;  %12007 = vmatprep.mubr.msk.bf16.mxu0 %vm12679_vm12, %v12678_v37 }
 0x555   :  { %v11895_v38 = vpop.f32.mrb[80].mxu1 }
 0x556   :  { %v6062_v22 = vrot.slane %v6061_v27, 2  ;;  %v6070_v0 = vmax.f32 %v6068_v28, %v6069_v31  ;;  %v5679_v3 = vpop.f32.mrb[81].mxu1  ;;  %v5688_v47 = vadd.f32 %v11895_v38, %v14346_v55 }
 0x557   :  { %v5680_v39 = vadd.f32 %v14346_v55, %v5679_v3  ;;  %v11896_v53 = vpop.f32.mrb[82].mxu1 }
 0x558   :  { %v6063_v44 = vmax.f32 %v6061_v27, %v6062_v22  ;;  %v6072_v45 = vmax.f32 %v6070_v0, %v6071_v41  ;;  %v5682_v46 = vpop.f32.mrb[83].mxu1  ;;  %v5691_v52 = vadd.f32 %v11896_v53, %v14346_v55  ;;  %v6077_v50 = vsel %vm1376_vm3, %v5688_v47, -inf }
 0x559   :  { %v6073_v48 = vsel %vm1376_vm3, %v5680_v39, -inf  ;;  %v5683_v6 = vadd.f32 %v14346_v55, %v5682_v46 }
 0x55a   :  { %v6064_v25 = vrot.slane %v6063_v44, 1  ;;  %v6074_v51 = vmax.f32 %v6072_v45, %v6073_v48  ;;  %v6079_v34 = vsel %vm1376_vm3, %v5691_v52, -inf }
 0x55b   :  { %v6075_v42 = vsel %vm1376_vm3, %v5683_v6, -inf }
 0x55c   :  { %v6065_v54 = vmax.f32 %v6063_v44, %v6064_v25  ;;  %v6076_v24 = vmax.f32 %v6074_v51, %v6075_v42  ;;  %v14555_v42 = vpop.f32.mrb[118].mxu0 }
 0x55d   :  { %v11899_v56 = vpop.f32.mrb[84].mxu1 }
 0x55e   :  { %v6407_v26 = vpack.c.bf16 %v6065_v54, %v6065_v54  ;;  %v6078_v60 = vmax.f32 %v6076_v24, %v6077_v50  ;;  %v5695_v61 = vpop.f32.mrb[85].mxu1  ;;  %v5704_v57 = vadd.f32 %v11899_v56, %v14346_v55  ;;  %v11962_v24 = vpop.f32.mrb[119].mxu0 }
 0x55f   :  { %v5696_v35 = vadd.f32 %v14346_v55, %v5695_v61  ;;  %v11900_v29 = vpop.f32.mrb[86].mxu1 }
 0x560   :  { %v6423_v2 = vunpack.c.l.b16 %v6407_v26  ;;  %v6080_v4 = vmax.f32 %v6078_v60, %v6079_v34  ;;  %v5698_v5 = vpop.f32.mrb[87].mxu1  ;;  %v5707_v13 = vadd.f32 %v11900_v29, %v14346_v55  ;;  %v6085_v18 = vsel %vm1376_vm3, %v5704_v57, -inf }
 0x561   :  { %v6081_v8 = vsel %vm1376_vm3, %v5696_v35, -inf  ;;  %v5699_v9 = vadd.f32 %v14346_v55, %v5698_v5 }
 0x562   :  { %v14534_v12 = vsel %vm6229_vm7, %v6423_v2, %v14489_v49  ;;  %v6082_v36 = vmax.f32 %v6080_v4, %v6081_v8  ;;  %v6087_v49 = vsel %vm1376_vm3, %v5707_v13, -inf }
 0x563   :  { %v6083_v16 = vsel %vm1376_vm3, %v5699_v9, -inf }
 0x564   :  { %v6084_v62 = vmax.f32 %v6082_v36, %v6083_v16 }
 0x565   :  { %v11903_v19 = vpop.f32.mrb[88].mxu1 }
 0x566   :  { %v6086_v20 = vmax.f32 %v6084_v62, %v6085_v18  ;;  %v5711_v33 = vpop.f32.mrb[89].mxu1  ;;  %v5720_v38 = vadd.f32 %v11903_v19, %v14346_v55 }
 0x567   :  { %v5712_v14 = vadd.f32 %v14346_v55, %v5711_v33  ;;  %v11904_v27 = vpop.f32.mrb[90].mxu1 }
 0x568   :  { %v6088_v28 = vmax.f32 %v6086_v20, %v6087_v49  ;;  %v5714_v31 = vpop.f32.mrb[91].mxu1  ;;  %v5723_v3 = vadd.f32 %v11904_v27, %v14346_v55  ;;  %v6093_v53 = vsel %vm1376_vm3, %v5720_v38, -inf }
 0x569   :  { %v6089_v40 = vsel %vm1376_vm3, %v5712_v14, -inf  ;;  %v5715_v22 = vadd.f32 %v14346_v55, %v5714_v31 }
 0x56a   :  { %v6090_v0 = vmax.f32 %v6088_v28, %v6089_v40  ;;  %v6095_v47 = vsel %vm1376_vm3, %v5723_v3, -inf }
 0x56b   :  { %v6091_v41 = vsel %vm1376_vm3, %v5715_v22, -inf }
 0x56c   :  { %v6092_v39 = vmax.f32 %v6090_v0, %v6091_v41 }
 0x56d   :  { %v11907_v44 = vpop.f32.mrb[92].mxu1 }
 0x56e   :  { %v6094_v45 = vmax.f32 %v6092_v39, %v6093_v53  ;;  %v5727_v46 = vpop.f32.mrb[93].mxu1  ;;  %v5736_v51 = vadd.f32 %v11907_v44, %v14346_v55 }
 0x56f   :  { %v5728_v48 = vadd.f32 %v14346_v55, %v5727_v46  ;;  %v11908_v6 = vpop.f32.mrb[94].mxu1 }
 0x570   :  { %v6096_v7 = vmax.f32 %v6094_v45, %v6095_v47  ;;  %v5730_v25 = vpop.f32.mrb[95].mxu1  ;;  %v5739_v56 = vadd.f32 %v11908_v6, %v14346_v55  ;;  %v6106_v61 = vsel %vm1376_vm3, %v5736_v51, -inf }
 0x571   :  { %v5731_v52 = vadd.f32 %v14346_v55, %v5730_v25  ;;  %v6103_v50 = vsel %vm1376_vm3, %v5728_v48, -inf }
 0x572   :  { %v6097_v54 = vrot.slane %v6096_v7, 4  ;;  %v6108_v4 = vsel %vm1376_vm3, %v5739_v56, -inf }
 0x573   :  { %v6104_v58 = vsel %vm1376_vm3, %v5731_v52, -inf }
 0x574   :  { %v6098_v26 = vmax.f32 %v6096_v7, %v6097_v54  ;;  %v6105_v60 = vmax.f32 %v6103_v50, %v6104_v58 }
 0x575   :  { %v11911_v34 = vpop.f32.mrb[96].mxu1 }
 0x576   :  { %v6099_v35 = vrot.slane %v6098_v26, 2  ;;  %v6107_v29 = vmax.f32 %v6105_v60, %v6106_v61  ;;  %v5743_v2 = vpop.f32.mrb[97].mxu1  ;;  %v5752_v36 = vadd.f32 %v11911_v34, %v14346_v55  ;;  %v14587_v60 = vld [vmem:[%s15233_s9] ss:$0 sm:$0xff] }
 0x577   :  { %v5744_v5 = vadd.f32 %v14346_v55, %v5743_v2  ;;  %v11912_v57 = vpop.f32.mrb[98].mxu1 }
 0x578   :  { %v6100_v8 = vmax.f32 %v6098_v26, %v6099_v35  ;;  %v6109_v9 = vmax.f32 %v6107_v29, %v6108_v4  ;;  %v5746_v10 = vpop.f32.mrb[99].mxu1  ;;  %v5755_v17 = vadd.f32 %v11912_v57, %v14346_v55  ;;  %v6114_v20 = vsel %vm1376_vm3, %v5752_v36, -inf }
 0x579   :  { %v6110_v13 = vsel %vm1376_vm3, %v5744_v5, -inf  ;;  %v5747_v16 = vadd.f32 %v14346_v55, %v5746_v10 }
 0x57a   :  { %v6101_v15 = vrot.slane %v6100_v8, 1  ;;  %v6111_v62 = vmax.f32 %v6109_v9, %v6110_v13  ;;  %v6116_v28 = vsel %vm1376_vm3, %v5755_v17, -inf }
 0x57b   :  { %v6112_v43 = vsel %vm1376_vm3, %v5747_v16, -inf }
 0x57c   :  { %v6102_v18 = vmax.f32 %v6100_v8, %v6101_v15  ;;  %v6113_v19 = vmax.f32 %v6111_v62, %v6112_v43 }
 0x57d   :  { %v11915_v33 = vpop.f32.mrb[100].mxu1 }
 0x57e   :  { %v6408_v49 = vpack.c.bf16 %v6102_v18, %v6102_v18  ;;  %v6115_v14 = vmax.f32 %v6113_v19, %v6114_v20  ;;  %v5759_v27 = vpop.f32.mrb[101].mxu1  ;;  %v5768_v3 = vadd.f32 %v11915_v33, %v14346_v55 }
 0x57f   :  { %v5760_v31 = vadd.f32 %v14346_v55, %v5759_v27  ;;  %v11916_v38 = vpop.f32.mrb[102].mxu1 }
 0x580   :  { %v6424_v40 = vunpack.c.l.b16 %v6408_v49  ;;  %v6117_v22 = vmax.f32 %v6115_v14, %v6116_v28  ;;  %v5762_v0 = vpop.f32.mrb[103].mxu1  ;;  %v5771_v45 = vadd.f32 %v11916_v38, %v14346_v55  ;;  %v6122_v48 = vsel %vm1376_vm3, %v5768_v3, -inf }
 0x581   :  { %v6118_v41 = vsel %vm1376_vm3, %v5760_v31, -inf  ;;  %v5763_v39 = vadd.f32 %v14346_v55, %v5762_v0 }
 0x582   :  { %v14576_v53 = vsel %vm6231_vm8, %v6424_v40, %v14534_v12  ;;  %v6119_v44 = vmax.f32 %v6117_v22, %v6118_v41  ;;  %v6124_v51 = vsel %vm1376_vm3, %v5771_v45, -inf }
 0x583   :  { %v6120_v46 = vsel %vm1376_vm3, %v5763_v39, -inf }
 0x584   :  { %v6121_v47 = vmax.f32 %v6119_v44, %v6120_v46 }
 0x585   :  { %v11919_v6 = vpop.f32.mrb[104].mxu1 }
 0x586   :  { %v6123_v7 = vmax.f32 %v6121_v47, %v6122_v48  ;;  %v5775_v25 = vpop.f32.mrb[105].mxu1  ;;  %v5784_v50 = vadd.f32 %v11919_v6, %v14346_v55 }
 0x587   :  { %v5776_v52 = vadd.f32 %v14346_v55, %v5775_v25  ;;  %v11920_v54 = vpop.f32.mrb[106].mxu1 }
 0x588   :  { %v6125_v24 = vmax.f32 %v6123_v7, %v6124_v51  ;;  %v5778_v12 = vpop.f32.mrb[107].mxu1  ;;  %v5787_v61 = vadd.f32 %v14587_v60, %v11920_v54  ;;  %v6130_v29 = vsel %vm1376_vm3, %v5784_v50, -inf }
 0x589   :  { %v6126_v56 = vsel %vm1376_vm3, %v5776_v52, -inf  ;;  %v5779_v58 = vadd.f32 %v14346_v55, %v5778_v12 }
 0x58a   :  { %v6127_v26 = vmax.f32 %v6125_v24, %v6126_v56  ;;  %v6132_v57 = vsel %vm1376_vm3, %v5787_v61, -inf }
 0x58b   :  { %v6128_v34 = vsel %vm1376_vm3, %v5779_v58, -inf }
 0x58c   :  { %v6129_v35 = vmax.f32 %v6127_v26, %v6128_v34 }
 0x58d   :  { %v11923_v2 = vpop.f32.mrb[108].mxu1 }
 0x58e   :  { %v6131_v4 = vmax.f32 %v6129_v35, %v6130_v29  ;;  %v5791_v5 = vpop.f32.mrb[109].mxu1  ;;  %v5800_v36 = vadd.f32 %v14587_v60, %v11923_v2 }
 0x58f   :  { %v5792_v8 = vadd.f32 %v14587_v60, %v5791_v5  ;;  %v11924_v9 = vpop.f32.mrb[110].mxu1 }
 0x590   :  { %v6133_v10 = vmax.f32 %v6131_v4, %v6132_v57  ;;  %v5794_v55 = vpop.f32.mrb[111].mxu1  ;;  %v5803_v62 = vadd.f32 %v14587_v60, %v11924_v9  ;;  %v6143_v19 = vsel %vm1376_vm3, %v5800_v36, -inf }
 0x591   :  { %v5795_v13 = vadd.f32 %v14587_v60, %v5794_v55  ;;  %v6140_v15 = vsel %vm1376_vm3, %v5792_v8, -inf }
 0x592   :  { %v6134_v16 = vrot.slane %v6133_v10, 4  ;;  %v6145_v27 = vsel %vm1376_vm3, %v5803_v62, -inf }
 0x593   :  { %v6141_v17 = vsel %vm1376_vm3, %v5795_v13, -inf }
 0x594   :  { %v6135_v43 = vmax.f32 %v6133_v10, %v6134_v16  ;;  %v6142_v18 = vmax.f32 %v6140_v15, %v6141_v17 }
 0x595   :  { %v11927_v20 = vpop.f32.mrb[112].mxu1 }
 0x596   :  { %v6136_v33 = vrot.slane %v6135_v43, 2  ;;  %v6144_v49 = vmax.f32 %v6142_v18, %v6143_v19  ;;  %v5807_v14 = vpop.f32.mrb[113].mxu1  ;;  %v5816_v0 = vadd.f32 %v14587_v60, %v11927_v20 }
 0x597   :  { %v5808_v28 = vadd.f32 %v14587_v60, %v5807_v14  ;;  %v11928_v31 = vpop.f32.mrb[114].mxu1 }
 0x598   :  { %v6137_v38 = vmax.f32 %v6135_v43, %v6136_v33  ;;  %v6146_v40 = vmax.f32 %v6144_v49, %v6145_v27  ;;  %v5810_v22 = vpop.f32.mrb[115].mxu1  ;;  %v5819_v45 = vadd.f32 %v14587_v60, %v11928_v31  ;;  %v6151_v6 = vsel %vm1376_vm3, %v5816_v0, -inf }
 0x599   :  { %v6147_v3 = vsel %vm1376_vm3, %v5808_v28, -inf  ;;  %v5811_v41 = vadd.f32 %v14587_v60, %v5810_v22 }
 0x59a   :  { %v6138_v39 = vrot.slane %v6137_v38, 1  ;;  %v6148_v44 = vmax.f32 %v6146_v40, %v6147_v3  ;;  %v6153_v54 = vsel %vm1376_vm3, %v5819_v45, -inf }
 0x59b   :  { %v6149_v46 = vsel %vm1376_vm3, %v5811_v41, -inf }
 0x59c   :  { %v6139_v47 = vmax.f32 %v6137_v38, %v6138_v39  ;;  %v6150_v48 = vmax.f32 %v6148_v44, %v6149_v46 }
 0x59d   :  { %v11931_v7 = vpop.f32.mrb[116].mxu1 }
 0x59e   :  { %v6409_v25 = vpack.c.bf16 %v6139_v47, %v6139_v47  ;;  %v6152_v51 = vmax.f32 %v6150_v48, %v6151_v6  ;;  %v5823_v52 = vpop.f32.mrb[117].mxu1  ;;  %v5832_v26 = vadd.f32 %v14587_v60, %v11931_v7 }
 0x59f   :  { %v5824_v24 = vadd.f32 %v14587_v60, %v5823_v52  ;;  %v11932_v12 = vpop.f32.mrb[118].mxu1 }
 0x5a0   :  { %v6425_v50 = vunpack.c.l.b16 %v6409_v25  ;;  %v6154_v56 = vmax.f32 %v6152_v51, %v6153_v54  ;;  %v5826_v58 = vpop.f32.mrb[119].mxu1  ;;  %v5835_v2 = vadd.f32 %v14587_v60, %v11932_v12  ;;  %v6159_v57 = vsel %vm1376_vm3, %v5832_v26, -inf }
 0x5a1   :  { %v6155_v61 = vsel %vm1376_vm3, %v5824_v24, -inf  ;;  %v5827_v34 = vadd.f32 %v14587_v60, %v5826_v58 }
 0x5a2   :  { %v14615_v35 = vsel %vm6233_vm9, %v6425_v50, %v14576_v53  ;;  %v6156_v29 = vmax.f32 %v6154_v56, %v6155_v61  ;;  %v6161_v55 = vsel %vm1376_vm3, %v5835_v2, -inf }
 0x5a3   :  { %v6157_v4 = vsel %vm1376_vm3, %v5827_v34, -inf }
 0x5a4   :  { %v6158_v5 = vmax.f32 %v6156_v29, %v6157_v4 }
 0x5a5   :  { %v11935_v8 = vpop.f32.mrb[120].mxu1 }
 0x5a6   :  { %v6160_v9 = vmax.f32 %v6158_v5, %v6159_v57  ;;  %v5839_v10 = vpop.f32.mrb[121].mxu1  ;;  %v5848_v53 = vadd.f32 %v14587_v60, %v11935_v8 }
 0x5a7   :  { %v5840_v36 = vadd.f32 %v14587_v60, %v5839_v10  ;;  %v11936_v13 = vpop.f32.mrb[122].mxu1 }
 0x5a8   :  { %v6162_v16 = vmax.f32 %v6160_v9, %v6161_v55  ;;  %v5842_v15 = vpop.f32.mrb[123].mxu1  ;;  %v5851_v18 = vadd.f32 %v14587_v60, %v11936_v13  ;;  %v6167_v33 = vsel %vm1376_vm3, %v5848_v53, -inf }
 0x5a9   :  { %v6163_v62 = vsel %vm1376_vm3, %v5840_v36, -inf  ;;  %v5843_v17 = vadd.f32 %v14587_v60, %v5842_v15 }
 0x5aa   :  { %v6164_v43 = vmax.f32 %v6162_v16, %v6163_v62  ;;  %v6169_v28 = vsel %vm1376_vm3, %v5851_v18, -inf }
 0x5ab   :  { %v6165_v19 = vsel %vm1376_vm3, %v5843_v17, -inf }
 0x5ac   :  { %v6166_v20 = vmax.f32 %v6164_v43, %v6165_v19 }
 0x5ad   :  { %v11939_v49 = vpop.f32.mrb[124].mxu1 }
 0x5ae   :  { %v6168_v14 = vmax.f32 %v6166_v20, %v6167_v33  ;;  %v5855_v27 = vpop.f32.mrb[125].mxu1  ;;  %v5864_v0 = vadd.f32 %v14587_v60, %v11939_v49 }
 0x5af   :  { %v5856_v31 = vadd.f32 %v14587_v60, %v5855_v27  ;;  %v11940_v38 = vpop.f32.mrb[126].mxu1 }
 0x5b0   :  { %v6170_v40 = vmax.f32 %v6168_v14, %v6169_v28  ;;  %v5858_v22 = vpop.f32.mrb[127].mxu1  ;;  %v5867_v44 = vadd.f32 %v14587_v60, %v11940_v38  ;;  %v6180_v48 = vsel %vm1376_vm3, %v5864_v0, -inf }
 0x5b1   :  { %v5859_v3 = vadd.f32 %v14587_v60, %v5858_v22  ;;  %v6177_v39 = vsel %vm1376_vm3, %v5856_v31, -inf }
 0x5b2   :  { %v6171_v41 = vrot.slane %v6170_v40, 4  ;;  %v6182_v52 = vsel %vm1376_vm3, %v5867_v44, -inf }
 0x5b3   :  { %v6178_v45 = vsel %vm1376_vm3, %v5859_v3, -inf }
 0x5b4   :  { %v6172_v46 = vmax.f32 %v6170_v40, %v6171_v41  ;;  %v6179_v47 = vmax.f32 %v6177_v39, %v6178_v45 }
 0x5b5   :  { %v11943_v6 = vpop.f32.mrb[128].mxu1 }
 0x5b6   :  { %v6173_v7 = vrot.slane %v6172_v46, 2  ;;  %v6181_v25 = vmax.f32 %v6179_v47, %v6180_v48  ;;  %v5871_v51 = vpop.f32.mrb[129].mxu1  ;;  %v5880_v58 = vadd.f32 %v14587_v60, %v11943_v6 }
 0x5b7   :  { %v5872_v54 = vadd.f32 %v14587_v60, %v5871_v51  ;;  %v11944_v24 = vpop.f32.mrb[130].mxu1 }
 0x5b8   :  { %v6174_v12 = vmax.f32 %v6172_v46, %v6173_v7  ;;  %v6183_v50 = vmax.f32 %v6181_v25, %v6182_v52  ;;  %v5874_v56 = vpop.f32.mrb[131].mxu1  ;;  %v5883_v2 = vadd.f32 %v14587_v60, %v11944_v24  ;;  %v6188_v8 = vsel %vm1376_vm3, %v5880_v58, -inf }
 0x5b9   :  { %v6184_v26 = vsel %vm1376_vm3, %v5872_v54, -inf  ;;  %v5875_v61 = vadd.f32 %v14587_v60, %v5874_v56 }
 0x5ba   :  { %v6175_v34 = vrot.slane %v6174_v12, 1  ;;  %v6185_v29 = vmax.f32 %v6183_v50, %v6184_v26  ;;  %v6190_v13 = vsel %vm1376_vm3, %v5883_v2, -inf  ;;  %v12272_v2 = vld [vmem:[%s15235_s29 + $0x8] sm:$0xff]  }
 0x5bb   :  { %v6186_v4 = vsel %vm1376_vm3, %v5875_v61, -inf }
 0x5bc   :  { %v6176_v5 = vmax.f32 %v6174_v12, %v6175_v34  ;;  %v6187_v57 = vmax.f32 %v6185_v29, %v6186_v4  ;;  %v12271_v34 = vld [vmem:[%s15235_s29] sm:$0xff]   ;;  %v12273_v4 = vld [vmem:[%s15235_s29 + $0x10] sm:$0xff]  }
 0x5bd   :  { %v11947_v9 = vpop.f32.mrb[132].mxu1 }
 0x5be   :  { %v6410_v10 = vpack.c.bf16 %v6176_v5, %v6176_v5  ;;  %v6189_v55 = vmax.f32 %v6187_v57, %v6188_v8  ;;  %v5887_v36 = vpop.f32.mrb[133].mxu1  ;;  %v5896_v43 = vadd.f32 %v14587_v60, %v11947_v9  ;;  %v12274_v5 = vld [vmem:[%s15235_s29 + $0x18] sm:$0xff]   ;;  %v6578_v57 = vpack.c.bf16 %v14555_v42, %v14555_v42  ;;  %v12277_v42 = vld [vmem:[%s15236_s3 + $0x8] sm:$0xff]  }
 0x5bf   :  { %v5888_v16 = vadd.f32 %v14587_v60, %v5887_v36  ;;  %v11948_v15 = vpop.f32.mrb[134].mxu1 }
 0x5c0   :  { %v6426_v53 = vunpack.c.l.b16 %v6410_v10  ;;  %v6191_v62 = vmax.f32 %v6189_v55, %v6190_v13  ;;  %v5890_v17 = vpop.f32.mrb[135].mxu1  ;;  %v5899_v49 = vadd.f32 %v14587_v60, %v11948_v15  ;;  %v6196_v28 = vsel %vm1376_vm3, %v5896_v43, -inf  ;;  %v12275_v10 = vld [vmem:[%s15236_s3] sm:$0xff]   ;;  %v12279_v15 = vld [vmem:[%s15236_s3 + $0x10] sm:$0xff]  }
 0x5c1   :  { %v6192_v18 = vsel %vm1376_vm3, %v5888_v16, -inf  ;;  %v5891_v19 = vadd.f32 %v14587_v60, %v5890_v17  ;;  %v12276_v55 = vld [vmem:[%s15237_s8] sm:$0xff]   ;;  %12000 = vmatpush3.bf16.msra.mxu0 %v12275_v10  ;;  %v12278_v16 = vld [vmem:[%s15237_s8 + $0x8] sm:$0xff]   ;;  %v12282_v17 = vld [vmem:[%s15237_s8 + $0x18] sm:$0xff]  }
 0x5c2   :  { %v6433_v20 = vsel %vm6235_vm10, %v6426_v53, %v14615_v35  ;;  %v6193_v33 = vmax.f32 %v6191_v62, %v6192_v18  ;;  %v6198_v22 = vsel %vm1376_vm3, %v5899_v49, -inf  ;;  %12001 = vmatprep.subr.bf16.mxu0 %v12678_v37  ;;  %v12280_v53 = vld [vmem:[%s15237_s8 + $0x10] sm:$0xff]   ;;  %v12281_v62 = vld [vmem:[%s15236_s3 + $0x18] sm:$0xff]  }
 0x5c3   :  { %v6194_v14 = vsel %vm1376_vm3, %v5891_v19, -inf }
 0x5c4   :  { %v6195_v27 = vmax.f32 %v6193_v33, %v6194_v14  ;;  %v10238_v14 = vld [vmem:[%s15238_s14] ss:$0 sm:$0xff] }
 0x5c5   :  { %v11951_v31 = vpop.f32.mrb[136].mxu1  ;;  %12002 = vmatpush3.bf16.msra.mxu0 %v12277_v42  ;;  %v10258_v42 = vld [vmem:[%s15245_s28] ss:$0 sm:$0xff] }
 0x5c6   :  { %v6197_v38 = vmax.f32 %v6195_v27, %v6196_v28  ;;  %v5903_v40 = vpop.f32.mrb[137].mxu1  ;;  %v5912_v35 = vadd.f32 %v14587_v60, %v11951_v31  ;;  %12003 = vmatprep.subr.bf16.mxu0 %v12678_v37 }
 0x5c7   :  { %v5904_v0 = vadd.f32 %v14587_v60, %v5903_v40  ;;  %v11952_v3 = vpop.f32.mrb[138].mxu1 }
 0x5c8   :  { %v6199_v41 = vmax.f32 %v6197_v38, %v6198_v22  ;;  %v5906_v39 = vpop.f32.mrb[139].mxu1  ;;  %v5915_v47 = vadd.f32 %v14587_v60, %v11952_v3  ;;  %v6204_v7 = vsel %vm1376_vm3, %v5912_v35, -inf  ;;  %v12286_v35 = vld [vmem:[%s15239_s19 + $0x18] sm:$0xff]  }
 0x5c9   :  { %v6200_v44 = vsel %vm1376_vm3, %v5904_v0, -inf  ;;  %v5907_v45 = vadd.f32 %v14587_v60, %v5906_v39  ;;  %12004 = vmatpush3.bf16.msra.mxu0 %v12279_v15  ;;  %v12283_v0 = vld [vmem:[%s15239_s19] sm:$0xff]   ;;  %v12285_v39 = vld [vmem:[%s15239_s19 + $0x10] sm:$0xff]  }
 0x5ca   :  { %v6201_v46 = vmax.f32 %v6199_v41, %v6200_v44  ;;  %v6206_v51 = vsel %vm1376_vm3, %v5915_v47, -inf  ;;  %12005 = vmatprep.subr.bf16.mxu0 %v12678_v37  ;;  %v12284_v41 = vld [vmem:[%s15239_s19 + $0x8] sm:$0xff]   ;;  %v12287_v44 = vld [vmem:[%s15240_s24] sm:$0xff]  }
 0x5cb   :  { %v6202_v48 = vsel %vm1376_vm3, %v5907_v45, -inf  ;;  %v12288_v45 = vld [vmem:[%s15240_s24 + $0x8] sm:$0xff]  }
 0x5cc   :  { %v6203_v6 = vmax.f32 %v6201_v46, %v6202_v48  ;;  %v12289_v46 = vld [vmem:[%s15240_s24 + $0x10] sm:$0xff]  }
 0x5cd   :  { %12006 = vmatpush3.bf16.msra.mxu0 %v12281_v62 }
 0x5ce   :  { %v6205_v25 = vmax.f32 %v6203_v6, %v6204_v7  ;;  %12023 = vmatprep.subr.bf16.mxu0 %v12678_v37 }
 0x5d0   :  { %v6207_v52 = vmax.f32 %v6205_v25, %v6206_v51 }
 0x5d2   :  { %v6208_v54 = vrot.slane %v6207_v52, 4 }
 0x5d4   :  { %v6209_v24 = vmax.f32 %v6207_v52, %v6208_v54 }
 0x5d6   :  { %v6210_v12 = vrot.slane %v6209_v24, 2 }
 0x5d8   :  { %v6211_v50 = vmax.f32 %v6209_v24, %v6210_v12  ;;  %v10239_v24 = vld [vmem:[%s15241_s30] ss:$0 sm:$0xff] }
 0x5d9   :  { %v10251_v12 = vld [vmem:[%s15242_s6] ss:$0 sm:$0xff] }
 0x5da   :  { %v6212_v56 = vrot.slane %v6211_v50, 1 }
 0x5dc   :  { %v6213_v58 = vmax.f32 %v6211_v50, %v6212_v56 }
 0x5de   :  { %v6411_v60 = vpack.c.bf16 %v6213_v58, %v6213_v58 }
 0x5e0   :  { %v6427_v26 = vunpack.c.l.b16 %v6411_v60 }
 0x5e2   :  { %v6434_v61 = vsel %vm6237_vm11, %v6427_v26, %v6433_v20 }
 0x5e3   :  { %v6435_v29 = vpack.c.b16 %v6434_v61, %v6434_v61 }
 0x5e5   :  { %11972 = vmatmul.mubr.msk.bf16.vlgmr.msra.gmra.mrb[140].mxu1 %vm1376_vm3, %v6435_v29 }
 0x5e6   :  { %11988 = vmatpush3.bf16.msra.mxu1 %v12271_v34  ;;  %11995 = vmatprep.mubr.msk.bf16.mxu1 %vm12679_vm12, %v12678_v37 }
 0x5e7   :  { %11989 = vmatprep.subr.bf16.mxu1 %v12678_v37 }
 0x5ea   :  { %11990 = vmatpush3.bf16.msra.mxu1 %v12272_v2 }
 0x5eb   :  { %11991 = vmatprep.subr.bf16.mxu1 %v12678_v37 }
 0x5ee   :  { %11992 = vmatpush3.bf16.msra.mxu1 %v12273_v4  ;;  %v14725_v4 = vld [vmem:[%s15243_s12] sm:$0xff] }
 0x5ef   :  { %11993 = vmatprep.subr.bf16.mxu1 %v12678_v37 }
 0x5f2   :  { %11994 = vmatpush3.bf16.msra.mxu1 %v12274_v5  ;;  %v12290_v5 = vld [vmem:[%s15240_s24 + $0x18] sm:$0xff]  }
 0x5f3   :  { %12011 = vmatprep.subr.bf16.mxu1 %v12678_v37 }
 0x5f5   :  { %11996 = vmatmul.mubr.msk.bf16.vlgmr.msra.gmra.mrb[144].mxu1 %vm1376_vm3, %v6578_v57  ;;  %v12291_v57 = vld [vmem:[%s15244_s20] sm:$0xff]  }
 0x5f6   :  { %12019 = vmatprep.mubr.msk.bf16.mxu1 %vm12679_vm12, %v12678_v37  ;;  %12012 = vmatpush3.bf16.msra.mxu1 %v12276_v55 }
 0x5f7   :  { %12013 = vmatprep.subr.bf16.mxu1 %v12678_v37 }
 0x5fa   :  { %12014 = vmatpush3.bf16.msra.mxu1 %v12278_v16 }
 0x5fb   :  { %12015 = vmatprep.subr.bf16.mxu1 %v12678_v37 }
 0x5fe   :  { %12016 = vmatpush3.bf16.msra.mxu1 %v12280_v53 }
 0x5ff   :  { %12017 = vmatprep.subr.bf16.mxu1 %v12678_v37 }
 0x602   :  { %12018 = vmatpush3.bf16.msra.mxu1 %v12282_v17 }
 0x603   :  { %12035 = vmatprep.subr.mxu1 %v12678_v37 }
 0x626   :  { %v6564_v8 = vpop.f32.mrb[120].mxu0 }
 0x627   :  { %v11985_v9 = vpop.f32.mrb[121].mxu0 }
 0x628   :  { %v6567_v36 = vpop.f32.mrb[122].mxu0 }
 0x629   :  { %v11986_v13 = vpop.f32.mrb[123].mxu0  ;;  %v12293_v36 = vld [vmem:[%s15244_s20 + $0x10] sm:$0xff]  }
 0x62a   :  { %v12294_v13 = vld [vmem:[%s15244_s20 + $0x18] sm:$0xff]  }
 0x6b8   :  { %v6497_v43 = vpop.f32.mrb[140].mxu1 }
 0x6b9   :  { %v6565_v18 = vadd.f32 %v6564_v8, %v6497_v43  ;;  %v11973_v19 = vpop.f32.mrb[141].mxu1  ;;  %v12292_v8 = vld [vmem:[%s15244_s20 + $0x8] sm:$0xff]  }
 0x6ba   :  { %v6500_v20 = vpop.f32.mrb[142].mxu1  ;;  %v10264_v19 = vld [vmem:[%s15246_s1] ss:$0 sm:$0xff] }
 0x6bb   :  { %v11974_v33 = vpop.f32.mrb[143].mxu1 }
 0x6c8   :  { %v6640_v49 = vpop.f32.mrb[144].mxu1 }
 0x6c9   :  { %v6646_v27 = vadd.f32 %v6640_v49, %v6565_v18  ;;  %v11997_v28 = vpop.f32.mrb[145].mxu1 }
 0x6ca   :  { %v6643_v31 = vpop.f32.mrb[146].mxu1 }
 0x6cb   :  { %v6654_v38 = vadd.f32 %v10238_v14, %v6646_v27  ;;  %v11998_v40 = vpop.f32.mrb[147].mxu1 }
 0x6cd   :  { %v6655_v22 = vmax.f32 %v6654_v38, 0.0 }
 0x6cf   :  { %v6664_v3 = vpack.c.bf16 %v6655_v22, %v6655_v22 }
 0x6d1   :  { %12008 = vmatmul.mubr.msk.bf16.vlgmr.msra.gmra.mrb[124].mxu0 %vm1376_vm3, %v6664_v3  ;;  %12020 = vmatmul.mubr.msk.bf16.vlgmr.msra.gmra.mrb[148].mxu1 %vm1376_vm3, %v6664_v3 }
 0x6d2   :  { %12024 = vmatpush3.bf16.msra.mxu0 %v12283_v0  ;;  %12031 = vmatprep.mubr.msk.bf16.mxu0 %vm12679_vm12, %v12678_v37 }
 0x6d3   :  { %12025 = vmatprep.subr.bf16.mxu0 %v12678_v37  ;;  %12037 = vmatprep.mubr.msk.f32.mxu1 %vm12679_vm12, %v12678_v37 }
 0x6d6   :  { %12026 = vmatpush3.bf16.msra.mxu0 %v12284_v41 }
 0x6d7   :  { %12027 = vmatprep.subr.bf16.mxu0 %v12678_v37 }
 0x6da   :  { %12028 = vmatpush3.bf16.msra.mxu0 %v12285_v39 }
 0x6db   :  { %12029 = vmatprep.subr.bf16.mxu0 %v12678_v37 }
 0x6de   :  { %12030 = vmatpush3.bf16.msra.mxu0 %v12286_v35 }
 0x6df   :  { %12040 = vmatprep.subr.bf16.mxu0 %v12678_v37 }
 0x6e1   :  { %12032 = vmatmul.mubr.msk.bf16.vlgmr.msra.gmra.mrb[128].mxu0 %vm1376_vm3, %v6664_v3 }
 0x6e2   :  { %12048 = vmatprep.mubr.msk.bf16.mxu0 %vm12679_vm12, %v12678_v37  ;;  %12041 = vmatpush3.bf16.msra.mxu0 %v12287_v44 }
 0x6e3   :  { %12042 = vmatprep.subr.bf16.mxu0 %v12678_v37 }
 0x6e6   :  { %12043 = vmatpush3.bf16.msra.mxu0 %v12288_v45 }
 0x6e7   :  { %12044 = vmatprep.subr.bf16.mxu0 %v12678_v37 }
 0x6ea   :  { %12045 = vmatpush3.bf16.msra.mxu0 %v12289_v46 }
 0x6eb   :  { %12046 = vmatprep.subr.bf16.mxu0 %v12678_v37 }
 0x6ee   :  { %12047 = vmatpush3.bf16.msra.mxu0 %v12290_v5  ;;  %v10245_v5 = vld [vmem:[%s15247_s2] ss:$0 sm:$0xff] }
 0x6ef   :  { %12064 = vmatprep.subr.mxu0 %v12678_v37 }
 0x7a4   :  { %v6733_v47 = vpop.f32.mrb[124].mxu0  ;;  %v14720_v48 = vpop.f32.mrb[148].mxu1 }
 0x7a5   :  { %v12009_v6 = vpop.f32.mrb[125].mxu0  ;;  %v12021_v7 = vpop.f32.mrb[149].mxu1  ;;  %v6734_v50 = vadd.f32 %v10239_v24, %v6733_v47 }
 0x7a6   :  { %v6736_v25 = vpop.f32.mrb[126].mxu0  ;;  %v6816_v51 = vpop.f32.mrb[150].mxu1 }
 0x7a7   :  { %v12010_v52 = vpop.f32.mrb[127].mxu0  ;;  %v12022_v54 = vpop.f32.mrb[151].mxu1  ;;  %v6739_v61 = vmax.f32 %v6734_v50, 0.0 }
 0x7b4   :  { %v6893_v56 = vpop.f32.mrb[128].mxu0 }
 0x7b5   :  { %v6894_v58 = vadd.f32 %v10251_v12, %v6893_v56  ;;  %v12033_v60 = vpop.f32.mrb[129].mxu0 }
 0x7b6   :  { %v6896_v26 = vpop.f32.mrb[130].mxu0 }
 0x7b7   :  { %v6899_v34 = vmax.f32 %v6894_v58, 0.0  ;;  %v12034_v29 = vpop.f32.mrb[131].mxu0 }
 0x7b8   :  { %v12295_v29 = vld [vmem:[%s15231_s0 + $0x20] sm:$0xff]  }
 0x7b9   :  { %v6900_v2 = vadd.f32 %v6899_v34, %v6739_v61 }
 0x7bb   :  { %12036 = vmatpush3.msra.mxu1 %v6900_v2  ;;  %v12299_v2 = vld [vmem:[%s15234_s25 + $0x20] sm:$0xff]  }
 0x7bc   :  { %12038 = vmatmul.mubr.msk.f32.vlgmr.msra.gmra.mrb[152].mxu1 %vm6240_vm13, %v14725_v4  ;;  %12052 = vmatprep.subr.bf16.mxu1 %v12678_v37 }
 0x7bd   :  { %12060 = vmatprep.mubr.msk.bf16.mxu1 %vm12679_vm12, %v12678_v37  ;;  %12053 = vmatpush3.bf16.msra.mxu1 %v12291_v57  ;;  %v12607_v57 = vld [vmem:[%s12700_s13] sm:$0xff]  ;;  %s15248_s13 = sld [smem:[#allocation22_spill]] }
 0x7be   :  { %12054 = vmatprep.subr.bf16.mxu1 %v12678_v37 }
 0x7c1   :  { %12055 = vmatpush3.bf16.msra.mxu1 %v12292_v8  ;;  %v12608_v8 = vld [vmem:[%s15232_s5] sm:$0xff] }
 0x7c2   :  { %12056 = vmatprep.subr.bf16.mxu1 %v12678_v37 }
 0x7c5   :  { %12057 = vmatpush3.bf16.msra.mxu1 %v12293_v36  ;;  %v12297_v36 = vld [vmem:[%s15231_s0 + $0x30] sm:$0xff]  }
 0x7c6   :  { %12058 = vmatprep.subr.bf16.mxu1 %v12678_v37 }
 0x7c9   :  { %12059 = vmatpush3.bf16.msra.mxu1 %v12294_v13 }
 0x7ca   :  { %12069 = vmatprep.subr.mxu1 %v12678_v37 }
 0x88f   :  { %v6970_v9 = vpop.f32.mrb[152].mxu1 }
 0x890   :  { %v6982_v10 = vpack.c.bf16 %v6970_v9, %v6970_v9  ;;  %v12039_v55 = vpop.f32.mrb[153].mxu1  ;;  %v12296_v9 = vld [vmem:[%s15231_s0 + $0x28] sm:$0xff]  }
 0x891   :  { %v12301_v55 = vld [vmem:[%s15234_s25 + $0x28] sm:$0xff]  }
 0x892   :  { %12049 = vmatmul.mubr.msk.bf16.vlgmr.msra.gmra.mrb[132].mxu0 %vm1376_vm3, %v6982_v10  ;;  %v6814_v10 = vadd.f32 %v10245_v5, %v14720_v48  ;;  %v12298_v48 = vld [vmem:[%s15231_s0 + $0x38] sm:$0xff]  }
 0x893   :  { %12066 = vmatprep.mubr.msk.f32.mxu0 %vm12679_vm12, %v12678_v37 }
 0x894   :  { %v6819_v13 = vmax.f32 %v6814_v10, 0.0  ;;  %v12316_v10 = vld [vmem:[%s15239_s19 + $0x28] sm:$0xff]  }
 0x965   :  { %v7051_v16 = vpop.f32.mrb[132].mxu0 }
 0x966   :  { %v7052_v15 = vadd.f32 %v10258_v42, %v7051_v16  ;;  %v12050_v53 = vpop.f32.mrb[133].mxu0  ;;  %v12303_v42 = vld [vmem:[%s15234_s25 + $0x30] sm:$0xff]   ;;  %v7173_v16 = vmax.f32 %v6819_v13, 0.0  ;;  %v12319_v13 = vld [vmem:[%s15240_s24 + $0x20] sm:$0xff]  }
 0x967   :  { %v7054_v62 = vpop.f32.mrb[134].mxu0 }
 0x968   :  { %v7057_v17 = vmax.f32 %v7052_v15, 0.0  ;;  %v12051_v43 = vpop.f32.mrb[135].mxu0  ;;  %v12300_v15 = vld [vmem:[%s15235_s29 + $0x20] sm:$0xff]   ;;  %v7356_v53 = vpack.c.bf16 %v7173_v16, %v7173_v16  ;;  %v12302_v62 = vld [vmem:[%s15235_s29 + $0x28] sm:$0xff]  }
 0x969   :  { %v12305_v43 = vld [vmem:[%s15234_s25 + $0x38] sm:$0xff]  }
 0x96a   :  { %v7066_v18 = vpack.c.bf16 %v7057_v17, %v7057_v17  ;;  %v12304_v17 = vld [vmem:[%s15235_s29 + $0x30] sm:$0xff]  }
 0x96c   :  { %12061 = vmatmul.mubr.msk.bf16.vlgmr.msra.gmra.mrb[156].mxu1 %vm1376_vm3, %v7066_v18  ;;  %v12306_v18 = vld [vmem:[%s15235_s29 + $0x38] sm:$0xff]  }
 0x96d   :  { %12071 = vmatprep.mubr.msk.f32.mxu1 %vm12679_vm12, %v12678_v37 }
 0xa3f   :  { %v7135_v20 = vpop.f32.mrb[156].mxu1 }
 0xa40   :  { %v7136_v33 = vadd.f32 %v10264_v19, %v7135_v20  ;;  %v12062_v49 = vpop.f32.mrb[157].mxu1 }
 0xa41   :  { %v7138_v14 = vpop.f32.mrb[158].mxu1  ;;  %v12308_v49 = vld [vmem:[%s15237_s8 + $0x20] sm:$0xff]  }
 0xa42   :  { %v12063_v27 = vpop.f32.mrb[159].mxu1  ;;  %v7142_v28 = vrot.slane %v7136_v33, 1  ;;  %v7143_v31 = vrot.slane %v7136_v33, 2  ;;  %v7144_v38 = vrot.slane %v7136_v33, 3  ;;  %v7145_v40 = vrot.slane %v7136_v33, 4 }
 0xa43   :  { %v7146_v22 = vrot.slane %v7136_v33, 5  ;;  %v7147_v0 = vrot.slane %v7136_v33, 6  ;;  %v7148_v3 = vrot.slane %v7136_v33, 7  ;;  %v14751_v41 = vadd.f32 %v7136_v33, %v14114_v59  ;;  %v12307_v33 = vld [vmem:[%s15236_s3 + $0x20] sm:$0xff]  }
 0xa44   :  { %v14754_v39 = vadd.f32 %v7142_v28, %v14118_v1  ;;  %v14757_v35 = vadd.f32 %v7143_v31, %v14147_v21  ;;  %v14760_v44 = vadd.f32 %v7144_v38, %v14163_v23  ;;  %v14763_v45 = vadd.f32 %v7145_v40, %v14167_v32  ;;  %v12309_v38 = vld [vmem:[%s15236_s3 + $0x28] sm:$0xff]  }
 0xa45   :  { %v14766_v46 = vadd.f32 %v7146_v22, %v14177_v63  ;;  %v14769_v47 = vadd.f32 %v7147_v0, %v14189_v11  ;;  %v14772_v59 = vadd.f32 %v7148_v3, %v14198_v30  ;;  %v7165_v32 = vmax.f32 %v14751_v41, 0.0 }
 0xa46   :  { %v7166_v1 = vmax.f32 %v14754_v39, 0.0  ;;  %v7167_v21 = vmax.f32 %v14757_v35, 0.0  ;;  %v7168_v6 = vmax.f32 %v14760_v44, 0.0  ;;  %v7169_v23 = vmax.f32 %v14763_v45, 0.0 }
 0xa47   :  { %v7170_v7 = vmax.f32 %v14766_v46, 0.0  ;;  %v7171_v30 = vmax.f32 %v14769_v47, 0.0  ;;  %v7172_v25 = vmax.f32 %v14772_v59, 0.0 }
 0xa48   :  { %v7182_v63 = vrot.slane %v7166_v1, 7  ;;  %v7184_v11 = vrot.slane %v7167_v21, 6  ;;  %v7186_v52 = vrot.slane %v7168_v6, 5  ;;  %v7188_v24 = vrot.slane %v7169_v23, 4 }
 0xa49   :  { %v7190_v50 = vrot.slane %v7170_v7, 3  ;;  %v7192_v58 = vrot.slane %v7171_v30, 2  ;;  %v7194_v26 = vrot.slane %v7172_v25, 1 }
 0xa4a   :  { %v7183_v51 = vsel %vm6225_vm5, %v7182_v63, %v7165_v32  ;;  %v12310_v63 = vld [vmem:[%s15237_s8 + $0x28] sm:$0xff]  }
 0xa4b   :  { %v7185_v54 = vsel %vm6227_vm6, %v7184_v11, %v7183_v51  ;;  %v12311_v11 = vld [vmem:[%s15236_s3 + $0x30] sm:$0xff]  }
 0xa4c   :  { %v7187_v12 = vsel %vm6229_vm7, %v7186_v52, %v7185_v54  ;;  %v12312_v51 = vld [vmem:[%s15237_s8 + $0x30] sm:$0xff]   ;;  %v12313_v52 = vld [vmem:[%s15236_s3 + $0x38] sm:$0xff]  }
 0xa4d   :  { %v7189_v56 = vsel %vm6231_vm8, %v7188_v24, %v7187_v12  ;;  %v12314_v54 = vld [vmem:[%s15237_s8 + $0x38] sm:$0xff]  }
 0xa4e   :  { %v7191_v60 = vsel %vm6233_vm9, %v7190_v50, %v7189_v56 }
 0xa4f   :  { %v7193_v61 = vsel %vm6235_vm10, %v7192_v58, %v7191_v60  ;;  %v10312_v60 = vld [vmem:[%s15238_s14 + $0x1] ss:$0 sm:$0xff] }
 0xa50   :  { %v7195_v34 = vsel %vm6237_vm11, %v7194_v26, %v7193_v61 }
 0xa51   :  { %12065 = vmatpush3.msra.mxu0 %v7195_v34  ;;  %12070 = vmatpush3.msra.mxu1 %v7195_v34 }
 0xa52   :  { %12067 = vmatmul.mubr.msk.f32.vlgmr.msra.gmra.mrb[136].mxu0 %vm6240_vm13, %v12607_v57  ;;  %12072 = vmatmul.mubr.msk.f32.vlgmr.msra.gmra.mrb[154].mxu1 %vm6240_vm13, %v12608_v8  ;;  %v12315_v8 = vld [vmem:[%s15239_s19 + $0x20] sm:$0xff]  }
 0xa53   :  { %12074 = vmatprep.subr.bf16.mxu0 %v12678_v37  ;;  %12082 = vmatprep.mubr.msk.bf16.mxu0 %vm12679_vm12, %v12678_v37 }
 0xa54   :  { %12075 = vmatpush3.bf16.msra.mxu0 %v12295_v29  ;;  %12086 = vmatprep.subr.bf16.mxu1 %v12678_v37 }
 0xa55   :  { %12076 = vmatprep.subr.bf16.mxu0 %v12678_v37  ;;  %12087 = vmatpush3.bf16.msra.mxu1 %v12299_v2 }
 0xa56   :  { %12088 = vmatprep.subr.bf16.mxu1 %v12678_v37  ;;  %12094 = vmatprep.mubr.msk.bf16.mxu1 %vm12679_vm12, %v12678_v37 }
 0xa58   :  { %12077 = vmatpush3.bf16.msra.mxu0 %v12296_v9 }
 0xa59   :  { %12078 = vmatprep.subr.bf16.mxu0 %v12678_v37  ;;  %12089 = vmatpush3.bf16.msra.mxu1 %v12301_v55  ;;  %v12317_v55 = vld [vmem:[%s15239_s19 + $0x30] sm:$0xff]  }
 0xa5a   :  { %12090 = vmatprep.subr.bf16.mxu1 %v12678_v37 }
 0xa5c   :  { %12079 = vmatpush3.bf16.msra.mxu0 %v12297_v36  ;;  %v12318_v36 = vld [vmem:[%s15239_s19 + $0x38] sm:$0xff]  }
 0xa5d   :  { %12080 = vmatprep.subr.bf16.mxu0 %v12678_v37  ;;  %12091 = vmatpush3.bf16.msra.mxu1 %v12303_v42  ;;  %v12320_v42 = vld [vmem:[%s15240_s24 + $0x28] sm:$0xff]  }
 0xa5e   :  { %12092 = vmatprep.subr.bf16.mxu1 %v12678_v37 }
 0xa60   :  { %12081 = vmatpush3.bf16.msra.mxu0 %v12298_v48  ;;  %v12321_v48 = vld [vmem:[%s15240_s24 + $0x30] sm:$0xff]  }
 0xa61   :  { %12098 = vmatprep.subr.bf16.mxu0 %v12678_v37  ;;  %12093 = vmatpush3.bf16.msra.mxu1 %v12305_v43 }
 0xa62   :  { %12110 = vmatprep.subr.bf16.mxu1 %v12678_v37 }
 0xa63   :  { %12083 = vmatmul.mubr.msk.bf16.vlgmr.msra.gmra.mrb[140].mxu0 %vm1376_vm3, %v7356_v53 }
 0xa64   :  { %12099 = vmatpush3.bf16.msra.mxu0 %v12300_v15  ;;  %12106 = vmatprep.mubr.msk.bf16.mxu0 %vm12679_vm12, %v12678_v37 }
 0xa65   :  { %12100 = vmatprep.subr.bf16.mxu0 %v12678_v37 }
 0xa68   :  { %12101 = vmatpush3.bf16.msra.mxu0 %v12302_v62 }
 0xa69   :  { %12102 = vmatprep.subr.bf16.mxu0 %v12678_v37 }
 0xa6c   :  { %12103 = vmatpush3.bf16.msra.mxu0 %v12304_v17 }
 0xa6d   :  { %12104 = vmatprep.subr.bf16.mxu0 %v12678_v37 }
 0xa70   :  { %12105 = vmatpush3.bf16.msra.mxu0 %v12306_v18 }
 0xa71   :  { %12122 = vmatprep.subr.bf16.mxu0 %v12678_v37 }
 0xb25   :  { %v7263_v19 = vpop.f32.mrb[136].mxu0  ;;  %v7333_v20 = vpop.f32.mrb[154].mxu1 }
 0xb26   :  { %v7346_v14 = vpack.c.bf16 %v7263_v19, %v7263_v19  ;;  %v7500_v27 = vpack.c.bf16 %v7333_v20, %v7333_v20  ;;  %v12068_v28 = vpop.f32.mrb[137].mxu0  ;;  %v12073_v31 = vpop.f32.mrb[155].mxu1  ;;  %v10322_v20 = vld [vmem:[%s15241_s30 + $0x1] ss:$0 sm:$0xff] }
 0xb28   :  { %12095 = vmatmul.mubr.msk.bf16.vlgmr.msra.gmra.mrb[160].mxu1 %vm1376_vm3, %v7346_v14  ;;  %12107 = vmatmul.mubr.msk.bf16.vlgmr.msra.gmra.mrb[144].mxu0 %vm1376_vm3, %v7500_v27 }
 0xb29   :  { %12111 = vmatpush3.bf16.msra.mxu1 %v12307_v33  ;;  %12123 = vmatpush3.bf16.msra.mxu0 %v12308_v49  ;;  %v10352_v33 = vld [vmem:[%s15242_s6 + $0x1] ss:$0 sm:$0xff] }
 0xb2a   :  { %12112 = vmatprep.subr.bf16.mxu1 %v12678_v37  ;;  %12124 = vmatprep.subr.bf16.mxu0 %v12678_v37 }
 0xb2b   :  { %12118 = vmatprep.mubr.msk.bf16.mxu1 %vm12679_vm12, %v12678_v37  ;;  %12130 = vmatprep.mubr.msk.bf16.mxu0 %vm12679_vm12, %v12678_v37 }
 0xb2d   :  { %12113 = vmatpush3.bf16.msra.mxu1 %v12309_v38  ;;  %12125 = vmatpush3.bf16.msra.mxu0 %v12310_v63  ;;  %v12323_v63 = vld [vmem:[%s15244_s20 + $0x20] sm:$0xff]  }
 0xb2e   :  { %12114 = vmatprep.subr.bf16.mxu1 %v12678_v37  ;;  %12126 = vmatprep.subr.bf16.mxu0 %v12678_v37 }
 0xb31   :  { %12115 = vmatpush3.bf16.msra.mxu1 %v12311_v11  ;;  %12127 = vmatpush3.bf16.msra.mxu0 %v12312_v51  ;;  %v12324_v11 = vld [vmem:[%s15244_s20 + $0x28] sm:$0xff]  }
 0xb32   :  { %12116 = vmatprep.subr.bf16.mxu1 %v12678_v37  ;;  %12128 = vmatprep.subr.bf16.mxu0 %v12678_v37 }
 0xb35   :  { %12117 = vmatpush3.bf16.msra.mxu1 %v12313_v52  ;;  %12129 = vmatpush3.bf16.msra.mxu0 %v12314_v54  ;;  %v12325_v54 = vld [vmem:[%s15244_s20 + $0x30] sm:$0xff]  }
 0xb36   :  { %v7418_v40 = vpop.f32.mrb[140].mxu0  ;;  %12134 = vmatprep.subr.bf16.mxu1 %v12678_v37  ;;  %12146 = vmatprep.subr.mxu0 %v12678_v37 }
 0xb37   :  { %v12084_v22 = vpop.f32.mrb[141].mxu0 }
 0xb38   :  { %v7421_v0 = vpop.f32.mrb[142].mxu0 }
 0xb39   :  { %v12085_v3 = vpop.f32.mrb[143].mxu0 }
 0xb3a   :  { %v12322_v3 = vld [vmem:[%s15240_s24 + $0x38] sm:$0xff]  }
 0xbfb   :  { %v7485_v24 = vpop.f32.mrb[160].mxu1  ;;  %v7562_v12 = vpop.f32.mrb[144].mxu0 }
 0xbfc   :  { %v7486_v50 = vadd.f32 %v7485_v24, %v7418_v40  ;;  %v12096_v56 = vpop.f32.mrb[161].mxu1  ;;  %v12108_v58 = vpop.f32.mrb[145].mxu0  ;;  %v12326_v24 = vld [vmem:[%s15244_s20 + $0x38] sm:$0xff]  }
 0xbfd   :  { %v7488_v26 = vpop.f32.mrb[162].mxu1  ;;  %v7565_v61 = vpop.f32.mrb[146].mxu0 }
 0xbfe   :  { %v7568_v34 = vadd.f32 %v7562_v12, %v7486_v50  ;;  %v12097_v29 = vpop.f32.mrb[163].mxu1  ;;  %v12109_v2 = vpop.f32.mrb[147].mxu0  ;;  %v10368_v12 = vld [vmem:[%s15245_s28 + $0x1] ss:$0 sm:$0xff] }
 0xbff   :  { %v12329_v29 = vld [vmem:[%s15248_s13 + $0x4] ss:$16 sps:$4 sm:$0xff]   ;;  %v12332_v2 = vld [vmem:[%s15248_s13 + $0xc] ss:$16 sps:$4 sm:$0xff]  }
 0xc00   :  { %v7577_v5 = vadd.f32 %v10312_v60, %v7568_v34 }
 0xc02   :  { %v7578_v57 = vmax.f32 %v7577_v5, 0.0  ;;  %v12330_v5 = vld [vmem:[%s15248_s13 + $0x8] ss:$16 sps:$4 sm:$0xff]  }
 0xc04   :  { %v7588_v9 = vpack.c.bf16 %v7578_v57, %v7578_v57  ;;  %v12335_v57 = vld [vmem:[%s15248_s13 + $0x24] ss:$16 sps:$4 sm:$0xff]  }
 0xc06   :  { %12119 = vmatmul.mubr.msk.bf16.vlgmr.msra.gmra.mrb[164].mxu1 %vm1376_vm3, %v7588_v9  ;;  %12131 = vmatmul.mubr.msk.bf16.vlgmr.msra.gmra.mrb[148].mxu0 %vm1376_vm3, %v7588_v9 }
 0xc07   :  { %12135 = vmatpush3.bf16.msra.mxu1 %v12315_v8  ;;  %12142 = vmatprep.mubr.msk.bf16.mxu1 %vm12679_vm12, %v12678_v37  ;;  %v12338_v8 = vld [vmem:[%s15248_s13 + $0x2c] ss:$16 sps:$4 sm:$0xff]  }
 0xc08   :  { %12136 = vmatprep.subr.bf16.mxu1 %v12678_v37  ;;  %12148 = vmatprep.mubr.msk.f32.mxu0 %vm12679_vm12, %v12678_v37 }
 0xc0b   :  { %12137 = vmatpush3.bf16.msra.mxu1 %v12316_v10  ;;  %v12336_v10 = vld [vmem:[%s15248_s13 + $0x28] ss:$16 sps:$4 sm:$0xff]  }
 0xc0c   :  { %12138 = vmatprep.subr.bf16.mxu1 %v12678_v37 }
 0xc0f   :  { %12139 = vmatpush3.bf16.msra.mxu1 %v12317_v55  ;;  %v12341_v55 = vld [vmem:[%s15248_s13 + $0x44] ss:$16 sps:$4 sm:$0xff]  }
 0xc10   :  { %12140 = vmatprep.subr.bf16.mxu1 %v12678_v37 }
 0xc13   :  { %12141 = vmatpush3.bf16.msra.mxu1 %v12318_v36  ;;  %v12344_v36 = vld [vmem:[%s15248_s13 + $0x4c] ss:$16 sps:$4 sm:$0xff]  }
 0xc14   :  { %12151 = vmatprep.subr.bf16.mxu1 %v12678_v37 }
 0xc16   :  { %12143 = vmatmul.mubr.msk.bf16.vlgmr.msra.gmra.mrb[168].mxu1 %vm1376_vm3, %v7588_v9  ;;  %v12333_v9 = vld [vmem:[%s15248_s13 + $0x20] ss:$16 sps:$4 sm:$0xff]  }
 0xc17   :  { %12159 = vmatprep.mubr.msk.bf16.mxu1 %vm12679_vm12, %v12678_v37  ;;  %12152 = vmatpush3.bf16.msra.mxu1 %v12319_v13  ;;  %v12339_v13 = vld [vmem:[%s15248_s13 + $0x40] ss:$16 sps:$4 sm:$0xff]  }
 0xc18   :  { %12153 = vmatprep.subr.bf16.mxu1 %v12678_v37 }
 0xc1b   :  { %12154 = vmatpush3.bf16.msra.mxu1 %v12320_v42  ;;  %v12342_v42 = vld [vmem:[%s15248_s13 + $0x48] ss:$16 sps:$4 sm:$0xff]  }
 0xc1c   :  { %12155 = vmatprep.subr.bf16.mxu1 %v12678_v37 }
 0xc1f   :  { %12156 = vmatpush3.bf16.msra.mxu1 %v12321_v48  ;;  %v12347_v48 = vld [vmem:[%s15248_s13 + $0x64] ss:$16 sps:$4 sm:$0xff]  }
 0xc20   :  { %12157 = vmatprep.subr.bf16.mxu1 %v12678_v37 }
 0xc23   :  { %12158 = vmatpush3.bf16.msra.mxu1 %v12322_v3 }
 0xc24   :  { %8353 = vmatprep.subr.bf16.mxu1 %v12329_v29 }
 0xcd9   :  { %v7658_v16 = vpop.f32.mrb[164].mxu1  ;;  %v14890_v15 = vpop.f32.mrb[148].mxu0 }
 0xcda   :  { %v12120_v53 = vpop.f32.mrb[165].mxu1  ;;  %v12132_v62 = vpop.f32.mrb[149].mxu0  ;;  %v7659_v49 = vadd.f32 %v10322_v20, %v7658_v16  ;;  %v12350_v16 = vld [vmem:[%s15248_s13 + $0x6c] ss:$16 sps:$4 sm:$0xff]  }
 0xcdb   :  { %v7661_v17 = vpop.f32.mrb[166].mxu1  ;;  %v7743_v43 = vpop.f32.mrb[150].mxu0  ;;  %v12345_v53 = vld [vmem:[%s15248_s13 + $0x60] ss:$16 sps:$4 sm:$0xff]   ;;  %v12348_v62 = vld [vmem:[%s15248_s13 + $0x68] ss:$16 sps:$4 sm:$0xff]  }
 0xcdc   :  { %v12121_v18 = vpop.f32.mrb[167].mxu1  ;;  %v12133_v19 = vpop.f32.mrb[151].mxu0  ;;  %v7664_v38 = vmax.f32 %v7659_v49, 0.0  ;;  %v12680_v17 = vmov 0   ;;  %v12353_v43 = vld [vmem:[%s15249_s7 + $0x4] ss:$8 sps:$4 sm:$0xff]  }
 0xcdd   :  { %v10383_v18 = vld [vmem:[%s15246_s1 + $0x1] ss:$0 sm:$0xff] }
 0xce9   :  { %v7822_v14 = vpop.f32.mrb[168].mxu1 }
 0xcea   :  { %v7823_v27 = vadd.f32 %v10352_v33, %v7822_v14  ;;  %v12144_v28 = vpop.f32.mrb[169].mxu1 }
 0xceb   :  { %v7825_v31 = vpop.f32.mrb[170].mxu1 }
 0xcec   :  { %v7828_v40 = vmax.f32 %v7823_v27, 0.0  ;;  %v12145_v22 = vpop.f32.mrb[171].mxu1 }
 0xcee   :  { %v7829_v0 = vadd.f32 %v7828_v40, %v7664_v38 }
 0xcf0   :  { %12147 = vmatpush3.msra.mxu0 %v7829_v0 }
 0xcf1   :  { %12149 = vmatmul.mubr.msk.f32.vlgmr.msra.gmra.mrb[138].mxu0 %vm6240_vm13, %v14725_v4  ;;  %12163 = vmatprep.subr.bf16.mxu0 %v12678_v37 }
 0xcf2   :  { %12171 = vmatprep.mubr.msk.bf16.mxu0 %vm12679_vm12, %v12678_v37  ;;  %12164 = vmatpush3.bf16.msra.mxu0 %v12323_v63 }
 0xcf3   :  { %12165 = vmatprep.subr.bf16.mxu0 %v12678_v37 }
 0xcf6   :  { %12166 = vmatpush3.bf16.msra.mxu0 %v12324_v11 }
 0xcf7   :  { %12167 = vmatprep.subr.bf16.mxu0 %v12678_v37 }
 0xcfa   :  { %12168 = vmatpush3.bf16.msra.mxu0 %v12325_v54 }
 0xcfb   :  { %12169 = vmatprep.subr.bf16.mxu0 %v12678_v37  ;;  %v12327_v37 = vld [vmem:[%s15248_s13] ss:$16 sps:$4 sm:$0xff]  }
 0xcfe   :  { %12170 = vmatpush3.bf16.msra.mxu0 %v12326_v24 }
 0xcff   :  { %8394 = vmatprep.subr.bf16.mxu0 %v12332_v2 }
 0xdc4   :  { %v7896_v51 = vpop.f32.mrb[138].mxu0 }
 0xdc5   :  { %v7909_v52 = vpack.c.bf16 %v7896_v51, %v7896_v51  ;;  %v12150_v4 = vpop.f32.mrb[139].mxu0 }
 0xdc7   :  { %12160 = vmatmul.mubr.msk.bf16.vlgmr.msra.gmra.mrb[172].mxu1 %vm1376_vm3, %v7909_v52 }
 0xdc8   :  { %8354 = vmatpush1.bf16.msra.mxu1 %v12327_v37  ;;  %8385 = vmatprep.mubr.bf16.mxu1 %v12680_v17 }
 0xdc9   :  { %8355 = vmatprep.subr.bf16.mxu1 %v12335_v57 }
 0xdcc   :  { %8356 = vmatpush1.bf16.msra.mxu1 %v12333_v9  ;;  %v12351_v9 = vld [vmem:[%s15249_s7] ss:$8 sps:$4 sm:$0xff]  }
 0xdcd   :  { %8357 = vmatprep.subr.bf16.mxu1 %v12341_v55  ;;  %v12356_v55 = vld [vmem:[%s15249_s7 + $0x14] ss:$8 sps:$4 sm:$0xff]  }
 0xdd0   :  { %8358 = vmatpush1.bf16.msra.mxu1 %v12339_v13  ;;  %v12359_v13 = vld [vmem:[%s15249_s7 + $0x24] ss:$8 sps:$4 sm:$0xff]  }
 0xdd1   :  { %8359 = vmatprep.subr.bf16.mxu1 %v12347_v48  ;;  %v12362_v48 = vld [vmem:[%s15249_s7 + $0x34] ss:$8 sps:$4 sm:$0xff]  }
 0xdd4   :  { %8360 = vmatpush1.bf16.msra.mxu1 %v12345_v53  ;;  %v12365_v53 = vld [vmem:[%s15249_s7 + $0x44] ss:$8 sps:$4 sm:$0xff]  }
 0xdd5   :  { %8774 = vmatprep.subr.bf16.mxu1 %v12353_v43  ;;  %v12368_v43 = vld [vmem:[%s15249_s7 + $0x54] ss:$8 sps:$4 sm:$0xff]  }
 0xe9a   :  { %v7979_v50 = vpop.f32.mrb[172].mxu1 }
 0xe9b   :  { %v7980_v56 = vadd.f32 %v10368_v12, %v7979_v50  ;;  %v12161_v58 = vpop.f32.mrb[173].mxu1 }
 0xe9c   :  { %v7982_v60 = vpop.f32.mrb[174].mxu1 }
 0xe9d   :  { %v7985_v26 = vmax.f32 %v7980_v56, 0.0  ;;  %v12162_v61 = vpop.f32.mrb[175].mxu1 }
 0xe9f   :  { %v7995_v34 = vpack.c.bf16 %v7985_v26, %v7985_v26 }
 0xea1   :  { %12172 = vmatmul.mubr.msk.bf16.vlgmr.msra.gmra.mrb[152].mxu0 %vm1376_vm3, %v7995_v34 }
 0xea2   :  { %8395 = vmatpush1.bf16.msra.mxu0 %v12330_v5  ;;  %8426 = vmatprep.mubr.bf16.mxu0 %v12680_v17 }
 0xea3   :  { %8396 = vmatprep.subr.bf16.mxu0 %v12338_v8 }
 0xea6   :  { %8397 = vmatpush1.bf16.msra.mxu0 %v12336_v10 }
 0xea7   :  { %8398 = vmatprep.subr.bf16.mxu0 %v12344_v36  ;;  %v12354_v36 = vld [vmem:[%s15249_s7 + $0x10] ss:$8 sps:$4 sm:$0xff]  }
 0xeaa   :  { %8399 = vmatpush1.bf16.msra.mxu0 %v12342_v42  ;;  %v12357_v42 = vld [vmem:[%s15249_s7 + $0x20] ss:$8 sps:$4 sm:$0xff]  }
 0xeab   :  { %8400 = vmatprep.subr.bf16.mxu0 %v12350_v16  ;;  %v12360_v16 = vld [vmem:[%s15249_s7 + $0x30] ss:$8 sps:$4 sm:$0xff]  }
 0xeae   :  { %8401 = vmatpush1.bf16.msra.mxu0 %v12348_v62  ;;  %v12363_v62 = vld [vmem:[%s15249_s7 + $0x40] ss:$8 sps:$4 sm:$0xff]  }
 0xf74   :  { %v8065_v19 = vpop.f32.mrb[152].mxu0 }
 0xf75   :  { %v8066_v20 = vadd.f32 %v10383_v18, %v8065_v19  ;;  %v12173_v33 = vpop.f32.mrb[153].mxu0  ;;  %v12366_v18 = vld [vmem:[%s15249_s7 + $0x50] ss:$8 sps:$4 sm:$0xff]   ;;  %v12371_v19 = vld [vmem:[%s15249_s7 + $0x64] ss:$8 sps:$4 sm:$0xff]  }
 0xf76   :  { %v8068_v49 = vpop.f32.mrb[154].mxu0  ;;  %v12374_v33 = vld [vmem:[%s15249_s7 + $0x74] ss:$8 sps:$4 sm:$0xff]  }
 0xf77   :  { %v8072_v14 = vrot.slane %v8066_v20, 1  ;;  %v8073_v27 = vrot.slane %v8066_v20, 2  ;;  %v8074_v28 = vrot.slane %v8066_v20, 3  ;;  %v8075_v31 = vrot.slane %v8066_v20, 4  ;;  %v12174_v38 = vpop.f32.mrb[155].mxu0 }
 0xf78   :  { %v8076_v40 = vrot.slane %v8066_v20, 5  ;;  %v8077_v22 = vrot.slane %v8066_v20, 6  ;;  %v8078_v0 = vrot.slane %v8066_v20, 7  ;;  %v8087_v3 = vadd.f32 %v8066_v20, %v7165_v32  ;;  %v12369_v20 = vld [vmem:[%s15249_s7 + $0x60] ss:$8 sps:$4 sm:$0xff]  }
 0xf79   :  { %v8088_v63 = vadd.f32 %v8072_v14, %v7166_v1  ;;  %v8089_v11 = vadd.f32 %v8073_v27, %v7167_v21  ;;  %v8090_v51 = vadd.f32 %v8074_v28, %v7168_v6  ;;  %v8091_v52 = vadd.f32 %v8075_v31, %v7169_v23  ;;  %v12372_v49 = vld [vmem:[%s15249_s7 + $0x70] ss:$8 sps:$4 sm:$0xff]   ;;  %v12377_v14 = vld [vmem:[%s15249_s7 + $0x84] ss:$8 sps:$4 sm:$0xff]   ;;  %v12375_v27 = vld [vmem:[%s15249_s7 + $0x80] ss:$8 sps:$4 sm:$0xff]  }
 0xf7a   :  { %v8092_v4 = vadd.f32 %v8076_v40, %v7170_v7  ;;  %v8093_v54 = vadd.f32 %v8077_v22, %v7171_v30  ;;  %v8094_v41 = vadd.f32 %v8078_v0, %v7172_v25  ;;  %v8210_v39 = vpack.c.bf16 %v8087_v3, %v8087_v3  ;;  %v12380_v28 = vld [vmem:[%s15249_s7 + $0x94] ss:$8 sps:$4 sm:$0xff]   ;;  %v12378_v31 = vld [vmem:[%s15249_s7 + $0x90] ss:$8 sps:$4 sm:$0xff]   ;;  %v12383_v38 = vld [vmem:[%s15249_s7 + $0xa4] ss:$8 sps:$4 sm:$0xff]  }
 0xf7b   :  { %v8211_v1 = vpack.c.bf16 %v8088_v63, %v8088_v63  ;;  %v8212_v32 = vpack.c.bf16 %v8089_v11, %v8089_v11  ;;  %v8213_v35 = vpack.c.bf16 %v8090_v51, %v8090_v51  ;;  %v8214_v21 = vpack.c.bf16 %v8091_v52, %v8091_v52  ;;  %v12381_v40 = vld [vmem:[%s15249_s7 + $0xa0] ss:$8 sps:$4 sm:$0xff]   ;;  %v12386_v22 = vld [vmem:[%s15249_s7 + $0xb4] ss:$8 sps:$4 sm:$0xff]   ;;  %v12384_v0 = vld [vmem:[%s15249_s7 + $0xb0] ss:$8 sps:$4 sm:$0xff]  }
 0xf7c   :  { %v8215_v24 = vpack.c.bf16 %v8092_v4, %v8092_v4  ;;  %v8216_v44 = vpack.c.bf16 %v8093_v54, %v8093_v54  ;;  %v8217_v6 = vpack.c.bf16 %v8094_v41, %v8094_v41  ;;  %v8247_v46 = vunpack.c.l.b16 %v8210_v39  ;;  %v12389_v3 = vld [vmem:[%s15249_s7 + $0xc4] ss:$8 sps:$4 sm:$0xff]   ;;  %v12387_v63 = vld [vmem:[%s15249_s7 + $0xc0] ss:$8 sps:$4 sm:$0xff]   ;;  %v12392_v11 = vld [vmem:[%s15249_s7 + $0xd4] ss:$8 sps:$4 sm:$0xff]  }
 0xf7d   :  { %v8248_v12 = vunpack.c.l.b16 %v8211_v1  ;;  %v8249_v45 = vunpack.c.l.b16 %v8212_v32  ;;  %v8250_v23 = vunpack.c.l.b16 %v8213_v35  ;;  %v8251_v50 = vunpack.c.l.b16 %v8214_v21  ;;  %v12390_v51 = vld [vmem:[%s15249_s7 + $0xd0] ss:$8 sps:$4 sm:$0xff]   ;;  %v12395_v52 = vld [vmem:[%s15249_s7 + $0xe4] ss:$8 sps:$4 sm:$0xff]   ;;  %v12393_v4 = vld [vmem:[%s15249_s7 + $0xe0] ss:$8 sps:$4 sm:$0xff]  }
 0xf7e   :  { %v8252_v7 = vunpack.c.l.b16 %v8215_v24  ;;  %v8253_v30 = vunpack.c.l.b16 %v8216_v44  ;;  %v8254_v59 = vunpack.c.l.b16 %v8217_v6  ;;  %v12398_v54 = vld [vmem:[%s15249_s7 + $0xf4] ss:$8 sps:$4 sm:$0xff]   ;;  %v12396_v41 = vld [vmem:[%s15249_s7 + $0xf0] ss:$8 sps:$4 sm:$0xff]   ;;  %v12401_v39 = vld [vmem:[%s15249_s7 + $0x104] ss:$8 sps:$4 sm:$0xff]  }
 0xf7f   :  { %v8255_v56 = vrot.slane %v8248_v12, 7  ;;  %v8257_v47 = vrot.slane %v8249_v45, 6  ;;  %v8259_v58 = vrot.slane %v8250_v23, 5  ;;  %v8261_v26 = vrot.slane %v8251_v50, 4  ;;  %v12447_v1 = vld [vmem:[%s15250_s10 + $0x40] sm:$0xff]   ;;  %v12449_v35 = vld [vmem:[%s15250_s10 + $0x48] sm:$0xff]  }
 0xf80   :  { %v8263_v34 = vrot.slane %v8252_v7, 3  ;;  %v8265_v2 = vrot.slane %v8253_v30, 2  ;;  %v8267_v5 = vrot.slane %v8254_v59, 1  ;;  %v12448_v32 = vld [vmem:[%s15250_s10] sm:$0xff]   ;;  %11089 = vmatprep.subr.bf16.mxu0 %v12447_v1  ;;  %v12450_v21 = vld [vmem:[%s15250_s10 + $0x8] sm:$0xff]   ;;  %v12451_v24 = vld [vmem:[%s15250_s10 + $0x50] sm:$0xff]   ;;  %v8219_v7 = vlaneseq }
 0xf81   :  { %v8256_v25 = vsel %vm6225_vm5, %v8255_v56, %v8247_v46  ;;  %v12452_v44 = vld [vmem:[%s15250_s10 + $0x10] sm:$0xff]   ;;  %v12453_v6 = vld [vmem:[%s15250_s10 + $0x58] sm:$0xff]   ;;  %v12455_v45 = vld [vmem:[%s15250_s10 + $0x60] sm:$0xff]  }
 0xf82   :  { %v8258_v60 = vsel %vm6227_vm6, %v8257_v47, %v8256_v25  ;;  %v12454_v12 = vld [vmem:[%s15250_s10 + $0x18] sm:$0xff]   ;;  %v12456_v23 = vld [vmem:[%s15250_s10 + $0x20] sm:$0xff]   ;;  %v12457_v50 = vld [vmem:[%s15250_s10 + $0x68] sm:$0xff]   ;;  %v14999_v56 = vshrl.u32 %v8219_v7, 7 }
 0xf83   :  { %v8260_v61 = vsel %vm6229_vm7, %v8259_v58, %v8258_v60  ;;  %v12458_v46 = vld [vmem:[%s15250_s10 + $0x28] sm:$0xff]   ;;  %v15005_v30 = vld [vmem:[%s15251_s11] sm:$0xf]  ;;  %v12459_v7 = vld [vmem:[%s15250_s10 + $0x70] sm:$0xff]  }
 0xf84   :  { %v8262_v29 = vsel %vm6231_vm8, %v8261_v26, %v8260_v61  ;;  %v15002_v47 = vsub.s32 0, %v14999_v56  ;;  %v15008_v59 = vsub.s32 1, %v14999_v56  ;;  %v8233_v25 = vsub.s32 3, %v14999_v56  ;;  %v12435_v1 = vld [vmem:[%s15249_s7 + $0x1c0] ss:$8 sps:$4 sm:$0xff]  }
 0xf85   :  { %v8264_v37 = vsel %vm6233_vm9, %v8263_v34, %v8262_v29 }
 0xf86   :  { %v8266_v57 = vsel %vm6235_vm10, %v8265_v2, %v8264_v37  ;;  %v8222_v58 = vrot.slane %v15005_v30, %v15002_v47  ;;  %v8226_v60 = vrot.slane %v15005_v30, %v15008_v59  ;;  %v8234_v26 = vrot.slane %v15005_v30, %v8233_v25 }
 0xf87   :  { %v8268_v8 = vsel %vm6237_vm11, %v8267_v5, %v8266_v57 }
 0xf88   :  { %v8269_v10 = vpack.c.b16 %v8268_v8, %v8268_v8 }
 0xf8a   :  { %10405 = vmatmul.mubr.msk.bf16.vlgmr.msra.gmra.mrb[176].mxu1 %vm1376_vm3, %v8269_v10  ;;  %10406 = vmatmul.mubr.msk.bf16.vlgmr.msra.gmra.mrb[156].mxu0 %vm1376_vm3, %v8269_v10 }
 0xf8b   :  { %8775 = vmatpush1.bf16.msra.mxu1 %v12351_v9  ;;  %11090 = vmatpush3.bf16.msra.mxu0 %v12448_v32  ;;  %v8229_v32 = vsub.s32 2, %v14999_v56 }
 0xf8c   :  { %8776 = vmatprep.subr.bf16.mxu1 %v12356_v55  ;;  %11091 = vmatprep.subr.bf16.mxu0 %v12449_v35  ;;  %v12440_v35 = vld [vmem:[%s15249_s7 + $0x1d4] ss:$8 sps:$4 sm:$0xff]  }
 0xf8f   :  { %8777 = vmatpush1.bf16.msra.mxu1 %v12354_v36  ;;  %11092 = vmatpush3.bf16.msra.mxu0 %v12450_v21  ;;  %v12438_v21 = vld [vmem:[%s15249_s7 + $0x1d0] ss:$8 sps:$4 sm:$0xff]  }
 0xf90   :  { %8778 = vmatprep.subr.bf16.mxu1 %v12359_v13  ;;  %11093 = vmatprep.subr.bf16.mxu0 %v12451_v24  ;;  %v8230_v24 = vrot.slane %v15005_v30, %v8229_v32  ;;  %v12460_v30 = vld [vmem:[%s15250_s10 + $0x30] sm:$0xff]  }
 0xf93   :  { %8779 = vmatpush1.bf16.msra.mxu1 %v12357_v42  ;;  %11094 = vmatpush3.bf16.msra.mxu0 %v12452_v44  ;;  %v12443_v44 = vld [vmem:[%s15249_s7 + $0x1e4] ss:$8 sps:$4 sm:$0xff]  }
 0xf94   :  { %8780 = vmatprep.subr.bf16.mxu1 %v12362_v48  ;;  %11095 = vmatprep.subr.bf16.mxu0 %v12453_v6  ;;  %v12441_v6 = vld [vmem:[%s15249_s7 + $0x1e0] ss:$8 sps:$4 sm:$0xff]  }
 0xf97   :  { %8781 = vmatpush1.bf16.msra.mxu1 %v12360_v16  ;;  %11096 = vmatpush3.bf16.msra.mxu0 %v12454_v12  ;;  %v12399_v16 = vld [vmem:[%s15249_s7 + $0x100] ss:$8 sps:$4 sm:$0xff]  }
 0xf98   :  { %8782 = vmatprep.subr.bf16.mxu1 %v12365_v53  ;;  %11097 = vmatprep.subr.bf16.mxu0 %v12455_v45  ;;  %v12446_v45 = vld [vmem:[%s15249_s7 + $0x1f4] ss:$8 sps:$4 sm:$0xff]  }
 0xf9b   :  { %8783 = vmatpush1.bf16.msra.mxu1 %v12363_v62  ;;  %11098 = vmatpush3.bf16.msra.mxu0 %v12456_v23  ;;  %v12404_v62 = vld [vmem:[%s15249_s7 + $0x114] ss:$8 sps:$4 sm:$0xff]   ;;  %v12444_v23 = vld [vmem:[%s15249_s7 + $0x1f0] ss:$8 sps:$4 sm:$0xff]  }
 0xf9c   :  { %8784 = vmatprep.subr.bf16.mxu1 %v12368_v43  ;;  %11099 = vmatprep.subr.bf16.mxu0 %v12457_v50 }
 0xf9f   :  { %8785 = vmatpush1.bf16.msra.mxu1 %v12366_v18  ;;  %11100 = vmatpush3.bf16.msra.mxu0 %v12458_v46  ;;  %v12402_v18 = vld [vmem:[%s15249_s7 + $0x110] ss:$8 sps:$4 sm:$0xff]  }
 0xfa0   :  { %8786 = vmatprep.subr.bf16.mxu1 %v12371_v19  ;;  %v12407_v19 = vld [vmem:[%s15249_s7 + $0x124] ss:$8 sps:$4 sm:$0xff]   ;;  %11101 = vmatprep.subr.bf16.mxu0 %v12459_v7  ;;  %v12522_v7 = vld [vmem:[%s15254_s18 + $0xb4] ss:$8 sps:$4 sm:$0xff]  }
 0xfa3   :  { %8787 = vmatpush1.bf16.msra.mxu1 %v12369_v20  ;;  %v12405_v20 = vld [vmem:[%s15249_s7 + $0x120] ss:$8 sps:$4 sm:$0xff]   ;;  %11102 = vmatpush3.bf16.msra.mxu0 %v12460_v30  ;;  %v12520_v30 = vld [vmem:[%s15254_s18 + $0xb0] ss:$8 sps:$4 sm:$0xff]  }
 0xfa4   :  { %8788 = vmatprep.subr.bf16.mxu1 %v12374_v33  ;;  %v12410_v33 = vld [vmem:[%s15249_s7 + $0x134] ss:$8 sps:$4 sm:$0xff]  }
 0xfa7   :  { %8789 = vmatpush1.bf16.msra.mxu1 %v12372_v49  ;;  %v12408_v49 = vld [vmem:[%s15249_s7 + $0x130] ss:$8 sps:$4 sm:$0xff]  }
 0xfa8   :  { %8790 = vmatprep.subr.bf16.mxu1 %v12377_v14  ;;  %v12413_v14 = vld [vmem:[%s15249_s7 + $0x144] ss:$8 sps:$4 sm:$0xff]  }
 0xfab   :  { %8791 = vmatpush1.bf16.msra.mxu1 %v12375_v27  ;;  %v12411_v27 = vld [vmem:[%s15249_s7 + $0x140] ss:$8 sps:$4 sm:$0xff]  }
 0xfac   :  { %8792 = vmatprep.subr.bf16.mxu1 %v12380_v28  ;;  %v12416_v28 = vld [vmem:[%s15249_s7 + $0x154] ss:$8 sps:$4 sm:$0xff]  }
 0xfaf   :  { %8793 = vmatpush1.bf16.msra.mxu1 %v12378_v31  ;;  %v12414_v31 = vld [vmem:[%s15249_s7 + $0x150] ss:$8 sps:$4 sm:$0xff]  }
 0xfb0   :  { %8794 = vmatprep.subr.bf16.mxu1 %v12383_v38  ;;  %v12419_v38 = vld [vmem:[%s15249_s7 + $0x164] ss:$8 sps:$4 sm:$0xff]  }
 0xfb3   :  { %8795 = vmatpush1.bf16.msra.mxu1 %v12381_v40  ;;  %v12417_v40 = vld [vmem:[%s15249_s7 + $0x160] ss:$8 sps:$4 sm:$0xff]  }
 0xfb4   :  { %8796 = vmatprep.subr.bf16.mxu1 %v12386_v22  ;;  %v12422_v22 = vld [vmem:[%s15249_s7 + $0x174] ss:$8 sps:$4 sm:$0xff]  }
 0xfb7   :  { %8797 = vmatpush1.bf16.msra.mxu1 %v12384_v0  ;;  %v12420_v0 = vld [vmem:[%s15249_s7 + $0x170] ss:$8 sps:$4 sm:$0xff]  }
 0xfb8   :  { %8798 = vmatprep.subr.bf16.mxu1 %v12389_v3  ;;  %v12425_v3 = vld [vmem:[%s15249_s7 + $0x184] ss:$8 sps:$4 sm:$0xff]  }
 0xfbb   :  { %8799 = vmatpush1.bf16.msra.mxu1 %v12387_v63  ;;  %v12423_v63 = vld [vmem:[%s15249_s7 + $0x180] ss:$8 sps:$4 sm:$0xff]  }
 0xfbc   :  { %8800 = vmatprep.subr.bf16.mxu1 %v12392_v11  ;;  %v12428_v11 = vld [vmem:[%s15249_s7 + $0x194] ss:$8 sps:$4 sm:$0xff]  }
 0xfbf   :  { %8801 = vmatpush1.bf16.msra.mxu1 %v12390_v51  ;;  %v12426_v51 = vld [vmem:[%s15249_s7 + $0x190] ss:$8 sps:$4 sm:$0xff]  }
 0xfc0   :  { %8802 = vmatprep.subr.bf16.mxu1 %v12395_v52  ;;  %v12431_v52 = vld [vmem:[%s15249_s7 + $0x1a4] ss:$8 sps:$4 sm:$0xff]  }
 0xfc3   :  { %8803 = vmatpush1.bf16.msra.mxu1 %v12393_v4  ;;  %v12429_v4 = vld [vmem:[%s15249_s7 + $0x1a0] ss:$8 sps:$4 sm:$0xff]  }
 0xfc4   :  { %8804 = vmatprep.subr.bf16.mxu1 %v12398_v54  ;;  %v12434_v54 = vld [vmem:[%s15249_s7 + $0x1b4] ss:$8 sps:$4 sm:$0xff]  }
 0xfc7   :  { %8805 = vmatpush1.bf16.msra.mxu1 %v12396_v41  ;;  %v12432_v41 = vld [vmem:[%s15249_s7 + $0x1b0] ss:$8 sps:$4 sm:$0xff]  }
 0xfc8   :  { %8815 = vmatprep.subr.bf16.mxu1 %v12401_v39  ;;  %v12437_v39 = vld [vmem:[%s15249_s7 + $0x1c4] ss:$8 sps:$4 sm:$0xff]  }
0x105d   :  { %v8387_v61 = vpop.f32.mrb[176].mxu1  ;;  %v15018_v34 = vpop.f32.mrb[156].mxu0 }
0x105e   :  { %v8388_v29 = vadd.f32 %v8387_v61, %v8222_v58  ;;  %v8389_v2 = vpop.f32.mrb[177].mxu1  ;;  %v8430_v37 = vpop.f32.mrb[157].mxu0  ;;  %v8429_v12 = vadd.f32 %v15018_v34, %v8230_v24  ;;  %v12461_v58 = vld [vmem:[%s15250_s10 + $0x78] sm:$0xff]   ;;  %v8176_v61 = vld [vmem:[%s15253_s16] sm:$0x3] }
0x105f   :  { %v8390_v5 = vadd.f32 %v8389_v2, %v8226_v60  ;;  %v8431_v57 = vadd.f32 %v8430_v37, %v8234_v26  ;;  %v8391_v8 = vpop.f32.mrb[178].mxu1  ;;  %v8432_v9 = vpop.f32.mrb[158].mxu0  ;;  %v12462_v60 = vld [vmem:[%s15250_s10 + $0x38] sm:$0xff]   ;;  %11103 = vmatprep.subr.bf16.mxu0 %v12461_v58  ;;  %v12465_v26 = vld [vmem:[%s15252_s15 + $0x4] ss:$16 sps:$4 sm:$0xff]   ;;  %v8447_v34 = vrot.slane %v8176_v61, %v15002_v47 }
0x1060   :  { %v8435_v10 = vmax.f32 %v8388_v29, 0.0  ;;  %v8392_v55 = vpop.f32.mrb[179].mxu1  ;;  %v8433_v36 = vpop.f32.mrb[159].mxu0  ;;  %v8437_v50 = vmax.f32 %v8429_v12, 0.0  ;;  %11104 = vmatpush3.bf16.msra.mxu0 %v12462_v60  ;;  %v8451_v29 = vrot.slane %v8176_v61, %v15008_v59  ;;  %v12510_v24 = vld [vmem:[%s15254_s18 + $0x74] ss:$8 sps:$4 sm:$0xff]  }
0x1061   :  { %v8436_v13 = vmax.f32 %v8390_v5, 0.0  ;;  %v8438_v42 = vmax.f32 %v8431_v57, 0.0  ;;  %9223 = vmatprep.subr.bf16.mxu0 %v12465_v26  ;;  %v12511_v12 = vld [vmem:[%s15254_s18 + $0x80] ss:$8 sps:$4 sm:$0xff]   ;;  %v12525_v60 = vld [vmem:[%s15254_s18 + $0xc4] ss:$8 sps:$4 sm:$0xff]  }
0x1062   :  { %v8439_v53 = vpack.c.bf16 %v8435_v10, %v8435_v10  ;;  %v8441_v46 = vpack.c.bf16 %v8437_v50, %v8437_v50  ;;  %v12519_v50 = vld [vmem:[%s15254_s18 + $0xa4] ss:$8 sps:$4 sm:$0xff]   ;;  %v12523_v58 = vld [vmem:[%s15254_s18 + $0xc0] ss:$8 sps:$4 sm:$0xff]   ;;  %v12528_v26 = vld [vmem:[%s15254_s18 + $0xd4] ss:$8 sps:$4 sm:$0xff]  }
0x1063   :  { %v8440_v48 = vpack.c.bf16 %v8436_v13, %v8436_v13  ;;  %v8442_v43 = vpack.c.bf16 %v8438_v42, %v8438_v42  ;;  %v12463_v13 = vld [vmem:[%s15252_s15] ss:$16 sps:$4 sm:$0xff]  }
0x1064   :  { %v12526_v61 = vld [vmem:[%s15254_s18 + $0xd0] ss:$8 sps:$4 sm:$0xff]  }
0x1065   :  { %8806 = vmatprep.mubr.bf16.mxu1 %v8440_v48  ;;  %v12468_v48 = vld [vmem:[%s15252_s15 + $0x24] ss:$16 sps:$4 sm:$0xff]  }
0x1066   :  { %8807 = vmatmul.mubr.bf16.vlgmr.msra.gmra.mrb[180].mxu1 %v8439_v53  ;;  %v12471_v53 = vld [vmem:[%s15252_s15 + $0x44] ss:$16 sps:$4 sm:$0xff]  }
0x1067   :  { %8816 = vmatpush1.bf16.msra.mxu1 %v12399_v16  ;;  %8847 = vmatprep.mubr.bf16.mxu1 %v8442_v43  ;;  %v12466_v16 = vld [vmem:[%s15252_s15 + $0x20] ss:$16 sps:$4 sm:$0xff]  }
0x1068   :  { %8817 = vmatprep.subr.bf16.mxu1 %v12404_v62  ;;  %v10337_v62 = vld [vmem:[%s15247_s2 + $0x1] ss:$0 sm:$0xff] }
0x1069   :  { %v12469_v43 = vld [vmem:[%s15252_s15 + $0x40] ss:$16 sps:$4 sm:$0xff]  }
0x106b   :  { %8818 = vmatpush1.bf16.msra.mxu1 %v12402_v18  ;;  %v7741_v18 = vadd.f32 %v10337_v62, %v14890_v15  ;;  %v12478_v15 = vld [vmem:[%s15252_s15 + $0x28] ss:$16 sps:$4 sm:$0xff]  }
0x106c   :  { %8819 = vmatprep.subr.bf16.mxu1 %v12407_v19  ;;  %v12474_v19 = vld [vmem:[%s15252_s15 + $0x64] ss:$16 sps:$4 sm:$0xff]   ;;  %v12594_v62 = vld [vmem:[%s12895_s4 + $0x28] sm:$0xff]  }
0x106f   :  { %8820 = vmatpush1.bf16.msra.mxu1 %v12405_v20  ;;  %v12472_v20 = vld [vmem:[%s15252_s15 + $0x60] ss:$16 sps:$4 sm:$0xff]  }
0x1070   :  { %8821 = vmatprep.subr.bf16.mxu1 %v12410_v33  ;;  %v7746_v33 = vmax.f32 %v7741_v18, 0.0  ;;  %v10471_v18 = vld [vmem:[%s15255_s22] ss:$0 sm:$0xff] }
0x1073   :  { %8822 = vmatpush1.bf16.msra.mxu1 %v12408_v49  ;;  %v12477_v49 = vld [vmem:[%s15252_s15 + $0xc] ss:$16 sps:$4 sm:$0xff]  }
0x1074   :  { %8823 = vmatprep.subr.bf16.mxu1 %v12413_v14  ;;  %v12475_v14 = vld [vmem:[%s15252_s15 + $0x8] ss:$16 sps:$4 sm:$0xff]  }
0x1077   :  { %8824 = vmatpush1.bf16.msra.mxu1 %v12411_v27  ;;  %v9118_v27 = vpack.c.bf16 %v7746_v33, %v7746_v33 }
0x1078   :  { %8825 = vmatprep.subr.bf16.mxu1 %v12416_v28  ;;  %v12480_v28 = vld [vmem:[%s15252_s15 + $0x2c] ss:$16 sps:$4 sm:$0xff]  }
0x107b   :  { %8826 = vmatpush1.bf16.msra.mxu1 %v12414_v31  ;;  %v12483_v31 = vld [vmem:[%s15252_s15 + $0x4c] ss:$16 sps:$4 sm:$0xff]  }
0x107c   :  { %8827 = vmatprep.subr.bf16.mxu1 %v12419_v38  ;;  %v12481_v38 = vld [vmem:[%s15252_s15 + $0x48] ss:$16 sps:$4 sm:$0xff]  }
0x107f   :  { %8828 = vmatpush1.bf16.msra.mxu1 %v12417_v40  ;;  %v12486_v40 = vld [vmem:[%s15252_s15 + $0x6c] ss:$16 sps:$4 sm:$0xff]  }
0x1080   :  { %8829 = vmatprep.subr.bf16.mxu1 %v12422_v22  ;;  %v12484_v22 = vld [vmem:[%s15252_s15 + $0x68] ss:$16 sps:$4 sm:$0xff]  }
0x1083   :  { %8830 = vmatpush1.bf16.msra.mxu1 %v12420_v0  ;;  %v12489_v0 = vld [vmem:[%s15254_s18 + $0x4] ss:$8 sps:$4 sm:$0xff]  }
0x1084   :  { %8831 = vmatprep.subr.bf16.mxu1 %v12425_v3  ;;  %v12487_v3 = vld [vmem:[%s15254_s18] ss:$8 sps:$4 sm:$0xff]  }
0x1087   :  { %8832 = vmatpush1.bf16.msra.mxu1 %v12423_v63  ;;  %v12490_v63 = vld [vmem:[%s15254_s18 + $0x10] ss:$8 sps:$4 sm:$0xff]  }
0x1088   :  { %8833 = vmatprep.subr.bf16.mxu1 %v12428_v11  ;;  %v12495_v11 = vld [vmem:[%s15254_s18 + $0x24] ss:$8 sps:$4 sm:$0xff]  }
0x108b   :  { %8834 = vmatpush1.bf16.msra.mxu1 %v12426_v51  ;;  %v12493_v51 = vld [vmem:[%s15254_s18 + $0x20] ss:$8 sps:$4 sm:$0xff]  }
0x108c   :  { %8835 = vmatprep.subr.bf16.mxu1 %v12431_v52  ;;  %v12498_v52 = vld [vmem:[%s15254_s18 + $0x34] ss:$8 sps:$4 sm:$0xff]  }
0x108f   :  { %8836 = vmatpush1.bf16.msra.mxu1 %v12429_v4  ;;  %v12496_v4 = vld [vmem:[%s15254_s18 + $0x30] ss:$8 sps:$4 sm:$0xff]  }
0x1090   :  { %8837 = vmatprep.subr.bf16.mxu1 %v12434_v54  ;;  %v12501_v54 = vld [vmem:[%s15254_s18 + $0x44] ss:$8 sps:$4 sm:$0xff]  }
0x1093   :  { %8838 = vmatpush1.bf16.msra.mxu1 %v12432_v41  ;;  %v12499_v41 = vld [vmem:[%s15254_s18 + $0x40] ss:$8 sps:$4 sm:$0xff]  }
0x1094   :  { %8839 = vmatprep.subr.bf16.mxu1 %v12437_v39  ;;  %v12504_v39 = vld [vmem:[%s15254_s18 + $0x54] ss:$8 sps:$4 sm:$0xff]  }
0x1097   :  { %8840 = vmatpush1.bf16.msra.mxu1 %v12435_v1  ;;  %v12502_v1 = vld [vmem:[%s15254_s18 + $0x50] ss:$8 sps:$4 sm:$0xff]  }
0x1098   :  { %8841 = vmatprep.subr.bf16.mxu1 %v12440_v35  ;;  %v12507_v35 = vld [vmem:[%s15254_s18 + $0x64] ss:$8 sps:$4 sm:$0xff]  }
0x109b   :  { %8842 = vmatpush1.bf16.msra.mxu1 %v12438_v21  ;;  %v12505_v21 = vld [vmem:[%s15254_s18 + $0x60] ss:$8 sps:$4 sm:$0xff]  }
0x109c   :  { %8843 = vmatprep.subr.bf16.mxu1 %v12443_v44  ;;  %v12508_v44 = vld [vmem:[%s15254_s18 + $0x70] ss:$8 sps:$4 sm:$0xff]  }
0x109f   :  { %8844 = vmatpush1.bf16.msra.mxu1 %v12441_v6  ;;  %v12513_v6 = vld [vmem:[%s15254_s18 + $0x84] ss:$8 sps:$4 sm:$0xff]  }
0x10a0   :  { %8845 = vmatprep.subr.bf16.mxu1 %v12446_v45  ;;  %v12516_v45 = vld [vmem:[%s15254_s18 + $0x94] ss:$8 sps:$4 sm:$0xff]  }
0x10a3   :  { %8846 = vmatpush1.bf16.msra.mxu1 %v12444_v23  ;;  %v12514_v23 = vld [vmem:[%s15254_s18 + $0x90] ss:$8 sps:$4 sm:$0xff]  }
0x10a6   :  { %8848 = vmatmul.mubr.bf16.vlgmr.msra.gmra.mrb[180].mxu1 %v8441_v46  ;;  %v12517_v46 = vld [vmem:[%s15254_s18 + $0xa0] ss:$8 sps:$4 sm:$0xff]  }
0x1179   :  { %v8849_v2 = vpop.f32.mrb[180].mxu1 }
0x117a   :  { %v12177_v37 = vadd.f32 %v8849_v2, %v8447_v34  ;;  %v8851_v5 = vpop.f32.mrb[181].mxu1  ;;  %v12531_v34 = vld [vmem:[%s15254_s18 + $0xe4] ss:$8 sps:$4 sm:$0xff]   ;;  %v12534_v2 = vld [vmem:[%s15254_s18 + $0xf4] ss:$8 sps:$4 sm:$0xff]  }
0x117b   :  { %v12178_v57 = vadd.f32 %v8851_v5, %v8451_v29  ;;  %v8853_v8 = vpop.f32.mrb[182].mxu1  ;;  %v12529_v29 = vld [vmem:[%s15254_s18 + $0xe0] ss:$8 sps:$4 sm:$0xff]   ;;  %v12537_v5 = vld [vmem:[%s15254_s18 + $0x104] ss:$8 sps:$4 sm:$0xff]  }
0x117c   :  { %v8856_v9 = vmax.f32 %v12177_v37, 0.0  ;;  %v8854_v10 = vpop.f32.mrb[183].mxu1  ;;  %v12532_v37 = vld [vmem:[%s15254_s18 + $0xf0] ss:$8 sps:$4 sm:$0xff]   ;;  %v12584_v8 = vld [vmem:[%s12895_s4] sm:$0xff]  }
0x117d   :  { %v8857_v55 = vmax.f32 %v12178_v57, 0.0  ;;  %v12583_v57 = vld [vmem:[%s12895_s4 + $0x40] sm:$0xff]   ;;  %v12586_v10 = vld [vmem:[%s12895_s4 + $0x8] sm:$0xff]  }
0x117e   :  { %v8858_v42 = vpack.c.bf16 %v8856_v9, %v8856_v9  ;;  %v12585_v9 = vld [vmem:[%s12895_s4 + $0x48] sm:$0xff]   ;;  %11111 = vmatprep.subr.bf16.mxu1 %v12583_v57 }
0x117f   :  { %v8859_v36 = vpack.c.bf16 %v8857_v55, %v8857_v55  ;;  %11112 = vmatpush3.bf16.msra.mxu1 %v12584_v8  ;;  %v12587_v55 = vld [vmem:[%s12895_s4 + $0x50] sm:$0xff]   ;;  %v12565_v57 = vld [vmem:[%s15254_s18 + $0x1a0] ss:$8 sps:$4 sm:$0xff]  }
0x1180   :  { %11113 = vmatprep.subr.bf16.mxu1 %v12585_v9  ;;  %v12570_v8 = vld [vmem:[%s15254_s18 + $0x1b4] ss:$8 sps:$4 sm:$0xff]   ;;  %v12568_v9 = vld [vmem:[%s15254_s18 + $0x1b0] ss:$8 sps:$4 sm:$0xff]  }
0x1181   :  { %8994 = vmatprep.mubr.bf16.mxu0 %v8859_v36  ;;  %v12588_v36 = vld [vmem:[%s12895_s4 + $0x10] sm:$0xff]  }
0x1182   :  { %8995 = vmatmul.mubr.bf16.vlgmr.msra.gmra.mrb[160].mxu0 %v8858_v42  ;;  %v12590_v42 = vld [vmem:[%s12895_s4 + $0x18] sm:$0xff]  }
0x1183   :  { %9224 = vmatpush1.bf16.msra.mxu0 %v12463_v13  ;;  %9255 = vmatprep.mubr.bf16.mxu0 %v12680_v17  ;;  %v12589_v13 = vld [vmem:[%s12895_s4 + $0x58] sm:$0xff]  }
0x1184   :  { %9225 = vmatprep.subr.bf16.mxu0 %v12468_v48  ;;  %11114 = vmatpush3.bf16.msra.mxu1 %v12586_v10  ;;  %v12591_v48 = vld [vmem:[%s12895_s4 + $0x60] sm:$0xff]  }
0x1185   :  { %11115 = vmatprep.subr.bf16.mxu1 %v12587_v55  ;;  %v12573_v10 = vld [vmem:[%s15254_s18 + $0x1c4] ss:$8 sps:$4 sm:$0xff]   ;;  %v12571_v55 = vld [vmem:[%s15254_s18 + $0x1c0] ss:$8 sps:$4 sm:$0xff]  }
0x1187   :  { %9226 = vmatpush1.bf16.msra.mxu0 %v12466_v16  ;;  %v12592_v16 = vld [vmem:[%s12895_s4 + $0x20] sm:$0xff]  }
0x1188   :  { %9227 = vmatprep.subr.bf16.mxu0 %v12471_v53  ;;  %11116 = vmatpush3.bf16.msra.mxu1 %v12588_v36  ;;  %v12593_v53 = vld [vmem:[%s12895_s4 + $0x68] sm:$0xff]   ;;  %v12576_v36 = vld [vmem:[%s15254_s18 + $0x1d4] ss:$8 sps:$4 sm:$0xff]  }
0x1189   :  { %11117 = vmatprep.subr.bf16.mxu1 %v12589_v13  ;;  %v12574_v13 = vld [vmem:[%s15254_s18 + $0x1d0] ss:$8 sps:$4 sm:$0xff]  }
0x118b   :  { %9228 = vmatpush1.bf16.msra.mxu0 %v12469_v43 }
0x118c   :  { %9229 = vmatprep.subr.bf16.mxu0 %v12474_v19  ;;  %11118 = vmatpush3.bf16.msra.mxu1 %v12590_v42  ;;  %v12579_v42 = vld [vmem:[%s15254_s18 + $0x1e4] ss:$8 sps:$4 sm:$0xff]  }
0x118d   :  { %11119 = vmatprep.subr.bf16.mxu1 %v12591_v48  ;;  %v12577_v48 = vld [vmem:[%s15254_s18 + $0x1e0] ss:$8 sps:$4 sm:$0xff]  }
0x118f   :  { %9230 = vmatpush1.bf16.msra.mxu0 %v12472_v20 }
0x1190   :  { %9264 = vmatprep.subr.bf16.mxu0 %v12477_v49  ;;  %11120 = vmatpush3.bf16.msra.mxu1 %v12592_v16  ;;  %v12582_v16 = vld [vmem:[%s15254_s18 + $0x1f4] ss:$8 sps:$4 sm:$0xff]  }
0x1191   :  { %11121 = vmatprep.subr.bf16.mxu1 %v12593_v53  ;;  %v12580_v53 = vld [vmem:[%s15254_s18 + $0x1f0] ss:$8 sps:$4 sm:$0xff]  }
0x1192   :  { %10504 = vmatmul.mubr.msk.bf16.vlgmr.msra.gmra.mrb[164].mxu0 %vm1376_vm3, %v9118_v27 }
0x1193   :  { %9265 = vmatpush1.bf16.msra.mxu0 %v12475_v14  ;;  %9296 = vmatprep.mubr.bf16.mxu0 %v12680_v17  ;;  %v12492_v17 = vld [vmem:[%s15254_s18 + $0x14] ss:$8 sps:$4 sm:$0xff]  }
0x1194   :  { %9266 = vmatprep.subr.bf16.mxu0 %v12480_v28  ;;  %11122 = vmatpush3.bf16.msra.mxu1 %v12594_v62 }
0x1197   :  { %9267 = vmatpush1.bf16.msra.mxu0 %v12478_v15 }
0x1198   :  { %9268 = vmatprep.subr.bf16.mxu0 %v12483_v31 }
0x119b   :  { %9269 = vmatpush1.bf16.msra.mxu0 %v12481_v38 }
0x119c   :  { %9270 = vmatprep.subr.bf16.mxu0 %v12486_v40 }
0x119f   :  { %9271 = vmatpush1.bf16.msra.mxu0 %v12484_v22 }
0x11a0   :  { %9644 = vmatprep.subr.bf16.mxu0 %v12489_v0 }
0x11a2   :  { %10505 = vmatmul.mubr.msk.bf16.vlgmr.msra.gmra.mrb[168].mxu0 %vm1376_vm3, %v9118_v27  ;;  %v9019_v27 = vld [vmem:[%s15256_s23] sm:$0xf] }
0x11a3   :  { %9645 = vmatpush1.bf16.msra.mxu0 %v12487_v3  ;;  %v9123_v28 = vrot.slane %v9019_v27, %v15002_v47  ;;  %v9127_v15 = vrot.slane %v9019_v27, %v15008_v59 }
0x11a4   :  { %9646 = vmatprep.subr.bf16.mxu0 %v12492_v17 }
0x11a7   :  { %9647 = vmatpush1.bf16.msra.mxu0 %v12490_v63 }
0x11a8   :  { %9648 = vmatprep.subr.bf16.mxu0 %v12495_v11 }
0x11ab   :  { %9649 = vmatpush1.bf16.msra.mxu0 %v12493_v51  ;;  %v12535_v51 = vld [vmem:[%s15254_s18 + $0x100] ss:$8 sps:$4 sm:$0xff]  }
0x11ac   :  { %9650 = vmatprep.subr.bf16.mxu0 %v12498_v52 }
0x11af   :  { %9651 = vmatpush1.bf16.msra.mxu0 %v12496_v4  ;;  %v12540_v4 = vld [vmem:[%s15254_s18 + $0x114] ss:$8 sps:$4 sm:$0xff]  }
0x11b0   :  { %9652 = vmatprep.subr.bf16.mxu0 %v12501_v54  ;;  %v12538_v54 = vld [vmem:[%s15254_s18 + $0x110] ss:$8 sps:$4 sm:$0xff]  }
0x11b3   :  { %9653 = vmatpush1.bf16.msra.mxu0 %v12499_v41  ;;  %v12543_v41 = vld [vmem:[%s15254_s18 + $0x124] ss:$8 sps:$4 sm:$0xff]  }
0x11b4   :  { %9654 = vmatprep.subr.bf16.mxu0 %v12504_v39  ;;  %v9131_v39 = vrot.slane %v9019_v27, %v8229_v32 }
0x11b7   :  { %9655 = vmatpush1.bf16.msra.mxu0 %v12502_v1  ;;  %v12541_v1 = vld [vmem:[%s15254_s18 + $0x120] ss:$8 sps:$4 sm:$0xff]  }
0x11b8   :  { %9656 = vmatprep.subr.bf16.mxu0 %v12507_v35  ;;  %v9135_v35 = vrot.slane %v9019_v27, %v8233_v25 }
0x11bb   :  { %9657 = vmatpush1.bf16.msra.mxu0 %v12505_v21  ;;  %v12546_v21 = vld [vmem:[%s15254_s18 + $0x134] ss:$8 sps:$4 sm:$0xff]  }
0x11bc   :  { %9658 = vmatprep.subr.bf16.mxu0 %v12510_v24 }
0x11bf   :  { %9659 = vmatpush1.bf16.msra.mxu0 %v12508_v44 }
0x11c0   :  { %9660 = vmatprep.subr.bf16.mxu0 %v12513_v6 }
0x11c3   :  { %9661 = vmatpush1.bf16.msra.mxu0 %v12511_v12 }
0x11c4   :  { %9662 = vmatprep.subr.bf16.mxu0 %v12516_v45 }
0x11c7   :  { %9663 = vmatpush1.bf16.msra.mxu0 %v12514_v23  ;;  %v12544_v23 = vld [vmem:[%s15254_s18 + $0x130] ss:$8 sps:$4 sm:$0xff]  }
0x11c8   :  { %9664 = vmatprep.subr.bf16.mxu0 %v12519_v50  ;;  %v12549_v50 = vld [vmem:[%s15254_s18 + $0x144] ss:$8 sps:$4 sm:$0xff]  }
0x11cb   :  { %9665 = vmatpush1.bf16.msra.mxu0 %v12517_v46  ;;  %v12547_v46 = vld [vmem:[%s15254_s18 + $0x140] ss:$8 sps:$4 sm:$0xff]  }
0x11cc   :  { %9666 = vmatprep.subr.bf16.mxu0 %v12522_v7  ;;  %v12552_v7 = vld [vmem:[%s15254_s18 + $0x154] ss:$8 sps:$4 sm:$0xff]  }
0x11cf   :  { %9667 = vmatpush1.bf16.msra.mxu0 %v12520_v30  ;;  %v12550_v30 = vld [vmem:[%s15254_s18 + $0x150] ss:$8 sps:$4 sm:$0xff]  }
0x11d0   :  { %9668 = vmatprep.subr.bf16.mxu0 %v12525_v60  ;;  %v12553_v60 = vld [vmem:[%s15254_s18 + $0x160] ss:$8 sps:$4 sm:$0xff]  }
0x11d3   :  { %9669 = vmatpush1.bf16.msra.mxu0 %v12523_v58  ;;  %v12555_v58 = vld [vmem:[%s15254_s18 + $0x164] ss:$8 sps:$4 sm:$0xff]  }
0x11d4   :  { %9670 = vmatprep.subr.bf16.mxu0 %v12528_v26  ;;  %v12558_v26 = vld [vmem:[%s15254_s18 + $0x174] ss:$8 sps:$4 sm:$0xff]  }
0x11d7   :  { %9671 = vmatpush1.bf16.msra.mxu0 %v12526_v61  ;;  %v12556_v61 = vld [vmem:[%s15254_s18 + $0x170] ss:$8 sps:$4 sm:$0xff]  }
0x11d8   :  { %9672 = vmatprep.subr.bf16.mxu0 %v12531_v34  ;;  %v12561_v34 = vld [vmem:[%s15254_s18 + $0x184] ss:$8 sps:$4 sm:$0xff]  }
0x11db   :  { %9673 = vmatpush1.bf16.msra.mxu0 %v12529_v29  ;;  %v12559_v29 = vld [vmem:[%s15254_s18 + $0x180] ss:$8 sps:$4 sm:$0xff]  }
0x11dc   :  { %9674 = vmatprep.subr.bf16.mxu0 %v12534_v2  ;;  %v12564_v2 = vld [vmem:[%s15254_s18 + $0x194] ss:$8 sps:$4 sm:$0xff]  }
0x11df   :  { %9675 = vmatpush1.bf16.msra.mxu0 %v12532_v37  ;;  %v12562_v37 = vld [vmem:[%s15254_s18 + $0x190] ss:$8 sps:$4 sm:$0xff]  }
0x11e0   :  { %9685 = vmatprep.subr.bf16.mxu0 %v12537_v5  ;;  %v12567_v5 = vld [vmem:[%s15254_s18 + $0x1a4] ss:$8 sps:$4 sm:$0xff]  }
0x1255   :  { %v11105_v43 = vpop.f32.mrb[160].mxu0 }
0x1256   :  { %v11106_v19 = vpop.f32.mrb[161].mxu0 }
0x1257   :  { %v11107_v20 = vadd.f32 %v11106_v19, %v11105_v43  ;;  %v11108_v33 = vpop.f32.mrb[162].mxu0  ;;  %v12596_v19 = vld [vmem:[%s12895_s4 + $0x30] sm:$0xff]  }
0x1258   :  { %v11109_v49 = vpop.f32.mrb[163].mxu0  ;;  %v12598_v33 = vld [vmem:[%s12895_s4 + $0x38] sm:$0xff]  }
0x1259   :  { %v8997_v14 = vadd.f32 %v11107_v20, %v10471_v18  ;;  %v12595_v18 = vld [vmem:[%s12895_s4 + $0x70] sm:$0xff]   ;;  %v12597_v20 = vld [vmem:[%s12895_s4 + $0x78] sm:$0xff]   ;;  %s12681_s4 = smov [#allocation2]  }
0x125a   :  { %11123 = vmatprep.subr.bf16.mxu1 %v12595_v18  ;;  %s9881_s26 = sshll.u32 %s12681_s4, 4  ;;  %s9882_s26 = int_to_ptr.vmem [resolvable:$true] %s9881_s26 }
0x125b   :  { %9002 = vst [vmem:[%s12905_s17] sm:$0xff] %v8997_v14  ;;  %s15257_s17 = sld [smem:[#allocation31_spill]]  ;;  %11124 = vmatpush3.bf16.msra.mxu1 %v12596_v19  ;;  %s12609_s0 = scalar_lea.vmem %s9882_s26, 128 }
0x125c   :  { %11125 = vmatprep.subr.bf16.mxu1 %v12597_v20  ;;  %p12610_p0 = scmp.ne.s32.totalorder %s9882_s26, %s12609_s0  ;;  %p12614_p1 = scmp.lt.s32.totalorder %s9882_s26, %s9882_s26 }
0x125d   :  { %p12615_p2 = scmp.lt.s32.totalorder %s12609_s0, %s12609_s0 }
0x125f   :  { %11126 = vmatpush3.bf16.msra.mxu1 %v12598_v33  ;;  %p12616_p3 = por %p12615_p2, %p12614_p1 }
0x1261   :  { %v9084_v49 = vld [vmem:[%s15257_s17] sm:$0x3]  ;;  %p12617_p4 = pnand %p12616_p3, %p12610_p0 }
0x1262   :  { %v9317_v14 = vrot.slane %v9084_v49, %v15002_v47  ;;  %v9321_v27 = vrot.slane %v9084_v49, %v15008_v59 }
0x1265   :  { %v9257_v31 = vpop.f32.mrb[164].mxu0 }
0x1266   :  { %v9258_v38 = vadd.f32 %v9257_v31, %v9123_v28  ;;  %v9259_v40 = vpop.f32.mrb[165].mxu0 }
0x1267   :  { %v9260_v22 = vadd.f32 %v9259_v40, %v9127_v15  ;;  %v9261_v0 = vpop.f32.mrb[166].mxu0 }
0x1268   :  { %v9305_v3 = vmax.f32 %v9258_v38, 0.0  ;;  %v9262_v17 = vpop.f32.mrb[167].mxu0 }
0x1269   :  { %v9306_v63 = vmax.f32 %v9260_v22, 0.0 }
0x126a   :  { %v9309_v52 = vpack.c.bf16 %v9305_v3, %v9305_v3 }
0x126b   :  { %v9310_v11 = vpack.c.bf16 %v9306_v63, %v9306_v63 }
0x126d   :  { %9676 = vmatprep.mubr.bf16.mxu0 %v9310_v11 }
0x126e   :  { %9677 = vmatmul.mubr.bf16.vlgmr.msra.gmra.mrb[172].mxu0 %v9309_v52  ;;  %v10570_v52 = vld [vmem:[%s12900_s21] ss:$0 sm:$0xff] }
0x126f   :  { %9686 = vmatpush1.bf16.msra.mxu0 %v12535_v51 }
0x1270   :  { %9687 = vmatprep.subr.bf16.mxu0 %v12540_v4 }
0x1273   :  { %9688 = vmatpush1.bf16.msra.mxu0 %v12538_v54 }
0x1274   :  { %9689 = vmatprep.subr.bf16.mxu0 %v12543_v41 }
0x1275   :  { %v9298_v24 = vpop.f32.mrb[168].mxu0 }
0x1276   :  { %v9299_v44 = vadd.f32 %v9298_v24, %v9131_v39  ;;  %v9300_v6 = vpop.f32.mrb[169].mxu0 }
0x1277   :  { %v9301_v12 = vadd.f32 %v9300_v6, %v9135_v35  ;;  %9690 = vmatpush1.bf16.msra.mxu0 %v12541_v1  ;;  %v9302_v45 = vpop.f32.mrb[170].mxu0 }
0x1278   :  { %v9303_v32 = vpop.f32.mrb[171].mxu0  ;;  %9691 = vmatprep.subr.bf16.mxu0 %v12546_v21  ;;  %v9307_v62 = vmax.f32 %v9299_v44, 0.0 }
0x1279   :  { %v9308_v56 = vmax.f32 %v9301_v12, 0.0 }
0x127a   :  { %v9311_v43 = vpack.c.bf16 %v9307_v62, %v9307_v62 }
0x127b   :  { %v9312_v25 = vpack.c.bf16 %v9308_v56, %v9308_v56  ;;  %9692 = vmatpush1.bf16.msra.mxu0 %v12544_v23 }
0x127c   :  { %9693 = vmatprep.subr.bf16.mxu0 %v12549_v50 }
0x127d   :  { %9717 = vmatprep.mubr.bf16.mxu0 %v9312_v25 }
0x127f   :  { %9694 = vmatpush1.bf16.msra.mxu0 %v12547_v46 }
0x1280   :  { %9695 = vmatprep.subr.bf16.mxu0 %v12552_v7 }
0x1283   :  { %9696 = vmatpush1.bf16.msra.mxu0 %v12550_v30 }
0x1284   :  { %9697 = vmatprep.subr.bf16.mxu0 %v12555_v58 }
0x1287   :  { %9698 = vmatpush1.bf16.msra.mxu0 %v12553_v60 }
0x1288   :  { %9699 = vmatprep.subr.bf16.mxu0 %v12558_v26 }
0x128b   :  { %9700 = vmatpush1.bf16.msra.mxu0 %v12556_v61 }
0x128c   :  { %9701 = vmatprep.subr.bf16.mxu0 %v12561_v34 }
0x128f   :  { %9702 = vmatpush1.bf16.msra.mxu0 %v12559_v29 }
0x1290   :  { %9703 = vmatprep.subr.bf16.mxu0 %v12564_v2 }
0x1293   :  { %9704 = vmatpush1.bf16.msra.mxu0 %v12562_v37 }
0x1294   :  { %9705 = vmatprep.subr.bf16.mxu0 %v12567_v5 }
0x1297   :  { %9706 = vmatpush1.bf16.msra.mxu0 %v12565_v57 }
0x1298   :  { %9707 = vmatprep.subr.bf16.mxu0 %v12570_v8 }
0x129b   :  { %9708 = vmatpush1.bf16.msra.mxu0 %v12568_v9 }
0x129c   :  { %9709 = vmatprep.subr.bf16.mxu0 %v12573_v10 }
0x129f   :  { %9710 = vmatpush1.bf16.msra.mxu0 %v12571_v55 }
0x12a0   :  { %9711 = vmatprep.subr.bf16.mxu0 %v12576_v36 }
0x12a3   :  { %9712 = vmatpush1.bf16.msra.mxu0 %v12574_v13 }
0x12a4   :  { %9713 = vmatprep.subr.bf16.mxu0 %v12579_v42 }
0x12a7   :  { %9714 = vmatpush1.bf16.msra.mxu0 %v12577_v48 }
0x12a8   :  { %9715 = vmatprep.subr.bf16.mxu0 %v12582_v16 }
0x12ab   :  { %9716 = vmatpush1.bf16.msra.mxu0 %v12580_v53 }
0x12ae   :  { %9718 = vmatmul.mubr.bf16.vlgmr.msra.gmra.mrb[172].mxu0 %v9311_v43 }
0x1381   :  { %v9719_v28 = vpop.f32.mrb[172].mxu0 }
0x1382   :  { %v12179_v15 = vadd.f32 %v9719_v28, %v9317_v14  ;;  %v9721_v31 = vpop.f32.mrb[173].mxu0 }
0x1383   :  { %v12180_v38 = vadd.f32 %v9721_v31, %v9321_v27  ;;  %v9723_v40 = vpop.f32.mrb[174].mxu0 }
0x1384   :  { %v9726_v22 = vmax.f32 %v12179_v15, 0.0  ;;  %v9724_v0 = vpop.f32.mrb[175].mxu0 }
0x1385   :  { %v9727_v3 = vmax.f32 %v12180_v38, 0.0 }
0x1386   :  { %v9728_v63 = vpack.c.bf16 %v9726_v22, %v9726_v22 }
0x1387   :  { %v9729_v17 = vpack.c.bf16 %v9727_v3, %v9727_v3 }
0x1389   :  { %9864 = vmatprep.mubr.bf16.mxu1 %v9729_v17 }
0x138a   :  { %9865 = vmatmul.mubr.bf16.vlgmr.msra.gmra.mrb[184].mxu1 %v9728_v63 }
0x145d   :  { %v11127_v11 = vpop.f32.mrb[184].mxu1 }
0x145e   :  { %v11128_v51 = vpop.f32.mrb[185].mxu1 }
0x145f   :  { %v11129_v47 = vadd.f32 %v11128_v51, %v11127_v11  ;;  %v11130_v4 = vpop.f32.mrb[186].mxu1 }
0x1460   :  { %v11131_v59 = vpop.f32.mrb[187].mxu1 }
0x1461   :  { %v9867_v54 = vadd.f32 %v11129_v47, %v10570_v52 }
0x1463   :  { %9872 = vst [vmem:[#allocation2] sm:$0xff] %v9867_v54 }
0x1464   :  { %12620 = shalt.err (!%p12617_p4)
}
0x1465   :  { %s12621_s5 = scalar_lea.hbm %s12910_s27, 128 }
0x1466   :  { %p12622_p5 = scmp.ne.s32.totalorder %s12910_s27, %s12621_s5  ;;  %p12625_p6 = scmp.lt.u32.totalorder %s12621_s5, %s12910_s27 }
0x1468   :  { %p12627_p7 = pnand %p12625_p6, %p12622_p5 }
0x146a   :  { %12630 = shalt.err (!%p12627_p7)
}
0x146b   :  { %9884 = dma.vmem_to_hbm [thread:$0]  %s9882_s26, 128, %s12910_s27, [#allocation3]  }
0x146c   :  { %12631 = dma.done.wait [#allocation3], 128  }
0x146d   :  { %12632 = vsyncadd [#allocation3], 4294967168 }
0x146e   :  { %9890 = vsyncpa [#allocation3], 1 }

</bundles_post_ra>
